<compile_context>
chip_gen: v7x
topology: tpu7x:2x2x1
jax: 0.10.0
libtpu: 0.0.40
codegen_flags: <defaults>
</compile_context>

<pallas_src>
import functools

import jax
import jax.numpy as jnp
from jax import lax
from jax.experimental import pallas as pl
from jax.experimental.pallas import tpu as pltpu

_EPS = 1e-5


# ----------------------------------------------------------------------------------
# Kernel A: ConvTranspose2d(k=2, s=2, p=0) + bn_deconv + ReLU.
# One grid step handles TH input rows of one image.  Output rows are written in
# "block" order (n, h, dh, w, dw*Cout+c), which is bit-identical to NHWC
# (n, 2h+dh, 2w+dw, c) in row-major memory, so no depth-to-space pass is needed.
#   x_ref : (1, TH, W, Cin)        bf16
#   wd_ref: (2, Cin, 2*Cout)       bf16, [dh] -> cols ordered (dw, c); BN scale folded
#   bd_ref: (1, 2*Cout)            f32 folded BN bias (deconv bias included)
#   o_ref : (1, TH, 2, W, 2*Cout)  bf16
# ----------------------------------------------------------------------------------
def deconv_kernel(x_ref, wd_ref, bd_ref, o_ref):
    _, TH, W, Cin = x_ref.shape
    C2 = wd_ref.shape[2]
    xf = x_ref[0].reshape(TH * W, Cin)                     # (TH*W, Cin) bf16
    for dh in range(2):
        y = jnp.dot(xf, wd_ref[dh], preferred_element_type=jnp.float32)
        y = jnp.maximum(y + bd_ref[...], 0.0)              # bn_deconv + relu
        o_ref[0, :, dh, :, :] = y.reshape(TH, W, C2).astype(o_ref.dtype)


# ----------------------------------------------------------------------------------
# Kernel B: concat + conv1(3x3) + bn1 + relu + conv2(3x3) + bn2 + conv3(1x1) + bn3
#           + residual (out3 + out1 + out2) + relu, fused; one grid step = TR output
#           rows of one image.  The channel concat is folded away by splitting conv1's
#           weight along its input channels.  Each 3x3 conv is ONE im2col matmul
#           (K = 9*C) against a BN-scale-folded weight.
#
# Row halos: tiles need 2 extra source rows on each side (conv1 is computed for TR+2
# rows so conv2's 1-row halo is available without cross-tile communication); those
# rows arrive as thin (2-row) side inputs, so core row tiles never overlap.
#
# Scratch buffers hold the zero-padded sources.  The image interior starts at column
# offset 2 (bf16-packing friendly); only the halo columns are (re)written with zeros.
# ----------------------------------------------------------------------------------
def fused_body_kernel(skip_ref, st_ref, sb_ref, up_ref, ut_ref, ub_ref,
                      w1s_ref, w1u_ref, w2_ref, w3_ref, b1_ref, b2_ref, b3_ref,
                      o_ref, skip_scr, up_scr, t_scr):
    _, TR, W2, _ = skip_ref.shape
    Cout = up_ref.shape[3]
    i = pl.program_id(1)
    last = pl.num_programs(1) - 1

    def stage(scr, top_ref, core_ref, bot_ref):
        # scr: (TR+4, W2+4, C); image col c lives at scr col c+2.
        R, SW, C = scr.shape
        zcol = jnp.zeros((R, 2, C), scr.dtype)
        scr[:, 0:2, :] = zcol                      # only the halo columns are zeroed
        scr[:, SW - 2:SW, :] = zcol
        scr[0:2, 2:2 + W2, :] = top_ref[0, 0]      # 2 halo rows above (zero at border)
        scr[2:2 + TR, 2:2 + W2, :] = core_ref[0]   # core rows
        scr[2 + TR:4 + TR, 2:2 + W2, :] = bot_ref[0, 0]

    stage(skip_scr, st_ref, skip_ref, sb_ref)
    stage(up_scr, ut_ref, up_ref, ub_ref)

    def im2col(scr, nrows):
        # Build the (nrows*W2, 9*C) patch once; K ordered (ky, kx, c) to match weights.
        C = scr.shape[-1]
        cols = []
        for ky in range(3):
            for kx in range(3):
                win = scr[ky:ky + nrows, kx + 1:kx + 1 + W2, :]
                cols.append(win.reshape(nrows * W2, C))
        return jnp.concatenate(cols, axis=-1)

    # conv1 over torch.cat((out_down, up), ch) == conv(skip) + conv(up); one big-K
    # matmul per source (BN1 scale folded into the weights).
    acc1 = jnp.dot(im2col(skip_scr, TR + 2), w1s_ref[...],
                   preferred_element_type=jnp.float32)
    acc1 = acc1 + jnp.dot(im2col(up_scr, TR + 2), w1u_ref[...],
                          preferred_element_type=jnp.float32)
    out1_ext = acc1 + b1_ref[...]                         # bn1; dropout(eval)=identity

    # relu(out1) for TR+2 rows, staged (padded) for conv2.
    t_ext = jnp.maximum(out1_ext, 0.0).astype(t_scr.dtype)
    R2, SW2, _ = t_scr.shape
    zc = jnp.zeros((R2, 2, Cout), t_scr.dtype)
    t_scr[:, 0:2, :] = zc
    t_scr[:, SW2 - 2:SW2, :] = zc
    t_scr[:, 2:2 + W2, :] = t_ext.reshape(TR + 2, W2, Cout)

    # out1 rows that fall outside the image must read as conv2's zero padding.
    @pl.when(i == 0)
    def _():
        t_scr[0:1, :, :] = jnp.zeros((1, SW2, Cout), t_scr.dtype)

    @pl.when(i == last)
    def _():
        t_scr[TR + 1:TR + 2, :, :] = jnp.zeros((1, SW2, Cout), t_scr.dtype)

    out2 = jnp.dot(im2col(t_scr, TR), w2_ref[...],
                   preferred_element_type=jnp.float32) + b2_ref[...]   # conv2 + bn2

    out3 = jnp.dot(out2.astype(w3_ref.dtype), w3_ref[...],
                   preferred_element_type=jnp.float32) + b3_ref[...]   # conv3 + bn3

    out1_core = out1_ext[W2:(TR + 1) * W2, :]             # drop the 2 halo rows
    res = jnp.maximum(out3 + out1_core + out2, 0.0)
    o_ref[0] = res.reshape(TR, W2, Cout).astype(o_ref.dtype)


# ----------------------------------------------------------------------------------
# Wrapper: layout transposes, BN folding into weights, thin halo-row side inputs.
# ----------------------------------------------------------------------------------
def upsampling_forward(params, x_nchw, skip_nchw, *, row_block=8, deconv_rows=8):
    N, Cin, H, W = x_nchw.shape
    Cout = params['deconv_w'].shape[1]
    H2, W2 = 2 * H, 2 * W

    # fold BatchNorm running stats + conv bias into per-channel (scale, bias)
    def fold(bn, conv_b):
        gamma, beta, mean, var = bn
        s = gamma / jnp.sqrt(var + _EPS)
        return s, s * (conv_b - mean) + beta

    sd, bd = fold(params['bn_deconv'], params['deconv_b'])
    s1, b1 = fold(params['bn1'], params['conv1_b'])
    s2, b2 = fold(params['bn2'], params['conv2_b'])
    s3, b3 = fold(params['bn3'], params['conv3_b'])

    # weights: fold BN scale into output channels, re-layout, cast to bf16
    # ConvTranspose2d weight (Cin, Cout, 2, 2) -> (dh, Cin, dw*Cout+c)
    wd = jnp.transpose(params['deconv_w'], (2, 0, 3, 1)).reshape(2, Cin, 2 * Cout)
    wd = (wd * jnp.tile(sd, 2)[None, None, :]).astype(jnp.bfloat16)
    bd2 = jnp.tile(bd, 2)[None, :].astype(jnp.float32)

    def conv3x3_w(w, scale):  # torch (co, ci, 3, 3) -> (9*ci, co), rows (ky, kx, ci)
        ci, co = w.shape[1], w.shape[0]
        ww = jnp.transpose(w, (2, 3, 1, 0)) * scale[None, None, None, :]
        return ww.reshape(9 * ci, co).astype(jnp.bfloat16)

    w1 = params['conv1_w']                       # input channels ordered [skip, up]
    w1s = conv3x3_w(w1[:, :Cin], s1)
    w1u = conv3x3_w(w1[:, Cin:], s1)
    w2m = conv3x3_w(params['conv2_w'], s2)
    w3m = (params['conv3_w'][:, :, 0, 0].T * s3[None, :]).astype(jnp.bfloat16)
    b1r, b2r, b3r = (v[None, :].astype(jnp.float32) for v in (b1, b2, b3))

    # activations: NCHW -> NHWC, bf16 for the MXU
    x = jnp.transpose(x_nchw, (0, 2, 3, 1)).astype(jnp.bfloat16)
    skip = jnp.transpose(skip_nchw, (0, 2, 3, 1)).astype(jnp.bfloat16)

    # --- kernel A: deconv + bn_deconv + relu, gridded over (batch, row blocks) ---
    TH = max(1, min(deconv_rows, H))
    while H % TH:
        TH -= 1
    up_blk = pl.pallas_call(
        deconv_kernel,
        out_shape=jax.ShapeDtypeStruct((N, H, 2, W, 2 * Cout), jnp.bfloat16),
        grid=(N, H // TH),
        in_specs=[
            pl.BlockSpec((1, TH, W, Cin), lambda n, i: (n, i, 0, 0)),
            pl.BlockSpec((2, Cin, 2 * Cout), lambda n, i: (0, 0, 0)),
            pl.BlockSpec((1, 2 * Cout), lambda n, i: (0, 0)),
        ],
        out_specs=pl.BlockSpec((1, TH, 2, W, 2 * Cout), lambda n, i: (n, i, 0, 0, 0)),
        compiler_params=pltpu.CompilerParams(
            dimension_semantics=("parallel", "parallel")),
    )(x, wd, bd2)
    # (N, H, 2, W, 2*Cout) has the same row-major layout as NHWC (N, 2H, 2W, Cout).
    up = up_blk.reshape(N, H2, W2, Cout)

    # --- thin 2-row halo side inputs so kernel B's row tiles never overlap --------
    TR = max(1, min(row_block, H2))
    while H2 % TR:
        TR -= 1
    nblk = H2 // TR

    def halo_rows(t):  # rows (i*TR-2, i*TR-1) and (i*TR+TR, i*TR+TR+1), zero at borders
        tp = jnp.pad(t, ((0, 0), (2, 2), (0, 0), (0, 0)))
        top = jnp.stack([tp[:, k * TR:k * TR + 2] for k in range(nblk)], axis=1)
        bot = jnp.stack([tp[:, k * TR + TR + 2:k * TR + TR + 4] for k in range(nblk)],
                        axis=1)
        return top, bot

    s_top, s_bot = halo_rows(skip)
    u_top, u_bot = halo_rows(up)

    # Per-step working set (tiles + weights + scratch) stays well under the default
    # 32 MiB scoped VMEM (and v7x's 64 MiB physical VMEM) for these row-block sizes.
    out = pl.pallas_call(
        fused_body_kernel,
        out_shape=jax.ShapeDtypeStruct((N, H2, W2, Cout), jnp.float32),
        grid=(N, nblk),
        in_specs=[
            pl.BlockSpec((1, TR, W2, Cin), lambda n, i: (n, i, 0, 0)),
            pl.BlockSpec((1, 1, 2, W2, Cin), lambda n, i: (n, i, 0, 0, 0)),
            pl.BlockSpec((1, 1, 2, W2, Cin), lambda n, i: (n, i, 0, 0, 0)),
            pl.BlockSpec((1, TR, W2, Cout), lambda n, i: (n, i, 0, 0)),
            pl.BlockSpec((1, 1, 2, W2, Cout), lambda n, i: (n, i, 0, 0, 0)),
            pl.BlockSpec((1, 1, 2, W2, Cout), lambda n, i: (n, i, 0, 0, 0)),
            pl.BlockSpec((9 * Cin, Cout), lambda n, i: (0, 0)),
            pl.BlockSpec((9 * Cout, Cout), lambda n, i: (0, 0)),
            pl.BlockSpec((9 * Cout, Cout), lambda n, i: (0, 0)),
            pl.BlockSpec((Cout, Cout), lambda n, i: (0, 0)),
            pl.BlockSpec((1, Cout), lambda n, i: (0, 0)),
            pl.BlockSpec((1, Cout), lambda n, i: (0, 0)),
            pl.BlockSpec((1, Cout), lambda n, i: (0, 0)),
        ],
        out_specs=pl.BlockSpec((1, TR, W2, Cout), lambda n, i: (n, i, 0, 0)),
        scratch_shapes=[
            pltpu.VMEM((TR + 4, W2 + 4, Cin), jnp.bfloat16),
            pltpu.VMEM((TR + 4, W2 + 4, Cout), jnp.bfloat16),
            pltpu.VMEM((TR + 2, W2 + 4, Cout), jnp.bfloat16),
        ],
        compiler_params=pltpu.CompilerParams(
            dimension_semantics=("parallel", "parallel")),
    )(skip, s_top, s_bot, up, u_top, u_bot, w1s, w1u, w2m, w3m, b1r, b2r, b3r)

    return jnp.transpose(out, (0, 3, 1, 2))  # back to NCHW


# ----------------------------------------------------------------------------------
# Pure-JAX reference (lax convs, f32, HIGHEST precision) for a correctness check.
# ----------------------------------------------------------------------------------
def reference_forward(params, x_nchw, skip_nchw):
    x = jnp.transpose(x_nchw, (0, 2, 3, 1)).astype(jnp.float32)
    skip = jnp.transpose(skip_nchw, (0, 2, 3, 1)).astype(jnp.float32)
    dn = ('NHWC', 'HWIO', 'NHWC')

    def bn(v, p):
        gamma, beta, mean, var = p
        return (v - mean) / jnp.sqrt(var + _EPS) * gamma + beta

    # ConvTranspose2d(k=2,s=2,p=0) == conv of 2x-dilated input with flipped kernel
    wd = params['deconv_w']                                   # (Cin, Cout, 2, 2)
    wd_hwio = jnp.transpose(wd, (2, 3, 0, 1))[::-1, ::-1]
    up = lax.conv_general_dilated(x, wd_hwio, (1, 1), ((1, 1), (1, 1)),
                                  lhs_dilation=(2, 2), dimension_numbers=dn,
                                  precision=lax.Precision.HIGHEST) + params['deconv_b']
    up = jax.nn.relu(bn(up, params['bn_deconv']))
    cat = jnp.concatenate([skip, up], axis=-1)

    def conv3(v, w, b):
        w_hwio = jnp.transpose(w, (2, 3, 1, 0))
        return lax.conv_general_dilated(v, w_hwio, (1, 1), ((1, 1), (1, 1)),
                                        dimension_numbers=dn,
                                        precision=lax.Precision.HIGHEST) + b

    out1 = bn(conv3(cat, params['conv1_w'], params['conv1_b']), params['bn1'])
    t = jax.nn.relu(out1)
    out2 = bn(conv3(t, params['conv2_w'], params['conv2_b']), params['bn2'])
    out3 = bn(jnp.einsum('nhwc,oc->nhwo', out2, params['conv3_w'][:, :, 0, 0],
                         precision=lax.Precision.HIGHEST) + params['conv3_b'],
              params['bn3'])
    out = jax.nn.relu(out3 + out1 + out2)
    return jnp.transpose(out, (0, 3, 1, 2))


# ----------------------------------------------------------------------------------
# Deterministic parameter init (shapes from UpSampling.__init__)
# ----------------------------------------------------------------------------------
def init_params(key, cin, cout):
    ks = jax.random.split(key, 12)
    ccat = cin + cout

    def w(k, shape, fan_in):
        return jax.random.normal(k, shape, jnp.float32) / jnp.sqrt(float(fan_in))

    def bn_params(k):
        k1, k2, k3, k4 = jax.random.split(k, 4)
        gamma = 1.0 + 0.1 * jax.random.normal(k1, (cout,), jnp.float32)
        beta = 0.1 * jax.random.normal(k2, (cout,), jnp.float32)
        mean = 0.1 * jax.random.normal(k3, (cout,), jnp.float32)
        var = 1.0 + 0.1 * jax.random.uniform(k4, (cout,), jnp.float32)
        return (gamma, beta, mean, var)

    return {
        'deconv_w': w(ks[0], (cin, cout, 2, 2), cin * 4),
        'deconv_b': 0.1 * jax.random.normal(ks[1], (cout,), jnp.float32),
        'conv1_w': w(ks[2], (cout, ccat, 3, 3), ccat * 9),
        'conv1_b': 0.1 * jax.random.normal(ks[3], (cout,), jnp.float32),
        'conv2_w': w(ks[4], (cout, cout, 3, 3), cout * 9),
        'conv2_b': 0.1 * jax.random.normal(ks[5], (cout,), jnp.float32),
        'conv3_w': w(ks[6], (cout, cout, 1, 1), cout),
        'conv3_b': 0.1 * jax.random.normal(ks[7], (cout,), jnp.float32),
        'bn_deconv': bn_params(ks[8]),
        'bn1': bn_params(ks[9]),
        'bn2': bn_params(ks[10]),
        'bn3': bn_params(ks[11]),
    }


if __name__ == "__main__":
    key = jax.random.PRNGKey(0)
    k_p, k_x, k_s = jax.random.split(key, 3)

    # in_channels=64, out_channels=128 -> lane-dense (Cout = 128) epilogue/stores.
    N, Cin, Cout, H, W = 2, 64, 128, 8, 8
    params = init_params(k_p, Cin, Cout)

    x = jax.random.normal(k_x, (N, Cin, H, W), jnp.float32)             # "input"
    skip = jax.random.normal(k_s, (N, Cin, 2 * H, 2 * W), jnp.float32)  # "out_down"

    fwd = jax.jit(functools.partial(upsampling_forward, params))
    out = jax.block_until_ready(fwd(x, skip))

    ref = reference_forward(params, x, skip)
    assert out.shape == (N, Cout, 2 * H, 2 * W), out.shape
    err = float(jnp.max(jnp.abs(out - ref)))
    # tolerance reflects bf16 MXU inputs (f32 accumulation) vs. the f32 reference
    assert jnp.allclose(out, ref, atol=5e-2, rtol=5e-2), err
    print("KERNEL_OK")
</pallas_src>

<mosaic_0001>
module attributes {stable_mosaic.version = 11 : i64} {
  func.func @fused_body_kernel(%arg0: i32, %arg1: i32, %arg2: memref<1x8x16x64xbf16, #tpu.memory_space<vmem>>, %arg3: memref<1x1x2x16x64xbf16, #tpu.memory_space<vmem>>, %arg4: memref<1x1x2x16x64xbf16, #tpu.memory_space<vmem>>, %arg5: memref<1x8x16x128xbf16, #tpu.memory_space<vmem>>, %arg6: memref<1x1x2x16x128xbf16, #tpu.memory_space<vmem>>, %arg7: memref<1x1x2x16x128xbf16, #tpu.memory_space<vmem>>, %arg8: memref<576x128xbf16, #tpu.memory_space<vmem>>, %arg9: memref<1152x128xbf16, #tpu.memory_space<vmem>>, %arg10: memref<1152x128xbf16, #tpu.memory_space<vmem>>, %arg11: memref<128x128xbf16, #tpu.memory_space<vmem>>, %arg12: memref<1x128xf32, #tpu.memory_space<vmem>>, %arg13: memref<1x128xf32, #tpu.memory_space<vmem>>, %arg14: memref<1x128xf32, #tpu.memory_space<vmem>>, %arg15: memref<1x8x16x128xf32, #tpu.memory_space<vmem>>, %arg16: memref<12x20x64xbf16, #tpu.memory_space<vmem>>, %arg17: memref<12x20x128xbf16, #tpu.memory_space<vmem>>, %arg18: memref<10x20x128xbf16, #tpu.memory_space<vmem>>) attributes {dimension_semantics = [#tpu.dimension_semantics<parallel>, #tpu.dimension_semantics<parallel>], iteration_bounds = array<i64: 2, 2>, scalar_prefetch = 0 : i64, scratch_operands = 3 : i64, tpu.core_type = #tpu.core_type<tc>, window_params = [{transform_indices = @transform_0, window_bounds = array<i64: 1, 8, 16, 64>}, {transform_indices = @transform_1, window_bounds = array<i64: 1, 1, 2, 16, 64>}, {transform_indices = @transform_2, window_bounds = array<i64: 1, 1, 2, 16, 64>}, {transform_indices = @transform_3, window_bounds = array<i64: 1, 8, 16, 128>}, {transform_indices = @transform_4, window_bounds = array<i64: 1, 1, 2, 16, 128>}, {transform_indices = @transform_5, window_bounds = array<i64: 1, 1, 2, 16, 128>}, {pipeline_mode = #tpu.pipeline_mode<synchronous>, transform_indices = @transform_6, window_bounds = array<i64: 576, 128>}, {pipeline_mode = #tpu.pipeline_mode<synchronous>, transform_indices = @transform_7, window_bounds = array<i64: 1152, 128>}, {pipeline_mode = #tpu.pipeline_mode<synchronous>, transform_indices = @transform_8, window_bounds = array<i64: 1152, 128>}, {pipeline_mode = #tpu.pipeline_mode<synchronous>, transform_indices = @transform_9, window_bounds = array<i64: 128, 128>}, {pipeline_mode = #tpu.pipeline_mode<synchronous>, transform_indices = @transform_10, window_bounds = array<i64: 1, 128>}, {pipeline_mode = #tpu.pipeline_mode<synchronous>, transform_indices = @transform_11, window_bounds = array<i64: 1, 128>}, {pipeline_mode = #tpu.pipeline_mode<synchronous>, transform_indices = @transform_12, window_bounds = array<i64: 1, 128>}, {transform_indices = @transform_13, window_bounds = array<i64: 1, 8, 16, 128>}]} {
    %cst = arith.constant 0.000000e+00 : bf16
    %0 = vector.broadcast %cst : bf16 to vector<12x2x64xbf16>
    %c0 = arith.constant 0 : index
    %c0_0 = arith.constant 0 : index
    %c0_1 = arith.constant 0 : index
    %1 = vector.load %arg16[%c0, %c0_0, %c0_1] : memref<12x20x64xbf16, #tpu.memory_space<vmem>>, vector<12x2x64xbf16>
    tpu.vector_store %arg16[%c0, %c0_0, %c0_1], %0 {strides = array<i32>} : memref<12x20x64xbf16, #tpu.memory_space<vmem>>, vector<12x2x64xbf16>,
    %c0_2 = arith.constant 0 : index
    %c18 = arith.constant 18 : index
    %c0_3 = arith.constant 0 : index
    %2 = vector.load %arg16[%c0_2, %c18, %c0_3] : memref<12x20x64xbf16, #tpu.memory_space<vmem>>, vector<12x2x64xbf16>
    tpu.vector_store %arg16[%c0_2, %c18, %c0_3], %0 {strides = array<i32>} : memref<12x20x64xbf16, #tpu.memory_space<vmem>>, vector<12x2x64xbf16>,
    %c0_4 = arith.constant 0 : index
    %c0_5 = arith.constant 0 : index
    %c0_6 = arith.constant 0 : index
    %c0_7 = arith.constant 0 : index
    %c0_8 = arith.constant 0 : index
    %3 = vector.load %arg3[%c0_4, %c0_5, %c0_6, %c0_7, %c0_8] : memref<1x1x2x16x64xbf16, #tpu.memory_space<vmem>>, vector<1x1x2x16x64xbf16>
    %4 = vector.shape_cast %3 : vector<1x1x2x16x64xbf16> to vector<2x16x64xbf16>
    %c0_9 = arith.constant 0 : index
    %c2 = arith.constant 2 : index
    %c0_10 = arith.constant 0 : index
    %5 = vector.load %arg16[%c0_9, %c2, %c0_10] : memref<12x20x64xbf16, #tpu.memory_space<vmem>>, vector<2x16x64xbf16>
    tpu.vector_store %arg16[%c0_9, %c2, %c0_10], %4 {strides = array<i32>} : memref<12x20x64xbf16, #tpu.memory_space<vmem>>, vector<2x16x64xbf16>,
    %c0_11 = arith.constant 0 : index
    %c0_12 = arith.constant 0 : index
    %c0_13 = arith.constant 0 : index
    %c0_14 = arith.constant 0 : index
    %6 = vector.load %arg2[%c0_11, %c0_12, %c0_13, %c0_14] : memref<1x8x16x64xbf16, #tpu.memory_space<vmem>>, vector<1x8x16x64xbf16>
    %7 = vector.shape_cast %6 : vector<1x8x16x64xbf16> to vector<8x16x64xbf16>
    %c2_15 = arith.constant 2 : index
    %c2_16 = arith.constant 2 : index
    %c0_17 = arith.constant 0 : index
    %8 = vector.load %arg16[%c2_15, %c2_16, %c0_17] : memref<12x20x64xbf16, #tpu.memory_space<vmem>>, vector<8x16x64xbf16>
    tpu.vector_store %arg16[%c2_15, %c2_16, %c0_17], %7 {strides = array<i32>} : memref<12x20x64xbf16, #tpu.memory_space<vmem>>, vector<8x16x64xbf16>,
    %c0_18 = arith.constant 0 : index
    %c0_19 = arith.constant 0 : index
    %c0_20 = arith.constant 0 : index
    %c0_21 = arith.constant 0 : index
    %c0_22 = arith.constant 0 : index
    %9 = vector.load %arg4[%c0_18, %c0_19, %c0_20, %c0_21, %c0_22] : memref<1x1x2x16x64xbf16, #tpu.memory_space<vmem>>, vector<1x1x2x16x64xbf16>
    %10 = vector.shape_cast %9 : vector<1x1x2x16x64xbf16> to vector<2x16x64xbf16>
    %c10 = arith.constant 10 : index
    %c2_23 = arith.constant 2 : index
    %c0_24 = arith.constant 0 : index
    %11 = vector.load %arg16[%c10, %c2_23, %c0_24] : memref<12x20x64xbf16, #tpu.memory_space<vmem>>, vector<2x16x64xbf16>
    tpu.vector_store %arg16[%c10, %c2_23, %c0_24], %10 {strides = array<i32>} : memref<12x20x64xbf16, #tpu.memory_space<vmem>>, vector<2x16x64xbf16>,
    %cst_25 = arith.constant 0.000000e+00 : bf16
    %12 = vector.broadcast %cst_25 : bf16 to vector<12x2x128xbf16>
    %c0_26 = arith.constant 0 : index
    %c0_27 = arith.constant 0 : index
    %c0_28 = arith.constant 0 : index
    %13 = vector.load %arg17[%c0_26, %c0_27, %c0_28] : memref<12x20x128xbf16, #tpu.memory_space<vmem>>, vector<12x2x128xbf16>
    tpu.vector_store %arg17[%c0_26, %c0_27, %c0_28], %12 {strides = array<i32>} : memref<12x20x128xbf16, #tpu.memory_space<vmem>>, vector<12x2x128xbf16>,
    %c0_29 = arith.constant 0 : index
    %c18_30 = arith.constant 18 : index
    %c0_31 = arith.constant 0 : index
    %14 = vector.load %arg17[%c0_29, %c18_30, %c0_31] : memref<12x20x128xbf16, #tpu.memory_space<vmem>>, vector<12x2x128xbf16>
    tpu.vector_store %arg17[%c0_29, %c18_30, %c0_31], %12 {strides = array<i32>} : memref<12x20x128xbf16, #tpu.memory_space<vmem>>, vector<12x2x128xbf16>,
    %c0_32 = arith.constant 0 : index
    %c0_33 = arith.constant 0 : index
    %c0_34 = arith.constant 0 : index
    %c0_35 = arith.constant 0 : index
    %c0_36 = arith.constant 0 : index
    %15 = vector.load %arg6[%c0_32, %c0_33, %c0_34, %c0_35, %c0_36] : memref<1x1x2x16x128xbf16, #tpu.memory_space<vmem>>, vector<1x1x2x16x128xbf16>
    %16 = vector.shape_cast %15 : vector<1x1x2x16x128xbf16> to vector<2x16x128xbf16>
    %c0_37 = arith.constant 0 : index
    %c2_38 = arith.constant 2 : index
    %c0_39 = arith.constant 0 : index
    %17 = vector.load %arg17[%c0_37, %c2_38, %c0_39] : memref<12x20x128xbf16, #tpu.memory_space<vmem>>, vector<2x16x128xbf16>
    tpu.vector_store %arg17[%c0_37, %c2_38, %c0_39], %16 {strides = array<i32>} : memref<12x20x128xbf16, #tpu.memory_space<vmem>>, vector<2x16x128xbf16>,
    %c0_40 = arith.constant 0 : index
    %c0_41 = arith.constant 0 : index
    %c0_42 = arith.constant 0 : index
    %c0_43 = arith.constant 0 : index
    %18 = vector.load %arg5[%c0_40, %c0_41, %c0_42, %c0_43] : memref<1x8x16x128xbf16, #tpu.memory_space<vmem>>, vector<1x8x16x128xbf16>
    %19 = vector.shape_cast %18 : vector<1x8x16x128xbf16> to vector<8x16x128xbf16>
    %c2_44 = arith.constant 2 : index
    %c2_45 = arith.constant 2 : index
    %c0_46 = arith.constant 0 : index
    %20 = vector.load %arg17[%c2_44, %c2_45, %c0_46] : memref<12x20x128xbf16, #tpu.memory_space<vmem>>, vector<8x16x128xbf16>
    tpu.vector_store %arg17[%c2_44, %c2_45, %c0_46], %19 {strides = array<i32>} : memref<12x20x128xbf16, #tpu.memory_space<vmem>>, vector<8x16x128xbf16>,
    %c0_47 = arith.constant 0 : index
    %c0_48 = arith.constant 0 : index
    %c0_49 = arith.constant 0 : index
    %c0_50 = arith.constant 0 : index
    %c0_51 = arith.constant 0 : index
    %21 = vector.load %arg7[%c0_47, %c0_48, %c0_49, %c0_50, %c0_51] : memref<1x1x2x16x128xbf16, #tpu.memory_space<vmem>>, vector<1x1x2x16x128xbf16>
    %22 = vector.shape_cast %21 : vector<1x1x2x16x128xbf16> to vector<2x16x128xbf16>
    %c10_52 = arith.constant 10 : index
    %c2_53 = arith.constant 2 : index
    %c0_54 = arith.constant 0 : index
    %23 = vector.load %arg17[%c10_52, %c2_53, %c0_54] : memref<12x20x128xbf16, #tpu.memory_space<vmem>>, vector<2x16x128xbf16>
    tpu.vector_store %arg17[%c10_52, %c2_53, %c0_54], %22 {strides = array<i32>} : memref<12x20x128xbf16, #tpu.memory_space<vmem>>, vector<2x16x128xbf16>,
    %c0_55 = arith.constant 0 : index
    %c1 = arith.constant 1 : index
    %c0_56 = arith.constant 0 : index
    %24 = vector.load %arg16[%c0_55, %c1, %c0_56] : memref<12x20x64xbf16, #tpu.memory_space<vmem>>, vector<10x16x64xbf16>
    %25 = vector.shape_cast %24 : vector<10x16x64xbf16> to vector<160x64xbf16>
    %c0_57 = arith.constant 0 : index
    %c2_58 = arith.constant 2 : index
    %c0_59 = arith.constant 0 : index
    %26 = vector.load %arg16[%c0_57, %c2_58, %c0_59] : memref<12x20x64xbf16, #tpu.memory_space<vmem>>, vector<10x16x64xbf16>
    %27 = vector.shape_cast %26 : vector<10x16x64xbf16> to vector<160x64xbf16>
    %c0_60 = arith.constant 0 : index
    %c3 = arith.constant 3 : index
    %c0_61 = arith.constant 0 : index
    %28 = vector.load %arg16[%c0_60, %c3, %c0_61] : memref<12x20x64xbf16, #tpu.memory_space<vmem>>, vector<10x16x64xbf16>
    %29 = vector.shape_cast %28 : vector<10x16x64xbf16> to vector<160x64xbf16>
    %c1_62 = arith.constant 1 : index
    %c1_63 = arith.constant 1 : index
    %c0_64 = arith.constant 0 : index
    %30 = vector.load %arg16[%c1_62, %c1_63, %c0_64] : memref<12x20x64xbf16, #tpu.memory_space<vmem>>, vector<10x16x64xbf16>
    %31 = vector.shape_cast %30 : vector<10x16x64xbf16> to vector<160x64xbf16>
    %c1_65 = arith.constant 1 : index
    %c2_66 = arith.constant 2 : index
    %c0_67 = arith.constant 0 : index
    %32 = vector.load %arg16[%c1_65, %c2_66, %c0_67] : memref<12x20x64xbf16, #tpu.memory_space<vmem>>, vector<10x16x64xbf16>
    %33 = vector.shape_cast %32 : vector<10x16x64xbf16> to vector<160x64xbf16>
    %c1_68 = arith.constant 1 : index
    %c3_69 = arith.constant 3 : index
    %c0_70 = arith.constant 0 : index
    %34 = vector.load %arg16[%c1_68, %c3_69, %c0_70] : memref<12x20x64xbf16, #tpu.memory_space<vmem>>, vector<10x16x64xbf16>
    %35 = vector.shape_cast %34 : vector<10x16x64xbf16> to vector<160x64xbf16>
    %c2_71 = arith.constant 2 : index
    %c1_72 = arith.constant 1 : index
    %c0_73 = arith.constant 0 : index
    %36 = vector.load %arg16[%c2_71, %c1_72, %c0_73] : memref<12x20x64xbf16, #tpu.memory_space<vmem>>, vector<10x16x64xbf16>
    %37 = vector.shape_cast %36 : vector<10x16x64xbf16> to vector<160x64xbf16>
    %c2_74 = arith.constant 2 : index
    %c2_75 = arith.constant 2 : index
    %c0_76 = arith.constant 0 : index
    %38 = vector.load %arg16[%c2_74, %c2_75, %c0_76] : memref<12x20x64xbf16, #tpu.memory_space<vmem>>, vector<10x16x64xbf16>
    %39 = vector.shape_cast %38 : vector<10x16x64xbf16> to vector<160x64xbf16>
    %c2_77 = arith.constant 2 : index
    %c3_78 = arith.constant 3 : index
    %c0_79 = arith.constant 0 : index
    %40 = vector.load %arg16[%c2_77, %c3_78, %c0_79] : memref<12x20x64xbf16, #tpu.memory_space<vmem>>, vector<10x16x64xbf16>
    %41 = vector.shape_cast %40 : vector<10x16x64xbf16> to vector<160x64xbf16>
    %42 = tpu.concatenate %25, %27, %29, %31, %33, %35, %37, %39, %41 in 1 : vector<160x64xbf16>, vector<160x64xbf16>, vector<160x64xbf16>, vector<160x64xbf16>, vector<160x64xbf16>, vector<160x64xbf16>, vector<160x64xbf16>, vector<160x64xbf16>, vector<160x64xbf16> -> vector<160x576xbf16>
    %c0_80 = arith.constant 0 : index
    %c0_81 = arith.constant 0 : index
    %43 = vector.load %arg8[%c0_80, %c0_81] : memref<576x128xbf16, #tpu.memory_space<vmem>>, vector<576x128xbf16>
    %cst_82 = arith.constant dense<0.000000e+00> : vector<160x128xf32>
    %44 = tpu.matmul %42, %43, %cst_82 {dimension_numbers = #tpu.dot_dimension_numbers<[1], [0], [0], [1], [0, 0, 1, 1], [], []>} : vector<160x576xbf16>, vector<576x128xbf16>, vector<160x128xf32> -> vector<160x128xf32>
    %c0_83 = arith.constant 0 : index
    %c1_84 = arith.constant 1 : index
    %c0_85 = arith.constant 0 : index
    %45 = vector.load %arg17[%c0_83, %c1_84, %c0_85] : memref<12x20x128xbf16, #tpu.memory_space<vmem>>, vector<10x16x128xbf16>
    %46 = vector.shape_cast %45 : vector<10x16x128xbf16> to vector<160x128xbf16>
    %c0_86 = arith.constant 0 : index
    %c2_87 = arith.constant 2 : index
    %c0_88 = arith.constant 0 : index
    %47 = vector.load %arg17[%c0_86, %c2_87, %c0_88] : memref<12x20x128xbf16, #tpu.memory_space<vmem>>, vector<10x16x128xbf16>
    %48 = vector.shape_cast %47 : vector<10x16x128xbf16> to vector<160x128xbf16>
    %c0_89 = arith.constant 0 : index
    %c3_90 = arith.constant 3 : index
    %c0_91 = arith.constant 0 : index
    %49 = vector.load %arg17[%c0_89, %c3_90, %c0_91] : memref<12x20x128xbf16, #tpu.memory_space<vmem>>, vector<10x16x128xbf16>
    %50 = vector.shape_cast %49 : vector<10x16x128xbf16> to vector<160x128xbf16>
    %c1_92 = arith.constant 1 : index
    %c1_93 = arith.constant 1 : index
    %c0_94 = arith.constant 0 : index
    %51 = vector.load %arg17[%c1_92, %c1_93, %c0_94] : memref<12x20x128xbf16, #tpu.memory_space<vmem>>, vector<10x16x128xbf16>
    %52 = vector.shape_cast %51 : vector<10x16x128xbf16> to vector<160x128xbf16>
    %c1_95 = arith.constant 1 : index
    %c2_96 = arith.constant 2 : index
    %c0_97 = arith.constant 0 : index
    %53 = vector.load %arg17[%c1_95, %c2_96, %c0_97] : memref<12x20x128xbf16, #tpu.memory_space<vmem>>, vector<10x16x128xbf16>
    %54 = vector.shape_cast %53 : vector<10x16x128xbf16> to vector<160x128xbf16>
    %c1_98 = arith.constant 1 : index
    %c3_99 = arith.constant 3 : index
    %c0_100 = arith.constant 0 : index
    %55 = vector.load %arg17[%c1_98, %c3_99, %c0_100] : memref<12x20x128xbf16, #tpu.memory_space<vmem>>, vector<10x16x128xbf16>
    %56 = vector.shape_cast %55 : vector<10x16x128xbf16> to vector<160x128xbf16>
    %c2_101 = arith.constant 2 : index
    %c1_102 = arith.constant 1 : index
    %c0_103 = arith.constant 0 : index
    %57 = vector.load %arg17[%c2_101, %c1_102, %c0_103] : memref<12x20x128xbf16, #tpu.memory_space<vmem>>, vector<10x16x128xbf16>
    %58 = vector.shape_cast %57 : vector<10x16x128xbf16> to vector<160x128xbf16>
    %c2_104 = arith.constant 2 : index
    %c2_105 = arith.constant 2 : index
    %c0_106 = arith.constant 0 : index
    %59 = vector.load %arg17[%c2_104, %c2_105, %c0_106] : memref<12x20x128xbf16, #tpu.memory_space<vmem>>, vector<10x16x128xbf16>
    %60 = vector.shape_cast %59 : vector<10x16x128xbf16> to vector<160x128xbf16>
    %c2_107 = arith.constant 2 : index
    %c3_108 = arith.constant 3 : index
    %c0_109 = arith.constant 0 : index
    %61 = vector.load %arg17[%c2_107, %c3_108, %c0_109] : memref<12x20x128xbf16, #tpu.memory_space<vmem>>, vector<10x16x128xbf16>
    %62 = vector.shape_cast %61 : vector<10x16x128xbf16> to vector<160x128xbf16>
    %63 = tpu.concatenate %46, %48, %50, %52, %54, %56, %58, %60, %62 in 1 : vector<160x128xbf16>, vector<160x128xbf16>, vector<160x128xbf16>, vector<160x128xbf16>, vector<160x128xbf16>, vector<160x128xbf16>, vector<160x128xbf16>, vector<160x128xbf16>, vector<160x128xbf16> -> vector<160x1152xbf16>
    %c0_110 = arith.constant 0 : index
    %c0_111 = arith.constant 0 : index
    %64 = vector.load %arg9[%c0_110, %c0_111] : memref<1152x128xbf16, #tpu.memory_space<vmem>>, vector<1152x128xbf16>
    %cst_112 = arith.constant dense<0.000000e+00> : vector<160x128xf32>
    %65 = tpu.matmul %63, %64, %cst_112 {dimension_numbers = #tpu.dot_dimension_numbers<[1], [0], [0], [1], [0, 0, 1, 1], [], []>} : vector<160x1152xbf16>, vector<1152x128xbf16>, vector<160x128xf32> -> vector<160x128xf32>
    %66 = arith.addf %44, %65 : vector<160x128xf32>
    %c0_113 = arith.constant 0 : index
    %c0_114 = arith.constant 0 : index
    %67 = vector.load %arg12[%c0_113, %c0_114] : memref<1x128xf32, #tpu.memory_space<vmem>>, vector<1x128xf32>
    %68 = vector.broadcast %67 : vector<1x128xf32> to vector<160x128xf32>
    %69 = arith.addf %66, %68 : vector<160x128xf32>
    %cst_115 = arith.constant 0.000000e+00 : f32
    %70 = vector.broadcast %cst_115 : f32 to vector<160x128xf32>
    %71 = arith.maximumf %69, %70 : vector<160x128xf32>
    %72 = arith.truncf %71 : vector<160x128xf32> to vector<160x128xbf16>
    %cst_116 = arith.constant 0.000000e+00 : bf16
    %73 = vector.broadcast %cst_116 : bf16 to vector<10x2x128xbf16>
    %c0_117 = arith.constant 0 : index
    %c0_118 = arith.constant 0 : index
    %c0_119 = arith.constant 0 : index
    %74 = vector.load %arg18[%c0_117, %c0_118, %c0_119] : memref<10x20x128xbf16, #tpu.memory_space<vmem>>, vector<10x2x128xbf16>
    tpu.vector_store %arg18[%c0_117, %c0_118, %c0_119], %73 {strides = array<i32>} : memref<10x20x128xbf16, #tpu.memory_space<vmem>>, vector<10x2x128xbf16>,
    %c0_120 = arith.constant 0 : index
    %c18_121 = arith.constant 18 : index
    %c0_122 = arith.constant 0 : index
    %75 = vector.load %arg18[%c0_120, %c18_121, %c0_122] : memref<10x20x128xbf16, #tpu.memory_space<vmem>>, vector<10x2x128xbf16>
    tpu.vector_store %arg18[%c0_120, %c18_121, %c0_122], %73 {strides = array<i32>} : memref<10x20x128xbf16, #tpu.memory_space<vmem>>, vector<10x2x128xbf16>,
    %76 = vector.shape_cast %72 : vector<160x128xbf16> to vector<10x16x128xbf16>
    %c0_123 = arith.constant 0 : index
    %c2_124 = arith.constant 2 : index
    %c0_125 = arith.constant 0 : index
    %77 = vector.load %arg18[%c0_123, %c2_124, %c0_125] : memref<10x20x128xbf16, #tpu.memory_space<vmem>>, vector<10x16x128xbf16>
    tpu.vector_store %arg18[%c0_123, %c2_124, %c0_125], %76 {strides = array<i32>} : memref<10x20x128xbf16, #tpu.memory_space<vmem>>, vector<10x16x128xbf16>,
    %c0_i32 = arith.constant 0 : i32
    %78 = arith.cmpi eq, %arg1, %c0_i32 : i32
    %79 = arith.extui %78 : i1 to i32
    %c0_i32_126 = arith.constant 0 : i32
    %80 = arith.cmpi ne, %79, %c0_i32_126 : i32
    scf.if %80 {
      %cst_170 = arith.constant 0.000000e+00 : bf16
      %123 = vector.broadcast %cst_170 : bf16 to vector<1x20x128xbf16>
      %c0_171 = arith.constant 0 : index
      %c0_172 = arith.constant 0 : index
      %c0_173 = arith.constant 0 : index
      %124 = vector.load %arg18[%c0_171, %c0_172, %c0_173] : memref<10x20x128xbf16, #tpu.memory_space<vmem>>, vector<1x20x128xbf16>
      tpu.vector_store %arg18[%c0_171, %c0_172, %c0_173], %123 {strides = array<i32>} : memref<10x20x128xbf16, #tpu.memory_space<vmem>>, vector<1x20x128xbf16>,
    } else {
    }
    %c1_i32 = arith.constant 1 : i32
    %81 = arith.cmpi eq, %arg1, %c1_i32 : i32
    %82 = arith.extui %81 : i1 to i32
    %c0_i32_127 = arith.constant 0 : i32
    %83 = arith.cmpi ne, %82, %c0_i32_127 : i32
    scf.if %83 {
      %cst_170 = arith.constant 0.000000e+00 : bf16
      %123 = vector.broadcast %cst_170 : bf16 to vector<1x20x128xbf16>
      %c9 = arith.constant 9 : index
      %c0_171 = arith.constant 0 : index
      %c0_172 = arith.constant 0 : index
      %124 = vector.load %arg18[%c9, %c0_171, %c0_172] : memref<10x20x128xbf16, #tpu.memory_space<vmem>>, vector<1x20x128xbf16>
      tpu.vector_store %arg18[%c9, %c0_171, %c0_172], %123 {strides = array<i32>} : memref<10x20x128xbf16, #tpu.memory_space<vmem>>, vector<1x20x128xbf16>,
    } else {
    }
    %c0_128 = arith.constant 0 : index
    %c1_129 = arith.constant 1 : index
    %c0_130 = arith.constant 0 : index
    %84 = vector.load %arg18[%c0_128, %c1_129, %c0_130] : memref<10x20x128xbf16, #tpu.memory_space<vmem>>, vector<8x16x128xbf16>
    %85 = vector.shape_cast %84 : vector<8x16x128xbf16> to vector<128x128xbf16>
    %c0_131 = arith.constant 0 : index
    %c2_132 = arith.constant 2 : index
    %c0_133 = arith.constant 0 : index
    %86 = vector.load %arg18[%c0_131, %c2_132, %c0_133] : memref<10x20x128xbf16, #tpu.memory_space<vmem>>, vector<8x16x128xbf16>
    %87 = vector.shape_cast %86 : vector<8x16x128xbf16> to vector<128x128xbf16>
    %c0_134 = arith.constant 0 : index
    %c3_135 = arith.constant 3 : index
    %c0_136 = arith.constant 0 : index
    %88 = vector.load %arg18[%c0_134, %c3_135, %c0_136] : memref<10x20x128xbf16, #tpu.memory_space<vmem>>, vector<8x16x128xbf16>
    %89 = vector.shape_cast %88 : vector<8x16x128xbf16> to vector<128x128xbf16>
    %c1_137 = arith.constant 1 : index
    %c1_138 = arith.constant 1 : index
    %c0_139 = arith.constant 0 : index
    %90 = vector.load %arg18[%c1_137, %c1_138, %c0_139] : memref<10x20x128xbf16, #tpu.memory_space<vmem>>, vector<8x16x128xbf16>
    %91 = vector.shape_cast %90 : vector<8x16x128xbf16> to vector<128x128xbf16>
    %c1_140 = arith.constant 1 : index
    %c2_141 = arith.constant 2 : index
    %c0_142 = arith.constant 0 : index
    %92 = vector.load %arg18[%c1_140, %c2_141, %c0_142] : memref<10x20x128xbf16, #tpu.memory_space<vmem>>, vector<8x16x128xbf16>
    %93 = vector.shape_cast %92 : vector<8x16x128xbf16> to vector<128x128xbf16>
    %c1_143 = arith.constant 1 : index
    %c3_144 = arith.constant 3 : index
    %c0_145 = arith.constant 0 : index
    %94 = vector.load %arg18[%c1_143, %c3_144, %c0_145] : memref<10x20x128xbf16, #tpu.memory_space<vmem>>, vector<8x16x128xbf16>
    %95 = vector.shape_cast %94 : vector<8x16x128xbf16> to vector<128x128xbf16>
    %c2_146 = arith.constant 2 : index
    %c1_147 = arith.constant 1 : index
    %c0_148 = arith.constant 0 : index
    %96 = vector.load %arg18[%c2_146, %c1_147, %c0_148] : memref<10x20x128xbf16, #tpu.memory_space<vmem>>, vector<8x16x128xbf16>
    %97 = vector.shape_cast %96 : vector<8x16x128xbf16> to vector<128x128xbf16>
    %c2_149 = arith.constant 2 : index
    %c2_150 = arith.constant 2 : index
    %c0_151 = arith.constant 0 : index
    %98 = vector.load %arg18[%c2_149, %c2_150, %c0_151] : memref<10x20x128xbf16, #tpu.memory_space<vmem>>, vector<8x16x128xbf16>
    %99 = vector.shape_cast %98 : vector<8x16x128xbf16> to vector<128x128xbf16>
    %c2_152 = arith.constant 2 : index
    %c3_153 = arith.constant 3 : index
    %c0_154 = arith.constant 0 : index
    %100 = vector.load %arg18[%c2_152, %c3_153, %c0_154] : memref<10x20x128xbf16, #tpu.memory_space<vmem>>, vector<8x16x128xbf16>
    %101 = vector.shape_cast %100 : vector<8x16x128xbf16> to vector<128x128xbf16>
    %102 = tpu.concatenate %85, %87, %89, %91, %93, %95, %97, %99, %101 in 1 : vector<128x128xbf16>, vector<128x128xbf16>, vector<128x128xbf16>, vector<128x128xbf16>, vector<128x128xbf16>, vector<128x128xbf16>, vector<128x128xbf16>, vector<128x128xbf16>, vector<128x128xbf16> -> vector<128x1152xbf16>
    %c0_155 = arith.constant 0 : index
    %c0_156 = arith.constant 0 : index
    %103 = vector.load %arg10[%c0_155, %c0_156] : memref<1152x128xbf16, #tpu.memory_space<vmem>>, vector<1152x128xbf16>
    %cst_157 = arith.constant dense<0.000000e+00> : vector<128x128xf32>
    %104 = tpu.matmul %102, %103, %cst_157 {dimension_numbers = #tpu.dot_dimension_numbers<[1], [0], [0], [1], [0, 0, 1, 1], [], []>} : vector<128x1152xbf16>, vector<1152x128xbf16>, vector<128x128xf32> -> vector<128x128xf32>
    %c0_158 = arith.constant 0 : index
    %c0_159 = arith.constant 0 : index
    %105 = vector.load %arg13[%c0_158, %c0_159] : memref<1x128xf32, #tpu.memory_space<vmem>>, vector<1x128xf32>
    %106 = vector.broadcast %105 : vector<1x128xf32> to vector<128x128xf32>
    %107 = arith.addf %104, %106 : vector<128x128xf32>
    %108 = arith.truncf %107 : vector<128x128xf32> to vector<128x128xbf16>
    %c0_160 = arith.constant 0 : index
    %c0_161 = arith.constant 0 : index
    %109 = vector.load %arg11[%c0_160, %c0_161] : memref<128x128xbf16, #tpu.memory_space<vmem>>, vector<128x128xbf16>
    %cst_162 = arith.constant dense<0.000000e+00> : vector<128x128xf32>
    %110 = tpu.matmul %108, %109, %cst_162 {dimension_numbers = #tpu.dot_dimension_numbers<[1], [0], [0], [1], [0, 0, 1, 1], [], []>} : vector<128x128xbf16>, vector<128x128xbf16>, vector<128x128xf32> -> vector<128x128xf32>
    %c0_163 = arith.constant 0 : index
    %c0_164 = arith.constant 0 : index
    %111 = vector.load %arg14[%c0_163, %c0_164] : memref<1x128xf32, #tpu.memory_space<vmem>>, vector<1x128xf32>
    %112 = vector.broadcast %111 : vector<1x128xf32> to vector<128x128xf32>
    %113 = arith.addf %110, %112 : vector<128x128xf32>
    %114 = vector.extract_strided_slice %69 {offsets = [16, 0], sizes = [128, 128], strides = [1, 1]} : vector<160x128xf32> to vector<128x128xf32>
    %115 = arith.addf %113, %114 : vector<128x128xf32>
    %116 = arith.addf %115, %107 : vector<128x128xf32>
    %cst_165 = arith.constant 0.000000e+00 : f32
    %117 = vector.broadcast %cst_165 : f32 to vector<128x128xf32>
    %118 = arith.maximumf %116, %117 : vector<128x128xf32>
    %119 = vector.shape_cast %118 : vector<128x128xf32> to vector<8x16x128xf32>
    %c0_166 = arith.constant 0 : index
    %c0_167 = arith.constant 0 : index
    %c0_168 = arith.constant 0 : index
    %c0_169 = arith.constant 0 : index
    %120 = vector.load %arg15[%c0_166, %c0_167, %c0_168, %c0_169] : memref<1x8x16x128xf32, #tpu.memory_space<vmem>>, vector<1x8x16x128xf32>
    %121 = vector.shape_cast %120 : vector<1x8x16x128xf32> to vector<8x16x128xf32>
    %122 = vector.shape_cast %119 : vector<8x16x128xf32> to vector<1x8x16x128xf32>
    tpu.vector_store %arg15[%c0_166, %c0_167, %c0_168, %c0_169], %122 {strides = array<i32>} : memref<1x8x16x128xf32, #tpu.memory_space<vmem>>, vector<1x8x16x128xf32>,
    return
  }
  func.func @transform_0(%arg0: i32, %arg1: i32) -> (i32, i32, i32, i32) {
    %c0_i32 = arith.constant 0 : i32
    %c0_i32_0 = arith.constant 0 : i32
    %c0_i32_1 = arith.constant 0 : i32
    return %arg0, %arg1, %c0_i32, %c0_i32_0 : i32, i32, i32, i32
  }
  func.func @transform_1(%arg0: i32, %arg1: i32) -> (i32, i32, i32, i32, i32) {
    %c0_i32 = arith.constant 0 : i32
    %c0_i32_0 = arith.constant 0 : i32
    %c0_i32_1 = arith.constant 0 : i32
    %c0_i32_2 = arith.constant 0 : i32
    return %arg0, %arg1, %c0_i32, %c0_i32_0, %c0_i32_1 : i32, i32, i32, i32, i32
  }
  func.func @transform_2(%arg0: i32, %arg1: i32) -> (i32, i32, i32, i32, i32) {
    %c0_i32 = arith.constant 0 : i32
    %c0_i32_0 = arith.constant 0 : i32
    %c0_i32_1 = arith.constant 0 : i32
    %c0_i32_2 = arith.constant 0 : i32
    return %arg0, %arg1, %c0_i32, %c0_i32_0, %c0_i32_1 : i32, i32, i32, i32, i32
  }
  func.func @transform_3(%arg0: i32, %arg1: i32) -> (i32, i32, i32, i32) {
    %c0_i32 = arith.constant 0 : i32
    %c0_i32_0 = arith.constant 0 : i32
    %c0_i32_1 = arith.constant 0 : i32
    return %arg0, %arg1, %c0_i32, %c0_i32_0 : i32, i32, i32, i32
  }
  func.func @transform_4(%arg0: i32, %arg1: i32) -> (i32, i32, i32, i32, i32) {
    %c0_i32 = arith.constant 0 : i32
    %c0_i32_0 = arith.constant 0 : i32
    %c0_i32_1 = arith.constant 0 : i32
    %c0_i32_2 = arith.constant 0 : i32
    return %arg0, %arg1, %c0_i32, %c0_i32_0, %c0_i32_1 : i32, i32, i32, i32, i32
  }
  func.func @transform_5(%arg0: i32, %arg1: i32) -> (i32, i32, i32, i32, i32) {
    %c0_i32 = arith.constant 0 : i32
    %c0_i32_0 = arith.constant 0 : i32
    %c0_i32_1 = arith.constant 0 : i32
    %c0_i32_2 = arith.constant 0 : i32
    return %arg0, %arg1, %c0_i32, %c0_i32_0, %c0_i32_1 : i32, i32, i32, i32, i32
  }
  func.func @transform_6(%arg0: i32, %arg1: i32) -> (i32, i32) {
    %c0_i32 = arith.constant 0 : i32
    %c0_i32_0 = arith.constant 0 : i32
    %c0_i32_1 = arith.constant 0 : i32
    return %c0_i32, %c0_i32_0 : i32, i32
  }
  func.func @transform_7(%arg0: i32, %arg1: i32) -> (i32, i32) {
    %c0_i32 = arith.constant 0 : i32
    %c0_i32_0 = arith.constant 0 : i32
    %c0_i32_1 = arith.constant 0 : i32
    return %c0_i32, %c0_i32_0 : i32, i32
  }
  func.func @transform_8(%arg0: i32, %arg1: i32) -> (i32, i32) {
    %c0_i32 = arith.constant 0 : i32
    %c0_i32_0 = arith.constant 0 : i32
    %c0_i32_1 = arith.constant 0 : i32
    return %c0_i32, %c0_i32_0 : i32, i32
  }
  func.func @transform_9(%arg0: i32, %arg1: i32) -> (i32, i32) {
    %c0_i32 = arith.constant 0 : i32
    %c0_i32_0 = arith.constant 0 : i32
    %c0_i32_1 = arith.constant 0 : i32
    return %c0_i32, %c0_i32_0 : i32, i32
  }
  func.func @transform_10(%arg0: i32, %arg1: i32) -> (i32, i32) {
    %c0_i32 = arith.constant 0 : i32
    %c0_i32_0 = arith.constant 0 : i32
    %c0_i32_1 = arith.constant 0 : i32
    return %c0_i32, %c0_i32_0 : i32, i32
  }
  func.func @transform_11(%arg0: i32, %arg1: i32) -> (i32, i32) {
    %c0_i32 = arith.constant 0 : i32
    %c0_i32_0 = arith.constant 0 : i32
    %c0_i32_1 = arith.constant 0 : i32
    return %c0_i32, %c0_i32_0 : i32, i32
  }
  func.func @transform_12(%arg0: i32, %arg1: i32) -> (i32, i32) {
    %c0_i32 = arith.constant 0 : i32
    %c0_i32_0 = arith.constant 0 : i32
    %c0_i32_1 = arith.constant 0 : i32
    return %c0_i32, %c0_i32_0 : i32, i32
  }
  func.func @transform_13(%arg0: i32, %arg1: i32) -> (i32, i32, i32, i32) {
    %c0_i32 = arith.constant 0 : i32
    %c0_i32_0 = arith.constant 0 : i32
    %c0_i32_1 = arith.constant 0 : i32
    return %arg0, %arg1, %c0_i32, %c0_i32_0 : i32, i32, i32, i32
  }
}

module attributes {stable_mosaic.version = 11 : i64} {
  func.func @deconv_kernel(%arg0: i32, %arg1: i32, %arg2: memref<1x8x8x64xbf16, #tpu.memory_space<vmem>>, %arg3: memref<2x64x256xbf16, #tpu.memory_space<vmem>>, %arg4: memref<1x256xf32, #tpu.memory_space<vmem>>, %arg5: memref<1x8x2x8x256xbf16, #tpu.memory_space<vmem>>) attributes {dimension_semantics = [#tpu.dimension_semantics<parallel>, #tpu.dimension_semantics<parallel>], iteration_bounds = array<i64: 2, 1>, scalar_prefetch = 0 : i64, scratch_operands = 0 : i64, tpu.core_type = #tpu.core_type<tc>, window_params = [{transform_indices = @transform_0, window_bounds = array<i64: 1, 8, 8, 64>}, {pipeline_mode = #tpu.pipeline_mode<synchronous>, transform_indices = @transform_1, window_bounds = array<i64: 2, 64, 256>}, {pipeline_mode = #tpu.pipeline_mode<synchronous>, transform_indices = @transform_2, window_bounds = array<i64: 1, 256>}, {transform_indices = @transform_3, window_bounds = array<i64: 1, 8, 2, 8, 256>}]} {
    %c0 = arith.constant 0 : index
    %c0_0 = arith.constant 0 : index
    %c0_1 = arith.constant 0 : index
    %c0_2 = arith.constant 0 : index
    %0 = vector.load %arg2[%c0, %c0_0, %c0_1, %c0_2] : memref<1x8x8x64xbf16, #tpu.memory_space<vmem>>, vector<1x8x8x64xbf16>
    %1 = vector.shape_cast %0 : vector<1x8x8x64xbf16> to vector<8x8x64xbf16>
    %2 = vector.shape_cast %1 : vector<8x8x64xbf16> to vector<64x64xbf16>
    %c0_3 = arith.constant 0 : index
    %c0_4 = arith.constant 0 : index
    %c0_5 = arith.constant 0 : index
    %3 = vector.load %arg3[%c0_3, %c0_4, %c0_5] : memref<2x64x256xbf16, #tpu.memory_space<vmem>>, vector<1x64x256xbf16>
    %4 = vector.shape_cast %3 : vector<1x64x256xbf16> to vector<64x256xbf16>
    %cst = arith.constant dense<0.000000e+00> : vector<64x256xf32>
    %5 = tpu.matmul %2, %4, %cst {dimension_numbers = #tpu.dot_dimension_numbers<[1], [0], [0], [1], [0, 0, 1, 1], [], []>} : vector<64x64xbf16>, vector<64x256xbf16>, vector<64x256xf32> -> vector<64x256xf32>
    %c0_6 = arith.constant 0 : index
    %c0_7 = arith.constant 0 : index
    %6 = vector.load %arg4[%c0_6, %c0_7] : memref<1x256xf32, #tpu.memory_space<vmem>>, vector<1x256xf32>
    %7 = vector.broadcast %6 : vector<1x256xf32> to vector<64x256xf32>
    %8 = arith.addf %5, %7 : vector<64x256xf32>
    %cst_8 = arith.constant 0.000000e+00 : f32
    %9 = vector.broadcast %cst_8 : f32 to vector<64x256xf32>
    %10 = arith.maximumf %8, %9 : vector<64x256xf32>
    %11 = vector.shape_cast %10 : vector<64x256xf32> to vector<8x8x256xf32>
    %12 = arith.truncf %11 : vector<8x8x256xf32> to vector<8x8x256xbf16>
    %c0_9 = arith.constant 0 : index
    %c0_10 = arith.constant 0 : index
    %c0_11 = arith.constant 0 : index
    %c0_12 = arith.constant 0 : index
    %c0_13 = arith.constant 0 : index
    %13 = vector.load %arg5[%c0_9, %c0_10, %c0_11, %c0_12, %c0_13] : memref<1x8x2x8x256xbf16, #tpu.memory_space<vmem>>, vector<1x8x1x8x256xbf16>
    %14 = vector.shape_cast %13 : vector<1x8x1x8x256xbf16> to vector<8x8x256xbf16>
    %15 = vector.shape_cast %12 : vector<8x8x256xbf16> to vector<1x8x1x8x256xbf16>
    tpu.vector_store %arg5[%c0_9, %c0_10, %c0_11, %c0_12, %c0_13], %15 {strides = array<i32>} : memref<1x8x2x8x256xbf16, #tpu.memory_space<vmem>>, vector<1x8x1x8x256xbf16>,
    %c1 = arith.constant 1 : index
    %c0_14 = arith.constant 0 : index
    %c0_15 = arith.constant 0 : index
    %16 = vector.load %arg3[%c1, %c0_14, %c0_15] : memref<2x64x256xbf16, #tpu.memory_space<vmem>>, vector<1x64x256xbf16>
    %17 = vector.shape_cast %16 : vector<1x64x256xbf16> to vector<64x256xbf16>
    %cst_16 = arith.constant dense<0.000000e+00> : vector<64x256xf32>
    %18 = tpu.matmul %2, %17, %cst_16 {dimension_numbers = #tpu.dot_dimension_numbers<[1], [0], [0], [1], [0, 0, 1, 1], [], []>} : vector<64x64xbf16>, vector<64x256xbf16>, vector<64x256xf32> -> vector<64x256xf32>
    %c0_17 = arith.constant 0 : index
    %c0_18 = arith.constant 0 : index
    %19 = vector.load %arg4[%c0_17, %c0_18] : memref<1x256xf32, #tpu.memory_space<vmem>>, vector<1x256xf32>
    %20 = vector.broadcast %19 : vector<1x256xf32> to vector<64x256xf32>
    %21 = arith.addf %18, %20 : vector<64x256xf32>
    %cst_19 = arith.constant 0.000000e+00 : f32
    %22 = vector.broadcast %cst_19 : f32 to vector<64x256xf32>
    %23 = arith.maximumf %21, %22 : vector<64x256xf32>
    %24 = vector.shape_cast %23 : vector<64x256xf32> to vector<8x8x256xf32>
    %25 = arith.truncf %24 : vector<8x8x256xf32> to vector<8x8x256xbf16>
    %c0_20 = arith.constant 0 : index
    %c0_21 = arith.constant 0 : index
    %c1_22 = arith.constant 1 : index
    %c0_23 = arith.constant 0 : index
    %c0_24 = arith.constant 0 : index
    %26 = vector.load %arg5[%c0_20, %c0_21, %c1_22, %c0_23, %c0_24] : memref<1x8x2x8x256xbf16, #tpu.memory_space<vmem>>, vector<1x8x1x8x256xbf16>
    %27 = vector.shape_cast %26 : vector<1x8x1x8x256xbf16> to vector<8x8x256xbf16>
    %28 = vector.shape_cast %25 : vector<8x8x256xbf16> to vector<1x8x1x8x256xbf16>
    tpu.vector_store %arg5[%c0_20, %c0_21, %c1_22, %c0_23, %c0_24], %28 {strides = array<i32>} : memref<1x8x2x8x256xbf16, #tpu.memory_space<vmem>>, vector<1x8x1x8x256xbf16>,
    return
  }
  func.func @transform_0(%arg0: i32, %arg1: i32) -> (i32, i32, i32, i32) {
    %c0_i32 = arith.constant 0 : i32
    %c0_i32_0 = arith.constant 0 : i32
    %c0_i32_1 = arith.constant 0 : i32
    return %arg0, %arg1, %c0_i32, %c0_i32_0 : i32, i32, i32, i32
  }
  func.func @transform_1(%arg0: i32, %arg1: i32) -> (i32, i32, i32) {
    %c0_i32 = arith.constant 0 : i32
    %c0_i32_0 = arith.constant 0 : i32
    %c0_i32_1 = arith.constant 0 : i32
    %c0_i32_2 = arith.constant 0 : i32
    return %c0_i32, %c0_i32_0, %c0_i32_1 : i32, i32, i32
  }
  func.func @transform_2(%arg0: i32, %arg1: i32) -> (i32, i32) {
    %c0_i32 = arith.constant 0 : i32
    %c0_i32_0 = arith.constant 0 : i32
    %c0_i32_1 = arith.constant 0 : i32
    return %c0_i32, %c0_i32_0 : i32, i32
  }
  func.func @transform_3(%arg0: i32, %arg1: i32) -> (i32, i32, i32, i32, i32) {
    %c0_i32 = arith.constant 0 : i32
    %c0_i32_0 = arith.constant 0 : i32
    %c0_i32_1 = arith.constant 0 : i32
    %c0_i32_2 = arith.constant 0 : i32
    return %arg0, %arg1, %c0_i32, %c0_i32_0, %c0_i32_1 : i32, i32, i32, i32, i32
  }
}

</mosaic_0001>

<bundles_post_ra>
// kernel: tile.14
= control target key start
LH: loop header
LB: loop body
LE: loop exit
PB: predicated region body
PF: predicated region fallthrough
CT: control target
= control target key end

     0   :  { %s22_s0 = inlined_call_operand.vmem [shape: f32[128], index: 0, kind: input, shape index: {}]   ;;  %s23_s1 = inlined_call_operand.vmem [shape: f32[2,128], index: 1, kind: output, shape index: {}]  }
   0x1   :  { %v4_v0 = vld [vmem:[%s22_s0] ss:$0 sm:$0xff] }
   0x2   :  { %5 = vst [vmem:[%s23_s1] sm:$0x3] %v4_v0 }

// kernel: upsampling_forward.2
= control target key start
LH: loop header
LB: loop body
LE: loop exit
PB: predicated region body
PF: predicated region fallthrough
CT: control target
= control target key end

     0   :  { %s978_s12 = smov 0   ;;  %s980_s13 = smov 0   ;;  %s1135_s0 = inlined_call_operand.vmem [shape: bf16[2,8,8,64], index: 0, kind: input, shape index: {}]   ;;  %s1136_s1 = inlined_call_operand.vmem [shape: bf16[2,64,256], index: 1, kind: input, shape index: {}]   ;;  %s1137_s2 = inlined_call_operand.vmem [shape: f32[1,256], index: 2, kind: input, shape index: {}]   ;;  %s1138_s3 = inlined_call_operand.vmem [shape: bf16[2,8,2,8,256], index: 3, kind: output, shape index: {}]  }
   0x1   :  { %s982_s14 = smov 0  }
   0x2 LB: > { %s25_s15 = sadd.s32 1, %s951_s13  ;;  %p795_p0 = scmp.ge.s32.totalorder %s955_s14, 1  ;;  %s955_s14 = sphi %s982_s14, %s13_s14   ;;  %s951_s13 = sphi %s980_s13, %s1140_s13   ;;  %s947_s12 = sphi %s978_s12, %s1139_s12  }
   0x3   : > { %p27_p1 = scmp.ge.s32.totalorder %s25_s15, 2  ;;  %p158_p2 = scmp.lt.s32.totalorder %s955_s14, 3 }
   0x5   : > { %s1142_s15 = smov (%p27_p1, %s25_s15), 0  ;;  %p159_p3 = pnand %p795_p0, %p158_p2 }
   0x6   : > { %v905_v0 = vld [vmem:[%s1136_s1 + $0x4] ss:$8 sps:$4 sm:$0xff] (!%p159_p3)   ;;  %p192_p4 = scmp.lt.s32.totalorder (!%p159_p3), %s947_s12, 1  ;;  %v957_v2 = vmov (!%p159_p3), 0   ;;  %v909_v3 = vld [vmem:[%s1136_s1] ss:$8 sps:$4 sm:$0xff] (!%p159_p3)   ;;  %v231_v21 = vlaneseq (!%p159_p3) }
   0x7   : > { %162 = sbr.rel (%p159_p3) target bundleno = 270 (0x10e), region = 32  ;;  %v907_v1 = vld [vmem:[%s1136_s1 + $0x44] ss:$8 sps:$4 sm:$0xff] (!%p159_p3)   ;;  %346 = vmatprep.mubr.bf16.mxu0 (!%p159_p3), %v957_v2  ;;  %568 = vmatprep.mubr.bf16.mxu1 (!%p159_p3), %v957_v2  ;;  %v910_v4 = vld [vmem:[%s1136_s1 + $0x40] ss:$8 sps:$4 sm:$0xff] (!%p159_p3)   ;;  %vm301_vm0 = vcmask (!%p159_p3), 523264  }
   0x8   : > { %314 = vmatprep.subr.bf16.mxu0 (!%p159_p3), %v905_v0  ;;  %536 = vmatprep.subr.bf16.mxu1 (!%p159_p3), %v907_v1  ;;  %v911_v5 = vld [vmem:[%s1136_s1 + $0x14] ss:$8 sps:$4 sm:$0xff] (!%p159_p3)   ;;  %v915_v7 = vld [vmem:[%s1136_s1 + $0x10] ss:$8 sps:$4 sm:$0xff] (!%p159_p3)   ;;  %v917_v9 = vld [vmem:[%s1136_s1 + $0x24] ss:$8 sps:$4 sm:$0xff] (!%p159_p3)  }
   0x9   : > { %315 = vmatpush1.bf16.msra.mxu0 (!%p159_p3), %v909_v3  ;;  %537 = vmatpush1.bf16.msra.mxu1 (!%p159_p3), %v910_v4  ;;  %v913_v6 = vld [vmem:[%s1136_s1 + $0x54] ss:$8 sps:$4 sm:$0xff] (!%p159_p3)   ;;  %v916_v8 = vld [vmem:[%s1136_s1 + $0x50] ss:$8 sps:$4 sm:$0xff] (!%p159_p3)   ;;  %v919_v10 = vld [vmem:[%s1136_s1 + $0x64] ss:$8 sps:$4 sm:$0xff] (!%p159_p3)  }
   0xa   : > { %316 = vmatprep.subr.bf16.mxu0 (!%p159_p3), %v911_v5  ;;  %538 = vmatprep.subr.bf16.mxu1 (!%p159_p3), %v913_v6  ;;  %v921_v11 = vld [vmem:[%s1136_s1 + $0x20] ss:$8 sps:$4 sm:$0xff] (!%p159_p3)   ;;  %v923_v13 = vld [vmem:[%s1136_s1 + $0x34] ss:$8 sps:$4 sm:$0xff] (!%p159_p3)   ;;  %v927_v15 = vld [vmem:[%s1136_s1 + $0x30] ss:$8 sps:$4 sm:$0xff] (!%p159_p3)  }
   0xb   : > { %v922_v12 = vld [vmem:[%s1136_s1 + $0x60] ss:$8 sps:$4 sm:$0xff] (!%p159_p3)   ;;  %v925_v14 = vld [vmem:[%s1136_s1 + $0x74] ss:$8 sps:$4 sm:$0xff] (!%p159_p3)   ;;  %v928_v16 = vld [vmem:[%s1136_s1 + $0x70] ss:$8 sps:$4 sm:$0xff] (!%p159_p3)  }
   0xc   : > { %v232_v22 = vshrl.u32 (!%p159_p3), %v231_v21, 7  ;;  %v229_v24 = vld [vmem:[%s1137_s2] sm:$0x3] (!%p159_p3) }
   0xd   : > { %317 = vmatpush1.bf16.msra.mxu0 (!%p159_p3), %v915_v7  ;;  %539 = vmatpush1.bf16.msra.mxu1 (!%p159_p3), %v916_v8  ;;  %v484_v25 = vld [vmem:[%s1137_s2] sm:$0x3] (!%p159_p3) }
   0xe   : > { %s1144_s12 = smov (!%p192_p4, %s947_s12), 1  ;;  %318 = vmatprep.subr.bf16.mxu0 %v917_v9  ;;  %540 = vmatprep.subr.bf16.mxu1 %v919_v10  ;;  %v233_v23 = vsub.s32 0, %v232_v22  ;;  %v237_v26 = vsub.s32 1, %v232_v22 }
   0xf   : > { %s862_s7 = sshll.u32 %s1144_s12, 5  ;;  %s863_s6 = sshll.u32 %s1144_s12, 7 }
  0x10   : > { %s199_s24 = scalar_lea.vmem %s1135_s0, %s862_s7  ;;  %v1064_v27 = vrot.slane %v229_v24, %v233_v23  ;;  %v1066_v28 = vrot.slane %v484_v25, %v233_v23  ;;  %v1068_v29 = vrot.slane %v229_v24, %v237_v26  ;;  %v1070_v30 = vrot.slane %v484_v25, %v237_v26  ;;  %s1084_s8 = scalar_lea.vmem %s1138_s3, %s863_s6 }
  0x11   : > { %319 = vmatpush1.bf16.msra.mxu0 %v921_v11  ;;  %541 = vmatpush1.bf16.msra.mxu1 %v922_v12  ;;  %v929_v17 = vld [vmem:[%s199_s24] sm:$0xff]   ;;  %v930_v18 = vld [vmem:[%s199_s24 + $0x8] sm:$0xff]   ;;  %v931_v19 = vld [vmem:[%s199_s24 + $0x10] sm:$0xff]  }
  0x12   : > { %320 = vmatprep.subr.bf16.mxu0 %v923_v13  ;;  %542 = vmatprep.subr.bf16.mxu1 %v925_v14  ;;  %v932_v20 = vld [vmem:[%s199_s24 + $0x18] sm:$0xff]  }
  0x15   : > { %321 = vmatpush1.bf16.msra.mxu0 %v927_v15  ;;  %543 = vmatpush1.bf16.msra.mxu1 %v928_v16 }
  0x18   : > { %812 = vmatmul.mubr.msk.bf16.vlgmr.msra.gmra.mrb[0].mxu0 %vm301_vm0, %v929_v17  ;;  %840 = vmatmul.mubr.msk.bf16.vlgmr.msra.gmra.mrb[0].mxu1 %vm301_vm0, %v929_v17 }
  0x19   : > { %356 = vmatprep.mubr.bf16.mxu0 %v957_v2  ;;  %578 = vmatprep.mubr.bf16.mxu1 %v957_v2 }
  0x20   : > { %813 = vmatmul.mubr.msk.bf16.gmra.mrb[4].mxu0 %vm301_vm0, %v930_v18  ;;  %841 = vmatmul.mubr.msk.bf16.gmra.mrb[4].mxu1 %vm301_vm0, %v930_v18 }
  0x21   : > { %366 = vmatprep.mubr.bf16.mxu0 %v957_v2  ;;  %588 = vmatprep.mubr.bf16.mxu1 %v957_v2 }
  0x28   : > { %814 = vmatmul.mubr.msk.bf16.gmra.mrb[8].mxu0 %vm301_vm0, %v931_v19  ;;  %842 = vmatmul.mubr.msk.bf16.gmra.mrb[8].mxu1 %vm301_vm0, %v931_v19 }
  0x29   : > { %376 = vmatprep.mubr.bf16.mxu0 %v957_v2  ;;  %598 = vmatprep.mubr.bf16.mxu1 %v957_v2 }
  0x30   : > { %815 = vmatmul.mubr.msk.bf16.gmra.mrb[12].mxu0 %vm301_vm0, %v932_v20  ;;  %843 = vmatmul.mubr.msk.bf16.gmra.mrb[12].mxu1 %vm301_vm0, %v932_v20 }
  0xeb   : > { %v348_v31 = vpop.f32.mrb[0].mxu0  ;;  %v570_v32 = vpop.f32.mrb[0].mxu1 }
  0xec   : > { %v349_v33 = vadd.f32 %v348_v31, %v1064_v27  ;;  %v571_v34 = vadd.f32 %v570_v32, %v1066_v28  ;;  %v350_v35 = vpop.f32.mrb[1].mxu0  ;;  %v572_v36 = vpop.f32.mrb[1].mxu1 }
  0xed   : > { %v351_v37 = vadd.f32 %v350_v35, %v1068_v29  ;;  %v573_v38 = vadd.f32 %v572_v36, %v1070_v30  ;;  %v352_v39 = vpop.f32.mrb[2].mxu0  ;;  %v574_v40 = vpop.f32.mrb[2].mxu1 }
  0xee   : > { %v387_v41 = vmax.f32 %v349_v33, 0.0  ;;  %v609_v42 = vmax.f32 %v571_v34, 0.0  ;;  %v353_v43 = vadd.f32 %v352_v39, %v1064_v27  ;;  %v575_v44 = vadd.f32 %v574_v40, %v1066_v28  ;;  %v354_v45 = vpop.f32.mrb[3].mxu0  ;;  %v576_v46 = vpop.f32.mrb[3].mxu1 }
  0xef   : > { %v388_v47 = vmax.f32 %v351_v37, 0.0  ;;  %v610_v48 = vmax.f32 %v573_v38, 0.0  ;;  %v355_v49 = vadd.f32 %v354_v45, %v1068_v29  ;;  %v577_v50 = vadd.f32 %v576_v46, %v1070_v30 }
  0xf0   : > { %v389_v51 = vmax.f32 %v353_v43, 0.0  ;;  %v611_v52 = vmax.f32 %v575_v44, 0.0 }
  0xf1   : > { %v864_v53 = vpack.c.bf16 %v388_v47, %v387_v41  ;;  %v872_v54 = vpack.c.bf16 %v610_v48, %v609_v42  ;;  %v390_v55 = vmax.f32 %v355_v49, 0.0  ;;  %v612_v56 = vmax.f32 %v577_v50, 0.0 }
  0xf3   : > { %467 = vst [vmem:[%s1084_s8] sm:$0xff] %v864_v53  ;;  %852 = vst [vmem:[%s1084_s8 + $0x8] sm:$0xff] %v872_v54  ;;  %v865_v57 = vpack.c.bf16 %v390_v55, %v389_v51  ;;  %v873_v58 = vpack.c.bf16 %v612_v56, %v611_v52  ;;  %v358_v59 = vpop.f32.mrb[4].mxu0  ;;  %v580_v60 = vpop.f32.mrb[4].mxu1 }
  0xf4   : > { %v359_v61 = vadd.f32 %v358_v59, %v1064_v27  ;;  %v581_v62 = vadd.f32 %v580_v60, %v1066_v28  ;;  %v360_v63 = vpop.f32.mrb[5].mxu0  ;;  %v582_v0 = vpop.f32.mrb[5].mxu1 }
  0xf5   : > { %468 = vst [vmem:[%s1084_s8 + $0x10] sm:$0xff] %v865_v57  ;;  %853 = vst [vmem:[%s1084_s8 + $0x18] sm:$0xff] %v873_v58  ;;  %v361_v1 = vadd.f32 %v360_v63, %v1068_v29  ;;  %v583_v2 = vadd.f32 %v582_v0, %v1070_v30  ;;  %v362_v3 = vpop.f32.mrb[6].mxu0  ;;  %v584_v4 = vpop.f32.mrb[6].mxu1 }
  0xf6   : > { %v391_v5 = vmax.f32 %v359_v61, 0.0  ;;  %v613_v6 = vmax.f32 %v581_v62, 0.0  ;;  %v363_v7 = vadd.f32 %v362_v3, %v1064_v27  ;;  %v585_v8 = vadd.f32 %v584_v4, %v1066_v28  ;;  %v364_v9 = vpop.f32.mrb[7].mxu0  ;;  %v586_v10 = vpop.f32.mrb[7].mxu1 }
  0xf7   : > { %v392_v11 = vmax.f32 %v361_v1, 0.0  ;;  %v614_v12 = vmax.f32 %v583_v2, 0.0  ;;  %v365_v13 = vadd.f32 %v364_v9, %v1068_v29  ;;  %v587_v14 = vadd.f32 %v586_v10, %v1070_v30 }
  0xf8   : > { %v393_v15 = vmax.f32 %v363_v7, 0.0  ;;  %v615_v16 = vmax.f32 %v585_v8, 0.0 }
  0xf9   : > { %v866_v17 = vpack.c.bf16 %v392_v11, %v391_v5  ;;  %v874_v18 = vpack.c.bf16 %v614_v12, %v613_v6  ;;  %v394_v19 = vmax.f32 %v365_v13, 0.0  ;;  %v616_v20 = vmax.f32 %v587_v14, 0.0 }
  0xfb   : > { %469 = vst [vmem:[%s1084_s8 + $0x20] sm:$0xff] %v866_v17  ;;  %854 = vst [vmem:[%s1084_s8 + $0x28] sm:$0xff] %v874_v18  ;;  %v867_v21 = vpack.c.bf16 %v394_v19, %v393_v15  ;;  %v875_v22 = vpack.c.bf16 %v616_v20, %v615_v16  ;;  %v368_v23 = vpop.f32.mrb[8].mxu0  ;;  %v590_v24 = vpop.f32.mrb[8].mxu1 }
  0xfc   : > { %v369_v25 = vadd.f32 %v368_v23, %v1064_v27  ;;  %v591_v26 = vadd.f32 %v590_v24, %v1066_v28  ;;  %v370_v31 = vpop.f32.mrb[9].mxu0  ;;  %v592_v32 = vpop.f32.mrb[9].mxu1 }
  0xfd   : > { %470 = vst [vmem:[%s1084_s8 + $0x30] sm:$0xff] %v867_v21  ;;  %855 = vst [vmem:[%s1084_s8 + $0x38] sm:$0xff] %v875_v22  ;;  %v371_v33 = vadd.f32 %v370_v31, %v1068_v29  ;;  %v593_v34 = vadd.f32 %v592_v32, %v1070_v30  ;;  %v372_v35 = vpop.f32.mrb[10].mxu0  ;;  %v594_v36 = vpop.f32.mrb[10].mxu1 }
  0xfe   : > { %v395_v37 = vmax.f32 %v369_v25, 0.0  ;;  %v617_v38 = vmax.f32 %v591_v26, 0.0  ;;  %v373_v39 = vadd.f32 %v372_v35, %v1064_v27  ;;  %v595_v40 = vadd.f32 %v594_v36, %v1066_v28  ;;  %v374_v41 = vpop.f32.mrb[11].mxu0  ;;  %v596_v42 = vpop.f32.mrb[11].mxu1 }
  0xff   : > { %v396_v43 = vmax.f32 %v371_v33, 0.0  ;;  %v618_v44 = vmax.f32 %v593_v34, 0.0  ;;  %v375_v45 = vadd.f32 %v374_v41, %v1068_v29  ;;  %v597_v46 = vadd.f32 %v596_v42, %v1070_v30 }
 0x100   : > { %v397_v47 = vmax.f32 %v373_v39, 0.0  ;;  %v619_v48 = vmax.f32 %v595_v40, 0.0 }
 0x101   : > { %v868_v49 = vpack.c.bf16 %v396_v43, %v395_v37  ;;  %v876_v50 = vpack.c.bf16 %v618_v44, %v617_v38  ;;  %v398_v51 = vmax.f32 %v375_v45, 0.0  ;;  %v620_v52 = vmax.f32 %v597_v46, 0.0 }
 0x103   : > { %471 = vst [vmem:[%s1084_s8 + $0x40] sm:$0xff] %v868_v49  ;;  %856 = vst [vmem:[%s1084_s8 + $0x48] sm:$0xff] %v876_v50  ;;  %v869_v53 = vpack.c.bf16 %v398_v51, %v397_v47  ;;  %v877_v54 = vpack.c.bf16 %v620_v52, %v619_v48  ;;  %v378_v55 = vpop.f32.mrb[12].mxu0  ;;  %v600_v56 = vpop.f32.mrb[12].mxu1 }
 0x104   : > { %v379_v57 = vadd.f32 %v378_v55, %v1064_v27  ;;  %v601_v58 = vadd.f32 %v600_v56, %v1066_v28  ;;  %v380_v59 = vpop.f32.mrb[13].mxu0  ;;  %v602_v60 = vpop.f32.mrb[13].mxu1 }
 0x105   : > { %472 = vst [vmem:[%s1084_s8 + $0x50] sm:$0xff] %v869_v53  ;;  %857 = vst [vmem:[%s1084_s8 + $0x58] sm:$0xff] %v877_v54  ;;  %v381_v61 = vadd.f32 %v380_v59, %v1068_v29  ;;  %v603_v62 = vadd.f32 %v602_v60, %v1070_v30  ;;  %v382_v63 = vpop.f32.mrb[14].mxu0  ;;  %v604_v0 = vpop.f32.mrb[14].mxu1 }
 0x106   : > { %v399_v1 = vmax.f32 %v379_v57, 0.0  ;;  %v621_v2 = vmax.f32 %v601_v58, 0.0  ;;  %v383_v3 = vadd.f32 %v382_v63, %v1064_v27  ;;  %v605_v4 = vadd.f32 %v604_v0, %v1066_v28  ;;  %v384_v5 = vpop.f32.mrb[15].mxu0  ;;  %v606_v6 = vpop.f32.mrb[15].mxu1 }
 0x107   : > { %v400_v7 = vmax.f32 %v381_v61, 0.0  ;;  %v622_v8 = vmax.f32 %v603_v62, 0.0  ;;  %v385_v9 = vadd.f32 %v384_v5, %v1068_v29  ;;  %v607_v10 = vadd.f32 %v606_v6, %v1070_v30 }
 0x108   : > { %v401_v11 = vmax.f32 %v383_v3, 0.0  ;;  %v623_v12 = vmax.f32 %v605_v4, 0.0 }
 0x109   : > { %v870_v13 = vpack.c.bf16 %v400_v7, %v399_v1  ;;  %v878_v14 = vpack.c.bf16 %v622_v8, %v621_v2  ;;  %v402_v15 = vmax.f32 %v385_v9, 0.0  ;;  %v624_v16 = vmax.f32 %v607_v10, 0.0 }
 0x10b   : > { %473 = vst [vmem:[%s1084_s8 + $0x60] sm:$0xff] %v870_v13  ;;  %858 = vst [vmem:[%s1084_s8 + $0x68] sm:$0xff] %v878_v14  ;;  %v871_v27 = vpack.c.bf16 %v402_v15, %v401_v11  ;;  %v879_v28 = vpack.c.bf16 %v624_v16, %v623_v12 }
 0x10d   : > { %474 = vst [vmem:[%s1084_s8 + $0x70] sm:$0xff] %v871_v27  ;;  %859 = vst [vmem:[%s1084_s8 + $0x78] sm:$0xff] %v879_v28 }
 0x10e PF: > { %s13_s14 = sadd.s32 1, %s955_s14   ;;  %s1139_s12 = smov %s951_s13 }
 0x10f   : > { %p10_p5 = scmp.ge.s32.totalorder %s13_s14, 4   ;;  %s1140_s13 = smov %s1142_s15 }
 0x111   :  { %12 = sbr.rel (!%p10_p5) target bundleno = 2 (0x2), region = 64 }

// kernel: upsampling_forward.3
= control target key start
LH: loop header
LB: loop body
LE: loop exit
PB: predicated region body
PF: predicated region fallthrough
CT: control target
= control target key end

     0   :  { %s17813_s0 = inlined_call_operand.vmem [shape: bf16[2,16,16,64], index: 0, kind: input, shape index: {}]   ;;  %s17814_s1 = inlined_call_operand.vmem [shape: bf16[2,2,2,16,64], index: 1, kind: input, shape index: {}]   ;;  %s17815_s2 = inlined_call_operand.vmem [shape: bf16[2,2,2,16,64], index: 2, kind: input, shape index: {}]   ;;  %s17816_s3 = inlined_call_operand.vmem [shape: bf16[2,16,16,128], index: 3, kind: input, shape index: {}]   ;;  %s17817_s4 = inlined_call_operand.vmem [shape: bf16[2,2,2,16,128], index: 4, kind: input, shape index: {}]   ;;  %s17818_s5 = inlined_call_operand.vmem [shape: bf16[2,2,2,16,128], index: 5, kind: input, shape index: {}]   ;;  %s17819_s6 = inlined_call_operand.vmem [shape: bf16[576,128], index: 6, kind: input, shape index: {}]   ;;  %s17820_s7 = inlined_call_operand.vmem [shape: bf16[1152,128], index: 7, kind: input, shape index: {}]   ;;  %s17821_s8 = inlined_call_operand.vmem [shape: bf16[1152,128], index: 8, kind: input, shape index: {}]   ;;  %s17822_s9 = inlined_call_operand.vmem [shape: bf16[128,128], index: 9, kind: input, shape index: {}]   ;;  %s17823_s10 = inlined_call_operand.vmem [shape: f32[1,128], index: 10, kind: input, shape index: {}]   ;;  %s17824_s11 = inlined_call_operand.vmem [shape: f32[1,128], index: 11, kind: input, shape index: {}]   ;;  %s17825_s12 = inlined_call_operand.vmem [shape: f32[1,128], index: 12, kind: input, shape index: {}]   ;;  %s17826_s13 = inlined_call_operand.hbm [shape: f32[2,16,16,128], index: 13, kind: output, shape index: {}]  }
   0x1   :  { %17981 = sst [smem:[#allocation151_spill]] %s17826_s13 }
   0x2   :  { %18 = vsyncpa [#allocation6], 0 }
   0x3   :  { %20 = vsyncpa [#allocation6 + $0x1], 0  ;;  %s13135_s25 = smov 0   ;;  %s13137_s26 = smov 0  }
   0x4   :  { %s13139_s27 = smov 0   ;;  %s13141_s28 = smov 0  }
   0x5   :  { %s13143_s29 = smov 0   ;;  %s13145_s30 = smov 0  }
   0x6   :  { %s13147_s14 = smov 0   ;;  %s13149_s15 = smov 0  }
   0x7 LB: > { %17982 = sst [smem:[#allocation8_spill]] %s13028_s25  ;;  %s11013_s16 = sadd.s32 4294967295, %s13056_s15   ;;  %s13056_s15 = sphi %s13149_s15, %s26_s15   ;;  %s13052_s14 = sphi %s13147_s14, %s18593_s14   ;;  %s13048_s30 = sphi %s13145_s30, %s18592_s30   ;;  %s13044_s29 = sphi %s13143_s29, %s18591_s29   ;;  %s13040_s28 = sphi %s13141_s28, %s18590_s28   ;;  %s13036_s27 = sphi %s13139_s27, %s18589_s27   ;;  %s13032_s26 = sphi %s13137_s26, %s18588_s26   ;;  %s13028_s25 = sphi %s13135_s25, %s18587_s25  }
   0x8   : > { %17983 = sst [smem:[#allocation9_spill]] %s13032_s26  ;;  %s11014_s17 = sadd.s32 4294967294, %s13056_s15  }
   0x9   : > { %17984 = sst [smem:[#allocation10_spill]] %s13036_s27  ;;  %s35_s18 = sadd.s32 1, %s13048_s30 }
   0xa   : > { %17985 = sst [smem:[#allocation11_spill]] %s13048_s30  ;;  %p36_p0 = scmp.ge.s32.totalorder %s35_s18, 2 }
   0xb   : > { %17986 = sst [smem:[#allocation12_spill]] %s13052_s14  ;;  %s38_s19 = sadd.s32 1, %s13052_s14 }
   0xc   : > { %17987 = sst [smem:[#allocation13_spill]] %s13056_s15  ;;  %p372_p1 = scmp.ne.s32.totalorder %s13036_s27, %s13032_s26 }
   0xd   : > { %p373_p2 = scmp.eq.s32.totalorder %s11013_s16, 3  ;;  %s18595_s18 = smov (%p36_p0, %s35_s18), 0 }
   0xe   : > { %17988 = sst [smem:[#allocation14_spill]] %s18595_s18  ;;  %s18597_s19 = smov (!%p36_p0, %s38_s19), %s13052_s14 }
   0xf   : > { %s358_s20 = ssub.s32 %s13048_s30, %s18595_s18  ;;  %p13186_p3 = por %p373_p2, %p372_p1 }
  0x10   : > { %p40_p4 = scmp.ge.s32.totalorder %s18597_s19, 2  ;;  %p378_p5 = scmp.ne.s32.totalorder %s13032_s26, %s13028_s25 }
  0x11   : > { %s17989_s21 = scalar_select %p13186_p3, 1, 0 }
  0x12   : > { %p379_p6 = scmp.eq.s32.totalorder %s11014_s17, 3  ;;  %p11017_p7 = scmp.ge.s32.totalorder %s13056_s15, 1 }
  0x13   : > { %17990 = sst [smem:[#allocation15_spill]] %s17989_s21  ;;  %s18599_s19 = smov (%p40_p4, %s18597_s19), 0 }
  0x14   : > { %17991 = sst [smem:[#allocation16_spill]] %s18599_s19  ;;  %p13195_p8 = por %p379_p6, %p378_p5 }
  0x15   : > { %p494_p9 = scmp.lt.s32.totalorder %s13056_s15, 5  ;;  %s357_s23 = ssub.s32 %s13052_s14, %s18599_s19 }
  0x16   : > { %s17992_s22 = scalar_select %p13195_p8, 1, 0 }
  0x17   : > { %s362_s24 = sadd.s32 1, %s13036_s27  ;;  %s359_s16 = sor.u32 %s358_s20, %s357_s23 }
  0x18   : > { %17993 = sst [smem:[#allocation17_spill]] %s17992_s22  ;;  %p495_p10 = pnand %p11017_p7, %p494_p9 }
  0x19   : > { %p360_p11 = scmp.eq.s32.totalorder %s359_s16, 0 }
  0x1a   : > { %498 = sbr.rel (%p495_p10) target bundleno = 1787 (0x6fb), region = 72 }
  0x1b   : > { %s13204_s18 = scalar_select %p360_p11, %s13036_s27, %s362_s24  }
  0x1d   : > { %17994 = sst [smem:[#allocation18_spill]] %s13204_s18 }
  0x21   : > { %s17834_s17 = sand.u32 1, %s13032_s26   ;;  %v12703_v0 = vld [vmem:[%s17820_s7 + $0x40] sm:$0xff]   ;;  %v12707_v4 = vld [vmem:[%s17820_s7 + $0x48] sm:$0xff]   ;;  %v12711_v8 = vld [vmem:[%s17820_s7 + $0x50] sm:$0xff]   ;;  %s11019_s22 = sshll.u32 %s13040_s28, 3  ;;  %v13058_v22 = vmov 0  }
  0x22   : > { %s13212_s13 = sshll.u32 %s17834_s17, 7  ;;  %v12704_v1 = vld [vmem:[%s17820_s7 + $0xc0] sm:$0xff]   ;;  %11626 = vmatprep.subr.bf16.mxu0 %v12703_v0  ;;  %v12708_v5 = vld [vmem:[%s17820_s7 + $0xc8] sm:$0xff]   ;;  %v12712_v9 = vld [vmem:[%s17820_s7 + $0xd0] sm:$0xff]   ;;  %p590_p12 = scmp.lt.s32.totalorder %s13044_s29, 1  ;;  %vm649_vm0 = vcmask 516096  }
  0x23   : > { %v12705_v2 = vld [vmem:[%s17820_s7] sm:$0xff]   ;;  %11702 = vmatprep.subr.bf16.mxu1 %v12704_v1  ;;  %v12709_v6 = vld [vmem:[%s17820_s7 + $0x8] sm:$0xff]   ;;  %v12713_v10 = vld [vmem:[%s17820_s7 + $0x10] sm:$0xff]   ;;  %p602_p13 = scmp.lt.s32.totalorder %s13040_s28, 1  ;;  %p592_p0 = scmp.lt.s32.totalorder %s11019_s22, 15  ;;  %vm662_vm1 = vcmask 517121  }
  0x24   : > { %v12706_v3 = vld [vmem:[%s17820_s7 + $0x80] sm:$0xff]   ;;  %11627 = vmatpush3.bf16.msra.mxu0 %v12705_v2  ;;  %v12710_v7 = vld [vmem:[%s17820_s7 + $0x88] sm:$0xff]   ;;  %v12714_v11 = vld [vmem:[%s17820_s7 + $0x90] sm:$0xff]   ;;  %s13260_s19 = scalar_select %p590_p12, %s13044_s29, 1  ;;  %863 = vst [vmem:[#allocation3 + $0xc] sm:$0x1] %v13058_v22 }
  0x25   : > { %11703 = vmatpush3.bf16.msra.mxu1 %v12706_v3  ;;  %11628 = vmatprep.subr.bf16.mxu0 %v12707_v4  ;;  %v12715_v12 = vld [vmem:[%s17820_s7 + $0x58] sm:$0xff]   ;;  %s13266_s17 = scalar_select %p602_p13, %s13040_s28, 1  ;;  %v12719_v16 = vld [vmem:[%s17820_s7 + $0x60] sm:$0xff]   ;;  %v12723_v20 = vld [vmem:[%s17820_s7 + $0x68] sm:$0xff]   ;;  %862 = vst [vmem:[#allocation3] sm:$0x1] %v13058_v22 }
  0x26   : > { %11704 = vmatprep.subr.bf16.mxu1 %v12708_v5  ;;  %v12716_v13 = vld [vmem:[%s17820_s7 + $0xd8] sm:$0xff]   ;;  %v12720_v17 = vld [vmem:[%s17820_s7 + $0xe0] sm:$0xff]   ;;  %s18601_s22 = smov (!%p592_p0, %s11019_s22), 15  ;;  %s11024_s24 = sshll.u32 %s13260_s19, 3  ;;  %v12724_v21 = vld [vmem:[%s17820_s7 + $0xe8] sm:$0xff]   ;;  %vm683_vm2 = vcmask 1040384  }
  0x27   : > { %v12717_v14 = vld [vmem:[%s17820_s7 + $0x18] sm:$0xff]   ;;  %v12721_v18 = vld [vmem:[%s17820_s7 + $0x20] sm:$0xff]   ;;  %s11023_s25 = sshll.u32 %s13266_s17, 2  ;;  %864 = vst [vmem:[#allocation3 + $0x18] sm:$0x1] %v13058_v22  ;;  %v12725_v23 = vld [vmem:[%s17820_s7 + $0x28] sm:$0xff]  }
  0x28   : > { %11629 = vmatpush3.bf16.msra.mxu0 %v12709_v6  ;;  %v12718_v15 = vld [vmem:[%s17820_s7 + $0x98] sm:$0xff]   ;;  %v12722_v19 = vld [vmem:[%s17820_s7 + $0xa0] sm:$0xff]   ;;  %865 = vst [vmem:[#allocation3 + $0x24] sm:$0x1] %v13058_v22  ;;  %866 = vst [vmem:[#allocation3 + $0x30] sm:$0x1] %v13058_v22  ;;  %s606_s30 = sadd.s32 %s11024_s24, %s11023_s25 }
  0x29   : > { %11705 = vmatpush3.bf16.msra.mxu1 %v12710_v7  ;;  %11630 = vmatprep.subr.bf16.mxu0 %v12711_v8  ;;  %867 = vst [vmem:[#allocation3 + $0x3c] sm:$0x1] %v13058_v22  ;;  %868 = vst [vmem:[#allocation3 + $0x48] sm:$0x1] %v13058_v22  ;;  %v12726_v24 = vld [vmem:[%s17820_s7 + $0xa8] sm:$0xff]   ;;  %s11021_s16 = sshll.u32 %s13260_s19, 5 }
  0x2a   : > { %11706 = vmatprep.subr.bf16.mxu1 %v12712_v9  ;;  %869 = vst [vmem:[#allocation3 + $0x54] sm:$0x1] %v13058_v22  ;;  %870 = vst [vmem:[#allocation3 + $0x60] sm:$0x1] %v13058_v22  ;;  %v12727_v25 = vld [vmem:[%s17820_s7 + $0x70] sm:$0xff]   ;;  %s11020_s27 = sshll.u32 %s18601_s22, 1 }
  0x2b   : > { %871 = vst [vmem:[#allocation3 + $0x6c] sm:$0x1] %v13058_v22  ;;  %872 = vst [vmem:[#allocation3 + $0x78] sm:$0x1] %v13058_v22  ;;  %v12728_v26 = vld [vmem:[%s17820_s7 + $0xf0] sm:$0xff]   ;;  %s13379_s17 = sshll.u32 %s606_s30, 2  ;;  %s13404_s30 = sadd.s32 %s11021_s16, %s11020_s27 }
  0x2c   : > { %11631 = vmatpush3.bf16.msra.mxu0 %v12713_v10  ;;  %873 = vst [vmem:[#allocation3 + $0x84] sm:$0x1] %v13058_v22  ;;  %874 = vst [vmem:[#allocation3 + $0x8] sm:$0x2] %v13058_v22  ;;  %v12729_v27 = vld [vmem:[%s17820_s7 + $0x30] sm:$0xff]   ;;  %v12731_v29 = vld [vmem:[%s17820_s7 + $0x78] sm:$0xff]   ;;  %s637_s14 = scalar_lea.vmem %s17817_s4, %s13379_s17  ;;  %s13675_s18 = scalar_lea.vmem %s17814_s1, %s13379_s17 }
  0x2d   : > { %11707 = vmatpush3.bf16.msra.mxu1 %v12714_v11  ;;  %11632 = vmatprep.subr.bf16.mxu0 %v12715_v12  ;;  %875 = vst [vmem:[#allocation3 + $0x14] sm:$0x2] %v13058_v22  ;;  %876 = vst [vmem:[#allocation3 + $0x20] sm:$0x2] %v13058_v22  ;;  %v12730_v28 = vld [vmem:[%s17820_s7 + $0xb0] sm:$0xff]   ;;  %v12732_v30 = vld [vmem:[%s17820_s7 + $0xf8] sm:$0xff]   ;;  %s14402_s26 = scalar_lea.vmem %s17818_s5, %s13379_s17  ;;  %s14415_s16 = scalar_lea.vmem %s17815_s2, %s13379_s17 }
  0x2e   : > { %11708 = vmatprep.subr.bf16.mxu1 %v12716_v13  ;;  %877 = vst [vmem:[#allocation3 + $0x2c] sm:$0x2] %v13058_v22  ;;  %878 = vst [vmem:[#allocation3 + $0x38] sm:$0x2] %v13058_v22  ;;  %v12733_v31 = vld [vmem:[%s17820_s7 + $0x38] sm:$0xff]   ;;  %vm684_vm3 = vcmask 1044484  }
  0x2f   : > { %879 = vst [vmem:[#allocation3 + $0x44] sm:$0x2] %v13058_v22  ;;  %880 = vst [vmem:[#allocation3 + $0x50] sm:$0x2] %v13058_v22  ;;  %v12734_v32 = vld [vmem:[%s17820_s7 + $0xb8] sm:$0xff]   ;;  %s11022_s19 = sshll.u32 %s13404_s30, 2 }
  0x30   : > { %11633 = vmatpush3.bf16.msra.mxu0 %v12717_v14  ;;  %881 = vst [vmem:[#allocation3 + $0x5c] sm:$0x2] %v13058_v22  ;;  %882 = vst [vmem:[#allocation3 + $0x68] sm:$0x2] %v13058_v22  ;;  %v886_v33 = vld [vmem:[%s637_s14] sm:$0xf]  ;;  %s13426_s24 = scalar_lea.vmem %s17816_s3, %s11022_s19  ;;  %s13600_s25 = scalar_lea.vmem %s17813_s0, %s11022_s19 }
  0x31   : > { %11709 = vmatpush3.bf16.msra.mxu1 %v12718_v15  ;;  %11634 = vmatprep.subr.bf16.mxu0 %v12719_v16  ;;  %883 = vst [vmem:[#allocation3 + $0x74] sm:$0x2] %v13058_v22  ;;  %884 = vst [vmem:[#allocation3 + $0x80] sm:$0x2] %v13058_v22  ;;  %v887_v34 = vld [vmem:[%s637_s14 + $0x4] sm:$0xf] }
  0x32   : > { %11710 = vmatprep.subr.bf16.mxu1 %v12720_v17  ;;  %885 = vst [vmem:[#allocation3 + $0x8c] sm:$0x2] %v13058_v22  ;;  %7525 = vst [vmem:[#allocation4] sm:$0x1] %v13058_v22  ;;  %v894_v35 = vrot.slane %v886_v33, 7  ;;  %v896_v36 = vrot.slane %v887_v34, 7 }
  0x33   : > { %7526 = vst [vmem:[#allocation4 + $0xc] sm:$0x1] %v13058_v22  ;;  %7527 = vst [vmem:[#allocation4 + $0x18] sm:$0x1] %v13058_v22  ;;  %v888_v37 = vld [vmem:[%s637_s14 + $0x8] sm:$0xf] }
  0x34   : > { %11635 = vmatpush3.bf16.msra.mxu0 %v12721_v18  ;;  %7528 = vst [vmem:[#allocation4 + $0x24] sm:$0x1] %v13058_v22  ;;  %7529 = vst [vmem:[#allocation4 + $0x30] sm:$0x1] %v13058_v22  ;;  %v889_v38 = vld [vmem:[%s637_s14 + $0xc] sm:$0xf] }
  0x35   : > { %11711 = vmatpush3.bf16.msra.mxu1 %v12722_v19  ;;  %7530 = vst [vmem:[#allocation4 + $0x3c] sm:$0x1] %v13058_v22  ;;  %7531 = vst [vmem:[#allocation4 + $0x48] sm:$0x1] %v13058_v22  ;;  %11636 = vmatprep.subr.bf16.mxu0 %v12723_v20  ;;  %v17995_v39 = vmov 0  ;;  %v899_v40 = vrot.slane %v888_v37, 7 }
  0x36   : > { %7532 = vst [vmem:[#allocation4 + $0x54] sm:$0x1] %v13058_v22  ;;  %7533 = vst [vmem:[#allocation4 + $0x60] sm:$0x1] %v13058_v22  ;;  %11712 = vmatprep.subr.bf16.mxu1 %v12724_v21  ;;  %v901_v41 = vrot.slane %v889_v38, 7  ;;  %v895_v42 = vrot.slane %v894_v35, 4 }
  0x37   : > { %7534 = vst [vmem:[#allocation4 + $0x6c] sm:$0x1] %v13058_v22  ;;  %7535 = vst [vmem:[#allocation4 + $0x8] sm:$0x2] %v13058_v22  ;;  %v898_v43 = vrot.slane %v896_v36, 4  ;;  %v900_v44 = vrot.slane %v899_v40, 4 }
  0x38   : > { %7536 = vst [vmem:[#allocation4 + $0x14] sm:$0x2] %v13058_v22  ;;  %7537 = vst [vmem:[#allocation4 + $0x20] sm:$0x2] %v13058_v22  ;;  %11637 = vmatpush3.bf16.msra.mxu0 %v12725_v23  ;;  %v903_v45 = vrot.slane %v901_v41, 4  ;;  %v12735_v46 = vld [vmem:[%s17820_s7 + $0x140] sm:$0xff]  }
  0x39   : > { %7538 = vst [vmem:[#allocation4 + $0x2c] sm:$0x2] %v13058_v22  ;;  %7539 = vst [vmem:[#allocation4 + $0x38] sm:$0x2] %v13058_v22  ;;  %11713 = vmatpush3.bf16.msra.mxu1 %v12726_v24  ;;  %11638 = vmatprep.subr.bf16.mxu0 %v12727_v25  ;;  %v916_v49 = vld [vmem:[%s13426_s24] sm:$0xf] }
  0x3a   : > { %7540 = vst [vmem:[#allocation4 + $0x44] sm:$0x2] %v13058_v22  ;;  %7541 = vst [vmem:[#allocation4 + $0x50] sm:$0x2] %v13058_v22  ;;  %11714 = vmatprep.subr.bf16.mxu1 %v12728_v26  ;;  %v917_v50 = vld [vmem:[%s13426_s24 + $0x4] sm:$0xf] }
  0x3b   : > { %7542 = vst [vmem:[#allocation4 + $0x5c] sm:$0x2] %v13058_v22  ;;  %7543 = vst [vmem:[#allocation4 + $0x68] sm:$0x2] %v13058_v22  ;;  %vm1098_vm5 = vsmask.f32 3328 }
  0x3c   : > { %7544 = vst [vmem:[#allocation4 + $0x74] sm:$0x2] %v13058_v22  ;;  %650 = vst.msk [vmem:[#allocation2] sm:$0x1] %vm649_vm0, %v13058_v22  ;;  %11639 = vmatpush3.bf16.msra.mxu0 %v12729_v27  ;;  %vm1099_vm6 = vsmask.f32 7440 }
  0x3d   : > { %651 = vst.msk [vmem:[#allocation2 + $0xc] sm:$0x1] %vm649_vm0, %v13058_v22  ;;  %652 = vst.msk [vmem:[#allocation2 + $0x18] sm:$0x1] %vm649_vm0, %v13058_v22  ;;  %11715 = vmatpush3.bf16.msra.mxu1 %v12730_v28  ;;  %11640 = vmatprep.subr.bf16.mxu0 %v12731_v29  ;;  %v948_v51 = vrot.slane %v916_v49, 7  ;;  %v950_v52 = vrot.slane %v917_v50, 7 }
  0x3e   : > { %653 = vst.msk [vmem:[#allocation2 + $0x24] sm:$0x1] %vm649_vm0, %v13058_v22  ;;  %654 = vst.msk [vmem:[#allocation2 + $0x30] sm:$0x1] %vm649_vm0, %v13058_v22  ;;  %11716 = vmatprep.subr.bf16.mxu1 %v12732_v30  ;;  %v13438_v53 = vld [vmem:[%s13426_s24 + $0x8] sm:$0xf] }
  0x3f   : > { %655 = vst.msk [vmem:[#allocation2 + $0x3c] sm:$0x1] %vm649_vm0, %v13058_v22  ;;  %656 = vst.msk [vmem:[#allocation2 + $0x48] sm:$0x1] %vm649_vm0, %v13058_v22  ;;  %vm1381_vm7 = vcmask 1042432   ;;  %v949_v54 = vrot.slane %v948_v51, 4 }
  0x40   : > { %657 = vst.msk [vmem:[#allocation2 + $0x54] sm:$0x1] %vm649_vm0, %v13058_v22  ;;  %658 = vst.msk [vmem:[#allocation2 + $0x60] sm:$0x1] %vm649_vm0, %v13058_v22  ;;  %11641 = vmatpush3.bf16.msra.mxu0 %v12733_v31  ;;  %v952_v55 = vrot.slane %v950_v52, 4  ;;  %v953_v57 = vrot.slane %v13438_v53, 7 }
  0x41   : > { %659 = vst.msk [vmem:[#allocation2 + $0x6c] sm:$0x1] %vm649_vm0, %v13058_v22  ;;  %660 = vst.msk [vmem:[#allocation2 + $0x78] sm:$0x1] %vm649_vm0, %v13058_v22  ;;  %11717 = vmatpush3.bf16.msra.mxu1 %v12734_v32  ;;  %11778 = vmatprep.subr.bf16.mxu0 %v12735_v46  ;;  %v13441_v56 = vld [vmem:[%s13426_s24 + $0xc] sm:$0xf] }
  0x42   : > { %661 = vst.msk [vmem:[#allocation2 + $0x84] sm:$0x1] %vm649_vm0, %v13058_v22  ;;  %vm13417_vm4 = vmor %vm683_vm2, %vm684_vm3  ;;  %vm1382_vm8 = vcmask 1046532   ;;  %v955_v60 = vrot.slane %v13441_v56, 7  ;;  %vm1464_vm9 = vsmask.f32 2304 }
  0x43   : > { %664 = vst.msk [vmem:[#allocation2 + $0x14] sm:$0x2] %vm662_vm1, %v13058_v22  ;;  %663 = vst.msk [vmem:[#allocation2 + $0x8] sm:$0x2] %vm662_vm1, %v13058_v22  ;;  %v17996_v39 = vsel %vm13417_vm4, 4294967295, %v17995_v39  ;;  %v897_v47 = vsel %vm13417_vm4, %v895_v42, %v896_v36  ;;  %v902_v48 = vsel %vm13417_vm4, %v900_v44, %v901_v41  ;;  %v951_v6 = vsel %vm13417_vm4, %v949_v54, %v950_v52  ;;  %s13059_s15 = smov 64  }
  0x44   : > { %665 = vst.msk [vmem:[#allocation2 + $0x20] sm:$0x2] %vm662_vm1, %v13058_v22  ;;  %666 = vst.msk [vmem:[#allocation2 + $0x2c] sm:$0x2] %vm662_vm1, %v13058_v22  ;;  %vm1465_vm10 = vsmask.f32 6416 }
  0x45   : > { %667 = vst.msk [vmem:[#allocation2 + $0x38] sm:$0x2] %vm662_vm1, %v13058_v22  ;;  %668 = vst.msk [vmem:[#allocation2 + $0x44] sm:$0x2] %vm662_vm1, %v13058_v22  ;;  %v17998_v7 = vmov 0  ;;  %v18001_v32 = vmov 0 }
  0x46   : > { %669 = vst.msk [vmem:[#allocation2 + $0x50] sm:$0x2] %vm662_vm1, %v13058_v22  ;;  %670 = vst.msk [vmem:[#allocation2 + $0x5c] sm:$0x2] %vm662_vm1, %v13058_v22  ;;  %vm702_vm14 = vcmask 519169   ;;  %vm704_vm15 = vcmask 519168  }
  0x47   : > { %671 = vst.msk [vmem:[#allocation2 + $0x68] sm:$0x2] %vm662_vm1, %v13058_v22  ;;  %672 = vst.msk [vmem:[#allocation2 + $0x74] sm:$0x2] %vm662_vm1, %v13058_v22  ;;  %s16670_s14 = scalar_lea.vmem [#allocation5], %s13212_s13  ;;  %p11418_p1 = scmp.ne.s32.totalorder %s13040_s28, 0 }
  0x48   : > { %673 = vst.msk [vmem:[#allocation2 + $0x80] sm:$0x2] %vm662_vm1, %v13058_v22  ;;  %674 = vst.msk [vmem:[#allocation2 + $0x8c] sm:$0x2] %vm662_vm1, %v13058_v22 }
  0x49   : > { %17997 = vst [vmem:[#allocation19_spill] sm:$0xff] %v17996_v39  ;;  %910 = vst [vmem:[#allocation3] sm:$0xe] %v894_v35 }
  0x4a   : > { %913 = vst [vmem:[#allocation3 + $0xc] sm:$0xe] %v899_v40  ;;  %912 = vst [vmem:[#allocation3 + $0x8] sm:$0x1] %v898_v43 }
  0x4b   : > { %911 = vst [vmem:[#allocation3 + $0x4] sm:$0xf] %v897_v47  ;;  %915 = vst [vmem:[#allocation3 + $0x14] sm:$0x1] %v903_v45 }
  0x4c   : > { %914 = vst [vmem:[#allocation3 + $0x10] sm:$0xf] %v902_v48  ;;  %1013 = vst [vmem:[#allocation3 + $0x18] sm:$0xe] %v948_v51 }
  0x4d   : > { %1015 = vst [vmem:[#allocation3 + $0x20] sm:$0x1] %v952_v55  ;;  %1016 = vst [vmem:[#allocation3 + $0x24] sm:$0xe] %v953_v57 }
  0x4e   : > { %vm13451_vm11 = vmor %vm1381_vm7, %vm1382_vm8  ;;  %1014 = vst [vmem:[#allocation3 + $0x1c] sm:$0xf] %v951_v6 }
  0x4f   : > { %v17999_v7 = vsel %vm13451_vm11, 4294967295, %v17998_v7  ;;  %vm13470_vm12 = vmor %vm1098_vm5, %vm1099_vm6 }
  0x50   : > { %v3791_v58 = vld [vmem:[#allocation3] sm:$0xe]  ;;  %18000 = vst [vmem:[#allocation20_spill] sm:$0xff] %v17999_v7  ;;  %v18002_v32 = vsel %vm13470_vm12, 4294967295, %v18001_v32  ;;  %vm13492_vm13 = vmor %vm1464_vm9, %vm1465_vm10 }
  0x51   : > { %v3521_v59 = vld [vmem:[#allocation3] sm:$0xf]  ;;  %v11159_v61 = vrot.slane %v3791_v58, 9  ;;  %v3912_v62 = vshrl.u32 %v3791_v58, 16  ;;  %v3915_v63 = vshll.u32 %v3791_v58, 16  ;;  %18003 = vst [vmem:[#allocation21_spill] sm:$0xff] %v18002_v32 }
  0x52   : > { %v4142_v0 = vld [vmem:[#allocation3 + $0xc] sm:$0xf]  ;;  %v3552_v1 = vshrl.u32 %v3521_v59, 16  ;;  %v3523_v2 = vld [vmem:[#allocation3 + $0x8] sm:$0x1]  ;;  %v3555_v5 = vshll.u32 %v3521_v59, 16 }
  0x53   : > { %v4173_v3 = vshrl.u32 %v4142_v0, 16  ;;  %v4176_v4 = vshll.u32 %v4142_v0, 16  ;;  %v3522_v8 = vld [vmem:[#allocation3 + $0x4] sm:$0xf]  ;;  %v3571_v9 = vshll.u32 %v3523_v2, 16  ;;  %v3836_v10 = vrot.slane %v3523_v2, 5 }
  0x54   : > { %v3914_v11 = vrot.slane %v3912_v62, 5  ;;  %v3917_v12 = vrot.slane %v3915_v63, 6  ;;  %v3561_v13 = vshll.u32 %v3522_v8, 16  ;;  %v3565_v14 = vshrl.u32 %v3522_v8, 16  ;;  %v13455_v16 = vld [vmem:[#allocation3 + $0x10] sm:$0xf] }
  0x55   : > { %v3833_v15 = vrot.slane %v3522_v8, 5  ;;  %v4175_v17 = vrot.slane %v4173_v3, 4  ;;  %v13457_v18 = vrot.slane %v3571_v9, 5  ;;  %v4144_v19 = vld [vmem:[#allocation3 + $0x14] sm:$0x1]  ;;  %v4178_v20 = vrot.slane %v4176_v4, 5 }
  0x56   : > { %v4182_v21 = vshll.u32 %v13455_v16, 16  ;;  %v17852_v22 = vshrl.u32 %v13455_v16, 16  ;;  %v4192_v25 = vshll.u32 %v4144_v19, 16  ;;  %v17849_v26 = vrot.slane %v13455_v16, 5  ;;  %v3901_v41 = vld [vmem:[#allocation3 + $0x8] sm:$0x3] }
  0x57   : > { %v3834_v23 = vsel %vm13451_vm11, %v11159_v61, %v3833_v15  ;;  %v3835_v24 = vrot.slane %v3833_v15, 4  ;;  %v4179_v27 = vor.u32 %v4178_v20, %v4175_v17  ;;  %v4457_v30 = vrot.slane %v4144_v19, 5  ;;  %v13484_v55 = vld [vmem:[#allocation3 + $0x14] sm:$0x1]  ;;  %v13486_v58 = vld [vmem:[#allocation3 + $0xc] sm:$0xe] }
  0x58   : > { %v4184_v28 = vrot.slane %v4182_v21, 5  ;;  %v4188_v29 = vrot.slane %v17852_v22, 4  ;;  %v4194_v33 = vrot.slane %v4192_v25, 5  ;;  %v4456_v34 = vrot.slane %v17849_v26, 4  ;;  %v13496_v0 = vld [vmem:[#allocation3 + $0x10] sm:$0xf] }
  0x59   : > { %v3837_v31 = vsel %vm13451_vm11, %v3835_v24, %v3836_v10  ;;  %v13476_v35 = vrot.slane %v4182_v21, 6  ;;  %v4180_v37 = vrot.slane %v4179_v27, 4  ;;  %v3554_v40 = vrot.slane %v3552_v1, 4  ;;  %v4145_v6 = vld [vmem:[#allocation3 + $0x18] sm:$0xf]  ;;  %v12736_v20 = vld [vmem:[%s17820_s7 + $0x100] sm:$0xff]  }
  0x5a   : > { %v11199_v36 = vcombine.low %v3834_v23, %v3837_v31  ;;  %v4189_v38 = vor.u32 %v4188_v29, %v4184_v28  ;;  %v13480_v42 = vsel %vm13451_vm11, %v4456_v34, %v4457_v30  ;;  %v3557_v43 = vrot.slane %v3555_v5, 5  ;;  %v13499_v8 = vld [vmem:[#allocation3 + $0x1c] sm:$0xf]  ;;  %v3524_v21 = vld [vmem:[#allocation3 + $0xc] sm:$0xf] }
  0x5b   : > { %v3563_v44 = vrot.slane %v3561_v13, 5  ;;  %v3567_v45 = vrot.slane %v3565_v14, 4  ;;  %v4185_v46 = vsel %vm13470_vm12, %v4180_v37, %v4184_v28  ;;  %v3918_v48 = vor.u32 %v3917_v12, %v3914_v11  ;;  %v12737_v28 = vld [vmem:[%s17820_s7 + $0x148] sm:$0xff]  }
  0x5c   : > { %6350 = vmatprep.mubr.bf16.mxu0 %v11199_v36  ;;  %v4190_v47 = vrot.slane %v4189_v38, 4  ;;  %v3920_v49 = vrot.slane %v3565_v14, 5  ;;  %v3558_v50 = vor.u32 %v3557_v43, %v3554_v40  ;;  %v3921_v52 = vrot.slane %v3561_v13, 6  ;;  %v4147_v13 = vld [vmem:[#allocation3 + $0x20] sm:$0x1] }
  0x5d   : > { %v3568_v51 = vor.u32 %v3567_v45, %v3563_v44  ;;  %v3926_v54 = vshrl.u32 %v3901_v41, 16  ;;  %v3919_v62 = vrot.slane %v3918_v48, 4  ;;  %v3929_v63 = vshll.u32 %v3901_v41, 16 }
  0x5e   : > { %v4195_v59 = vsel %vm13470_vm12, %v4190_v47, %v4194_v33  ;;  %v11160_v1 = vrot.slane %v13486_v58, 9  ;;  %v3559_v3 = vrot.slane %v3558_v50, 4  ;;  %v3922_v5 = vor.u32 %v3921_v52, %v3920_v49  ;;  %v12739_v49 = vld [vmem:[%s17820_s7 + $0x150] sm:$0xff]  }
  0x5f   : > { %v11219_v2 = vcombine.low %v4185_v46, %v4195_v59  ;;  %v3569_v4 = vrot.slane %v3568_v51, 4  ;;  %v3928_v9 = vrot.slane %v3926_v54, 5  ;;  %v3931_v10 = vrot.slane %v3929_v63, 6 }
  0x60   : > { %v3840_v11 = vrot.slane %v13496_v0, 5  ;;  %v3843_v12 = vrot.slane %v13484_v55, 5  ;;  %v3564_v14 = vsel %vm13470_vm12, %v3559_v3, %v3563_v44  ;;  %v3923_v17 = vsel %vm13492_vm13, %v3919_v62, %v3922_v5  ;;  %v12738_v44 = vld [vmem:[%s17820_s7 + $0x108] sm:$0xff]  }
  0x61   : > { %6463 = vmatprep.mubr.bf16.mxu1 %v11219_v2  ;;  %v3574_v15 = vsel %vm13470_vm12, %v3569_v4, %v13457_v18  ;;  %v3924_v19 = vrot.slane %v3922_v5, 4  ;;  %v3932_v24 = vor.u32 %v3931_v10, %v3928_v9  ;;  %v4197_v18 = vshrl.u32 %v4145_v6, 16  ;;  %v12740_v2 = vld [vmem:[%s17820_s7 + $0x110] sm:$0xff]   ;;  %v3902_v9 = vld [vmem:[#allocation3 + $0x14] sm:$0x3] }
  0x62   : > { %v11189_v23 = vcombine.low %v3564_v14, %v3574_v15  ;;  %v3841_v25 = vsel %vm13451_vm11, %v11160_v1, %v3840_v11  ;;  %v3842_v27 = vrot.slane %v3840_v11, 4  ;;  %v4200_v29 = vshll.u32 %v4145_v6, 16 }
  0x63   : > { %v17847_v30 = vshll.u32 %v13499_v8, 16  ;;  %v17848_v31 = vshrl.u32 %v13499_v8, 16  ;;  %v3933_v33 = vsel %vm13492_vm13, %v3924_v19, %v3932_v24  ;;  %v4216_v36 = vshll.u32 %v4147_v13, 16  ;;  %v13551_v24 = vld [vmem:[#allocation3 + $0x1c] sm:$0xf] }
  0x64   : > { %6351 = vmatmul.mubr.bf16.vlgmr.msra.gmra.mrb[0].mxu0 %v11189_v23  ;;  %v3844_v34 = vsel %vm13451_vm11, %v3842_v27, %v3843_v12  ;;  %v3576_v37 = vshrl.u32 %v3524_v21, 16  ;;  %v11209_v38 = vcombine.low %v3923_v17, %v3933_v33  ;;  %v4199_v41 = vrot.slane %v4197_v18, 4  ;;  %v13547_v17 = vld [vmem:[#allocation3 + $0x20] sm:$0x1]  ;;  %v4148_v33 = vld [vmem:[#allocation3 + $0x24] sm:$0xf] }
  0x65   : > { %11779 = vmatpush3.bf16.msra.mxu0 %v12736_v20  ;;  %v11200_v40 = vcombine.low %v3841_v25, %v3844_v34  ;;  %v4202_v43 = vrot.slane %v4200_v29, 5  ;;  %v4208_v45 = vrot.slane %v17847_v30, 5  ;;  %v4212_v46 = vrot.slane %v17848_v31, 4  ;;  %v13553_v25 = vld [vmem:[#allocation3 + $0x18] sm:$0xe]  ;;  %v12742_v34 = vld [vmem:[%s17820_s7 + $0x118] sm:$0xff]  }
  0x66   : > { %v4218_v47 = vrot.slane %v4216_v36, 5  ;;  %v3578_v48 = vrot.slane %v3576_v37, 4  ;;  %11780 = vmatprep.subr.bf16.mxu0 %v12737_v28  ;;  %6464 = vmatmul.mubr.bf16.vlgmr.msra.gmra.mrb[0].mxu1 %v11209_v38  ;;  %v3579_v51 = vshll.u32 %v3524_v21, 16  ;;  %v3585_v52 = vshll.u32 %v13496_v0, 16  ;;  %v715_v30 = vld [vmem:[%s13600_s25 + $0x14] sm:$0xf] }
  0x67   : > { %6358 = vmatprep.mubr.bf16.mxu0 %v11200_v40  ;;  %v4203_v50 = vor.u32 %v4202_v43, %v4199_v41  ;;  %v3589_v54 = vshrl.u32 %v13496_v0, 16  ;;  %v4213_v59 = vor.u32 %v4212_v46, %v4208_v45  ;;  %v3595_v62 = vshll.u32 %v13484_v55, 16  ;;  %v12741_v55 = vld [vmem:[%s17820_s7 + $0x158] sm:$0xff]   ;;  %v12743_v41 = vld [vmem:[%s17820_s7 + $0x160] sm:$0xff]  }
  0x68   : > { %v3935_v63 = vshrl.u32 %v13486_v58, 16  ;;  %v3938_v1 = vshll.u32 %v13486_v58, 16  ;;  %v3581_v4 = vrot.slane %v3579_v51, 5  ;;  %v3587_v5 = vrot.slane %v3585_v52, 5 }
  0x69   : > { %v4204_v3 = vrot.slane %v4203_v50, 4  ;;  %v3591_v6 = vrot.slane %v3589_v54, 4  ;;  %11781 = vmatpush3.bf16.msra.mxu0 %v12738_v44  ;;  %v4214_v10 = vrot.slane %v4213_v59, 4  ;;  %v3597_v11 = vrot.slane %v3595_v62, 5 }
  0x6a   : > { %v3937_v0 = vrot.slane %v3935_v63, 5  ;;  %v3940_v12 = vrot.slane %v3938_v1, 6  ;;  %11782 = vmatprep.subr.bf16.mxu0 %v12739_v49  ;;  %v3582_v13 = vor.u32 %v3581_v4, %v3578_v48  ;;  %v3943_v15 = vrot.slane %v3589_v54, 5  ;;  %v12744_v63 = vld [vmem:[%s17820_s7 + $0x120] sm:$0xff]  }
  0x6b   : > { %v4209_v58 = vsel %vm13470_vm12, %v4204_v3, %v4208_v45  ;;  %v3592_v14 = vor.u32 %v3591_v6, %v3587_v5  ;;  %v4219_v19 = vsel %vm13470_vm12, %v4214_v10, %v4218_v47  ;;  %v3944_v21 = vrot.slane %v3585_v52, 6  ;;  %v3527_v47 = vld [vmem:[#allocation3 + $0x18] sm:$0xf] }
  0x6c   : > { %v3941_v20 = vor.u32 %v3940_v12, %v3937_v0  ;;  %v3949_v23 = vshrl.u32 %v3902_v9, 16  ;;  %v11220_v27 = vcombine.low %v4209_v58, %v4219_v19  ;;  %v3583_v28 = vrot.slane %v3582_v13, 4  ;;  %v3903_v12 = vld [vmem:[#allocation3 + $0x20] sm:$0x3] }
  0x6d   : > { %v3593_v18 = vrot.slane %v3592_v14, 4  ;;  %v3952_v29 = vshll.u32 %v3902_v9, 16  ;;  %11783 = vmatpush3.bf16.msra.mxu0 %v12740_v2  ;;  %v3945_v37 = vor.u32 %v3944_v21, %v3943_v15  ;;  %v11161_v40 = vrot.slane %v13553_v25, 9 }
  0x6e   : > { %v3942_v36 = vrot.slane %v3941_v20, 4  ;;  %v3951_v38 = vrot.slane %v3949_v23, 5  ;;  %11784 = vmatprep.subr.bf16.mxu0 %v12741_v55  ;;  %6471 = vmatprep.mubr.bf16.mxu1 %v11220_v27  ;;  %v3588_v43 = vsel %vm13470_vm12, %v3583_v28, %v3587_v5  ;;  %v3847_v46 = vrot.slane %v13551_v24, 5  ;;  %v920_v28 = vld [vmem:[%s13426_s24 + $0x10] sm:$0xf] }
  0x6f   : > { %v3598_v44 = vsel %vm13470_vm12, %v3593_v18, %v3597_v11  ;;  %v3954_v45 = vrot.slane %v3952_v29, 6  ;;  %v3947_v50 = vrot.slane %v3945_v37, 4  ;;  %v3850_v51 = vrot.slane %v13547_v17, 5 }
  0x70   : > { %v11190_v48 = vcombine.low %v3588_v43, %v3598_v44  ;;  %v3946_v49 = vsel %vm13492_vm13, %v3942_v36, %v3945_v37  ;;  %v3848_v54 = vsel %vm13451_vm11, %v11161_v40, %v3847_v46  ;;  %v3849_v59 = vrot.slane %v3847_v46, 4  ;;  %v13602_v37 = vld [vmem:[#allocation3 + $0x24] sm:$0xe] }
  0x71   : > { %v3955_v52 = vor.u32 %v3954_v45, %v3951_v38  ;;  %v954_v62 = vrot.slane %v953_v57, 4  ;;  %11785 = vmatpush3.bf16.msra.mxu0 %v12742_v34  ;;  %v957_v1 = vrot.slane %v955_v60, 4  ;;  %v4221_v2 = vshrl.u32 %v4148_v33, 16 }
  0x72   : > { %6359 = vmatmul.mubr.bf16.gmra.mrb[4].mxu0 %v11190_v48  ;;  %v4224_v3 = vshll.u32 %v4148_v33, 16  ;;  %v3600_v4 = vshrl.u32 %v3527_v47, 16  ;;  %11786 = vmatprep.subr.bf16.mxu0 %v12743_v41  ;;  %v3851_v53 = vsel %vm13451_vm11, %v3849_v59, %v3850_v51  ;;  %v3603_v6 = vshll.u32 %v3527_v47, 16 }
  0x73   : > { %v3956_v5 = vsel %vm13492_vm13, %v3947_v50, %v3955_v52  ;;  %v956_v57 = vsel %vm13417_vm4, %v954_v62, %v955_v60  ;;  %v11201_v10 = vcombine.low %v3848_v54, %v3851_v53  ;;  %1018 = vst [vmem:[#allocation3 + $0x2c] sm:$0x1] %v957_v1  ;;  %v4223_v11 = vrot.slane %v4221_v2, 4  ;;  %v921_v62 = vld [vmem:[%s13426_s24 + $0x14] sm:$0xf] }
  0x74   : > { %v11210_v9 = vcombine.low %v3946_v49, %v3956_v5  ;;  %1017 = vst [vmem:[#allocation3 + $0x28] sm:$0xf] %v956_v57  ;;  %v4226_v0 = vrot.slane %v4224_v3, 5  ;;  %v3602_v55 = vrot.slane %v3600_v4, 4  ;;  %v3605_v58 = vrot.slane %v3603_v6, 5 }
  0x75   : > { %v3609_v13 = vshll.u32 %v13551_v24, 16  ;;  %v3613_v14 = vshrl.u32 %v13551_v24, 16  ;;  %11787 = vmatpush3.bf16.msra.mxu0 %v12744_v63  ;;  %6366 = vmatprep.mubr.bf16.mxu0 %v11201_v10  ;;  %v3619_v60 = vshll.u32 %v13547_v17, 16  ;;  %v3958_v15 = vshrl.u32 %v13553_v25, 16  ;;  %v710_v63 = vld [vmem:[%s13600_s25] sm:$0xf] }
  0x76   : > { %6472 = vmatmul.mubr.bf16.gmra.mrb[4].mxu1 %v11210_v9  ;;  %v4227_v56 = vor.u32 %v4226_v0, %v4223_v11  ;;  %v3961_v19 = vshll.u32 %v13553_v25, 16  ;;  %v3606_v20 = vor.u32 %v3605_v58, %v3602_v55  ;;  %v3972_v36 = vshrl.u32 %v3903_v12, 16  ;;  %v711_v10 = vld [vmem:[%s13600_s25 + $0x4] sm:$0xf]  ;;  %v3530_v58 = vld [vmem:[#allocation3 + $0x24] sm:$0xf] }
  0x77   : > { %v3611_v21 = vrot.slane %v3609_v13, 5  ;;  %v3615_v23 = vrot.slane %v3613_v14, 4  ;;  %v3966_v27 = vrot.slane %v3613_v14, 5  ;;  %v3621_v29 = vrot.slane %v3619_v60, 5 }
  0x78   : > { %v13593_v18 = vrot.slane %v4227_v56, 4  ;;  %v3960_v24 = vrot.slane %v3958_v15, 5  ;;  %v3963_v33 = vrot.slane %v3961_v19, 6  ;;  %v3607_v17 = vrot.slane %v3606_v20, 4 }
  0x79   : > { %v3616_v34 = vor.u32 %v3615_v23, %v3611_v21  ;;  %v3967_v25 = vrot.slane %v3609_v13, 6  ;;  %v3975_v40 = vshll.u32 %v3903_v12, 16  ;;  %v11162_v41 = vrot.slane %v13602_v37, 9 }
  0x7a   : > { %v3964_v38 = vor.u32 %v3963_v33, %v3960_v24  ;;  %v958_v43 = vrot.slane %v920_v28, 7  ;;  %v4150_v45 = vld [vmem:[#allocation3 + $0x2c] sm:$0x1]  ;;  %v3612_v46 = vsel %vm13470_vm12, %v3607_v17, %v3611_v21  ;;  %v3974_v49 = vrot.slane %v3972_v36, 5 }
  0x7b   : > { %v13605_v44 = vld [vmem:[#allocation3 + $0x28] sm:$0xf]  ;;  %v3617_v47 = vrot.slane %v3616_v34, 4  ;;  %v3968_v48 = vor.u32 %v3967_v25, %v3966_v27  ;;  %v4240_v52 = vshll.u32 %v4150_v45, 16  ;;  %v3977_v3 = vrot.slane %v3975_v40, 6 }
  0x7c   : > { %v17845_v50 = vshll.u32 %v13605_v44, 16  ;;  %v17846_v51 = vshrl.u32 %v13605_v44, 16  ;;  %v3965_v54 = vrot.slane %v3964_v38, 4  ;;  %v13611_v59 = vld [vmem:[#allocation3 + $0x28] sm:$0xf]  ;;  %v959_v60 = vrot.slane %v958_v43, 4 }
  0x7d   : > { %1019 = vst [vmem:[#allocation3 + $0x30] sm:$0xe] %v958_v43  ;;  %v3622_v1 = vsel %vm13470_vm12, %v3617_v47, %v3621_v29  ;;  %v3970_v2 = vrot.slane %v3968_v48, 4  ;;  %v3532_v4 = vld [vmem:[#allocation3 + $0x2c] sm:$0x1]  ;;  %v3854_v5 = vrot.slane %v13611_v59, 5  ;;  %v3978_v0 = vor.u32 %v3977_v3, %v3974_v49 }
  0x7e   : > { %v4232_v53 = vrot.slane %v17845_v50, 5  ;;  %v4236_v57 = vrot.slane %v17846_v51, 4  ;;  %v4242_v6 = vrot.slane %v4240_v52, 5  ;;  %v11191_v9 = vcombine.low %v3612_v46, %v3622_v1  ;;  %v13641_v47 = vld [vmem:[#allocation3 + $0x2c] sm:$0x3] }
  0x7f   : > { %v3969_v11 = vsel %vm13492_vm13, %v3965_v54, %v3968_v48  ;;  %v3855_v12 = vsel %vm13451_vm11, %v11162_v41, %v3854_v5  ;;  %v3856_v55 = vrot.slane %v3854_v5, 4  ;;  %v3857_v56 = vrot.slane %v3532_v4, 5  ;;  %v12745_v48 = vld [vmem:[%s17820_s7 + $0x1c0] sm:$0xff]   ;;  %v714_v51 = vld [vmem:[%s13600_s25 + $0x10] sm:$0xf] }
  0x80   : > { %v4233_v13 = vsel %vm13470_vm12, %v13593_v18, %v4232_v53  ;;  %v4237_v14 = vor.u32 %v4236_v57, %v4232_v53  ;;  %6367 = vmatmul.mubr.bf16.gmra.mrb[8].mxu0 %v11191_v9  ;;  %v3979_v15 = vsel %vm13492_vm13, %v3970_v2, %v3978_v0  ;;  %v960_v19 = vrot.slane %v921_v62, 7  ;;  %11854 = vmatprep.subr.bf16.mxu1 %v12745_v48 }
  0x81   : > { %v742_v20 = vrot.slane %v710_v63, 7  ;;  %v744_v21 = vrot.slane %v711_v10, 7  ;;  %v11211_v27 = vcombine.low %v3969_v11, %v3979_v15  ;;  %v3858_v28 = vsel %vm13451_vm11, %v3856_v55, %v3857_v56 }
  0x82   : > { %v4238_v23 = vrot.slane %v4237_v14, 4  ;;  %v3624_v29 = vshrl.u32 %v3530_v58, 16  ;;  %v11202_v24 = vcombine.low %v3855_v12, %v3858_v28  ;;  %v961_v18 = vsel %vm13417_vm4, %v959_v60, %v960_v19 }
  0x83   : > { %v962_v33 = vrot.slane %v960_v19, 4  ;;  %v743_v34 = vrot.slane %v742_v20, 4  ;;  %807 = vst.msk [vmem:[#allocation2 + $0x18] sm:$0xe] %vm702_vm14, %v742_v20  ;;  %1020 = vst [vmem:[#allocation3 + $0x34] sm:$0xf] %v961_v18 }
  0x84   : > { %v4151_v17 = vld [vmem:[#allocation3 + $0x30] sm:$0xf]  ;;  %v4243_v25 = vsel %vm13470_vm12, %v4238_v23, %v4242_v6  ;;  %v746_v40 = vrot.slane %v744_v21, 4  ;;  %6374 = vmatprep.mubr.bf16.mxu0 %v11202_v24  ;;  %v3626_v45 = vrot.slane %v3624_v29, 4  ;;  %v3627_v46 = vshll.u32 %v3530_v58, 16 }
  0x85   : > { %v4245_v36 = vshrl.u32 %v4151_v17, 16  ;;  %v4248_v38 = vshll.u32 %v4151_v17, 16  ;;  %v11221_v41 = vcombine.low %v4233_v13, %v4243_v25  ;;  %1021 = vst [vmem:[#allocation3 + $0x38] sm:$0x1] %v962_v33  ;;  %v745_v43 = vsel %vm13417_vm4, %v743_v34, %v744_v21  ;;  %v12746_v23 = vld [vmem:[%s17820_s7 + $0x180] sm:$0xff]  }
  0x86   : > { %808 = vst.msk [vmem:[#allocation2 + $0x1c] sm:$0xf] %vm704_vm15, %v745_v43  ;;  %v3633_v54 = vshll.u32 %v13611_v59, 16  ;;  %v3637_v62 = vshrl.u32 %v13611_v59, 16  ;;  %v3629_v63 = vrot.slane %v3627_v46, 5  ;;  %v3643_v1 = vshll.u32 %v3532_v4, 16  ;;  %11855 = vmatpush3.bf16.msra.mxu1 %v12746_v23 }
  0x87   : > { %v4247_v49 = vrot.slane %v4245_v36, 4  ;;  %v4250_v52 = vrot.slane %v4248_v38, 5  ;;  %809 = vst.msk [vmem:[#allocation2 + $0x20] sm:$0x1] %vm649_vm0, %v746_v40  ;;  %6479 = vmatprep.mubr.bf16.mxu1 %v11221_v41  ;;  %v3981_v2 = vshrl.u32 %v13602_v37, 16  ;;  %v3984_v3 = vshll.u32 %v13602_v37, 16 }
  0x88   : > { %6480 = vmatmul.mubr.bf16.gmra.mrb[8].mxu1 %v11211_v27  ;;  %v3635_v53 = vrot.slane %v3633_v54, 5  ;;  %v3639_v57 = vrot.slane %v3637_v62, 4  ;;  %v3989_v6 = vrot.slane %v3637_v62, 5  ;;  %v3630_v9 = vor.u32 %v3629_v63, %v3626_v45 }
  0x89   : > { %v4251_v5 = vor.u32 %v4250_v52, %v4247_v49  ;;  %v3645_v10 = vrot.slane %v3643_v1, 5  ;;  %v3983_v11 = vrot.slane %v3981_v2, 5  ;;  %v3986_v0 = vrot.slane %v3984_v3, 6  ;;  %v712_v49 = vld [vmem:[%s13600_s25 + $0x8] sm:$0xf] }
  0x8a   : > { %v2588_v59 = vld [vmem:[#allocation2 + $0x18] sm:$0xe]  ;;  %v3640_v55 = vor.u32 %v3639_v57, %v3635_v53  ;;  %v3990_v58 = vrot.slane %v3633_v54, 6  ;;  %v3995_v4 = vshrl.u32 %v13641_v47, 16  ;;  %v13655_v13 = vld [vmem:[#allocation3 + $0x34] sm:$0xf] }
  0x8b   : > { %v13652_v12 = vrot.slane %v4251_v5, 4  ;;  %v11059_v37 = vrot.slane %v2588_v59, 9  ;;  %v2709_v14 = vshrl.u32 %v2588_v59, 16  ;;  %v2712_v56 = vshll.u32 %v2588_v59, 16  ;;  %v713_v52 = vld [vmem:[%s13600_s25 + $0xc] sm:$0xf] }
  0x8c   : > { %v3631_v60 = vrot.slane %v3630_v9, 4  ;;  %v4153_v15 = vld [vmem:[#allocation3 + $0x38] sm:$0x1]  ;;  %v17843_v19 = vshll.u32 %v13655_v13, 16  ;;  %v17844_v20 = vshrl.u32 %v13655_v13, 16  ;;  %v3641_v21 = vrot.slane %v3640_v55, 4 }
  0x8d   : > { %v4264_v27 = vshll.u32 %v4153_v15, 16  ;;  %v13662_v28 = vld [vmem:[#allocation2 + $0x1c] sm:$0xf]  ;;  %v13664_v24 = vrot.slane %v2709_v14, 5  ;;  %v3987_v18 = vor.u32 %v3986_v0, %v3983_v11  ;;  %v13679_v41 = vor.u32 %v3990_v58, %v3989_v6  ;;  %v12747_v54 = vld [vmem:[%s17820_s7 + $0x168] sm:$0xff]  }
  0x8e   : > { %v2320_v29 = vld [vmem:[#allocation2 + $0x20] sm:$0x1]  ;;  %v4256_v33 = vrot.slane %v17843_v19, 5  ;;  %v4260_v17 = vrot.slane %v17844_v20, 4  ;;  %v2630_v25 = vrot.slane %v13662_v28, 5  ;;  %v3636_v40 = vsel %vm13470_vm12, %v3631_v60, %v3635_v53  ;;  %v12748_v5 = vld [vmem:[%s17820_s7 + $0x128] sm:$0xff]   ;;  %11788 = vmatprep.subr.bf16.mxu0 %v12747_v54 }
  0x8f   : > { %18006 = vst [vmem:[#allocation22_spill] sm:$0xff] %v13664_v24  ;;  %v2368_v34 = vshll.u32 %v2320_v29, 16  ;;  %v4266_v36 = vrot.slane %v4264_v27, 5  ;;  %v2633_v38 = vrot.slane %v2320_v29, 5  ;;  %v13684_v46 = vrot.slane %v2712_v56, 6  ;;  %v12749_v0 = vld [vmem:[%s17820_s7 + $0x1c8] sm:$0xff]   ;;  %11789 = vmatpush3.bf16.msra.mxu0 %v12748_v5 }
  0x90   : > { %v4257_v43 = vsel %vm13470_vm12, %v13652_v12, %v4256_v33  ;;  %v4261_v45 = vor.u32 %v4260_v17, %v4256_v33  ;;  %v17842_v48 = vshll.u32 %v13662_v28, 16  ;;  %v2631_v63 = vsel %vm13451_vm11, %v11059_v37, %v2630_v25  ;;  %v677_v3 = vld [vmem:[%s13675_s18 + $0x8] sm:$0xf]  ;;  %v678_v11 = vld [vmem:[%s13675_s18 + $0xc] sm:$0xf]  ;;  %11856 = vmatprep.subr.bf16.mxu1 %v12749_v0 }
  0x91   : > { %18007 = vst [vmem:[#allocation23_spill] sm:$0xff] %v13684_v46  ;;  %v13692_v62 = vrot.slane %v2368_v34, 5  ;;  %v2632_v1 = vrot.slane %v2630_v25, 4  ;;  %v3646_v2 = vsel %vm13470_vm12, %v3641_v21, %v3645_v10  ;;  %v2362_v57 = vshrl.u32 %v13662_v28, 16  ;;  %v13714_v58 = vld [vmem:[#allocation2 + $0x1c] sm:$0xf] }
  0x92   : > { %v4262_v53 = vrot.slane %v4261_v45, 4  ;;  %v11192_v6 = vcombine.low %v3636_v40, %v3646_v2  ;;  %v3988_v9 = vrot.slane %v3987_v18, 4  ;;  %v13711_v10 = vrot.slane %v17842_v48, 6  ;;  %v12750_v37 = vld [vmem:[%s17820_s7 + $0x188] sm:$0xff]   ;;  %v1969_v21 = vld [vmem:[#allocation2 + $0x18] sm:$0xe] }
  0x93   : > { %18008 = vst [vmem:[#allocation24_spill] sm:$0xff] %v13692_v62  ;;  %v2634_v12 = vsel %vm13451_vm11, %v2632_v1, %v2633_v38  ;;  %v3993_v59 = vrot.slane %v13679_v41, 4  ;;  %v3997_v55 = vrot.slane %v3995_v4, 5  ;;  %v3998_v15 = vshll.u32 %v13641_v47, 16  ;;  %11857 = vmatpush3.bf16.msra.mxu1 %v12750_v37  ;;  %v2079_v38 = vld [vmem:[#allocation2 + $0x20] sm:$0x3] }
  0x94   : > { %18009 = vst [vmem:[#allocation25_spill] sm:$0xff] %v13711_v10  ;;  %v4267_v14 = vsel %vm13470_vm12, %v4262_v53, %v4266_v36  ;;  %v11139_v56 = vcombine.low %v2631_v63, %v2634_v12  ;;  %6375 = vmatmul.mubr.bf16.gmra.mrb[12].mxu0 %v11192_v6  ;;  %v3992_v60 = vsel %vm13492_vm13, %v3988_v9, %v13679_v41  ;;  %v747_v23 = vrot.slane %v712_v49, 7  ;;  %v13734_v54 = vld [vmem:[#allocation3 + $0x30] sm:$0xe]  ;;  %v13737_v63 = vld [vmem:[%s13426_s24 + $0x18] sm:$0xf] }
  0x95   : > { %v11222_v4 = vcombine.low %v4257_v43, %v4267_v14  ;;  %v749_v27 = vrot.slane %v713_v52, 7  ;;  %v691_v29 = vrot.slane %v677_v3, 7  ;;  %v4000_v18 = vrot.slane %v3998_v15, 6  ;;  %v13732_v52 = vld [vmem:[#allocation3 + $0x34] sm:$0xf] }
  0x96   : > { %3238 = vrot.lane.b32.xlu0 %v11139_v56, %s13059_s15  ;;  %v693_v33 = vrot.slane %v678_v11, 7  ;;  %v17858_v17 = vshll.u32 %v13714_v58, 16  ;;  %v17857_v34 = vshrl.u32 %v13714_v58, 16  ;;  %v748_v25 = vrot.slane %v747_v23, 4  ;;  %810 = vst.msk [vmem:[#allocation2 + $0x24] sm:$0xe] %vm702_vm14, %v747_v23 }
  0x97   : > { %6487 = vmatprep.mubr.bf16.mxu1 %v11222_v4  ;;  %v751_v47 = vrot.slane %v749_v27, 4  ;;  %v692_v36 = vrot.slane %v691_v29, 4  ;;  %707 = vst.msk [vmem:[#allocation2 + $0xc] sm:$0xe] %vm702_vm14, %v691_v29  ;;  %v2112_v40 = vshrl.u32 %v1969_v21, 16  ;;  %v4001_v41 = vor.u32 %v4000_v18, %v3997_v55 }
  0x98   : > { %v695_v43 = vrot.slane %v693_v33, 4  ;;  %v2115_v45 = vshll.u32 %v1969_v21, 16  ;;  %v2120_v49 = vrot.slane %v17857_v34, 5  ;;  %v750_v1 = vsel %vm13417_vm4, %v748_v25, %v749_v27  ;;  %v13746_v53 = vld [vmem:[#allocation3 + $0x38] sm:$0x1] }
  0x99   : > { %812 = vst.msk [vmem:[#allocation2 + $0x2c] sm:$0x1] %vm649_vm0, %v751_v47  ;;  %v694_v2 = vsel %vm13417_vm4, %v692_v36, %v693_v33  ;;  %v2114_v3 = vrot.slane %v2112_v40, 5  ;;  %v2121_v5 = vrot.slane %v17858_v17, 6  ;;  %v4002_v6 = vsel %vm13492_vm13, %v3993_v59, %v4001_v41  ;;  %v13754_v12 = vld [vmem:[%s13426_s24 + $0x1c] sm:$0xf] }
  0x9a   : > { %811 = vst.msk [vmem:[#allocation2 + $0x28] sm:$0xf] %vm704_vm15, %v750_v1  ;;  %708 = vst.msk [vmem:[#allocation2 + $0x10] sm:$0xf] %vm704_vm15, %v694_v2  ;;  %v2117_v9 = vrot.slane %v2115_v45, 6  ;;  %v2126_v11 = vshrl.u32 %v2079_v38, 16  ;;  %v11212_v55 = vcombine.low %v3992_v60, %v4002_v6 }
  0x9b   : > { %709 = vst.msk [vmem:[#allocation2 + $0x14] sm:$0x1] %vm649_vm0, %v695_v43  ;;  %v2129_v0 = vshll.u32 %v2079_v38, 16  ;;  %v13756_v37 = vor.u32 %v2121_v5, %v2120_v49  ;;  %v11163_v14 = vrot.slane %v13734_v54, 9  ;;  %v3861_v56 = vrot.slane %v13732_v52, 5 }
  0x9c   : > { %v13762_v59 = vrot.slane %v2362_v57, 4  ;;  %v2118_v15 = vor.u32 %v2117_v9, %v2114_v3  ;;  %v2128_v21 = vrot.slane %v2126_v11, 5  ;;  %6488 = vmatmul.mubr.bf16.gmra.mrb[12].mxu1 %v11212_v55  ;;  %v3864_v29 = vrot.slane %v13746_v53, 5 }
  0x9d   : > { %v2131_v4 = vrot.slane %v2129_v0, 6  ;;  %v2124_v23 = vrot.slane %v13756_v37, 4  ;;  %v3863_v27 = vrot.slane %v3861_v56, 4  ;;  %v963_v60 = vrot.slane %v13737_v63, 7  ;;  %v2589_v33 = vld [vmem:[#allocation2 + $0x24] sm:$0xe] }
  0x9e   : > { %18010 = vst [vmem:[#allocation26_spill] sm:$0xff] %v13762_v59  ;;  %v13769_v18 = vrot.slane %v2362_v57, 5  ;;  %v1968_v25 = vld [vmem:[#allocation2 + $0xc] sm:$0xe]  ;;  %v2119_v47 = vrot.slane %v2118_v15, 4  ;;  %v3862_v38 = vsel %vm13451_vm11, %v11163_v14, %v3861_v56  ;;  %v2732_v40 = vshrl.u32 %v2589_v33, 16 }
  0x9f   : > { %v2132_v36 = vor.u32 %v2131_v4, %v2128_v21  ;;  %v2735_v41 = vshll.u32 %v2589_v33, 16  ;;  %v2089_v43 = vshrl.u32 %v1968_v25, 16  ;;  %v965_v45 = vrot.slane %v13754_v12, 7  ;;  %1022 = vst [vmem:[#allocation3 + $0x3c] sm:$0xe] %v963_v60 }
  0xa0   : > { %18011 = vst [vmem:[#allocation27_spill] sm:$0xff] %v13769_v18  ;;  %v2323_v49 = vld [vmem:[#allocation2 + $0x2c] sm:$0x1]  ;;  %v11060_v1 = vrot.slane %v2589_v33, 9  ;;  %v2092_v63 = vshll.u32 %v1968_v25, 16  ;;  %v2123_v57 = vsel %vm13492_vm13, %v2119_v47, %v13756_v37  ;;  %v2734_v6 = vrot.slane %v2732_v40, 5 }
  0xa1   : > { %v2133_v2 = vsel %vm13492_vm13, %v2124_v23, %v2132_v36  ;;  %v13779_v3 = vld [vmem:[#allocation2 + $0x28] sm:$0xf]  ;;  %v2392_v5 = vshll.u32 %v2323_v49, 16  ;;  %v2737_v9 = vrot.slane %v2735_v41, 6  ;;  %v3865_v11 = vsel %vm13451_vm11, %v3863_v27, %v3864_v29  ;;  %v13786_v56 = vld [vmem:[#allocation2 + $0x10] sm:$0xf] }
  0xa2   : > { %18012 = vst [vmem:[#allocation28_spill] sm:$0xff] %v13779_v3  ;;  %v2637_v0 = vrot.slane %v13779_v3, 5  ;;  %v2640_v12 = vrot.slane %v2323_v49, 5  ;;  %v17841_v55 = vshll.u32 %v13779_v3, 16  ;;  %v2386_v14 = vshrl.u32 %v13779_v3, 16  ;;  %v12751_v47 = vld [vmem:[%s17820_s7 + $0x1d0] sm:$0xff]  }
  0xa3   : > { %v2738_v37 = vor.u32 %v2737_v9, %v2734_v6  ;;  %v17862_v15 = vshll.u32 %v13786_v56, 16  ;;  %v17859_v21 = vshrl.u32 %v13786_v56, 16  ;;  %v2078_v4 = vld [vmem:[#allocation2 + $0x14] sm:$0x3]  ;;  %v2091_v23 = vrot.slane %v2089_v43, 5  ;;  %11858 = vmatprep.subr.bf16.mxu1 %v12751_v47 }
  0xa4   : > { %v13790_v33 = vrot.slane %v2392_v5, 5  ;;  %v2638_v27 = vsel %vm13451_vm11, %v11060_v1, %v2637_v0  ;;  %v2639_v29 = vrot.slane %v2637_v0, 4  ;;  %v2740_v25 = vrot.slane %v2386_v14, 5  ;;  %v3533_v47 = vld [vmem:[#allocation3 + $0x30] sm:$0xf] }
  0xa5   : > { %v13797_v36 = vrot.slane %v2386_v14, 4  ;;  %v2741_v40 = vrot.slane %v17841_v55, 6  ;;  %v2094_v41 = vrot.slane %v2092_v63, 6  ;;  %v2097_v43 = vrot.slane %v17859_v21, 5 }
  0xa6   : > { %18013 = vst [vmem:[#allocation29_spill] sm:$0xff] %v13790_v33  ;;  %v2641_v49 = vsel %vm13451_vm11, %v2639_v29, %v2640_v12  ;;  %v2098_v1 = vrot.slane %v17862_v15, 6  ;;  %v2103_v5 = vshrl.u32 %v2078_v4, 16  ;;  %v2106_v6 = vshll.u32 %v2078_v4, 16  ;;  %v4154_v55 = vld [vmem:[#allocation3 + $0x3c] sm:$0xf] }
  0xa7   : > { %18014 = vst [vmem:[#allocation30_spill] sm:$0xff] %v13797_v36  ;;  %v13807_v9 = vrot.slane %v2738_v37, 4  ;;  %v11140_v0 = vcombine.low %v2638_v27, %v2641_v49  ;;  %v13809_v14 = vor.u32 %v2741_v40, %v2740_v25  ;;  %v2095_v63 = vor.u32 %v2094_v41, %v2091_v23 }
  0xa8   : > { %v2099_v48 = vor.u32 %v2098_v1, %v2097_v43  ;;  %v2105_v19 = vrot.slane %v2103_v5, 5  ;;  %v2108_v20 = vrot.slane %v2106_v6, 6  ;;  %v11203_v50 = vcombine.low %v3862_v38, %v3865_v11  ;;  %v13835_v6 = vld [vmem:[#allocation2 + $0x28] sm:$0xf] }
  0xa9   : > { %18015 = vst [vmem:[#allocation31_spill] sm:$0xff] %v13807_v9  ;;  %18016 = vst [vmem:[#allocation32_spill] sm:$0xff] %v13809_v14  ;;  %3240 = vrot.lane.b32.xlu1 %v11140_v0, %s13059_s15  ;;  %v2096_v12 = vrot.slane %v2095_v63, 4  ;;  %v11120_v29 = vcombine.low %v2123_v57, %v2133_v2  ;;  %v964_v31 = vrot.slane %v963_v60, 4  ;;  %v967_v4 = vrot.slane %v965_v45, 4 }
  0xaa   : > { %v2101_v37 = vrot.slane %v2099_v48, 4  ;;  %v2109_v26 = vor.u32 %v2108_v20, %v2105_v19  ;;  %6382 = vmatprep.mubr.bf16.mxu0 %v11203_v50  ;;  %v4269_v27 = vshrl.u32 %v4154_v55, 16  ;;  %v4272_v25 = vshll.u32 %v4154_v55, 16  ;;  %v12752_v50 = vld [vmem:[%s17820_s7 + $0x190] sm:$0xff]   ;;  %v13827_v55 = vld [vmem:[#allocation3 + $0x38] sm:$0x3] }
  0xab   : > { %v2100_v23 = vsel %vm13492_vm13, %v2096_v12, %v2099_v48  ;;  %v966_v38 = vsel %vm13417_vm4, %v964_v31, %v965_v45  ;;  %1024 = vst [vmem:[#allocation3 + $0x44] sm:$0x1] %v967_v4  ;;  %v752_v11 = vrot.slane %v714_v51, 7  ;;  %v754_v40 = vrot.slane %v715_v30, 7  ;;  %11859 = vmatpush3.bf16.msra.mxu1 %v12752_v50  ;;  %v12756_v4 = vld [vmem:[%s17820_s7 + $0x198] sm:$0xff]  }
  0xac   : > { %v2110_v57 = vsel %vm13492_vm13, %v2101_v37, %v2109_v26  ;;  %1023 = vst [vmem:[#allocation3 + $0x40] sm:$0xf] %v966_v38  ;;  %v4271_v60 = vrot.slane %v4269_v27, 4  ;;  %v4274_v2 = vrot.slane %v4272_v25, 5  ;;  %v3648_v41 = vshrl.u32 %v3533_v47, 16 }
  0xad   : > { %v11119_v19 = vcombine.low %v2100_v23, %v2110_v57  ;;  %3160 = vrot.lane.b32.xlu1 %v11120_v29, %s13059_s15  ;;  %v753_v20 = vrot.slane %v752_v11, 4  ;;  %v756_v48 = vrot.slane %v754_v40, 4  ;;  %813 = vst.msk [vmem:[#allocation2 + $0x30] sm:$0xe] %vm702_vm14, %v752_v11  ;;  %v3651_v31 = vshll.u32 %v3533_v47, 16  ;;  %v12755_v23 = vld [vmem:[%s17820_s7 + $0x130] sm:$0xff]  }
  0xae   : > { %v4275_v30 = vor.u32 %v4274_v2, %v4271_v60  ;;  %v3650_v51 = vrot.slane %v3648_v41, 4  ;;  %v3657_v26 = vshll.u32 %v13732_v52, 16  ;;  %v3661_v45 = vshrl.u32 %v13732_v52, 16  ;;  %v12754_v52 = vld [vmem:[%s17820_s7 + $0x1d8] sm:$0xff]  }
  0xaf   : > { %3158 = vrot.lane.b32.xlu0 %v11119_v19, %s13059_s15  ;;  %v755_v43 = vsel %vm13417_vm4, %v753_v20, %v754_v40  ;;  %815 = vst.msk [vmem:[#allocation2 + $0x38] sm:$0x1] %vm649_vm0, %v756_v48  ;;  %v3653_v49 = vrot.slane %v3651_v31, 5  ;;  %v3667_v1 = vshll.u32 %v13746_v53, 16  ;;  %v4004_v5 = vshrl.u32 %v13734_v54, 16  ;;  %v12753_v53 = vld [vmem:[%s17820_s7 + $0x170] sm:$0xff]   ;;  %11860 = vmatprep.subr.bf16.mxu1 %v12754_v52 }
  0xb0   : > { %814 = vst.msk [vmem:[#allocation2 + $0x34] sm:$0xf] %vm704_vm15, %v755_v43  ;;  %v3659_v63 = vrot.slane %v3657_v26, 5  ;;  %v3663_v12 = vrot.slane %v3661_v45, 4  ;;  %v4007_v29 = vshll.u32 %v13734_v54, 16  ;;  %v13849_v47 = vrot.slane %v4275_v30, 4  ;;  %11790 = vmatprep.subr.bf16.mxu0 %v12753_v53  ;;  %11861 = vmatpush3.bf16.msra.mxu1 %v12756_v4 }
  0xb1   : > { %v3654_v37 = vor.u32 %v3653_v49, %v3650_v51  ;;  %v3669_v27 = vrot.slane %v3667_v1, 5  ;;  %v4006_v25 = vrot.slane %v4004_v5, 5  ;;  %v4012_v40 = vrot.slane %v3661_v45, 5  ;;  %11791 = vmatpush3.bf16.msra.mxu0 %v12755_v23 }
  0xb2   : > { %v4156_v38 = vld [vmem:[#allocation3 + $0x44] sm:$0x1]  ;;  %v3664_v54 = vor.u32 %v3663_v12, %v3659_v63  ;;  %v4009_v11 = vrot.slane %v4007_v29, 6  ;;  %v4013_v57 = vrot.slane %v3657_v26, 6  ;;  %v4018_v50 = vshrl.u32 %v13827_v55, 16 }
  0xb3   : > { %v13854_v60 = vld [vmem:[#allocation3 + $0x40] sm:$0xf]  ;;  %v4288_v2 = vshll.u32 %v4156_v38, 16  ;;  %v3655_v41 = vrot.slane %v3654_v37, 4  ;;  %v4021_v19 = vshll.u32 %v13827_v55, 16  ;;  %v17856_v51 = vshll.u32 %v13835_v6, 16 }
  0xb4   : > { %v17850_v20 = vshll.u32 %v13854_v60, 16  ;;  %v17851_v48 = vshrl.u32 %v13854_v60, 16  ;;  %v2590_v31 = vld [vmem:[#allocation2 + $0x30] sm:$0xe]  ;;  %v3665_v30 = vrot.slane %v3664_v54, 4  ;;  %v4010_v49 = vor.u32 %v4009_v11, %v4006_v25 }
  0xb5   : > { %v11061_v26 = vrot.slane %v2590_v31, 9  ;;  %v2755_v45 = vshrl.u32 %v2590_v31, 16  ;;  %v2758_v43 = vshll.u32 %v2590_v31, 16  ;;  %v3660_v52 = vsel %vm13470_vm12, %v3655_v41, %v3659_v63 }
  0xb6   : > { %v4280_v1 = vrot.slane %v17850_v20, 5  ;;  %v4284_v5 = vrot.slane %v17851_v48, 4  ;;  %v13865_v55 = vld [vmem:[#allocation2 + $0x38] sm:$0x1]  ;;  %v3670_v12 = vsel %vm13470_vm12, %v3665_v30, %v3669_v27  ;;  %v4290_v29 = vrot.slane %v4288_v2, 5 }
  0xb7   : > { %18017 = vst [vmem:[#allocation33_spill] sm:$0xff] %v13865_v55  ;;  %v13871_v53 = vld [vmem:[#allocation2 + $0x34] sm:$0xf]  ;;  %v2647_v37 = vrot.slane %v13865_v55, 5  ;;  %v13875_v25 = vrot.slane %v2755_v45, 5  ;;  %v13881_v54 = vrot.slane %v2758_v43, 6  ;;  %v11193_v11 = vcombine.low %v3660_v52, %v3670_v12 }
  0xb8   : > { %18018 = vst [vmem:[#allocation34_spill] sm:$0xff] %v13871_v53  ;;  %v4281_v23 = vsel %vm13470_vm12, %v13849_v47, %v4280_v1  ;;  %v4285_v38 = vor.u32 %v4284_v5, %v4280_v1  ;;  %v2644_v63 = vrot.slane %v13871_v53, 5  ;;  %v1970_v27 = vld [vmem:[#allocation2 + $0x24] sm:$0xe]  ;;  %v4011_v2 = vrot.slane %v4010_v49, 4 }
  0xb9   : > { %18019 = vst [vmem:[#allocation35_spill] sm:$0xff] %v13875_v25  ;;  %18020 = vst [vmem:[#allocation36_spill] sm:$0xff] %v13881_v54  ;;  %v4014_v41 = vor.u32 %v4013_v57, %v4012_v40  ;;  %v4020_v31 = vrot.slane %v4018_v50, 5  ;;  %v2080_v30 = vld [vmem:[#allocation2 + $0x2c] sm:$0x3]  ;;  %v4023_v20 = vrot.slane %v4021_v19, 6  ;;  %6383 = vmatmul.mubr.bf16.gmra.mrb[16].mxu0 %v11193_v11 }
  0xba   : > { %v4286_v0 = vrot.slane %v4285_v38, 4  ;;  %v2645_v45 = vsel %vm13451_vm11, %v11061_v26, %v2644_v63  ;;  %v2646_v4 = vrot.slane %v2644_v63, 4  ;;  %v716_v48 = vld [vmem:[%s13600_s25 + $0x18] sm:$0xf]  ;;  %v17855_v1 = vshrl.u32 %v13835_v6, 16 }
  0xbb   : > { %v4015_v47 = vsel %vm13492_vm13, %v4011_v2, %v4014_v41  ;;  %v4016_v43 = vrot.slane %v4014_v41, 4  ;;  %v2135_v5 = vshrl.u32 %v1970_v27, 16  ;;  %v4024_v50 = vor.u32 %v4023_v20, %v4020_v31  ;;  %v717_v26 = vld [vmem:[%s13600_s25 + $0x1c] sm:$0xf]  ;;  %v13896_v63 = vld [vmem:[#allocation2 + $0x34] sm:$0xf] }
  0xbc   : > { %v4291_v40 = vsel %vm13470_vm12, %v4286_v0, %v4290_v29  ;;  %v2648_v57 = vsel %vm13451_vm11, %v2646_v4, %v2647_v37  ;;  %v2138_v49 = vshll.u32 %v1970_v27, 16  ;;  %v2143_v38 = vrot.slane %v17855_v1, 5  ;;  %v1971_v4 = vld [vmem:[#allocation2 + $0x30] sm:$0xe]  ;;  %v2081_v41 = vld [vmem:[#allocation2 + $0x38] sm:$0x3] }
  0xbd   : > { %v11223_v52 = vcombine.low %v4281_v23, %v4291_v40  ;;  %v11141_v19 = vcombine.low %v2645_v45, %v2648_v57  ;;  %v2137_v12 = vrot.slane %v2135_v5, 5  ;;  %v4025_v11 = vsel %vm13492_vm13, %v4016_v43, %v4024_v50  ;;  %v2700_v32 = vld [vmem:[#allocation2 + $0x38] sm:$0x3] }
  0xbe   : > { %v2140_v2 = vrot.slane %v2138_v49, 6  ;;  %v2144_v0 = vrot.slane %v17856_v51, 6  ;;  %v2149_v29 = vshrl.u32 %v2080_v30, 16  ;;  %v11213_v20 = vcombine.low %v4015_v47, %v4025_v11 }
  0xbf   : > { %6495 = vmatprep.mubr.bf16.mxu1 %v11223_v52  ;;  %3242 = vrot.lane.b32.xlu0 %v11141_v19, %s13059_s15  ;;  %v2152_v37 = vshll.u32 %v2080_v30, 16  ;;  %v757_v23 = vrot.slane %v716_v48, 7  ;;  %v759_v27 = vrot.slane %v717_v26, 7  ;;  %v17854_v43 = vshll.u32 %v13896_v63, 16  ;;  %v13906_v52 = vld [vmem:[#allocation3 + $0x3c] sm:$0xe] }
  0xc0   : > { %v2141_v31 = vor.u32 %v2140_v2, %v2137_v12  ;;  %v2145_v45 = vor.u32 %v2144_v0, %v2143_v38  ;;  %v2151_v5 = vrot.slane %v2149_v29, 5  ;;  %6496 = vmatmul.mubr.bf16.gmra.mrb[16].mxu1 %v11213_v20  ;;  %v17853_v49 = vshrl.u32 %v13896_v63, 16  ;;  %v924_v19 = vld [vmem:[%s13426_s24 + $0x20] sm:$0xf]  ;;  %v13916_v0 = vld [vmem:[#allocation3 + $0x40] sm:$0xf] }
  0xc1   : > { %v2154_v40 = vrot.slane %v2152_v37, 6  ;;  %v758_v57 = vrot.slane %v757_v23, 4  ;;  %v761_v50 = vrot.slane %v759_v27, 4  ;;  %816 = vst.msk [vmem:[#allocation2 + $0x3c] sm:$0xe] %vm702_vm14, %v757_v23  ;;  %v2158_v48 = vshrl.u32 %v1971_v4, 16 }
  0xc2   : > { %v2142_v47 = vrot.slane %v2141_v31, 4  ;;  %v2147_v30 = vrot.slane %v2145_v45, 4  ;;  %v2161_v26 = vshll.u32 %v1971_v4, 16  ;;  %v2166_v11 = vrot.slane %v17853_v49, 5  ;;  %v925_v29 = vld [vmem:[%s13426_s24 + $0x24] sm:$0xf] }
  0xc3   : > { %v2155_v12 = vor.u32 %v2154_v40, %v2151_v5  ;;  %v760_v38 = vsel %vm13417_vm4, %v758_v57, %v759_v27  ;;  %818 = vst.msk [vmem:[#allocation2 + $0x44] sm:$0x1] %vm649_vm0, %v761_v50  ;;  %v2167_v2 = vrot.slane %v17854_v43, 6  ;;  %v2160_v20 = vrot.slane %v2158_v48, 5  ;;  %v13922_v27 = vld [vmem:[#allocation3 + $0x44] sm:$0x1] }
  0xc4   : > { %v2146_v4 = vsel %vm13492_vm13, %v2142_v47, %v2145_v45  ;;  %817 = vst.msk [vmem:[#allocation2 + $0x40] sm:$0xf] %vm704_vm15, %v760_v38  ;;  %v2163_v37 = vrot.slane %v2161_v26, 6  ;;  %v2172_v23 = vshrl.u32 %v2081_v41, 16  ;;  %v2175_v40 = vshll.u32 %v2081_v41, 16  ;;  %v12757_v50 = vld [vmem:[%s17820_s7 + $0x1e0] sm:$0xff]  }
  0xc5   : > { %v2156_v31 = vsel %vm13492_vm13, %v2147_v30, %v2155_v12  ;;  %v2168_v5 = vor.u32 %v2167_v2, %v2166_v11  ;;  %v11164_v57 = vrot.slane %v13906_v52, 9  ;;  %v3868_v48 = vrot.slane %v13916_v0, 5  ;;  %11862 = vmatprep.subr.bf16.mxu1 %v12757_v50 }
  0xc6   : > { %v11121_v45 = vcombine.low %v2146_v4, %v2156_v31  ;;  %v2164_v47 = vor.u32 %v2163_v37, %v2160_v20  ;;  %v2174_v38 = vrot.slane %v2172_v23, 5  ;;  %v2177_v22 = vrot.slane %v2175_v40, 6  ;;  %v718_v20 = vld [vmem:[%s13600_s25 + $0x20] sm:$0xf]  ;;  %v719_v40 = vld [vmem:[%s13600_s25 + $0x24] sm:$0xf] }
  0xc7   : > { %v2170_v26 = vrot.slane %v2168_v5, 4  ;;  %v3871_v49 = vrot.slane %v13922_v27, 5  ;;  %v968_v30 = vrot.slane %v924_v19, 7  ;;  %v3869_v11 = vsel %vm13451_vm11, %v11164_v57, %v3868_v48  ;;  %v3536_v57 = vld [vmem:[#allocation3 + $0x3c] sm:$0xf] }
  0xc8   : > { %3162 = vrot.lane.b32.xlu1 %v11121_v45, %s13059_s15  ;;  %v2591_v41 = vld [vmem:[#allocation2 + $0x3c] sm:$0xe]  ;;  %v2165_v12 = vrot.slane %v2164_v47, 4  ;;  %v3870_v2 = vrot.slane %v3868_v48, 4  ;;  %v970_v4 = vrot.slane %v925_v29, 7  ;;  %v2178_v43 = vor.u32 %v2177_v22, %v2174_v38 }
  0xc9   : > { %v11062_v37 = vrot.slane %v2591_v41, 9  ;;  %v2778_v23 = vshrl.u32 %v2591_v41, 16  ;;  %v2781_v31 = vshll.u32 %v2591_v41, 16  ;;  %1025 = vst [vmem:[#allocation3 + $0x48] sm:$0xe] %v968_v30  ;;  %v969_v45 = vrot.slane %v968_v30, 4 }
  0xca   : > { %v13937_v1 = vld [vmem:[#allocation2 + $0x44] sm:$0x1]  ;;  %v2169_v19 = vsel %vm13492_vm13, %v2165_v12, %v2168_v5  ;;  %v3872_v50 = vsel %vm13451_vm11, %v3870_v2, %v3871_v49  ;;  %v972_v47 = vrot.slane %v970_v4, 4  ;;  %v2179_v49 = vsel %vm13492_vm13, %v2170_v26, %v2178_v43 }
  0xcb   : > { %18021 = vst [vmem:[#allocation37_spill] sm:$0xff] %v13937_v1  ;;  %v13944_v48 = vld [vmem:[#allocation2 + $0x40] sm:$0xf]  ;;  %v2654_v22 = vrot.slane %v13937_v1, 5  ;;  %v13948_v38 = vrot.slane %v2778_v23, 5  ;;  %v13951_v34 = vrot.slane %v2781_v31, 6  ;;  %v11204_v5 = vcombine.low %v3869_v11, %v3872_v50 }
  0xcc   : > { %18022 = vst [vmem:[#allocation38_spill] sm:$0xff] %v13944_v48  ;;  %v2651_v51 = vrot.slane %v13944_v48, 5  ;;  %1027 = vst [vmem:[#allocation3 + $0x50] sm:$0x1] %v972_v47  ;;  %v12758_v30 = vld [vmem:[%s17820_s7 + $0x1a0] sm:$0xff]   ;;  %v11122_v12 = vcombine.low %v2169_v19, %v2179_v49  ;;  %v971_v2 = vsel %vm13417_vm4, %v969_v45, %v970_v4  ;;  %v762_v41 = vrot.slane %v718_v20, 7 }
  0xcd   : > { %18023 = vst [vmem:[#allocation39_spill] sm:$0xff] %v13948_v38  ;;  %18024 = vst [vmem:[#allocation40_spill] sm:$0xff] %v13951_v34  ;;  %v764_v23 = vrot.slane %v719_v40, 7  ;;  %6390 = vmatprep.mubr.bf16.mxu0 %v11204_v5  ;;  %v3672_v17 = vshrl.u32 %v3536_v57, 16  ;;  %v3675_v43 = vshll.u32 %v3536_v57, 16  ;;  %11863 = vmatpush3.bf16.msra.mxu1 %v12758_v30  ;;  %v3681_v19 = vshll.u32 %v13916_v0, 16 }
  0xce   : > { %v2652_v29 = vsel %vm13451_vm11, %v11062_v37, %v2651_v51  ;;  %v2653_v31 = vrot.slane %v2651_v51, 4  ;;  %1026 = vst [vmem:[#allocation3 + $0x4c] sm:$0xf] %v971_v2  ;;  %3164 = vrot.lane.b32.xlu1 %v11122_v12, %s13059_s15  ;;  %v763_v26 = vrot.slane %v762_v41, 4  ;;  %819 = vst.msk [vmem:[#allocation2 + $0x48] sm:$0xe] %vm702_vm14, %v762_v41 }
  0xcf   : > { %v766_v11 = vrot.slane %v764_v23, 4  ;;  %v3685_v4 = vshrl.u32 %v13916_v0, 16  ;;  %v3674_v51 = vrot.slane %v3672_v17, 4  ;;  %v3677_v40 = vrot.slane %v3675_v43, 5  ;;  %v12759_v45 = vld [vmem:[%s17820_s7 + $0x1e8] sm:$0xff]  }
  0xd0   : > { %v2655_v20 = vsel %vm13451_vm11, %v2653_v31, %v2654_v22  ;;  %v4157_v37 = vld [vmem:[#allocation3 + $0x48] sm:$0xf]  ;;  %v3691_v50 = vshll.u32 %v13922_v27, 16  ;;  %v765_v41 = vsel %vm13417_vm4, %v763_v26, %v764_v23  ;;  %v3683_v22 = vrot.slane %v3681_v19, 5  ;;  %11864 = vmatprep.subr.bf16.mxu1 %v12759_v45  ;;  %v12760_v27 = vld [vmem:[%s17820_s7 + $0x1a8] sm:$0xff]  }
  0xd1   : > { %v11142_v47 = vcombine.low %v2652_v29, %v2655_v20  ;;  %v4293_v57 = vshrl.u32 %v4157_v37, 16  ;;  %v4296_v49 = vshll.u32 %v4157_v37, 16  ;;  %821 = vst.msk [vmem:[#allocation2 + $0x50] sm:$0x1] %vm649_vm0, %v766_v11  ;;  %v3678_v17 = vor.u32 %v3677_v40, %v3674_v51  ;;  %v12761_v29 = vld [vmem:[%s17820_s7 + $0x178] sm:$0xff]   ;;  %11865 = vmatpush3.bf16.msra.mxu1 %v12760_v27 }
  0xd2   : > { %820 = vst.msk [vmem:[#allocation2 + $0x4c] sm:$0xf] %vm704_vm15, %v765_v41  ;;  %v3687_v5 = vrot.slane %v3685_v4, 4  ;;  %v4027_v23 = vshrl.u32 %v13906_v52, 16  ;;  %v4030_v31 = vshll.u32 %v13906_v52, 16  ;;  %v3693_v20 = vrot.slane %v3691_v50, 5  ;;  %11792 = vmatprep.subr.bf16.mxu0 %v12761_v29 }
  0xd3   : > { %3244 = vrot.lane.b32.xlu0 %v11142_v47, %s13059_s15  ;;  %v4159_v30 = vld [vmem:[#allocation3 + $0x50] sm:$0x1]  ;;  %v4295_v12 = vrot.slane %v4293_v57, 4  ;;  %v4298_v2 = vrot.slane %v4296_v49, 5  ;;  %v3679_v26 = vrot.slane %v3678_v17, 4  ;;  %v4035_v41 = vrot.slane %v3685_v4, 5 }
  0xd4   : > { %v4312_v43 = vshll.u32 %v4159_v30, 16  ;;  %v3688_v11 = vor.u32 %v3687_v5, %v3683_v22  ;;  %v4029_v40 = vrot.slane %v4027_v23, 5  ;;  %v4032_v45 = vrot.slane %v4030_v31, 6  ;;  %v3906_v50 = vld [vmem:[#allocation3 + $0x44] sm:$0x3] }
  0xd5   : > { %v13986_v37 = vld [vmem:[#allocation3 + $0x4c] sm:$0xf]  ;;  %v4299_v51 = vor.u32 %v4298_v2, %v4295_v12  ;;  %v2592_v0 = vld [vmem:[#allocation2 + $0x48] sm:$0xe]  ;;  %v4036_v21 = vrot.slane %v3681_v19, 6  ;;  %v4041_v31 = vshrl.u32 %v3906_v50, 16 }
  0xd6   : > { %v17860_v47 = vshll.u32 %v13986_v37, 16  ;;  %v17861_v57 = vshrl.u32 %v13986_v37, 16  ;;  %v4314_v49 = vrot.slane %v4312_v43, 5  ;;  %v11063_v30 = vrot.slane %v2592_v0, 9  ;;  %v14011_v34 = vld [vmem:[#allocation2 + $0x40] sm:$0xf] }
  0xd7   : > { %v4300_v52 = vrot.slane %v4299_v51, 4  ;;  %v2801_v17 = vshrl.u32 %v2592_v0, 16  ;;  %v2804_v5 = vshll.u32 %v2592_v0, 16  ;;  %v3689_v4 = vrot.slane %v3688_v11, 4  ;;  %v14034_v25 = vld [vmem:[#allocation3 + $0x48] sm:$0xe] }
  0xd8   : > { %v4304_v27 = vrot.slane %v17860_v47, 5  ;;  %v4308_v29 = vrot.slane %v17861_v57, 4  ;;  %v13994_v12 = vld [vmem:[#allocation2 + $0x50] sm:$0x1]  ;;  %v4033_v2 = vor.u32 %v4032_v45, %v4029_v40  ;;  %v3684_v0 = vsel %vm13470_vm12, %v3679_v26, %v3683_v22  ;;  %v3907_v18 = vld [vmem:[#allocation3 + $0x50] sm:$0x3] }
  0xd9   : > { %18025 = vst [vmem:[#allocation41_spill] sm:$0xff] %v13994_v12  ;;  %v13996_v23 = vld [vmem:[#allocation2 + $0x4c] sm:$0xf]  ;;  %v2661_v19 = vrot.slane %v13994_v12, 5  ;;  %v14000_v43 = vrot.slane %v2801_v17, 5  ;;  %v14007_v15 = vrot.slane %v2804_v5, 6  ;;  %v3694_v11 = vsel %vm13470_vm12, %v3689_v4, %v3693_v20 }
  0xda   : > { %18026 = vst [vmem:[#allocation42_spill] sm:$0xff] %v13996_v23  ;;  %v4305_v51 = vsel %vm13470_vm12, %v4300_v52, %v4304_v27  ;;  %v4309_v47 = vor.u32 %v4308_v29, %v4304_v27  ;;  %v2658_v57 = vrot.slane %v13996_v23, 5  ;;  %v4034_v40 = vrot.slane %v4033_v2, 4  ;;  %v1972_v17 = vld [vmem:[#allocation2 + $0x3c] sm:$0xe] }
  0xdb   : > { %18027 = vst [vmem:[#allocation43_spill] sm:$0xff] %v14000_v43  ;;  %18028 = vst [vmem:[#allocation44_spill] sm:$0xff] %v14007_v15  ;;  %v4037_v45 = vor.u32 %v4036_v21, %v4035_v41  ;;  %v11194_v52 = vcombine.low %v3684_v0, %v3694_v11  ;;  %v2082_v27 = vld [vmem:[#allocation2 + $0x44] sm:$0x3]  ;;  %v4043_v15 = vrot.slane %v4041_v31, 5  ;;  %v4044_v38 = vshll.u32 %v3906_v50, 16 }
  0xdc   : > { %v4310_v43 = vrot.slane %v4309_v47, 4  ;;  %v2659_v22 = vsel %vm13451_vm11, %v11063_v30, %v2658_v57  ;;  %v2660_v26 = vrot.slane %v2658_v57, 4  ;;  %v17864_v41 = vshll.u32 %v14011_v34, 16  ;;  %v1698_v57 = vld [vmem:[#allocation2 + $0xc] sm:$0xf] }
  0xdd   : > { %v4038_v5 = vsel %vm13492_vm13, %v4034_v40, %v4037_v45  ;;  %v4039_v29 = vrot.slane %v4037_v45, 4  ;;  %6391 = vmatmul.mubr.bf16.gmra.mrb[20].mxu0 %v11194_v52  ;;  %v17863_v47 = vshrl.u32 %v14011_v34, 16  ;;  %v4046_v2 = vrot.slane %v4044_v38, 6  ;;  %v675_v11 = vld [vmem:[%s13675_s18] sm:$0xf] }
  0xde   : > { %v4315_v21 = vsel %vm13470_vm12, %v4310_v43, %v4314_v49  ;;  %v2662_v20 = vsel %vm13451_vm11, %v2660_v26, %v2661_v19  ;;  %v2181_v0 = vshrl.u32 %v1972_v17, 16  ;;  %v2184_v31 = vshll.u32 %v1972_v17, 16  ;;  %v1700_v19 = vld [vmem:[#allocation2 + $0x14] sm:$0x1] }
  0xdf   : > { %v11224_v30 = vcombine.low %v4305_v51, %v4315_v21  ;;  %v11143_v4 = vcombine.low %v2659_v22, %v2662_v20  ;;  %v2189_v50 = vrot.slane %v17863_v47, 5  ;;  %v2190_v49 = vrot.slane %v17864_v41, 6  ;;  %v676_v22 = vld [vmem:[%s13675_s18 + $0x4] sm:$0xf] }
  0xe0   : > { %v2195_v43 = vshrl.u32 %v2082_v27, 16  ;;  %v4047_v40 = vor.u32 %v4046_v2, %v4043_v15  ;;  %v2183_v45 = vrot.slane %v2181_v0, 5  ;;  %v2198_v51 = vshll.u32 %v2082_v27, 16 }
  0xe1   : > { %6503 = vmatprep.mubr.bf16.mxu1 %v11224_v30  ;;  %3246 = vrot.lane.b32.xlu0 %v11143_v4, %s13059_s15  ;;  %v1729_v26 = vshrl.u32 %v1698_v57, 16  ;;  %v2186_v38 = vrot.slane %v2184_v31, 6  ;;  %v2191_v52 = vor.u32 %v2190_v49, %v2189_v50  ;;  %v1732_v21 = vshll.u32 %v1698_v57, 16 }
  0xe2   : > { %v2197_v17 = vrot.slane %v2195_v43, 5  ;;  %v4048_v20 = vsel %vm13492_vm13, %v4039_v29, %v4047_v40  ;;  %v2200_v47 = vrot.slane %v2198_v51, 6  ;;  %v18029_v54 = vshll.u32 %v13786_v56, 16  ;;  %v14038_v29 = vld [vmem:[#allocation3 + $0x50] sm:$0x1] }
  0xe3   : > { %v1731_v41 = vrot.slane %v1729_v26, 4  ;;  %v11214_v15 = vcombine.low %v4038_v5, %v4048_v20  ;;  %v2187_v4 = vor.u32 %v2186_v38, %v2183_v45  ;;  %v2193_v27 = vrot.slane %v2191_v52, 4  ;;  %v926_v43 = vld [vmem:[%s13426_s24 + $0x28] sm:$0xf]  ;;  %v14044_v51 = vld [vmem:[#allocation3 + $0x4c] sm:$0xf] }
  0xe4   : > { %v1740_v30 = vrot.slane %v18029_v54, 5  ;;  %v1734_v2 = vrot.slane %v1732_v21, 5  ;;  %v2201_v0 = vor.u32 %v2200_v47, %v2197_v17  ;;  %v18030_v31 = vshrl.u32 %v13786_v56, 16  ;;  %v12763_v54 = vld [vmem:[%s17820_s7 + $0x1f0] sm:$0xff]   ;;  %v927_v56 = vld [vmem:[%s13426_s24 + $0x2c] sm:$0xf] }
  0xe5   : > { %v1748_v50 = vshll.u32 %v1700_v19, 16  ;;  %v686_v49 = vrot.slane %v675_v11, 7  ;;  %6504 = vmatmul.mubr.bf16.gmra.mrb[20].mxu1 %v11214_v15  ;;  %v2188_v5 = vrot.slane %v2187_v4, 4  ;;  %v688_v45 = vrot.slane %v676_v22, 7  ;;  %v720_v26 = vld [vmem:[%s13600_s25 + $0x28] sm:$0xf]  ;;  %11866 = vmatprep.subr.bf16.mxu1 %v12763_v54 }
  0xe6   : > { %v1744_v57 = vrot.slane %v18030_v31, 4  ;;  %v1735_v40 = vor.u32 %v1734_v2, %v1731_v41  ;;  %v11165_v47 = vrot.slane %v14034_v25, 9  ;;  %v12762_v19 = vld [vmem:[%s17820_s7 + $0x138] sm:$0xff]   ;;  %v2202_v11 = vsel %vm13492_vm13, %v2193_v27, %v2201_v0  ;;  %v721_v4 = vld [vmem:[%s13600_s25 + $0x2c] sm:$0xf] }
  0xe7   : > { %v1750_v17 = vrot.slane %v1748_v50, 5  ;;  %v687_v21 = vrot.slane %v686_v49, 4  ;;  %703 = vst.msk [vmem:[#allocation2] sm:$0xe] %vm702_vm14, %v686_v49  ;;  %v2192_v41 = vsel %vm13492_vm13, %v2188_v5, %v2191_v52  ;;  %v690_v20 = vrot.slane %v688_v45, 4  ;;  %11793 = vmatpush3.bf16.msra.mxu0 %v12762_v19 }
  0xe8   : > { %v1745_v38 = vor.u32 %v1744_v57, %v1740_v30  ;;  %v1736_v22 = vrot.slane %v1735_v40, 4  ;;  %v3875_v15 = vrot.slane %v14044_v51, 5  ;;  %v11123_v2 = vcombine.low %v2192_v41, %v2202_v11  ;;  %v3539_v57 = vld [vmem:[#allocation3 + $0x48] sm:$0xf] }
  0xe9   : > { %v689_v27 = vsel %vm13417_vm4, %v687_v21, %v688_v45  ;;  %v3878_v0 = vrot.slane %v14038_v29, 5  ;;  %706 = vst.msk [vmem:[#allocation2 + $0x8] sm:$0x1] %vm649_vm0, %v690_v20  ;;  %v973_v54 = vrot.slane %v926_v43, 7  ;;  %v975_v40 = vrot.slane %v927_v56, 7  ;;  %v12764_v43 = vld [vmem:[%s17820_s7 + $0x1b0] sm:$0xff]  }
  0xea   : > { %v1746_v31 = vrot.slane %v1745_v38, 4  ;;  %v1741_v50 = vsel %vm13470_vm12, %v1736_v22, %v1740_v30  ;;  %705 = vst.msk [vmem:[#allocation2 + $0x4] sm:$0xf] %vm704_vm15, %v689_v27  ;;  %v3876_v52 = vsel %vm13451_vm11, %v11165_v47, %v3875_v15  ;;  %v3877_v49 = vrot.slane %v3875_v15, 4  ;;  %3166 = vrot.lane.b32.xlu1 %v11123_v2, %s13059_s15  ;;  %11867 = vmatpush3.bf16.msra.mxu1 %v12764_v43 }
  0xeb   : > { %v767_v45 = vrot.slane %v720_v26, 7  ;;  %v769_v19 = vrot.slane %v721_v4, 7  ;;  %v974_v38 = vrot.slane %v973_v54, 4  ;;  %1028 = vst [vmem:[#allocation3 + $0x54] sm:$0xe] %v973_v54  ;;  %v3696_v21 = vshrl.u32 %v3539_v57, 16 }
  0xec   : > { %v1751_v5 = vsel %vm13470_vm12, %v1746_v31, %v1750_v17  ;;  %v3879_v30 = vsel %vm13451_vm11, %v3877_v49, %v3878_v0  ;;  %v977_v22 = vrot.slane %v975_v40, 4  ;;  %v3699_v15 = vshll.u32 %v3539_v57, 16  ;;  %v12765_v54 = vld [vmem:[%s17820_s7 + $0x1f8] sm:$0xff]  }
  0xed   : > { %v11099_v11 = vcombine.low %v1741_v50, %v1751_v5  ;;  %v11205_v41 = vcombine.low %v3876_v52, %v3879_v30  ;;  %v768_v47 = vrot.slane %v767_v45, 4  ;;  %v771_v20 = vrot.slane %v769_v19, 4  ;;  %822 = vst.msk [vmem:[#allocation2 + $0x54] sm:$0xe] %vm702_vm14, %v767_v45  ;;  %11868 = vmatprep.subr.bf16.mxu1 %v12765_v54 }
  0xee   : > { %v14079_v26 = vld [vmem:[#allocation2] sm:$0xe]  ;;  %v976_v17 = vsel %vm13417_vm4, %v974_v38, %v975_v40  ;;  %v17865_v4 = vshll.u32 %v14044_v51, 16  ;;  %1030 = vst [vmem:[#allocation3 + $0x5c] sm:$0x1] %v977_v22  ;;  %v3698_v0 = vrot.slane %v3696_v21, 4 }
  0xef   : > { %3078 = vrot.lane.b32.xlu0 %v11099_v11, %s13059_s15  ;;  %v11039_v2 = vrot.slane %v14079_v26, 9  ;;  %6398 = vmatprep.mubr.bf16.mxu0 %v11205_v41  ;;  %1029 = vst [vmem:[#allocation3 + $0x58] sm:$0xf] %v976_v17  ;;  %v770_v27 = vsel %vm13417_vm4, %v768_v47, %v769_v19  ;;  %824 = vst.msk [vmem:[#allocation2 + $0x5c] sm:$0x1] %vm649_vm0, %v771_v20  ;;  %v3701_v57 = vrot.slane %v3699_v15, 5 }
  0xf0   : > { %823 = vst.msk [vmem:[#allocation2 + $0x58] sm:$0xf] %vm704_vm15, %v770_v27  ;;  %v3709_v52 = vshrl.u32 %v14044_v51, 16  ;;  %v3715_v49 = vshll.u32 %v14038_v29, 16  ;;  %v14098_v40 = vld [vmem:[#allocation2 + $0x8] sm:$0x1] }
  0xf1   : > { %v14096_v5 = vld [vmem:[#allocation2 + $0x4] sm:$0xf]  ;;  %v14102_v45 = vrot.slane %v17865_v4, 5  ;;  %v4050_v19 = vshrl.u32 %v14034_v25, 16  ;;  %v1389_v29 = vrot.slane %v14098_v40, 5  ;;  %v4053_v38 = vshll.u32 %v14034_v25, 16 }
  0xf2   : > { %v1386_v30 = vrot.slane %v14096_v5, 5  ;;  %v12766_v21 = vld [vmem:[%s17820_s7 + $0x1b8] sm:$0xff]   ;;  %v4160_v22 = vld [vmem:[#allocation3 + $0x54] sm:$0xf]  ;;  %v3702_v47 = vor.u32 %v3701_v57, %v3698_v0  ;;  %v3711_v20 = vrot.slane %v3709_v52, 4  ;;  %v3717_v43 = vrot.slane %v3715_v49, 5 }
  0xf3   : > { %v4317_v27 = vshrl.u32 %v4160_v22, 16  ;;  %v4320_v56 = vshll.u32 %v4160_v22, 16  ;;  %11869 = vmatpush3.bf16.msra.mxu1 %v12766_v21  ;;  %v4052_v11 = vrot.slane %v4050_v19, 5  ;;  %v4064_v46 = vshrl.u32 %v3907_v18, 16 }
  0xf4   : > { %v1387_v17 = vsel %vm13451_vm11, %v11039_v2, %v1386_v30  ;;  %v1388_v15 = vrot.slane %v1386_v30, 4  ;;  %v14115_v50 = vld [vmem:[#allocation2 + $0x54] sm:$0xe]  ;;  %v3703_v31 = vrot.slane %v3702_v47, 4  ;;  %v3712_v30 = vor.u32 %v3711_v20, %v14102_v45 }
  0xf5   : > { %v11064_v25 = vrot.slane %v14115_v50, 9  ;;  %v2824_v54 = vshrl.u32 %v14115_v50, 16  ;;  %v4162_v49 = vld [vmem:[#allocation3 + $0x5c] sm:$0x1]  ;;  %v4319_v41 = vrot.slane %v4317_v27, 4  ;;  %v4322_v2 = vrot.slane %v4320_v56, 5 }
  0xf6   : > { %v1390_v0 = vsel %vm13451_vm11, %v1388_v15, %v1389_v29  ;;  %v14121_v57 = vld [vmem:[#allocation3 + $0x58] sm:$0xf]  ;;  %v4336_v9 = vshll.u32 %v4162_v49, 16  ;;  %v14128_v19 = vld [vmem:[#allocation2 + $0x5c] sm:$0x1]  ;;  %v4067_v24 = vshll.u32 %v3907_v18, 16 }
  0xf7   : > { %v11079_v22 = vcombine.low %v1387_v17, %v1390_v0  ;;  %v17868_v4 = vshll.u32 %v14121_v57, 16  ;;  %v17869_v21 = vshrl.u32 %v14121_v57, 16  ;;  %v14126_v14 = vld [vmem:[#allocation2 + $0x58] sm:$0xf]  ;;  %v4323_v47 = vor.u32 %v4322_v2, %v4319_v41  ;;  %18032 = vst [vmem:[#allocation46_spill] sm:$0xff] %v14128_v19 }
  0xf8   : > { %18031 = vst [vmem:[#allocation45_spill] sm:$0xff] %v14126_v14  ;;  %v2665_v15 = vrot.slane %v14126_v14, 5  ;;  %v4338_v17 = vrot.slane %v4336_v9, 5  ;;  %v14138_v0 = vrot.slane %v2824_v54, 5  ;;  %v2668_v29 = vrot.slane %v14128_v19, 5 }
  0xf9   : > { %2998 = vrot.lane.b32.xlu1 %v11079_v22, %s13059_s15  ;;  %v4328_v56 = vrot.slane %v17868_v4, 5  ;;  %v4332_v20 = vrot.slane %v17869_v21, 4  ;;  %v4324_v41 = vrot.slane %v4323_v47, 4  ;;  %v3708_v22 = vsel %vm13470_vm12, %v3703_v31, %v14102_v45 }
  0xfa   : > { %18033 = vst [vmem:[#allocation47_spill] sm:$0xff] %v14138_v0  ;;  %v2666_v49 = vsel %vm13451_vm11, %v11064_v25, %v2665_v15  ;;  %v2667_v2 = vrot.slane %v2665_v15, 4  ;;  %v3713_v4 = vrot.slane %v3712_v30, 4  ;;  %v4055_v47 = vrot.slane %v4053_v38, 6  ;;  %v14151_v15 = vld [vmem:[#allocation2 + $0x4c] sm:$0xf] }
  0xfb   : > { %v4333_v10 = vor.u32 %v4332_v20, %v4328_v56  ;;  %v4329_v9 = vsel %vm13470_vm12, %v4324_v41, %v4328_v56  ;;  %v4058_v25 = vrot.slane %v3709_v52, 5  ;;  %v18034_v0 = vshll.u32 %v14044_v51, 16  ;;  %v1973_v56 = vld [vmem:[#allocation2 + $0x48] sm:$0xe]  ;;  %v2083_v41 = vld [vmem:[#allocation2 + $0x50] sm:$0x3] }
  0xfc   : > { %v2669_v54 = vsel %vm13451_vm11, %v2667_v2, %v2668_v29  ;;  %v3718_v27 = vsel %vm13470_vm12, %v3713_v4, %v3717_v43  ;;  %v4056_v30 = vor.u32 %v4055_v47, %v4052_v11  ;;  %v17870_v29 = vshrl.u32 %v14151_v15, 16  ;;  %v1701_v11 = vld [vmem:[#allocation2 + $0x18] sm:$0xf] }
  0xfd   : > { %v4334_v21 = vrot.slane %v4333_v10, 4  ;;  %v11144_v20 = vcombine.low %v2666_v49, %v2669_v54  ;;  %v4059_v31 = vrot.slane %v18034_v0, 6  ;;  %v11195_v45 = vcombine.low %v3708_v22, %v3718_v27 }
  0xfe   : > { %v17871_v10 = vshll.u32 %v14151_v15, 16  ;;  %v4057_v51 = vrot.slane %v4056_v30, 4  ;;  %v4066_v43 = vrot.slane %v4064_v46, 5  ;;  %v4069_v27 = vrot.slane %v4067_v24, 6 }
  0xff   : > { %v4339_v38 = vsel %vm13470_vm12, %v4334_v21, %v4338_v17  ;;  %3248 = vrot.lane.b32.xlu0 %v11144_v20, %s13059_s15  ;;  %v4060_v52 = vor.u32 %v4059_v31, %v4058_v25  ;;  %6399 = vmatmul.mubr.bf16.gmra.mrb[24].mxu0 %v11195_v45  ;;  %v2204_v18 = vshrl.u32 %v1973_v56, 16  ;;  %v2207_v49 = vshll.u32 %v1973_v56, 16  ;;  %v1703_v45 = vld [vmem:[#allocation2 + $0x20] sm:$0x1] }
 0x100   : > { %v11225_v4 = vcombine.low %v4329_v9, %v4339_v38  ;;  %v2212_v2 = vrot.slane %v17870_v29, 5  ;;  %v4070_v17 = vor.u32 %v4069_v27, %v4066_v43  ;;  %v2213_v22 = vrot.slane %v17871_v10, 6 }
 0x101   : > { %v4062_v0 = vrot.slane %v4060_v52, 4  ;;  %v4061_v21 = vsel %vm13492_vm13, %v4057_v51, %v4060_v52  ;;  %v2218_v9 = vshrl.u32 %v2083_v41, 16  ;;  %v2206_v54 = vrot.slane %v2204_v18, 5  ;;  %v14170_v51 = vld [vmem:[#allocation2 + $0xc] sm:$0xe] }
 0x102   : > { %6511 = vmatprep.mubr.bf16.mxu1 %v11225_v4  ;;  %v2209_v47 = vrot.slane %v2207_v49, 6  ;;  %v2221_v46 = vshll.u32 %v2083_v41, 16  ;;  %v1753_v24 = vshrl.u32 %v1701_v11, 16  ;;  %v2214_v20 = vor.u32 %v2213_v22, %v2212_v2  ;;  %v14180_v22 = vld [vmem:[#allocation2 + $0x10] sm:$0xf] }
 0x103   : > { %v4071_v25 = vsel %vm13492_vm13, %v4062_v0, %v4070_v17  ;;  %v2220_v31 = vrot.slane %v2218_v9, 5  ;;  %v1756_v30 = vshll.u32 %v1701_v11, 16  ;;  %v18035_v18 = vshll.u32 %v13714_v58, 16 }
 0x104   : > { %v11215_v56 = vcombine.low %v4061_v21, %v4071_v25  ;;  %v2210_v38 = vor.u32 %v2209_v47, %v2206_v54  ;;  %v2223_v4 = vrot.slane %v2221_v46, 6  ;;  %v1755_v52 = vrot.slane %v1753_v24, 4  ;;  %v14182_v47 = vld [vmem:[#allocation2 + $0x14] sm:$0x1]  ;;  %v12767_v24 = vld [vmem:[%s17820_s7 + $0x200] sm:$0xff]  }
 0x105   : > { %v2216_v43 = vrot.slane %v2214_v20, 4  ;;  %v1758_v27 = vrot.slane %v1756_v30, 5  ;;  %v1764_v41 = vrot.slane %v18035_v18, 5  ;;  %v18036_v49 = vshrl.u32 %v13714_v58, 16  ;;  %v14195_v30 = vld [vmem:[#allocation3 + $0x5c] sm:$0x1]  ;;  %12402 = vmatprep.subr.bf16.mxu0 %v12767_v24 }
 0x106   : > { %v18037_v0 = vshll.u32 %v14115_v50, 16  ;;  %6512 = vmatmul.mubr.bf16.gmra.mrb[24].mxu1 %v11215_v56  ;;  %v2211_v11 = vrot.slane %v2210_v38, 4  ;;  %v2224_v21 = vor.u32 %v2223_v4, %v2220_v31  ;;  %v1772_v17 = vshll.u32 %v1703_v45, 16  ;;  %v928_v50 = vld [vmem:[%s13426_s24 + $0x30] sm:$0xf] }
 0x107   : > { %v1768_v29 = vrot.slane %v18036_v49, 4  ;;  %v1759_v9 = vor.u32 %v1758_v27, %v1755_v52  ;;  %v14197_v56 = vld [vmem:[#allocation3 + $0x54] sm:$0xe]  ;;  %v929_v38 = vld [vmem:[%s13426_s24 + $0x34] sm:$0xf]  ;;  %v978_v46 = vrot.slane %v928_v50, 7 }
 0x108   : > { %v14178_v2 = vrot.slane %v18037_v0, 6  ;;  %v2215_v25 = vsel %vm13492_vm13, %v2211_v11, %v2214_v20  ;;  %v2225_v31 = vsel %vm13492_vm13, %v2216_v43, %v2224_v21  ;;  %v1774_v45 = vrot.slane %v1772_v17, 5  ;;  %v722_v4 = vld [vmem:[%s13600_s25 + $0x30] sm:$0xf]  ;;  %v723_v52 = vld [vmem:[%s13600_s25 + $0x34] sm:$0xf] }
 0x109   : > { %v1769_v54 = vor.u32 %v1768_v29, %v1764_v41  ;;  %v11040_v29 = vrot.slane %v14170_v51, 9  ;;  %v11124_v27 = vcombine.low %v2215_v25, %v2225_v31  ;;  %v1760_v18 = vrot.slane %v1759_v9, 4  ;;  %v3543_v21 = vld [vmem:[#allocation3 + $0x58] sm:$0xf]  ;;  %v3542_v11 = vld [vmem:[#allocation3 + $0x54] sm:$0xf] }
 0x10a   : > { %18038 = vst [vmem:[#allocation48_spill] sm:$0xff] %v14178_v2  ;;  %v1393_v0 = vrot.slane %v14180_v22, 5  ;;  %v1396_v43 = vrot.slane %v14182_v47, 5  ;;  %v11166_v17 = vrot.slane %v14197_v56, 9  ;;  %v3882_v31 = vrot.slane %v3543_v21, 5 }
 0x10b   : > { %v1770_v49 = vrot.slane %v1769_v54, 4  ;;  %3168 = vrot.lane.b32.xlu1 %v11124_v27, %s13059_s15  ;;  %v1765_v58 = vsel %vm13470_vm12, %v1760_v18, %v1764_v41  ;;  %v3885_v20 = vrot.slane %v14195_v30, 5  ;;  %v980_v27 = vrot.slane %v929_v38, 7  ;;  %1031 = vst [vmem:[#allocation3 + $0x60] sm:$0xe] %v978_v46 }
 0x10c   : > { %v1394_v54 = vsel %vm13451_vm11, %v11040_v29, %v1393_v0  ;;  %v1395_v24 = vrot.slane %v1393_v0, 4  ;;  %v772_v2 = vrot.slane %v722_v4, 7  ;;  %v774_v19 = vrot.slane %v723_v52, 7 }
 0x10d   : > { %v1775_v9 = vsel %vm13470_vm12, %v1770_v49, %v1774_v45  ;;  %v3883_v45 = vsel %vm13451_vm11, %v11166_v17, %v3882_v31  ;;  %v3884_v29 = vrot.slane %v3882_v31, 4  ;;  %v979_v18 = vrot.slane %v978_v46, 4 }
 0x10e   : > { %v11100_v25 = vcombine.low %v1765_v58, %v1775_v9  ;;  %v1397_v10 = vsel %vm13451_vm11, %v1395_v24, %v1396_v43  ;;  %v982_v58 = vrot.slane %v980_v27, 4  ;;  %v773_v49 = vrot.slane %v772_v2, 4  ;;  %825 = vst.msk [vmem:[#allocation2 + $0x60] sm:$0xe] %vm702_vm14, %v772_v2  ;;  %v14221_v9 = vld [vmem:[#allocation3 + $0x5c] sm:$0x3] }
 0x10f   : > { %v11080_v41 = vcombine.low %v1394_v54, %v1397_v10  ;;  %v776_v0 = vrot.slane %v774_v19, 4  ;;  %v3720_v50 = vshrl.u32 %v3542_v11, 16  ;;  %v3886_v38 = vsel %vm13451_vm11, %v3884_v29, %v3885_v20 }
 0x110   : > { %3080 = vrot.lane.b32.xlu0 %v11100_v25, %s13059_s15  ;;  %v981_v10 = vsel %vm13417_vm4, %v979_v18, %v980_v27  ;;  %v3723_v4 = vshll.u32 %v3542_v11, 16  ;;  %v3729_v52 = vshll.u32 %v3543_v21, 16  ;;  %v11206_v43 = vcombine.low %v3883_v45, %v3886_v38  ;;  %1033 = vst [vmem:[#allocation3 + $0x68] sm:$0x1] %v982_v58 }
 0x111   : > { %3000 = vrot.lane.b32.xlu1 %v11080_v41, %s13059_s15  ;;  %1032 = vst [vmem:[#allocation3 + $0x64] sm:$0xf] %v981_v10  ;;  %v775_v46 = vsel %vm13417_vm4, %v773_v49, %v774_v19  ;;  %827 = vst.msk [vmem:[#allocation2 + $0x68] sm:$0x1] %vm649_vm0, %v776_v0  ;;  %v3722_v2 = vrot.slane %v3720_v50, 4  ;;  %v3733_v17 = vshrl.u32 %v3543_v21, 16 }
 0x112   : > { %826 = vst.msk [vmem:[#allocation2 + $0x64] sm:$0xf] %vm704_vm15, %v775_v46  ;;  %v3725_v54 = vrot.slane %v3723_v4, 5  ;;  %v3731_v24 = vrot.slane %v3729_v52, 5  ;;  %v3739_v20 = vshll.u32 %v14195_v30, 16  ;;  %v4073_v25 = vshrl.u32 %v14197_v56, 16  ;;  %6406 = vmatprep.mubr.bf16.mxu0 %v11206_v43 }
 0x113   : > { %v3735_v31 = vrot.slane %v3733_v17, 4  ;;  %v4076_v27 = vshll.u32 %v14197_v56, 16  ;;  %v4081_v41 = vrot.slane %v3733_v17, 5  ;;  %v4082_v29 = vrot.slane %v3729_v52, 6  ;;  %v4163_v18 = vld [vmem:[#allocation3 + $0x60] sm:$0xf] }
 0x114   : > { %v3726_v19 = vor.u32 %v3725_v54, %v3722_v2  ;;  %v3741_v45 = vrot.slane %v3739_v20, 5  ;;  %v4087_v21 = vshrl.u32 %v14221_v9, 16  ;;  %v4075_v49 = vrot.slane %v4073_v25, 5 }
 0x115   : > { %v3736_v58 = vor.u32 %v3735_v31, %v3731_v24  ;;  %v4078_v0 = vrot.slane %v4076_v27, 6  ;;  %v4090_v30 = vshll.u32 %v14221_v9, 16  ;;  %v4341_v50 = vshrl.u32 %v4163_v18, 16  ;;  %v2594_v10 = vld [vmem:[#allocation2 + $0x60] sm:$0xe] }
 0x116   : > { %v4344_v38 = vshll.u32 %v4163_v18, 16  ;;  %v3727_v4 = vrot.slane %v3726_v19, 4  ;;  %v4089_v43 = vrot.slane %v4087_v21, 5  ;;  %v11065_v46 = vrot.slane %v2594_v10, 9 }
 0x117   : > { %v2847_v11 = vshrl.u32 %v2594_v10, 16  ;;  %v2850_v56 = vshll.u32 %v2594_v10, 16  ;;  %v3737_v17 = vrot.slane %v3736_v58, 4  ;;  %v4165_v52 = vld [vmem:[#allocation3 + $0x68] sm:$0x1]  ;;  %v4343_v54 = vrot.slane %v4341_v50, 4 }
 0x118   : > { %v14238_v2 = vld [vmem:[#allocation3 + $0x64] sm:$0xf]  ;;  %v4346_v20 = vrot.slane %v4344_v38, 5  ;;  %v3732_v25 = vsel %vm13470_vm12, %v3727_v4, %v3731_v24  ;;  %v4083_v31 = vor.u32 %v4082_v29, %v4081_v41  ;;  %v4360_v18 = vshll.u32 %v4165_v52, 16  ;;  %v14246_v10 = vld [vmem:[#allocation2 + $0x68] sm:$0x1] }
 0x119   : > { %v17875_v9 = vshll.u32 %v14238_v2, 16  ;;  %v17878_v27 = vshrl.u32 %v14238_v2, 16  ;;  %v14244_v19 = vld [vmem:[#allocation2 + $0x64] sm:$0xf]  ;;  %v4079_v21 = vor.u32 %v4078_v0, %v4075_v49  ;;  %18040 = vst [vmem:[#allocation50_spill] sm:$0xff] %v14246_v10  ;;  %v14250_v38 = vrot.slane %v2847_v11, 5 }
 0x11a   : > { %18039 = vst [vmem:[#allocation49_spill] sm:$0xff] %v14244_v19  ;;  %v4347_v14 = vor.u32 %v4346_v20, %v4343_v54  ;;  %v2672_v50 = vrot.slane %v14244_v19, 5  ;;  %v4362_v29 = vrot.slane %v4360_v18, 5  ;;  %v14256_v4 = vrot.slane %v2850_v56, 6  ;;  %v14261_v20 = vld [vmem:[#allocation2 + $0x58] sm:$0xf] }
 0x11b   : > { %18041 = vst [vmem:[#allocation51_spill] sm:$0xff] %v14250_v38  ;;  %v4352_v24 = vrot.slane %v17875_v9, 5  ;;  %v4356_v41 = vrot.slane %v17878_v27, 4  ;;  %v2675_v54 = vrot.slane %v14246_v10, 5  ;;  %v3742_v58 = vsel %vm13470_vm12, %v3737_v17, %v3741_v45  ;;  %v1974_v19 = vld [vmem:[#allocation2 + $0x54] sm:$0xe] }
 0x11c   : > { %18042 = vst [vmem:[#allocation52_spill] sm:$0xff] %v14256_v4  ;;  %v4348_v52 = vrot.slane %v4347_v14, 4  ;;  %v2673_v49 = vsel %vm13451_vm11, %v11065_v46, %v2672_v50  ;;  %v2674_v0 = vrot.slane %v2672_v50, 4  ;;  %v4080_v9 = vrot.slane %v4079_v21, 4  ;;  %v2084_v50 = vld [vmem:[#allocation2 + $0x5c] sm:$0x3] }
 0x11d   : > { %v4357_v11 = vor.u32 %v4356_v41, %v4352_v24  ;;  %v4085_v38 = vrot.slane %v4083_v31, 4  ;;  %v11196_v18 = vcombine.low %v3732_v25, %v3742_v58  ;;  %v4092_v46 = vrot.slane %v4090_v30, 6 }
 0x11e   : > { %v4353_v56 = vsel %vm13470_vm12, %v4348_v52, %v4352_v24  ;;  %v2676_v14 = vsel %vm13451_vm11, %v2674_v0, %v2675_v54  ;;  %v4084_v41 = vsel %vm13492_vm13, %v4080_v9, %v4083_v31  ;;  %v17883_v12 = vshll.u32 %v14261_v20, 16  ;;  %v1704_v52 = vld [vmem:[#allocation2 + $0x24] sm:$0xf]  ;;  %v1706_v0 = vld [vmem:[#allocation2 + $0x2c] sm:$0x1] }
 0x11f   : > { %v4358_v27 = vrot.slane %v4357_v11, 4  ;;  %v11145_v4 = vcombine.low %v2673_v49, %v2676_v14  ;;  %6407 = vmatmul.mubr.bf16.gmra.mrb[28].mxu0 %v11196_v18  ;;  %v4093_v45 = vor.u32 %v4092_v46, %v4089_v43  ;;  %v17882_v17 = vshrl.u32 %v14261_v20, 16 }
 0x120   : > { %v2227_v21 = vshrl.u32 %v1974_v19, 16  ;;  %v2230_v23 = vshll.u32 %v1974_v19, 16  ;;  %v2236_v30 = vrot.slane %v17883_v12, 6  ;;  %v2241_v25 = vshrl.u32 %v2084_v50, 16 }
 0x121   : > { %v4363_v24 = vsel %vm13470_vm12, %v4358_v27, %v4362_v29  ;;  %3250 = vrot.lane.b32.xlu0 %v11145_v4, %s13059_s15  ;;  %v2244_v58 = vshll.u32 %v2084_v50, 16  ;;  %v4094_v9 = vsel %vm13492_vm13, %v4085_v38, %v4093_v45  ;;  %v2235_v19 = vrot.slane %v17882_v17, 5  ;;  %v3545_v17 = vld [vmem:[#allocation3 + $0x60] sm:$0xf] }
 0x122   : > { %v11226_v31 = vcombine.low %v4353_v56, %v4363_v24  ;;  %v2229_v43 = vrot.slane %v2227_v21, 5  ;;  %v2232_v49 = vrot.slane %v2230_v23, 6  ;;  %v11216_v54 = vcombine.low %v4084_v41, %v4094_v9  ;;  %v14284_v56 = vld [vmem:[#allocation2 + $0x18] sm:$0xe]  ;;  %v14288_v21 = vld [vmem:[#allocation2 + $0x1c] sm:$0xf] }
 0x123   : > { %v2243_v27 = vrot.slane %v2241_v25, 5  ;;  %v2246_v29 = vrot.slane %v2244_v58, 6  ;;  %v1777_v11 = vshrl.u32 %v1704_v52, 16  ;;  %v1780_v14 = vshll.u32 %v1704_v52, 16  ;;  %v14290_v24 = vld [vmem:[#allocation2 + $0x20] sm:$0x1] }
 0x124   : > { %6519 = vmatprep.mubr.bf16.mxu1 %v11226_v31  ;;  %v2233_v4 = vor.u32 %v2232_v49, %v2229_v43  ;;  %v18043_v18 = vshll.u32 %v13835_v6, 16  ;;  %v2237_v38 = vor.u32 %v2236_v30, %v2235_v19  ;;  %v18044_v23 = vshrl.u32 %v13835_v6, 16 }
 0x125   : > { %6520 = vmatmul.mubr.bf16.gmra.mrb[28].mxu1 %v11216_v54  ;;  %v2247_v50 = vor.u32 %v2246_v29, %v2243_v27  ;;  %v1796_v45 = vshll.u32 %v1706_v0, 16  ;;  %v1779_v52 = vrot.slane %v1777_v11, 4  ;;  %v1782_v31 = vrot.slane %v1780_v14, 5  ;;  %v14298_v27 = vld [vmem:[#allocation3 + $0x60] sm:$0xe] }
 0x126   : > { %v1788_v46 = vrot.slane %v18043_v18, 5  ;;  %v1792_v41 = vrot.slane %v18044_v23, 4  ;;  %v2234_v58 = vrot.slane %v2233_v4, 4  ;;  %v2239_v9 = vrot.slane %v2237_v38, 4  ;;  %v930_v29 = vld [vmem:[%s13426_s24 + $0x38] sm:$0xf] }
 0x127   : > { %v1798_v43 = vrot.slane %v1796_v45, 5  ;;  %v11041_v6 = vrot.slane %v14284_v56, 9  ;;  %v1783_v0 = vor.u32 %v1782_v31, %v1779_v52  ;;  %v1400_v54 = vrot.slane %v14288_v21, 5  ;;  %v931_v4 = vld [vmem:[%s13426_s24 + $0x3c] sm:$0xf] }
 0x128   : > { %v1793_v30 = vor.u32 %v1792_v41, %v1788_v46  ;;  %v2238_v49 = vsel %vm13492_vm13, %v2234_v58, %v2237_v38  ;;  %v1403_v19 = vrot.slane %v14290_v24, 5  ;;  %v2248_v11 = vsel %vm13492_vm13, %v2239_v9, %v2247_v50  ;;  %v3547_v23 = vld [vmem:[#allocation3 + $0x68] sm:$0x1]  ;;  %v725_v45 = vld [vmem:[%s13600_s25 + $0x3c] sm:$0xf] }
 0x129   : > { %v724_v41 = vld [vmem:[%s13600_s25 + $0x38] sm:$0xf]  ;;  %v11125_v25 = vcombine.low %v2238_v49, %v2248_v11  ;;  %v1784_v38 = vrot.slane %v1783_v0, 4  ;;  %v1401_v58 = vsel %vm13451_vm11, %v11041_v6, %v1400_v54  ;;  %v1402_v52 = vrot.slane %v1400_v54, 4  ;;  %v3546_v31 = vld [vmem:[#allocation3 + $0x64] sm:$0xf] }
 0x12a   : > { %v1794_v14 = vrot.slane %v1793_v30, 4  ;;  %v11167_v9 = vrot.slane %v14298_v27, 9  ;;  %v3889_v49 = vrot.slane %v3546_v31, 5  ;;  %v3892_v0 = vrot.slane %v3547_v23, 5 }
 0x12b   : > { %3170 = vrot.lane.b32.xlu1 %v11125_v25, %s13059_s15  ;;  %v1789_v30 = vsel %vm13470_vm12, %v1784_v38, %v1788_v46  ;;  %v1404_v6 = vsel %vm13451_vm11, %v1402_v52, %v1403_v19  ;;  %v983_v18 = vrot.slane %v930_v29, 7  ;;  %v777_v10 = vrot.slane %v724_v41, 7 }
 0x12c   : > { %v1799_v12 = vsel %vm13470_vm12, %v1794_v14, %v1798_v43  ;;  %v11081_v11 = vcombine.low %v1401_v58, %v1404_v6  ;;  %v985_v43 = vrot.slane %v931_v4, 7  ;;  %v3890_v14 = vsel %vm13451_vm11, %v11167_v9, %v3889_v49 }
 0x12d   : > { %v11101_v54 = vcombine.low %v1789_v30, %v1799_v12  ;;  %v3891_v50 = vrot.slane %v3889_v49, 4  ;;  %v779_v1 = vrot.slane %v725_v45, 7  ;;  %v984_v25 = vrot.slane %v983_v18, 4  ;;  %1034 = vst [vmem:[#allocation3 + $0x6c] sm:$0xe] %v983_v18 }
 0x12e   : > { %v987_v48 = vrot.slane %v985_v43, 4  ;;  %v3744_v46 = vshrl.u32 %v3545_v17, 16  ;;  %v3747_v38 = vshll.u32 %v3545_v17, 16  ;;  %v778_v19 = vrot.slane %v777_v10, 4  ;;  %828 = vst.msk [vmem:[#allocation2 + $0x6c] sm:$0xe] %vm702_vm14, %v777_v10 }
 0x12f   : > { %3082 = vrot.lane.b32.xlu0 %v11101_v54, %s13059_s15  ;;  %3002 = vrot.lane.b32.xlu1 %v11081_v11, %s13059_s15  ;;  %v3893_v12 = vsel %vm13451_vm11, %v3891_v50, %v3892_v0  ;;  %v781_v29 = vrot.slane %v779_v1, 4  ;;  %v3753_v4 = vshll.u32 %v3546_v31, 16  ;;  %v986_v41 = vsel %vm13417_vm4, %v984_v25, %v985_v43  ;;  %v14328_v18 = vld [vmem:[#allocation3 + $0x68] sm:$0x3]  ;;  %v14339_v25 = vld [vmem:[#allocation2 + $0x64] sm:$0xf] }
 0x130   : > { %v11207_v58 = vcombine.low %v3890_v14, %v3893_v12  ;;  %1036 = vst [vmem:[#allocation3 + $0x74] sm:$0x1] %v987_v48  ;;  %v3746_v45 = vrot.slane %v3744_v46, 4  ;;  %v3749_v52 = vrot.slane %v3747_v38, 5  ;;  %1035 = vst [vmem:[#allocation3 + $0x70] sm:$0xf] %v986_v41  ;;  %v780_v17 = vsel %vm13417_vm4, %v778_v19, %v779_v1 }
 0x131   : > { %830 = vst.msk [vmem:[#allocation2 + $0x74] sm:$0x1] %vm649_vm0, %v781_v29  ;;  %v3755_v50 = vrot.slane %v3753_v4, 5  ;;  %v3757_v9 = vshrl.u32 %v3546_v31, 16  ;;  %v3763_v30 = vshll.u32 %v3547_v23, 16  ;;  %v4096_v6 = vshrl.u32 %v14298_v27, 16 }
 0x132   : > { %6414 = vmatprep.mubr.bf16.mxu0 %v11207_v58  ;;  %829 = vst.msk [vmem:[#allocation2 + $0x70] sm:$0xf] %vm704_vm15, %v780_v17  ;;  %v3750_v10 = vor.u32 %v3749_v52, %v3746_v45  ;;  %v4099_v48 = vshll.u32 %v14298_v27, 16  ;;  %v4105_v49 = vrot.slane %v3753_v4, 6  ;;  %v4110_v1 = vshrl.u32 %v14328_v18, 16 }
 0x133   : > { %v3759_v54 = vrot.slane %v3757_v9, 4  ;;  %v4104_v11 = vrot.slane %v3757_v9, 5  ;;  %v3765_v14 = vrot.slane %v3763_v30, 5  ;;  %v4098_v31 = vrot.slane %v4096_v6, 5 }
 0x134   : > { %v4101_v23 = vrot.slane %v4099_v48, 6  ;;  %v4166_v46 = vld [vmem:[#allocation3 + $0x6c] sm:$0xf]  ;;  %v3751_v38 = vrot.slane %v3750_v10, 4  ;;  %v4113_v27 = vshll.u32 %v14328_v18, 16  ;;  %v4112_v45 = vrot.slane %v4110_v1, 5 }
 0x135   : > { %v3760_v12 = vor.u32 %v3759_v54, %v3755_v50  ;;  %v14341_v19 = vor.u32 %v4105_v49, %v4104_v11  ;;  %v4365_v29 = vshrl.u32 %v4166_v46, 16  ;;  %v4368_v4 = vshll.u32 %v4166_v46, 16  ;;  %v14344_v58 = vld [vmem:[#allocation2 + $0x6c] sm:$0xe] }
 0x136   : > { %v4102_v41 = vor.u32 %v4101_v23, %v4098_v31  ;;  %v11066_v17 = vrot.slane %v14344_v58, 9  ;;  %v2870_v9 = vshrl.u32 %v14344_v58, 16  ;;  %v3756_v23 = vsel %vm13470_vm12, %v3751_v38, %v3755_v50 }
 0x137   : > { %v4168_v52 = vld [vmem:[#allocation3 + $0x74] sm:$0x1]  ;;  %v3761_v30 = vrot.slane %v3760_v12, 4  ;;  %v14349_v10 = vld [vmem:[#allocation3 + $0x70] sm:$0xf]  ;;  %v4367_v48 = vrot.slane %v4365_v29, 4 }
 0x138   : > { %v4370_v49 = vrot.slane %v4368_v4, 5  ;;  %v4384_v54 = vshll.u32 %v4168_v52, 16  ;;  %v4103_v18 = vrot.slane %v4102_v41, 4  ;;  %v17889_v11 = vshll.u32 %v14349_v10, 16  ;;  %v14355_v1 = vld [vmem:[#allocation2 + $0x74] sm:$0x1] }
 0x139   : > { %v17890_v46 = vshrl.u32 %v14349_v10, 16  ;;  %v14353_v31 = vld [vmem:[#allocation2 + $0x70] sm:$0xf]  ;;  %18046 = vst [vmem:[#allocation54_spill] sm:$0xff] %v14355_v1  ;;  %v3766_v12 = vsel %vm13470_vm12, %v3761_v30, %v3765_v14  ;;  %v2873_v4 = vshll.u32 %v14344_v58, 16  ;;  %v2682_v55 = vrot.slane %v14355_v1, 5 }
 0x13a   : > { %18045 = vst [vmem:[#allocation53_spill] sm:$0xff] %v14353_v31  ;;  %v4371_v0 = vor.u32 %v4370_v49, %v4367_v48  ;;  %v4386_v43 = vrot.slane %v4384_v54, 5  ;;  %v4376_v41 = vrot.slane %v17889_v11, 5  ;;  %v2679_v6 = vrot.slane %v14353_v31, 5  ;;  %v1975_v48 = vld [vmem:[#allocation2 + $0x60] sm:$0xe] }
 0x13b   : > { %v4380_v52 = vrot.slane %v17890_v46, 4  ;;  %v14370_v14 = vrot.slane %v2870_v9, 5  ;;  %v11197_v30 = vcombine.low %v3756_v23, %v3766_v12  ;;  %v4107_v29 = vsel %vm13492_vm13, %v4103_v18, %v14341_v19  ;;  %v2085_v23 = vld [vmem:[#allocation2 + $0x68] sm:$0x3] }
 0x13c   : > { %v4372_v50 = vrot.slane %v4371_v0, 4  ;;  %v2680_v58 = vsel %vm13451_vm11, %v11066_v17, %v2679_v6  ;;  %v2681_v54 = vrot.slane %v2679_v6, 4  ;;  %v4108_v0 = vrot.slane %v14341_v19, 4 }
 0x13d   : > { %18047 = vst [vmem:[#allocation55_spill] sm:$0xff] %v14370_v14  ;;  %v4381_v49 = vor.u32 %v4380_v52, %v4376_v41  ;;  %6415 = vmatmul.mubr.bf16.gmra.mrb[32].mxu0 %v11197_v30  ;;  %v4115_v38 = vrot.slane %v4113_v27, 6  ;;  %v17894_v9 = vshrl.u32 %v14339_v25, 16  ;;  %v2250_v17 = vshrl.u32 %v1975_v48, 16  ;;  %v1707_v30 = vld [vmem:[#allocation2 + $0x30] sm:$0xf] }
 0x13e   : > { %v4377_v11 = vsel %vm13470_vm12, %v4372_v50, %v4376_v41  ;;  %v2683_v52 = vsel %vm13451_vm11, %v2681_v54, %v2682_v55  ;;  %v2253_v6 = vshll.u32 %v1975_v48, 16  ;;  %v18048_v41 = vshll.u32 %v14339_v25, 16  ;;  %v1709_v48 = vld [vmem:[#allocation2 + $0x38] sm:$0x1] }
 0x13f   : > { %v4382_v12 = vrot.slane %v4381_v49, 4  ;;  %v11146_v46 = vcombine.low %v2680_v58, %v2683_v52  ;;  %v4116_v14 = vor.u32 %v4115_v38, %v4112_v45  ;;  %v2258_v18 = vrot.slane %v17894_v9, 5  ;;  %v14392_v9 = vld [vmem:[#allocation2 + $0x28] sm:$0xf] }
 0x140   : > { %v2259_v50 = vrot.slane %v18048_v41, 6  ;;  %v2252_v27 = vrot.slane %v2250_v17, 5  ;;  %v2255_v1 = vrot.slane %v2253_v6, 6  ;;  %v2264_v49 = vshrl.u32 %v2085_v23, 16  ;;  %v14396_v6 = vld [vmem:[#allocation2 + $0x2c] sm:$0x1] }
 0x141   : > { %v4387_v19 = vsel %vm13470_vm12, %v4382_v12, %v4386_v43  ;;  %3252 = vrot.lane.b32.xlu0 %v11146_v46, %s13059_s15  ;;  %v4117_v55 = vsel %vm13492_vm13, %v4108_v0, %v4116_v14  ;;  %v2267_v38 = vshll.u32 %v2085_v23, 16  ;;  %v1801_v41 = vshrl.u32 %v1707_v30, 16  ;;  %v14406_v23 = vld [vmem:[#allocation2 + $0x24] sm:$0xe] }
 0x142   : > { %v11227_v31 = vcombine.low %v4377_v11, %v4387_v19  ;;  %v2260_v45 = vor.u32 %v2259_v50, %v2258_v18  ;;  %v11217_v58 = vcombine.low %v4107_v29, %v4117_v55  ;;  %v2256_v54 = vor.u32 %v2255_v1, %v2252_v27 }
 0x143   : > { %v2266_v52 = vrot.slane %v2264_v49, 5  ;;  %v2269_v12 = vrot.slane %v2267_v38, 6  ;;  %v1804_v11 = vshll.u32 %v1707_v30, 16  ;;  %v18049_v46 = vshll.u32 %v13896_v63, 16  ;;  %v1038_v38 = vld [vmem:[%s14402_s26 + $0x4] sm:$0xf] }
 0x144   : > { %6527 = vmatprep.mubr.bf16.mxu1 %v11227_v31  ;;  %v2262_v43 = vrot.slane %v2260_v45, 4  ;;  %v2257_v1 = vrot.slane %v2256_v54, 4  ;;  %v1803_v29 = vrot.slane %v1801_v41, 4  ;;  %v18050_v31 = vshrl.u32 %v13896_v63, 16  ;;  %v3549_v41 = vld [vmem:[#allocation3 + $0x70] sm:$0xf] }
 0x145   : > { %v1812_v17 = vrot.slane %v18049_v46, 5  ;;  %6528 = vmatmul.mubr.bf16.gmra.mrb[32].mxu1 %v11217_v58  ;;  %v1820_v0 = vshll.u32 %v1709_v48, 16  ;;  %v14408_v18 = vrot.slane %v2873_v4, 6  ;;  %v2270_v50 = vor.u32 %v2269_v12, %v2266_v52  ;;  %v1037_v4 = vld [vmem:[%s14402_s26] sm:$0xf] }
 0x146   : > { %v1816_v14 = vrot.slane %v18050_v31, 4  ;;  %v1806_v30 = vrot.slane %v1804_v11, 5  ;;  %v2261_v27 = vsel %vm13492_vm13, %v2257_v1, %v2260_v45  ;;  %v11042_v54 = vrot.slane %v14406_v23, 9  ;;  %v14426_v12 = vld [vmem:[#allocation3 + $0x74] sm:$0x1] }
 0x147   : > { %18051 = vst [vmem:[#allocation56_spill] sm:$0xff] %v14408_v18  ;;  %v1822_v63 = vrot.slane %v1820_v0, 5  ;;  %v2271_v48 = vsel %vm13492_vm13, %v2262_v43, %v2270_v50  ;;  %v1407_v52 = vrot.slane %v14392_v9, 5  ;;  %v3800_v45 = vld [vmem:[#allocation3 + $0x6c] sm:$0xe]  ;;  %v1410_v31 = vrot.slane %v14396_v6, 5 }
 0x148   : > { %v1817_v49 = vor.u32 %v1816_v14, %v1812_v17  ;;  %v1807_v58 = vor.u32 %v1806_v30, %v1803_v29  ;;  %v11126_v11 = vcombine.low %v2261_v27, %v2271_v48  ;;  %v831_v14 = vld [vmem:[%s14415_s16] sm:$0xf]  ;;  %v832_v0 = vld [vmem:[%s14415_s16 + $0x4] sm:$0xf]  ;;  %v3548_v30 = vld [vmem:[#allocation3 + $0x6c] sm:$0xf] }
 0x149   : > { %v1408_v43 = vsel %vm13451_vm11, %v11042_v54, %v1407_v52  ;;  %v1409_v29 = vrot.slane %v1407_v52, 4  ;;  %v3896_v48 = vrot.slane %v3549_v41, 5  ;;  %v3899_v1 = vrot.slane %v14426_v12, 5 }
 0x14a   : > { %v1818_v46 = vrot.slane %v1817_v49, 4  ;;  %v1808_v19 = vrot.slane %v1807_v58, 4  ;;  %3172 = vrot.lane.b32.xlu1 %v11126_v11, %s13059_s15  ;;  %v11168_v49 = vrot.slane %v3800_v45, 9  ;;  %v1045_v54 = vrot.slane %v1037_v4, 7 }
 0x14b   : > { %v1411_v58 = vsel %vm13451_vm11, %v1409_v29, %v1410_v31  ;;  %v1047_v52 = vrot.slane %v1038_v38, 7  ;;  %v3898_v53 = vrot.slane %v3896_v48, 4  ;;  %v841_v36 = vrot.slane %v832_v0, 7  ;;  %v14449_v38 = vld [vmem:[#allocation3 + $0x74] sm:$0x3] }
 0x14c   : > { %v1823_v27 = vsel %vm13470_vm12, %v1818_v46, %v1822_v63  ;;  %v1813_v55 = vsel %vm13470_vm12, %v1808_v19, %v1812_v17  ;;  %v11082_v50 = vcombine.low %v1408_v43, %v1411_v58  ;;  %v3897_v11 = vsel %vm13451_vm11, %v11168_v49, %v3896_v48  ;;  %1062 = vst [vmem:[#allocation3 + $0x78] sm:$0xe] %v1045_v54 }
 0x14d   : > { %v11102_v18 = vcombine.low %v1813_v55, %v1823_v27  ;;  %v1046_v33 = vrot.slane %v1045_v54, 4  ;;  %v1049_v63 = vrot.slane %v1047_v52, 4  ;;  %v839_v46 = vrot.slane %v831_v14, 7 }
 0x14e   : > { %3004 = vrot.lane.b32.xlu1 %v11082_v50, %s13059_s15  ;;  %v3900_v17 = vsel %vm13451_vm11, %v3898_v53, %v3899_v1  ;;  %v3768_v19 = vshrl.u32 %v3548_v30, 16  ;;  %v3771_v4 = vshll.u32 %v3548_v30, 16  ;;  %v3777_v55 = vshll.u32 %v3549_v41, 16 }
 0x14f   : > { %3084 = vrot.lane.b32.xlu0 %v11102_v18, %s13059_s15  ;;  %v11208_v31 = vcombine.low %v3897_v11, %v3900_v17  ;;  %v1048_v43 = vsel %vm13417_vm4, %v1046_v33, %v1047_v52  ;;  %1064 = vst [vmem:[#allocation3 + $0x80] sm:$0x1] %v1049_v63  ;;  %v840_v29 = vrot.slane %v839_v46, 4  ;;  %v843_v14 = vrot.slane %v841_v36, 4  ;;  %856 = vst.msk [vmem:[#allocation2 + $0x78] sm:$0xe] %vm702_vm14, %v839_v46 }
 0x150   : > { %1063 = vst [vmem:[#allocation3 + $0x7c] sm:$0xf] %v1048_v43  ;;  %v3770_v18 = vrot.slane %v3768_v19, 4  ;;  %v3773_v0 = vrot.slane %v3771_v4, 5  ;;  %v3779_v50 = vrot.slane %v3777_v55, 5  ;;  %v3781_v27 = vshrl.u32 %v3549_v41, 16 }
 0x151   : > { %6422 = vmatprep.mubr.bf16.mxu0 %v11208_v31  ;;  %v842_v53 = vsel %vm13417_vm4, %v840_v29, %v841_v36  ;;  %858 = vst.msk [vmem:[#allocation2 + $0x80] sm:$0x1] %vm649_vm0, %v843_v14  ;;  %v3787_v1 = vshll.u32 %v14426_v12, 16  ;;  %v4119_v30 = vshrl.u32 %v3800_v45, 16  ;;  %v4122_v33 = vshll.u32 %v3800_v45, 16 }
 0x152   : > { %857 = vst.msk [vmem:[#allocation2 + $0x7c] sm:$0xf] %vm704_vm15, %v842_v53  ;;  %v3774_v49 = vor.u32 %v3773_v0, %v3770_v18  ;;  %v3783_v48 = vrot.slane %v3781_v27, 4  ;;  %v4127_v58 = vrot.slane %v3781_v27, 5  ;;  %v4128_v54 = vrot.slane %v3777_v55, 6 }
 0x153   : > { %v4121_v11 = vrot.slane %v4119_v30, 5  ;;  %v4124_v41 = vrot.slane %v4122_v33, 6  ;;  %v4133_v63 = vshrl.u32 %v14449_v38, 16  ;;  %v4169_v46 = vld [vmem:[#allocation3 + $0x78] sm:$0xf]  ;;  %v3789_v19 = vrot.slane %v3787_v1, 5 }
 0x154   : > { %v3775_v36 = vrot.slane %v3774_v49, 4  ;;  %v3784_v17 = vor.u32 %v3783_v48, %v3779_v50  ;;  %v14461_v4 = vor.u32 %v4128_v54, %v4127_v58  ;;  %v4389_v12 = vshrl.u32 %v4169_v46, 16  ;;  %v14483_v52 = vld [vmem:[#allocation2 + $0x70] sm:$0xf] }
 0x155   : > { %v4392_v45 = vshll.u32 %v4169_v46, 16  ;;  %v4135_v31 = vrot.slane %v4133_v63, 5  ;;  %v4136_v43 = vshll.u32 %v14449_v38, 16  ;;  %v4125_v0 = vor.u32 %v4124_v41, %v4121_v11  ;;  %v1976_v11 = vld [vmem:[#allocation2 + $0x6c] sm:$0xe] }
 0x156   : > { %v4171_v29 = vld [vmem:[#allocation3 + $0x80] sm:$0x1]  ;;  %v2596_v14 = vld [vmem:[#allocation2 + $0x78] sm:$0xe]  ;;  %v3780_v55 = vsel %vm13470_vm12, %v3775_v36, %v3779_v50  ;;  %v3785_v18 = vrot.slane %v3784_v17, 4  ;;  %v4131_v27 = vrot.slane %v14461_v4, 4 }
 0x157   : > { %v14467_v53 = vld [vmem:[#allocation3 + $0x7c] sm:$0xf]  ;;  %v4391_v30 = vrot.slane %v4389_v12, 4  ;;  %v4394_v1 = vrot.slane %v4392_v45, 5  ;;  %v4408_v33 = vshll.u32 %v4171_v29, 16  ;;  %v11067_v49 = vrot.slane %v2596_v14, 9 }
 0x158   : > { %v17898_v48 = vshll.u32 %v14467_v53, 16  ;;  %v17899_v58 = vshrl.u32 %v14467_v53, 16  ;;  %v14471_v38 = vld [vmem:[#allocation2 + $0x80] sm:$0x1]  ;;  %v2893_v54 = vshrl.u32 %v2596_v14, 16  ;;  %v2896_v63 = vshll.u32 %v2596_v14, 16 }
 0x159   : > { %18052 = vst [vmem:[#allocation57_spill] sm:$0xff] %v14471_v38  ;;  %v4395_v46 = vor.u32 %v4394_v1, %v4391_v30  ;;  %v4410_v50 = vrot.slane %v4408_v33, 5  ;;  %v14473_v36 = vld [vmem:[#allocation2 + $0x7c] sm:$0xf]  ;;  %v2689_v41 = vrot.slane %v14471_v38, 5  ;;  %v3790_v33 = vsel %vm13470_vm12, %v3785_v18, %v3789_v19 }
 0x15a   : > { %18053 = vst [vmem:[#allocation58_spill] sm:$0xff] %v14473_v36  ;;  %v4400_v17 = vrot.slane %v17898_v48, 5  ;;  %v4404_v12 = vrot.slane %v17899_v58, 4  ;;  %v2686_v29 = vrot.slane %v14473_v36, 5  ;;  %v14485_v30 = vrot.slane %v2893_v54, 5 }
 0x15b   : > { %v4396_v14 = vrot.slane %v4395_v46, 4  ;;  %v14487_v1 = vrot.slane %v2896_v63, 6  ;;  %v11198_v3 = vcombine.low %v3780_v55, %v3790_v33  ;;  %v4126_v36 = vrot.slane %v4125_v0, 4  ;;  %v2086_v18 = vld [vmem:[#allocation2 + $0x74] sm:$0x3] }
 0x15c   : > { %18054 = vst [vmem:[#allocation59_spill] sm:$0xff] %v14485_v30  ;;  %v4405_v38 = vor.u32 %v4404_v12, %v4400_v17  ;;  %v2687_v48 = vsel %vm13451_vm11, %v11067_v49, %v2686_v29  ;;  %v2688_v58 = vrot.slane %v2686_v29, 4  ;;  %v4138_v62 = vrot.slane %v4136_v43, 6  ;;  %v1710_v0 = vld [vmem:[#allocation2 + $0x3c] sm:$0xf] }
 0x15d   : > { %18055 = vst [vmem:[#allocation60_spill] sm:$0xff] %v14487_v1  ;;  %v4401_v45 = vsel %vm13470_vm12, %v4396_v14, %v4400_v17  ;;  %v17904_v54 = vshll.u32 %v14483_v52, 16  ;;  %6423 = vmatmul.mubr.bf16.gmra.mrb[36].mxu0 %v11198_v3  ;;  %v17903_v19 = vshrl.u32 %v14483_v52, 16  ;;  %v2273_v12 = vshrl.u32 %v1976_v11, 16  ;;  %v14511_v14 = vld [vmem:[#allocation2 + $0x34] sm:$0xf] }
 0x15e   : > { %v4406_v46 = vrot.slane %v4405_v38, 4  ;;  %v2690_v63 = vsel %vm13451_vm11, %v2688_v58, %v2689_v41  ;;  %v4130_v55 = vsel %vm13492_vm13, %v4126_v36, %v14461_v4  ;;  %v4139_v49 = vor.u32 %v4138_v62, %v4135_v31  ;;  %v1712_v31 = vld [vmem:[#allocation2 + $0x44] sm:$0x1] }
 0x15f   : > { %v11147_v1 = vcombine.low %v2687_v48, %v2690_v63  ;;  %v2276_v17 = vshll.u32 %v1976_v11, 16  ;;  %v2275_v38 = vrot.slane %v2273_v12, 5  ;;  %v2281_v58 = vrot.slane %v17903_v19, 5 }
 0x160   : > { %v4411_v43 = vsel %vm13470_vm12, %v4406_v46, %v4410_v50  ;;  %v2282_v3 = vrot.slane %v17904_v54, 6  ;;  %v4140_v48 = vsel %vm13492_vm13, %v4131_v27, %v4139_v49  ;;  %v2287_v62 = vshrl.u32 %v2086_v18, 16 }
 0x161   : > { %v11228_v41 = vcombine.low %v4401_v45, %v4411_v43  ;;  %3254 = vrot.lane.b32.xlu0 %v11147_v1, %s13059_s15  ;;  %v2278_v4 = vrot.slane %v2276_v17, 6  ;;  %v11218_v36 = vcombine.low %v4130_v55, %v4140_v48  ;;  %v2290_v29 = vshll.u32 %v2086_v18, 16  ;;  %v14517_v55 = vld [vmem:[#allocation2 + $0x30] sm:$0xe]  ;;  %v14519_v48 = vld [vmem:[#allocation2 + $0x38] sm:$0x1] }
 0x162   : > { %v2283_v11 = vor.u32 %v2282_v3, %v2281_v58  ;;  %v1825_v50 = vshrl.u32 %v1710_v0, 16  ;;  %v2289_v46 = vrot.slane %v2287_v62, 5  ;;  %v1828_v63 = vshll.u32 %v1710_v0, 16 }
 0x163   : > { %6535 = vmatprep.mubr.bf16.mxu1 %v11228_v41  ;;  %v2279_v33 = vor.u32 %v2278_v4, %v2275_v38  ;;  %v18056_v45 = vshll.u32 %v14011_v34, 16  ;;  %v2292_v43 = vrot.slane %v2290_v29, 6  ;;  %v18057_v49 = vshrl.u32 %v14011_v34, 16  ;;  %v833_v38 = vld [vmem:[%s14415_s16 + $0x8] sm:$0xf] }
 0x164   : > { %6536 = vmatmul.mubr.bf16.gmra.mrb[36].mxu1 %v11218_v36  ;;  %v2285_v1 = vrot.slane %v2283_v11, 4  ;;  %v1827_v27 = vrot.slane %v1825_v50, 4  ;;  %v1830_v58 = vrot.slane %v1828_v63, 5  ;;  %v1844_v3 = vshll.u32 %v1712_v31, 16  ;;  %v14524_v36 = vld [vmem:[#allocation3 + $0xc] sm:$0xe] }
 0x165   : > { %v1836_v12 = vrot.slane %v18056_v45, 5  ;;  %v1840_v17 = vrot.slane %v18057_v49, 4  ;;  %v2280_v18 = vrot.slane %v2279_v33, 4  ;;  %v2293_v0 = vor.u32 %v2292_v43, %v2289_v46  ;;  %v4522_v31 = vld [vmem:[#allocation3 + $0x14] sm:$0x3] }
 0x166   : > { %v1831_v29 = vor.u32 %v1830_v58, %v1827_v27  ;;  %v1846_v50 = vrot.slane %v1844_v3, 5  ;;  %v11043_v33 = vrot.slane %v14517_v55, 9  ;;  %v1414_v46 = vrot.slane %v14511_v14, 5  ;;  %v4764_v3 = vld [vmem:[#allocation3 + $0x20] sm:$0x1] }
 0x167   : > { %v1841_v41 = vor.u32 %v1840_v17, %v1836_v12  ;;  %v2284_v34 = vsel %vm13492_vm13, %v2280_v18, %v2283_v11  ;;  %v2294_v63 = vsel %vm13492_vm13, %v2285_v1, %v2293_v0  ;;  %v1417_v43 = vrot.slane %v14519_v48, 5  ;;  %v14535_v11 = vld [vmem:[#allocation3 + $0x1c] sm:$0xf]  ;;  %v5032_v0 = vld [vmem:[#allocation3 + $0x18] sm:$0xe] }
 0x168   : > { %v11127_v49 = vcombine.low %v2284_v34, %v2294_v63  ;;  %v1832_v17 = vrot.slane %v1831_v29, 4  ;;  %v1415_v1 = vsel %vm13451_vm11, %v11043_v33, %v1414_v46  ;;  %v1416_v18 = vrot.slane %v1414_v46, 4 }
 0x169   : > { %v1842_v45 = vrot.slane %v1841_v41, 4  ;;  %v11169_v58 = vrot.slane %v14524_v36, 9  ;;  %v4533_v34 = vshrl.u32 %v14524_v36, 16  ;;  %v4536_v29 = vshll.u32 %v14524_v36, 16 }
 0x16a   : > { %3174 = vrot.lane.b32.xlu1 %v11127_v49, %s13059_s15  ;;  %v1837_v41 = vsel %vm13470_vm12, %v1832_v17, %v1836_v12  ;;  %v1418_v33 = vsel %vm13451_vm11, %v1416_v18, %v1417_v43  ;;  %v4547_v46 = vshrl.u32 %v4522_v31, 16  ;;  %v4550_v4 = vshll.u32 %v4522_v31, 16  ;;  %v834_v12 = vld [vmem:[%s14415_s16 + $0xc] sm:$0xf] }
 0x16b   : > { %v1847_v27 = vsel %vm13470_vm12, %v1842_v45, %v1846_v50  ;;  %v18058_v50 = vshrl.u32 %v13455_v16, 16  ;;  %v11083_v62 = vcombine.low %v1415_v1, %v1418_v33  ;;  %v4535_v19 = vrot.slane %v4533_v34, 5 }
 0x16c   : > { %v11103_v45 = vcombine.low %v1837_v41, %v1847_v27  ;;  %v4538_v49 = vrot.slane %v4536_v29, 6  ;;  %v4549_v17 = vrot.slane %v4547_v46, 5  ;;  %v4552_v36 = vrot.slane %v4550_v4, 6  ;;  %v4762_v29 = vld [vmem:[#allocation3 + $0x18] sm:$0xf] }
 0x16d   : > { %v4541_v63 = vrot.slane %v18058_v50, 5  ;;  %v17905_v30 = vshll.u32 %v14535_v11, 16  ;;  %v17906_v27 = vshrl.u32 %v14535_v11, 16  ;;  %v4812_v31 = vshll.u32 %v4764_v3, 16 }
 0x16e   : > { %3086 = vrot.lane.b32.xlu0 %v11103_v45, %s13059_s15  ;;  %3006 = vrot.lane.b32.xlu1 %v11083_v62, %s13059_s15  ;;  %v4539_v43 = vor.u32 %v4538_v49, %v4535_v19  ;;  %v11179_v41 = vrot.slane %v5032_v0, 9  ;;  %v4553_v1 = vor.u32 %v4552_v36, %v4549_v17  ;;  %v5074_v4 = vrot.slane %v14535_v11, 5  ;;  %v14567_v19 = vld [vmem:[#allocation2 + $0x7c] sm:$0xf]  ;;  %v1977_v17 = vld [vmem:[#allocation2 + $0x78] sm:$0xe] }
 0x16f   : > { %v4543_v54 = vor.u32 %v13476_v35, %v4541_v63  ;;  %v14560_v34 = vrot.slane %v17905_v30, 5  ;;  %v4808_v35 = vrot.slane %v17906_v27, 4  ;;  %v14565_v63 = vrot.slane %v4812_v31, 5  ;;  %v2087_v36 = vld [vmem:[#allocation2 + $0x80] sm:$0x3] }
 0x170   : > { %v4540_v50 = vrot.slane %v4539_v43, 4  ;;  %v5077_v45 = vrot.slane %v4764_v3, 5  ;;  %v844_v62 = vrot.slane %v833_v38, 7  ;;  %v5075_v33 = vsel %vm13451_vm11, %v11179_v41, %v5074_v4 }
 0x171   : > { %v4545_v18 = vrot.slane %v4543_v54, 4  ;;  %v5076_v46 = vrot.slane %v5074_v4, 4  ;;  %v846_v49 = vrot.slane %v834_v12, 7  ;;  %v18059_v38 = vrot.slane %v13455_v16, 5 }
 0x172   : > { %v4544_v30 = vsel %vm13492_vm13, %v4540_v50, %v4543_v54  ;;  %v845_v43 = vrot.slane %v844_v62, 4  ;;  %859 = vst.msk [vmem:[#allocation2 + $0x84] sm:$0xe] %vm702_vm14, %v844_v62  ;;  %v4793_v31 = vshrl.u32 %v4762_v29, 16  ;;  %v4796_v62 = vshll.u32 %v4762_v29, 16 }
 0x173   : > { %v4554_v0 = vsel %vm13492_vm13, %v4545_v18, %v4553_v1  ;;  %v4455_v3 = vsel %vm13451_vm11, %v11169_v58, %v18059_v38  ;;  %v12772_v18 = vld [vmem:[%s17819_s6 + $0x40] sm:$0xff]   ;;  %v5078_v12 = vsel %vm13451_vm11, %v5076_v46, %v5077_v45  ;;  %v848_v1 = vrot.slane %v846_v49, 4  ;;  %v12768_v58 = vld [vmem:[%s17820_s7 + $0x208] sm:$0xff]  }
 0x174   : > { %v11239_v41 = vcombine.low %v4544_v30, %v4554_v0  ;;  %v11229_v54 = vcombine.low %v4455_v3, %v13480_v42  ;;  %v11259_v4 = vcombine.low %v5075_v33, %v5078_v12  ;;  %v847_v50 = vsel %vm13417_vm4, %v845_v43, %v846_v49  ;;  %11948 = vmatprep.subr.bf16.mxu1 %v12772_v18  ;;  %v1713_v43 = vld [vmem:[#allocation2 + $0x48] sm:$0xf]  ;;  %v12811_v18 = vld [vmem:[%s17820_s7 + $0x200] sm:$0xff]  }
 0x175   : > { %v4795_v16 = vrot.slane %v4793_v31, 4  ;;  %860 = vst.msk [vmem:[#allocation2 + $0x88] sm:$0xf] %vm704_vm15, %v847_v50  ;;  %v4809_v30 = vor.u32 %v4808_v35, %v14560_v34  ;;  %v17908_v42 = vshll.u32 %v14567_v19, 16  ;;  %v17907_v45 = vshrl.u32 %v14567_v19, 16 }
 0x176   : > { %6576 = vmatprep.mubr.bf16.mxu0 %v11239_v41  ;;  %861 = vst.msk [vmem:[#allocation2 + $0x8c] sm:$0x1] %vm649_vm0, %v848_v1  ;;  %v2296_v0 = vshrl.u32 %v1977_v17, 16  ;;  %6689 = vmatprep.mubr.bf16.mxu1 %v11259_v4  ;;  %v4798_v29 = vrot.slane %v4796_v62, 5  ;;  %v2299_v33 = vshll.u32 %v1977_v17, 16  ;;  %v2310_v46 = vshrl.u32 %v2087_v36, 16 }
 0x177   : > { %6577 = vmatmul.mubr.bf16.vlgmr.msra.gmra.mrb[40].mxu0 %v11229_v54  ;;  %v2313_v49 = vshll.u32 %v2087_v36, 16  ;;  %v4810_v38 = vrot.slane %v4809_v30, 4  ;;  %v2304_v31 = vrot.slane %v17907_v45, 5  ;;  %v2305_v35 = vrot.slane %v17908_v42, 6  ;;  %v12769_v36 = vld [vmem:[%s17820_s7 + $0x210] sm:$0xff]   ;;  %v12770_v42 = vld [vmem:[%s17820_s7 + $0x218] sm:$0xff]  }
 0x178   : > { %v2298_v3 = vrot.slane %v2296_v0, 5  ;;  %12403 = vmatpush3.bf16.msra.mxu0 %v12811_v18  ;;  %v4799_v41 = vor.u32 %v4798_v29, %v4795_v16  ;;  %v2301_v12 = vrot.slane %v2299_v33, 6  ;;  %v2312_v1 = vrot.slane %v2310_v46, 5 }
 0x179   : > { %v2315_v17 = vrot.slane %v2313_v49, 6  ;;  %12404 = vmatprep.subr.bf16.mxu0 %v12768_v58  ;;  %v2597_v54 = vld [vmem:[#allocation2 + $0x84] sm:$0xe]  ;;  %v4815_v4 = vsel %vm13470_vm12, %v4810_v38, %v14565_v63  ;;  %v2306_v50 = vor.u32 %v2305_v35, %v2304_v31  ;;  %v1849_v62 = vshrl.u32 %v1713_v43, 16  ;;  %v1715_v49 = vld [vmem:[#allocation2 + $0x50] sm:$0x1] }
 0x17a   : > { %v1852_v30 = vshll.u32 %v1713_v43, 16  ;;  %v11068_v0 = vrot.slane %v2597_v54, 9  ;;  %v2916_v27 = vshrl.u32 %v2597_v54, 16  ;;  %v2919_v18 = vshll.u32 %v2597_v54, 16 }
 0x17b   : > { %v4800_v16 = vrot.slane %v4799_v41, 4  ;;  %v2302_v29 = vor.u32 %v2301_v12, %v2298_v3  ;;  %v2308_v33 = vrot.slane %v2306_v50, 4  ;;  %v2316_v46 = vor.u32 %v2315_v17, %v2312_v1 }
 0x17c   : > { %v1851_v45 = vrot.slane %v1849_v62, 4  ;;  %12405 = vmatpush3.bf16.msra.mxu0 %v12768_v58  ;;  %v14612_v59 = vld [vmem:[#allocation2 + $0x88] sm:$0xf]  ;;  %v14616_v38 = vrot.slane %v2916_v27, 5  ;;  %v14618_v43 = vrot.slane %v2919_v18, 6  ;;  %v12773_v27 = vld [vmem:[%s17819_s6] sm:$0xff]  }
 0x17d   : > { %18060 = vst [vmem:[#allocation61_spill] sm:$0xff] %v14612_v59  ;;  %v14614_v63 = vld [vmem:[#allocation2 + $0x8c] sm:$0x1]  ;;  %v4805_v3 = vsel %vm13470_vm12, %v4800_v16, %v14560_v34  ;;  %12406 = vmatprep.subr.bf16.mxu0 %v12769_v36  ;;  %v2693_v35 = vrot.slane %v14612_v59, 5  ;;  %v2303_v1 = vrot.slane %v2302_v29, 4  ;;  %v2317_v17 = vsel %vm13492_vm13, %v2308_v33, %v2316_v46 }
 0x17e   : > { %18061 = vst [vmem:[#allocation62_spill] sm:$0xff] %v14614_v63  ;;  %18062 = vst [vmem:[#allocation63_spill] sm:$0xff] %v14616_v38  ;;  %v2696_v41 = vrot.slane %v14614_v63, 5  ;;  %v11249_v12 = vcombine.low %v4805_v3, %v4815_v4  ;;  %v1854_v54 = vrot.slane %v1852_v30, 5  ;;  %v14632_v34 = vld [vmem:[#allocation2 + $0x40] sm:$0xf] }
 0x17f   : > { %18063 = vst [vmem:[#allocation64_spill] sm:$0xff] %v14618_v43  ;;  %18064 = vst [vmem:[#allocation65_spill] sm:$0xff] %v14632_v34  ;;  %v12775_v62 = vld [vmem:[%s17819_s6 + $0x48] sm:$0xff]   ;;  %v2694_v18 = vsel %vm13451_vm11, %v11068_v0, %v2693_v35  ;;  %v2695_v16 = vrot.slane %v2693_v35, 4  ;;  %v18065_v58 = vshll.u32 %v14151_v15, 16  ;;  %v18066_v4 = vshrl.u32 %v14151_v15, 16 }
 0x180   : > { %v14643_v3 = vld [vmem:[#allocation2 + $0x44] sm:$0x1]  ;;  %12407 = vmatpush3.bf16.msra.mxu0 %v12769_v36  ;;  %6690 = vmatmul.mubr.bf16.vlgmr.msra.gmra.mrb[40].mxu1 %v11249_v12  ;;  %v2307_v30 = vsel %vm13492_vm13, %v2303_v1, %v2306_v50  ;;  %v1855_v33 = vor.u32 %v1854_v54, %v1851_v45  ;;  %v1868_v46 = vshll.u32 %v1715_v49, 16  ;;  %v14648_v38 = vld [vmem:[#allocation2 + $0x3c] sm:$0xe]  ;;  %v12776_v45 = vld [vmem:[%s17819_s6 + $0x8] sm:$0xff]  }
 0x181   : > { %v1860_v31 = vrot.slane %v18065_v58, 5  ;;  %v1864_v29 = vrot.slane %v18066_v4, 4  ;;  %18067 = vst [vmem:[#allocation66_spill] sm:$0xff] %v14643_v3  ;;  %18068 = vst [vmem:[#allocation67_spill] sm:$0xff] %v14648_v38  ;;  %12408 = vmatprep.subr.bf16.mxu0 %v12770_v42  ;;  %v12771_v0 = vld [vmem:[%s17820_s7 + $0x220] sm:$0xff]   ;;  %v2697_v15 = vsel %vm13451_vm11, %v2695_v16, %v2696_v41  ;;  %v11128_v58 = vcombine.low %v2307_v30, %v2317_v17  ;;  %v12777_v41 = vld [vmem:[%s17819_s6 + $0x50] sm:$0xff]  }
 0x182   : > { %v14656_v12 = vld [vmem:[#allocation3 + $0x18] sm:$0xe]  ;;  %11949 = vmatpush3.bf16.msra.mxu1 %v12773_v27  ;;  %v11148_v50 = vcombine.low %v2694_v18, %v2697_v15  ;;  %v1856_v49 = vrot.slane %v1855_v33, 4  ;;  %v1870_v1 = vrot.slane %v1868_v46, 5  ;;  %v4523_v4 = vld [vmem:[#allocation3 + $0x20] sm:$0x3] }
 0x183   : > { %v1865_v36 = vor.u32 %v1864_v29, %v1860_v31  ;;  %11950 = vmatprep.subr.bf16.mxu1 %v12775_v62  ;;  %3176 = vrot.lane.b32.xlu1 %v11128_v58, %s13059_s15  ;;  %v11044_v27 = vrot.slane %v14648_v38, 9  ;;  %v1421_v16 = vrot.slane %v14632_v34, 5  ;;  %v1424_v29 = vrot.slane %v14643_v3, 5  ;;  %v14669_v18 = vld [vmem:[#allocation3 + $0x24] sm:$0xe]  ;;  %v12774_v62 = vld [vmem:[%s17820_s7 + $0x228] sm:$0xff]  }
 0x184   : > { %12409 = vmatpush3.bf16.msra.mxu0 %v12770_v42  ;;  %3256 = vrot.lane.b32.xlu0 %v11148_v50, %s13059_s15  ;;  %v1861_v30 = vsel %vm13470_vm12, %v1856_v49, %v1860_v31  ;;  %v4556_v15 = vshrl.u32 %v14656_v12, 16  ;;  %v14680_v58 = vld [vmem:[#allocation3 + $0x2c] sm:$0x1]  ;;  %v12778_v42 = vld [vmem:[%s17819_s6 + $0x10] sm:$0xff]   ;;  %v4559_v49 = vshll.u32 %v14656_v12, 16  ;;  %v18069_v46 = vshrl.u32 %v13499_v8, 16 }
 0x185   : > { %v1866_v17 = vrot.slane %v1865_v36, 4  ;;  %12410 = vmatprep.subr.bf16.mxu0 %v12771_v0  ;;  %v1422_v50 = vsel %vm13451_vm11, %v11044_v27, %v1421_v16  ;;  %v1423_v31 = vrot.slane %v1421_v16, 4  ;;  %v14690_v54 = vld [vmem:[#allocation3 + $0x28] sm:$0xf]  ;;  %v18070_v63 = vshll.u32 %v13499_v8, 16 }
 0x186   : > { %11951 = vmatpush3.bf16.msra.mxu1 %v12776_v45  ;;  %v4558_v35 = vrot.slane %v4556_v15, 5  ;;  %v4564_v33 = vrot.slane %v18069_v46, 5  ;;  %v4561_v27 = vrot.slane %v4559_v49, 6  ;;  %v4570_v16 = vshrl.u32 %v4523_v4, 16  ;;  %v12779_v45 = vld [vmem:[%s17820_s7 + $0x230] sm:$0xff]  }
 0x187   : > { %v1871_v36 = vsel %vm13470_vm12, %v1866_v17, %v1870_v1  ;;  %v4565_v59 = vrot.slane %v18070_v63, 6  ;;  %11952 = vmatprep.subr.bf16.mxu1 %v12777_v41  ;;  %v12780_v1 = vld [vmem:[%s17819_s6 + $0x58] sm:$0xff]   ;;  %v1425_v17 = vsel %vm13451_vm11, %v1423_v31, %v1424_v29  ;;  %v4573_v3 = vshll.u32 %v4523_v4, 16  ;;  %v1068_v38 = vld [vmem:[#allocation2] sm:$0xf] }
 0x188   : > { %v11104_v43 = vcombine.low %v1861_v30, %v1871_v36  ;;  %12411 = vmatpush3.bf16.msra.mxu0 %v12771_v0  ;;  %v11084_v8 = vcombine.low %v1422_v50, %v1425_v17  ;;  %v11180_v41 = vrot.slane %v14669_v18, 9  ;;  %v5081_v30 = vrot.slane %v14690_v54, 5  ;;  %v12781_v0 = vld [vmem:[%s17819_s6 + $0x18] sm:$0xff]   ;;  %v4765_v50 = vld [vmem:[#allocation3 + $0x24] sm:$0xf] }
 0x189   : > { %v4566_v63 = vor.u32 %v4565_v59, %v4564_v33  ;;  %12412 = vmatprep.subr.bf16.mxu0 %v12774_v62  ;;  %v4562_v46 = vor.u32 %v4561_v27, %v4558_v35  ;;  %v4572_v15 = vrot.slane %v4570_v16, 5  ;;  %v4575_v29 = vrot.slane %v4573_v3, 6  ;;  %v12812_v27 = vld [vmem:[#allocation3 + $0x1c] sm:$0xf] }
 0x18a   : > { %3088 = vrot.lane.b32.xlu0 %v11104_v43, %s13059_s15  ;;  %v5084_v36 = vrot.slane %v14680_v58, 5  ;;  %11953 = vmatpush3.bf16.msra.mxu1 %v12778_v42  ;;  %v5082_v59 = vsel %vm13451_vm11, %v11180_v41, %v5081_v30  ;;  %v5083_v4 = vrot.slane %v5081_v30, 4  ;;  %v5176_v33 = vshrl.u32 %v14669_v18, 16  ;;  %v1716_v30 = vld [vmem:[#allocation2 + $0x54] sm:$0xf] }
 0x18b   : > { %3008 = vrot.lane.b32.xlu1 %v11084_v8, %s13059_s15  ;;  %v4568_v43 = vrot.slane %v4566_v63, 4  ;;  %11954 = vmatprep.subr.bf16.mxu1 %v12780_v1  ;;  %v4563_v35 = vrot.slane %v4562_v46, 4  ;;  %v4576_v3 = vor.u32 %v4575_v29, %v4572_v15  ;;  %v5179_v31 = vshll.u32 %v14669_v18, 16  ;;  %v12813_v8 = vld [vmem:[#allocation3 + $0x20] sm:$0x1] }
 0x18c   : > { %v11170_v42 = vrot.slane %v14656_v12, 9  ;;  %12413 = vmatpush3.bf16.msra.mxu0 %v12774_v62  ;;  %v5085_v49 = vsel %vm13451_vm11, %v5083_v4, %v5084_v36  ;;  %v5178_v17 = vrot.slane %v5176_v33, 5  ;;  %v4461_v16 = vrot.slane %v12812_v27, 5  ;;  %v12782_v12 = vld [vmem:[%s17819_s6 + $0x60] sm:$0xff]  }
 0x18d   : > { %v4464_v41 = vrot.slane %v12813_v8, 5  ;;  %12414 = vmatprep.subr.bf16.mxu0 %v12779_v45  ;;  %v4567_v1 = vsel %vm13492_vm13, %v4563_v35, %v4566_v63  ;;  %v4577_v46 = vsel %vm13492_vm13, %v4568_v43, %v4576_v3  ;;  %v5181_v18 = vrot.slane %v5179_v31, 6  ;;  %v12783_v63 = vld [vmem:[%s17819_s6 + $0x20] sm:$0xff]   ;;  %v1718_v35 = vld [vmem:[#allocation2 + $0x5c] sm:$0x1]  ;;  %v12784_v3 = vld [vmem:[%s17819_s6 + $0x68] sm:$0xff]  }
 0x18e   : > { %v11260_v15 = vcombine.low %v5082_v59, %v5085_v49  ;;  %11955 = vmatpush3.bf16.msra.mxu1 %v12781_v0  ;;  %v11240_v62 = vcombine.low %v4567_v1, %v4577_v46  ;;  %v4462_v29 = vsel %vm13451_vm11, %v11170_v42, %v4461_v16  ;;  %v4463_v36 = vrot.slane %v4461_v16, 4  ;;  %v12786_v31 = vld [vmem:[%s17820_s7 + $0x238] sm:$0xff]   ;;  %v12785_v8 = vld [vmem:[%s17819_s6 + $0x28] sm:$0xff]  }
 0x18f   : > { %v4817_v4 = vshrl.u32 %v4765_v50, 16  ;;  %v5182_v33 = vor.u32 %v5181_v18, %v5178_v17  ;;  %v4820_v43 = vshll.u32 %v4765_v50, 16  ;;  %v4826_v59 = vshll.u32 %v14690_v54, 16  ;;  %11956 = vmatprep.subr.bf16.mxu1 %v12782_v12 }
 0x190   : > { %6697 = vmatprep.mubr.bf16.mxu1 %v11260_v15  ;;  %v4830_v0 = vshrl.u32 %v14690_v54, 16  ;;  %12415 = vmatpush3.bf16.msra.mxu0 %v12779_v45  ;;  %v4465_v42 = vsel %vm13451_vm11, %v4463_v36, %v4464_v41  ;;  %v4836_v50 = vshll.u32 %v14680_v58, 16  ;;  %v1873_v17 = vshrl.u32 %v1716_v30, 16 }
 0x191   : > { %6584 = vmatprep.mubr.bf16.mxu0 %v11240_v62  ;;  %v4819_v49 = vrot.slane %v4817_v4, 4  ;;  %v14742_v54 = vrot.slane %v5182_v33, 4  ;;  %v11230_v45 = vcombine.low %v4462_v29, %v4465_v42  ;;  %v4822_v27 = vrot.slane %v4820_v43, 5  ;;  %12416 = vmatprep.subr.bf16.mxu0 %v12786_v31  ;;  %v14753_v42 = vld [vmem:[#allocation2 + $0x4c] sm:$0xf] }
 0x192   : > { %v4828_v16 = vrot.slane %v4826_v59, 5  ;;  %11957 = vmatpush3.bf16.msra.mxu1 %v12783_v63  ;;  %v4832_v1 = vrot.slane %v4830_v0, 4  ;;  %v4838_v46 = vrot.slane %v4836_v50, 5  ;;  %v5184_v18 = vrot.slane %v4830_v0, 5  ;;  %18073 = vst [vmem:[#allocation68_spill] sm:$0xff] %v14753_v42 }
 0x193   : > { %v5185_v41 = vrot.slane %v4826_v59, 6  ;;  %11958 = vmatprep.subr.bf16.mxu1 %v12784_v3  ;;  %6585 = vmatmul.mubr.bf16.gmra.mrb[44].mxu0 %v11230_v45  ;;  %v4823_v58 = vor.u32 %v4822_v27, %v4819_v49  ;;  %v1875_v15 = vrot.slane %v1873_v17, 4  ;;  %v1876_v12 = vshll.u32 %v1716_v30, 16  ;;  %v14755_v50 = vld [vmem:[#allocation2 + $0x48] sm:$0xe] }
 0x194   : > { %v18071_v62 = vshll.u32 %v14261_v20, 16  ;;  %v4833_v36 = vor.u32 %v4832_v1, %v4828_v16  ;;  %v18072_v63 = vshrl.u32 %v14261_v20, 16  ;;  %v1892_v43 = vshll.u32 %v1718_v35, 16  ;;  %18074 = vst [vmem:[#allocation69_spill] sm:$0xff] %v14755_v50  ;;  %12417 = vmatpush3.bf16.msra.mxu0 %v12786_v31  ;;  %v14757_v3 = vld [vmem:[#allocation2 + $0x50] sm:$0x1] }
 0x195   : > { %v14749_v4 = vor.u32 %v5185_v41, %v5184_v18  ;;  %v4824_v59 = vrot.slane %v4823_v58, 4  ;;  %v1878_v0 = vrot.slane %v1876_v12, 5  ;;  %18075 = vst [vmem:[#allocation70_spill] sm:$0xff] %v14757_v3  ;;  %v11045_v31 = vrot.slane %v14755_v50, 9  ;;  %v4414_v41 = vld [vmem:[#allocation3 + $0x24] sm:$0xe] }
 0x196   : > { %v1884_v29 = vrot.slane %v18071_v62, 5  ;;  %v1888_v33 = vrot.slane %v18072_v63, 4  ;;  %11959 = vmatpush3.bf16.msra.mxu1 %v12785_v8  ;;  %v4834_v17 = vrot.slane %v4833_v36, 4  ;;  %v1894_v27 = vrot.slane %v1892_v43, 5 }
 0x197   : > { %v4829_v35 = vsel %vm13470_vm12, %v4824_v59, %v4828_v16  ;;  %v1879_v1 = vor.u32 %v1878_v0, %v1875_v15  ;;  %v1428_v18 = vrot.slane %v14753_v42, 5  ;;  %v1431_v8 = vrot.slane %v14757_v3, 5  ;;  %v4524_v15 = vld [vmem:[#allocation3 + $0x2c] sm:$0x3]  ;;  %v14785_v3 = vld [vmem:[#allocation3 + $0x34] sm:$0xf] }
 0x198   : > { %v1889_v45 = vor.u32 %v1888_v33, %v1884_v29  ;;  %v4839_v58 = vsel %vm13470_vm12, %v4834_v17, %v4838_v46  ;;  %v4579_v0 = vshrl.u32 %v4414_v41, 16  ;;  %v4582_v20 = vshll.u32 %v4414_v41, 16  ;;  %v5034_v46 = vld [vmem:[#allocation3 + $0x30] sm:$0xe] }
 0x199   : > { %v11250_v36 = vcombine.low %v4829_v35, %v4839_v58  ;;  %v1880_v63 = vrot.slane %v1879_v1, 4  ;;  %v1429_v33 = vsel %vm13451_vm11, %v11045_v31, %v1428_v18  ;;  %v1430_v16 = vrot.slane %v1428_v18, 4  ;;  %v14783_v58 = vld [vmem:[#allocation3 + $0x38] sm:$0x1] }
 0x19a   : > { %v1890_v12 = vrot.slane %v1889_v45, 4  ;;  %v18076_v35 = vshrl.u32 %v13605_v44, 16  ;;  %v18077_v31 = vshll.u32 %v13605_v44, 16  ;;  %v4581_v30 = vrot.slane %v4579_v0, 5 }
 0x19b   : > { %6698 = vmatmul.mubr.bf16.gmra.mrb[44].mxu1 %v11250_v36  ;;  %v1885_v17 = vsel %vm13470_vm12, %v1880_v63, %v1884_v29  ;;  %v1432_v45 = vsel %vm13451_vm11, %v1430_v16, %v1431_v8  ;;  %v4584_v49 = vrot.slane %v4582_v20, 6  ;;  %v4593_v36 = vshrl.u32 %v4524_v15, 16  ;;  %v12787_v20 = vld [vmem:[%s17819_s6 + $0x70] sm:$0xff]  }
 0x19c   : > { %v1895_v43 = vsel %vm13470_vm12, %v1890_v12, %v1894_v27  ;;  %v4587_v1 = vrot.slane %v18076_v35, 5  ;;  %v4588_v18 = vrot.slane %v18077_v31, 6  ;;  %v11085_v12 = vcombine.low %v1429_v33, %v1432_v45  ;;  %v12788_v45 = vld [vmem:[%s17819_s6 + $0x30] sm:$0xff]   ;;  %11960 = vmatprep.subr.bf16.mxu1 %v12787_v20  ;;  %v12789_v31 = vld [vmem:[%s17819_s6 + $0x78] sm:$0xff]  }
 0x19d   : > { %v11105_v27 = vcombine.low %v1885_v17, %v1895_v43  ;;  %v4596_v62 = vshll.u32 %v4524_v15, 16  ;;  %v11181_v29 = vrot.slane %v5034_v46, 9  ;;  %v4585_v8 = vor.u32 %v4584_v49, %v4581_v30  ;;  %v4768_v43 = vld [vmem:[#allocation3 + $0x30] sm:$0xf]  ;;  %v12814_v17 = vld [vmem:[#allocation3 + $0x28] sm:$0xf]  ;;  %11961 = vmatpush3.bf16.msra.mxu1 %v12788_v45 }
 0x19e   : > { %v4589_v59 = vor.u32 %v4588_v18, %v4587_v1  ;;  %3010 = vrot.lane.b32.xlu1 %v11085_v12, %s13059_s15  ;;  %v5088_v44 = vrot.slane %v14785_v3, 5  ;;  %v5091_v63 = vrot.slane %v14783_v58, 5  ;;  %v11171_v16 = vrot.slane %v4414_v41, 9  ;;  %v12815_v41 = vld [vmem:[#allocation3 + $0x2c] sm:$0x1]  ;;  %11962 = vmatprep.subr.bf16.mxu1 %v12789_v31 }
 0x19f   : > { %3090 = vrot.lane.b32.xlu0 %v11105_v27, %s13059_s15  ;;  %v4595_v15 = vrot.slane %v4593_v36, 5  ;;  %v4598_v0 = vrot.slane %v4596_v62, 6  ;;  %v4468_v46 = vrot.slane %v12814_v17, 5  ;;  %v4586_v30 = vrot.slane %v4585_v8, 4  ;;  %v12790_v36 = vld [vmem:[%s17819_s6 + $0x38] sm:$0xff]  }
 0x1a0   : > { %v4591_v33 = vrot.slane %v4589_v59, 4  ;;  %v5089_v49 = vsel %vm13451_vm11, %v11181_v29, %v5088_v44  ;;  %v5090_v35 = vrot.slane %v5088_v44, 4  ;;  %v4471_v1 = vrot.slane %v12815_v41, 5  ;;  %v1721_v45 = vld [vmem:[#allocation2 + $0x68] sm:$0x1] }
 0x1a1   : > { %v4599_v18 = vor.u32 %v4598_v0, %v4595_v15  ;;  %v4469_v62 = vsel %vm13451_vm11, %v11171_v16, %v4468_v46  ;;  %v4470_v27 = vrot.slane %v4468_v46, 4  ;;  %v4841_v12 = vshrl.u32 %v4768_v43, 16  ;;  %v1719_v15 = vld [vmem:[#allocation2 + $0x60] sm:$0xf]  ;;  %11963 = vmatpush3.bf16.msra.mxu1 %v12790_v36 }
 0x1a2   : > { %v4590_v29 = vsel %vm13492_vm13, %v4586_v30, %v4589_v59  ;;  %v5092_v8 = vsel %vm13451_vm11, %v5090_v35, %v5091_v63  ;;  %v4844_v44 = vshll.u32 %v4768_v43, 16  ;;  %v17916_v20 = vshll.u32 %v14785_v3, 16 }
 0x1a3   : > { %v4600_v16 = vsel %vm13492_vm13, %v4591_v33, %v4599_v18  ;;  %v11261_v0 = vcombine.low %v5089_v49, %v5092_v8  ;;  %v4472_v17 = vsel %vm13451_vm11, %v4470_v27, %v4471_v1  ;;  %v4843_v46 = vrot.slane %v4841_v12, 4  ;;  %v14824_v12 = vld [vmem:[#allocation2 + $0x58] sm:$0xf] }
 0x1a4   : > { %v11241_v41 = vcombine.low %v4590_v29, %v4600_v16  ;;  %v11231_v42 = vcombine.low %v4469_v62, %v4472_v17  ;;  %v4846_v59 = vrot.slane %v4844_v44, 5  ;;  %v4852_v63 = vrot.slane %v17916_v20, 5  ;;  %18080 = vst [vmem:[#allocation71_spill] sm:$0xff] %v14824_v12  ;;  %v14830_v17 = vld [vmem:[#allocation2 + $0x5c] sm:$0x1] }
 0x1a5   : > { %6705 = vmatprep.mubr.bf16.mxu1 %v11261_v0  ;;  %v17917_v43 = vshrl.u32 %v14785_v3, 16  ;;  %v4860_v30 = vshll.u32 %v14783_v58, 16  ;;  %v1897_v35 = vshrl.u32 %v1719_v15, 16  ;;  %v1900_v31 = vshll.u32 %v1719_v15, 16  ;;  %v14828_v15 = vld [vmem:[#allocation2 + $0x54] sm:$0xe] }
 0x1a6   : > { %6592 = vmatprep.mubr.bf16.mxu0 %v11241_v41  ;;  %v4847_v33 = vor.u32 %v4846_v59, %v4843_v46  ;;  %v18078_v49 = vshll.u32 %v14339_v25, 16  ;;  %v18079_v18 = vshrl.u32 %v14339_v25, 16  ;;  %v1916_v27 = vshll.u32 %v1721_v45, 16  ;;  %18081 = vst [vmem:[#allocation72_spill] sm:$0xff] %v14828_v15  ;;  %18082 = vst [vmem:[#allocation73_spill] sm:$0xff] %v14830_v17 }
 0x1a7   : > { %6593 = vmatmul.mubr.bf16.gmra.mrb[48].mxu0 %v11231_v42  ;;  %v4856_v29 = vrot.slane %v17917_v43, 4  ;;  %v4862_v8 = vrot.slane %v4860_v30, 5  ;;  %v1899_v58 = vrot.slane %v1897_v35, 4  ;;  %v1902_v44 = vrot.slane %v1900_v31, 5  ;;  %v5035_v41 = vld [vmem:[#allocation3 + $0x3c] sm:$0xe] }
 0x1a8   : > { %v1908_v1 = vrot.slane %v18078_v49, 5  ;;  %v1912_v62 = vrot.slane %v18079_v18, 4  ;;  %v4848_v36 = vrot.slane %v4847_v33, 4  ;;  %v1918_v0 = vrot.slane %v1916_v27, 5  ;;  %v4415_v33 = vld [vmem:[#allocation3 + $0x30] sm:$0xe] }
 0x1a9   : > { %v4857_v46 = vor.u32 %v4856_v29, %v4852_v63  ;;  %v1903_v45 = vor.u32 %v1902_v44, %v1899_v58  ;;  %v11046_v35 = vrot.slane %v14828_v15, 9  ;;  %v1435_v31 = vrot.slane %v14824_v12, 5  ;;  %v12791_v49 = vld [vmem:[%s17819_s6 + $0xc0] sm:$0xff]  }
 0x1aa   : > { %v1913_v16 = vor.u32 %v1912_v62, %v1908_v1  ;;  %v4853_v59 = vsel %vm13470_vm12, %v4848_v36, %v4852_v63  ;;  %v1438_v27 = vrot.slane %v14830_v17, 5  ;;  %12024 = vmatprep.subr.bf16.mxu0 %v12791_v49  ;;  %v4602_v42 = vshrl.u32 %v4415_v33, 16 }
 0x1ab   : > { %v4858_v18 = vrot.slane %v4857_v46, 4  ;;  %v1904_v62 = vrot.slane %v1903_v45, 4  ;;  %v1436_v63 = vsel %vm13451_vm11, %v11046_v35, %v1435_v31  ;;  %v1437_v44 = vrot.slane %v1435_v31, 4  ;;  %v4525_v45 = vld [vmem:[#allocation3 + $0x38] sm:$0x3] }
 0x1ac   : > { %v1914_v30 = vrot.slane %v1913_v16, 4  ;;  %v4605_v25 = vshll.u32 %v4415_v33, 16  ;;  %v4773_v31 = vld [vmem:[#allocation3 + $0x44] sm:$0x1]  ;;  %v4604_v36 = vrot.slane %v4602_v42, 5  ;;  %v11172_v42 = vrot.slane %v4415_v33, 9 }
 0x1ad   : > { %v4863_v16 = vsel %vm13470_vm12, %v4858_v18, %v4862_v8  ;;  %v1909_v46 = vsel %vm13470_vm12, %v1904_v62, %v1908_v1  ;;  %v18084_v8 = vshll.u32 %v13655_v13, 16  ;;  %v14859_v1 = vld [vmem:[#allocation3 + $0x40] sm:$0xf]  ;;  %v4619_v62 = vshll.u32 %v4525_v45, 16 }
 0x1ae   : > { %v1919_v58 = vsel %vm13470_vm12, %v1914_v30, %v1918_v0  ;;  %v11251_v29 = vcombine.low %v4853_v59, %v4863_v16  ;;  %v1439_v0 = vsel %vm13451_vm11, %v1437_v44, %v1438_v27  ;;  %v18083_v30 = vshrl.u32 %v13655_v13, 16 }
 0x1af   : > { %v11106_v20 = vcombine.low %v1909_v46, %v1919_v58  ;;  %v11086_v49 = vcombine.low %v1436_v63, %v1439_v0  ;;  %v4607_v43 = vrot.slane %v4605_v25, 6  ;;  %v4611_v18 = vrot.slane %v18084_v8, 6  ;;  %v4771_v25 = vld [vmem:[#allocation3 + $0x3c] sm:$0xf]  ;;  %v12816_v8 = vld [vmem:[#allocation3 + $0x34] sm:$0xf] }
 0x1b0   : > { %v4610_v35 = vrot.slane %v18083_v30, 5  ;;  %6706 = vmatmul.mubr.bf16.gmra.mrb[48].mxu1 %v11251_v29  ;;  %v4616_v59 = vshrl.u32 %v4525_v45, 16  ;;  %v11182_v58 = vrot.slane %v5035_v41, 9  ;;  %v5095_v27 = vrot.slane %v14859_v1, 5  ;;  %v12817_v41 = vld [vmem:[#allocation3 + $0x38] sm:$0x1] }
 0x1b1   : > { %3092 = vrot.lane.b32.xlu0 %v11106_v20, %s13059_s15  ;;  %3012 = vrot.lane.b32.xlu1 %v11086_v49, %s13059_s15  ;;  %v4608_v44 = vor.u32 %v4607_v43, %v4604_v36  ;;  %v5098_v63 = vrot.slane %v4773_v31, 5  ;;  %v4621_v13 = vrot.slane %v4619_v62, 6  ;;  %v4475_v45 = vrot.slane %v12816_v8, 5  ;;  %v1722_v62 = vld [vmem:[#allocation2 + $0x6c] sm:$0xf] }
 0x1b2   : > { %v4612_v16 = vor.u32 %v4611_v18, %v4610_v35  ;;  %v4618_v46 = vrot.slane %v4616_v59, 5  ;;  %v5096_v0 = vsel %vm13451_vm11, %v11182_v58, %v5095_v27  ;;  %v5097_v29 = vrot.slane %v5095_v27, 4 }
 0x1b3   : > { %v4609_v30 = vrot.slane %v4608_v44, 4  ;;  %v4478_v17 = vrot.slane %v12817_v41, 5  ;;  %v4865_v36 = vshrl.u32 %v4771_v25, 16  ;;  %v4868_v35 = vshll.u32 %v4771_v25, 16 }
 0x1b4   : > { %v4614_v20 = vrot.slane %v4612_v16, 4  ;;  %v4622_v12 = vor.u32 %v4621_v13, %v4618_v46  ;;  %v5099_v43 = vsel %vm13451_vm11, %v5097_v29, %v5098_v63  ;;  %v4476_v18 = vsel %vm13451_vm11, %v11172_v42, %v4475_v45 }
 0x1b5   : > { %v4613_v33 = vsel %vm13492_vm13, %v4609_v30, %v4612_v16  ;;  %v11262_v49 = vcombine.low %v5096_v0, %v5099_v43  ;;  %v4477_v59 = vrot.slane %v4475_v45, 4  ;;  %v4867_v27 = vrot.slane %v4865_v36, 4  ;;  %v1724_v0 = vld [vmem:[#allocation2 + $0x74] sm:$0x1] }
 0x1b6   : > { %v4623_v58 = vsel %vm13492_vm13, %v4614_v20, %v4622_v12  ;;  %v4870_v44 = vrot.slane %v4868_v35, 5  ;;  %v17921_v46 = vshll.u32 %v14859_v1, 16  ;;  %v17922_v16 = vshrl.u32 %v14859_v1, 16 }
 0x1b7   : > { %v11242_v13 = vcombine.low %v4613_v33, %v4623_v58  ;;  %6713 = vmatprep.mubr.bf16.mxu1 %v11262_v49  ;;  %v4479_v63 = vsel %vm13451_vm11, %v4477_v59, %v4478_v17  ;;  %v4884_v25 = vshll.u32 %v4773_v31, 16  ;;  %v1921_v8 = vshrl.u32 %v1722_v62, 16  ;;  %v14884_v17 = vld [vmem:[#allocation2 + $0x64] sm:$0xf] }
 0x1b8   : > { %v11232_v29 = vcombine.low %v4476_v18, %v4479_v63  ;;  %v4871_v42 = vor.u32 %v4870_v44, %v4867_v27  ;;  %v4876_v30 = vrot.slane %v17921_v46, 5  ;;  %v4880_v12 = vrot.slane %v17922_v16, 4  ;;  %18086 = vst [vmem:[#allocation74_spill] sm:$0xff] %v14884_v17  ;;  %v14888_v18 = vld [vmem:[#allocation2 + $0x60] sm:$0xe] }
 0x1b9   : > { %6600 = vmatprep.mubr.bf16.mxu0 %v11242_v13  ;;  %v4886_v20 = vrot.slane %v4884_v25, 5  ;;  %v1924_v45 = vshll.u32 %v1722_v62, 16  ;;  %v18085_v41 = vshll.u32 %v14483_v52, 16  ;;  %v1923_v36 = vrot.slane %v1921_v8, 4  ;;  %18088 = vst [vmem:[#allocation75_spill] sm:$0xff] %v14888_v18 }
 0x1ba   : > { %6601 = vmatmul.mubr.bf16.gmra.mrb[52].mxu0 %v11232_v29  ;;  %v4872_v31 = vrot.slane %v4871_v42, 4  ;;  %v18087_v35 = vshrl.u32 %v14483_v52, 16  ;;  %v1940_v49 = vshll.u32 %v1724_v0, 16  ;;  %v4881_v59 = vor.u32 %v4880_v12, %v4876_v30  ;;  %v14890_v27 = vld [vmem:[#allocation2 + $0x68] sm:$0x1] }
 0x1bb   : > { %v1932_v43 = vrot.slane %v18085_v41, 5  ;;  %v1926_v58 = vrot.slane %v1924_v45, 5  ;;  %18089 = vst [vmem:[#allocation76_spill] sm:$0xff] %v14890_v27  ;;  %v11047_v0 = vrot.slane %v14888_v18, 9  ;;  %v1442_v8 = vrot.slane %v14884_v17, 5 }
 0x1bc   : > { %v1936_v33 = vrot.slane %v18087_v35, 4  ;;  %v4877_v13 = vsel %vm13470_vm12, %v4872_v31, %v4876_v30  ;;  %v1942_v25 = vrot.slane %v1940_v49, 5  ;;  %v4882_v52 = vrot.slane %v4881_v59, 4  ;;  %v4416_v12 = vld [vmem:[#allocation3 + $0x3c] sm:$0xe] }
 0x1bd   : > { %v1927_v42 = vor.u32 %v1926_v58, %v1923_v36  ;;  %v1445_v41 = vrot.slane %v14890_v27, 5  ;;  %v1444_v36 = vrot.slane %v1442_v8, 4  ;;  %v4526_v58 = vld [vmem:[#allocation3 + $0x44] sm:$0x3]  ;;  %v4628_v29 = vshll.u32 %v4416_v12, 16 }
 0x1be   : > { %v1937_v63 = vor.u32 %v1936_v33, %v1932_v43  ;;  %v4887_v30 = vsel %vm13470_vm12, %v4882_v52, %v4886_v20  ;;  %v1443_v33 = vsel %vm13451_vm11, %v11047_v0, %v1442_v8  ;;  %v5036_v44 = vld [vmem:[#allocation3 + $0x48] sm:$0xe]  ;;  %v18090_v20 = vshrl.u32 %v13854_v60, 16  ;;  %v14916_v17 = vld [vmem:[#allocation3 + $0x4c] sm:$0xf] }
 0x1bf   : > { %v1928_v31 = vrot.slane %v1927_v42, 4  ;;  %v11252_v49 = vcombine.low %v4877_v13, %v4887_v30  ;;  %v1446_v62 = vsel %vm13451_vm11, %v1444_v36, %v1445_v41  ;;  %v18091_v42 = vshll.u32 %v13854_v60, 16  ;;  %v4776_v13 = vld [vmem:[#allocation3 + $0x50] sm:$0x1]  ;;  %v4788_v18 = vld [vmem:[#allocation3 + $0x80] sm:$0x1] }
 0x1c0   : > { %v1938_v45 = vrot.slane %v1937_v63, 4  ;;  %v4625_v63 = vshrl.u32 %v4416_v12, 16  ;;  %v4633_v52 = vrot.slane %v18090_v20, 5  ;;  %v4630_v30 = vrot.slane %v4628_v29, 6  ;;  %v12818_v29 = vld [vmem:[#allocation3 + $0x40] sm:$0xf] }
 0x1c1   : > { %v1933_v35 = vsel %vm13470_vm12, %v1928_v31, %v1932_v43  ;;  %v4634_v0 = vrot.slane %v18091_v42, 6  ;;  %6714 = vmatmul.mubr.bf16.gmra.mrb[52].mxu1 %v11252_v49  ;;  %v4639_v16 = vshrl.u32 %v4526_v58, 16  ;;  %v4642_v27 = vshll.u32 %v4526_v58, 16  ;;  %v4774_v49 = vld [vmem:[#allocation3 + $0x48] sm:$0xf] }
 0x1c2   : > { %v1943_v59 = vsel %vm13470_vm12, %v1938_v45, %v1942_v25  ;;  %v11087_v25 = vcombine.low %v1443_v33, %v1446_v62  ;;  %v4627_v45 = vrot.slane %v4625_v63, 5  ;;  %v11183_v43 = vrot.slane %v5036_v44, 9  ;;  %v12819_v20 = vld [vmem:[#allocation3 + $0x44] sm:$0x1] }
 0x1c3   : > { %v11107_v8 = vcombine.low %v1933_v35, %v1943_v59  ;;  %v4635_v46 = vor.u32 %v4634_v0, %v4633_v52  ;;  %v5102_v60 = vrot.slane %v14916_v17, 5  ;;  %v5105_v31 = vrot.slane %v4776_v13, 5 }
 0x1c4   : > { %3014 = vrot.lane.b32.xlu1 %v11087_v25, %s13059_s15  ;;  %v4631_v41 = vor.u32 %v4630_v30, %v4627_v45  ;;  %v11173_v36 = vrot.slane %v4416_v12, 9  ;;  %v4641_v62 = vrot.slane %v4639_v16, 5  ;;  %v4644_v33 = vrot.slane %v4642_v27, 6  ;;  %v1725_v30 = vld [vmem:[#allocation2 + $0x78] sm:$0xf] }
 0x1c5   : > { %3094 = vrot.lane.b32.xlu0 %v11107_v8, %s13059_s15  ;;  %v4637_v35 = vrot.slane %v4635_v46, 4  ;;  %v4482_v59 = vrot.slane %v12818_v29, 5  ;;  %v5103_v58 = vsel %vm13451_vm11, %v11183_v43, %v5102_v60  ;;  %v5104_v44 = vrot.slane %v5102_v60, 4 }
 0x1c6   : > { %v4632_v63 = vrot.slane %v4631_v41, 4  ;;  %v4485_v52 = vrot.slane %v12819_v20, 5  ;;  %v4645_v42 = vor.u32 %v4644_v33, %v4641_v62  ;;  %v4889_v25 = vshrl.u32 %v4774_v49, 16  ;;  %v1727_v62 = vld [vmem:[#allocation2 + $0x80] sm:$0x1] }
 0x1c7   : > { %v4483_v0 = vsel %vm13451_vm11, %v11173_v36, %v4482_v59  ;;  %v4484_v8 = vrot.slane %v4482_v59, 4  ;;  %v5106_v16 = vsel %vm13451_vm11, %v5104_v44, %v5105_v31  ;;  %v4892_v27 = vshll.u32 %v4774_v49, 16 }
 0x1c8   : > { %v4636_v12 = vsel %vm13492_vm13, %v4632_v63, %v4635_v46  ;;  %v17926_v45 = vshll.u32 %v14916_v17, 16  ;;  %v4646_v43 = vsel %vm13492_vm13, %v4637_v35, %v4645_v42  ;;  %v11263_v41 = vcombine.low %v5103_v58, %v5106_v16 }
 0x1c9   : > { %v4486_v60 = vsel %vm13451_vm11, %v4484_v8, %v4485_v52  ;;  %v4891_v36 = vrot.slane %v4889_v25, 4  ;;  %v11243_v33 = vcombine.low %v4636_v12, %v4646_v43  ;;  %v4894_v59 = vrot.slane %v4892_v27, 5  ;;  %v14945_v27 = vld [vmem:[#allocation2 + $0x6c] sm:$0xe] }
 0x1ca   : > { %v11233_v29 = vcombine.low %v4483_v0, %v4486_v60  ;;  %v4900_v46 = vrot.slane %v17926_v45, 5  ;;  %6721 = vmatprep.mubr.bf16.mxu1 %v11263_v41  ;;  %v17927_v31 = vshrl.u32 %v14916_v17, 16  ;;  %v4908_v49 = vshll.u32 %v4776_v13, 16  ;;  %v14941_v0 = vld [vmem:[#allocation2 + $0x70] sm:$0xf]  ;;  %18095 = vst [vmem:[#allocation78_spill] sm:$0xff] %v14945_v27 }
 0x1cb   : > { %v1945_v63 = vshrl.u32 %v1725_v30, 16  ;;  %v1948_v44 = vshll.u32 %v1725_v30, 16  ;;  %6608 = vmatprep.mubr.bf16.mxu0 %v11243_v33  ;;  %v4895_v35 = vor.u32 %v4894_v59, %v4891_v36  ;;  %v18092_v58 = vshll.u32 %v14567_v19, 16  ;;  %18094 = vst [vmem:[#allocation77_spill] sm:$0xff] %v14941_v0  ;;  %v14947_v60 = vld [vmem:[#allocation2 + $0x74] sm:$0x1] }
 0x1cc   : > { %v18093_v52 = vshrl.u32 %v14567_v19, 16  ;;  %v1964_v8 = vshll.u32 %v1727_v62, 16  ;;  %6609 = vmatmul.mubr.bf16.gmra.mrb[56].mxu0 %v11233_v29  ;;  %v4904_v25 = vrot.slane %v17927_v31, 4  ;;  %v4910_v12 = vrot.slane %v4908_v49, 5  ;;  %18096 = vst [vmem:[#allocation79_spill] sm:$0xff] %v14947_v60 }
 0x1cd   : > { %v1956_v20 = vrot.slane %v18092_v58, 5  ;;  %v1947_v16 = vrot.slane %v1945_v63, 4  ;;  %v1950_v13 = vrot.slane %v1948_v44, 5  ;;  %v4896_v30 = vrot.slane %v4895_v35, 4  ;;  %v4417_v35 = vld [vmem:[#allocation3 + $0x48] sm:$0xe] }
 0x1ce   : > { %v1960_v42 = vrot.slane %v18093_v52, 4  ;;  %v1966_v41 = vrot.slane %v1964_v8, 5  ;;  %v4905_v36 = vor.u32 %v4904_v25, %v4900_v46  ;;  %v11048_v63 = vrot.slane %v14945_v27, 9  ;;  %v5037_v19 = vld [vmem:[#allocation3 + $0x54] sm:$0xe] }
 0x1cf   : > { %v1951_v62 = vor.u32 %v1950_v13, %v1947_v16  ;;  %v4901_v59 = vsel %vm13470_vm12, %v4896_v30, %v4900_v46  ;;  %v1449_v44 = vrot.slane %v14941_v0, 5  ;;  %v4651_v29 = vshll.u32 %v4417_v35, 16 }
 0x1d0   : > { %v1961_v43 = vor.u32 %v1960_v42, %v1956_v20  ;;  %v4906_v58 = vrot.slane %v4905_v36, 4  ;;  %v1452_v42 = vrot.slane %v14947_v60, 5  ;;  %v4527_v36 = vld [vmem:[#allocation3 + $0x50] sm:$0x3]  ;;  %vm3288_vm0 = vcmask 523264  }
 0x1d1   : > { %v1952_v52 = vrot.slane %v1951_v62, 4  ;;  %v1450_v16 = vsel %vm13451_vm11, %v11048_v63, %v1449_v44  ;;  %v1451_v13 = vrot.slane %v1449_v44, 4  ;;  %v4648_v62 = vshrl.u32 %v4417_v35, 16  ;;  %v4779_v44 = vld [vmem:[#allocation3 + $0x5c] sm:$0x1] }
 0x1d2   : > { %v1962_v49 = vrot.slane %v1961_v43, 4  ;;  %v4911_v30 = vsel %vm13470_vm12, %v4906_v58, %v4910_v12  ;;  %v4653_v31 = vrot.slane %v4651_v29, 6  ;;  %v18098_v12 = vshll.u32 %v13986_v37, 16  ;;  %v4777_v29 = vld [vmem:[#allocation3 + $0x54] sm:$0xf] }
 0x1d3   : > { %v1957_v43 = vsel %vm13470_vm12, %v1952_v52, %v1956_v20  ;;  %v11253_v33 = vcombine.low %v4901_v59, %v4911_v30  ;;  %v4650_v45 = vrot.slane %v4648_v62, 5  ;;  %v14973_v20 = vld [vmem:[#allocation3 + $0x58] sm:$0xf]  ;;  %v4662_v59 = vshrl.u32 %v4527_v36, 16 }
 0x1d4   : > { %v1967_v25 = vsel %vm13470_vm12, %v1962_v49, %v1966_v41  ;;  %v1453_v41 = vsel %vm13451_vm11, %v1451_v13, %v1452_v42  ;;  %v18097_v49 = vshrl.u32 %v13986_v37, 16  ;;  %v4657_v58 = vrot.slane %v18098_v12, 6  ;;  %v12820_v12 = vld [vmem:[#allocation3 + $0x4c] sm:$0xf] }
 0x1d5   : > { %v11108_v8 = vcombine.low %v1957_v43, %v1967_v25  ;;  %v11088_v46 = vcombine.low %v1450_v16, %v1453_v41  ;;  %6722 = vmatmul.mubr.bf16.gmra.mrb[56].mxu1 %v11253_v33  ;;  %v4665_v52 = vshll.u32 %v4527_v36, 16  ;;  %v11184_v25 = vrot.slane %v5037_v19, 9  ;;  %v12821_v19 = vld [vmem:[#allocation3 + $0x50] sm:$0x1] }
 0x1d6   : > { %v4656_v63 = vrot.slane %v18097_v49, 5  ;;  %v5109_v42 = vrot.slane %v14973_v20, 5  ;;  %v4654_v13 = vor.u32 %v4653_v31, %v4650_v45  ;;  %v5112_v16 = vrot.slane %v4779_v44, 5 }
 0x1d7   : > { %3096 = vrot.lane.b32.xlu0 %v11108_v8, %s13059_s15  ;;  %3016 = vrot.lane.b32.xlu1 %v11088_v46, %s13059_s15  ;;  %v11174_v43 = vrot.slane %v4417_v35, 9  ;;  %v4664_v62 = vrot.slane %v4662_v59, 5  ;;  %v4667_v37 = vrot.slane %v4665_v52, 6  ;;  %v4489_v36 = vrot.slane %v12820_v12, 5  ;;  %v4418_v52 = vld [vmem:[#allocation3 + $0x54] sm:$0xe] }
 0x1d8   : > { %v4658_v30 = vor.u32 %v4657_v58, %v4656_v63  ;;  %v5110_v41 = vsel %vm13451_vm11, %v11184_v25, %v5109_v42  ;;  %v5111_v33 = vrot.slane %v5109_v42, 4  ;;  %v4655_v49 = vrot.slane %v4654_v13, 4 }
 0x1d9   : > { %v4492_v60 = vrot.slane %v12821_v19, 5  ;;  %v4668_v0 = vor.u32 %v4667_v37, %v4664_v62  ;;  %v4913_v31 = vshrl.u32 %v4777_v29, 16  ;;  %v4916_v46 = vshll.u32 %v4777_v29, 16 }
 0x1da   : > { %v4660_v8 = vrot.slane %v4658_v30, 4  ;;  %v5113_v45 = vsel %vm13451_vm11, %v5111_v33, %v5112_v16  ;;  %v4659_v35 = vsel %vm13492_vm13, %v4655_v49, %v4658_v30  ;;  %v4490_v58 = vsel %vm13451_vm11, %v11174_v43, %v4489_v36 }
 0x1db   : > { %v11264_v63 = vcombine.low %v5110_v41, %v5113_v45  ;;  %v4491_v59 = vrot.slane %v4489_v36, 4  ;;  %v4915_v42 = vrot.slane %v4913_v31, 4  ;;  %v4918_v13 = vrot.slane %v4916_v46, 5  ;;  %v4528_v41 = vld [vmem:[#allocation3 + $0x5c] sm:$0x3] }
 0x1dc   : > { %v4669_v25 = vsel %vm13492_vm13, %v4660_v8, %v4668_v0  ;;  %v17931_v62 = vshll.u32 %v14973_v20, 16  ;;  %v17932_v30 = vshrl.u32 %v14973_v20, 16  ;;  %v4932_v29 = vshll.u32 %v4779_v44, 16  ;;  %v5038_v0 = vld [vmem:[#allocation3 + $0x60] sm:$0xe] }
 0x1dd   : > { %v11244_v37 = vcombine.low %v4659_v35, %v4669_v25  ;;  %6729 = vmatprep.mubr.bf16.mxu1 %v11264_v63  ;;  %v4493_v16 = vsel %vm13451_vm11, %v4491_v59, %v4492_v60  ;;  %v4919_v43 = vor.u32 %v4918_v13, %v4915_v42  ;;  %v4671_v12 = vshrl.u32 %v4418_v52, 16  ;;  %v15000_v13 = vld [vmem:[#allocation3 + $0x64] sm:$0xf] }
 0x1de   : > { %v11234_v33 = vcombine.low %v4490_v58, %v4493_v16  ;;  %v4924_v49 = vrot.slane %v17931_v62, 5  ;;  %v4928_v8 = vrot.slane %v17932_v30, 4  ;;  %v4934_v36 = vrot.slane %v4932_v29, 5  ;;  %v4782_v58 = vld [vmem:[#allocation3 + $0x68] sm:$0x1] }
 0x1df   : > { %6616 = vmatprep.mubr.bf16.mxu0 %v11244_v37  ;;  %v4674_v19 = vshll.u32 %v4418_v52, 16  ;;  %v18099_v45 = vshrl.u32 %v14121_v57, 16  ;;  %v4920_v31 = vrot.slane %v4919_v43, 4  ;;  %v4673_v44 = vrot.slane %v4671_v12, 5 }
 0x1e0   : > { %6617 = vmatmul.mubr.bf16.gmra.mrb[60].mxu0 %v11234_v33  ;;  %v18100_v46 = vshll.u32 %v14121_v57, 16  ;;  %v4685_v63 = vshrl.u32 %v4528_v41, 16  ;;  %v4929_v59 = vor.u32 %v4928_v8, %v4924_v49  ;;  %v4688_v42 = vshll.u32 %v4528_v41, 16 }
 0x1e1   : > { %v4679_v60 = vrot.slane %v18099_v45, 5  ;;  %v4676_v25 = vrot.slane %v4674_v19, 6  ;;  %v11185_v37 = vrot.slane %v5038_v0, 9  ;;  %v4925_v16 = vsel %vm13470_vm12, %v4920_v31, %v4924_v49 }
 0x1e2   : > { %v4680_v35 = vrot.slane %v18100_v46, 6  ;;  %v4687_v62 = vrot.slane %v4685_v63, 5  ;;  %v5116_v33 = vrot.slane %v15000_v13, 5  ;;  %v4930_v43 = vrot.slane %v4929_v59, 4  ;;  %v4780_v46 = vld [vmem:[#allocation3 + $0x60] sm:$0xf] }
 0x1e3   : > { %v4677_v12 = vor.u32 %v4676_v25, %v4673_v44  ;;  %v4690_v45 = vrot.slane %v4688_v42, 6  ;;  %v5119_v57 = vrot.slane %v4782_v58, 5  ;;  %v11175_v19 = vrot.slane %v4418_v52, 9  ;;  %v12823_v63 = vld [vmem:[#allocation3 + $0x5c] sm:$0x1] }
 0x1e4   : > { %v4681_v29 = vor.u32 %v4680_v35, %v4679_v60  ;;  %v5117_v8 = vsel %vm13451_vm11, %v11185_v37, %v5116_v33  ;;  %v5118_v41 = vrot.slane %v5116_v33, 4  ;;  %v4935_v0 = vsel %vm13470_vm12, %v4930_v43, %v4934_v36  ;;  %v12822_v60 = vld [vmem:[#allocation3 + $0x58] sm:$0xf]  ;;  %v15011_v42 = vld [vmem:[#allocation3 + $0x60] sm:$0xe] }
 0x1e5   : > { %v4678_v27 = vrot.slane %v4677_v12, 4  ;;  %v4691_v49 = vor.u32 %v4690_v45, %v4687_v62  ;;  %v4496_v31 = vrot.slane %v12822_v60, 5  ;;  %v11254_v35 = vcombine.low %v4925_v16, %v4935_v0  ;;  %v4529_v0 = vld [vmem:[#allocation3 + $0x68] sm:$0x3] }
 0x1e6   : > { %v4683_v30 = vrot.slane %v4681_v29, 4  ;;  %v5120_v44 = vsel %vm13451_vm11, %v5118_v41, %v5119_v57  ;;  %v4499_v59 = vrot.slane %v12823_v63, 5  ;;  %v4937_v25 = vshrl.u32 %v4780_v46, 16 }
 0x1e7   : > { %v4682_v37 = vsel %vm13492_vm13, %v4678_v27, %v4681_v29  ;;  %v11265_v36 = vcombine.low %v5117_v8, %v5120_v44  ;;  %v4497_v62 = vsel %vm13451_vm11, %v11175_v19, %v4496_v31  ;;  %6730 = vmatmul.mubr.bf16.gmra.mrb[60].mxu1 %v11254_v35  ;;  %v4498_v33 = vrot.slane %v4496_v31, 4 }
 0x1e8   : > { %v4692_v52 = vsel %vm13492_vm13, %v4683_v30, %v4691_v49  ;;  %v4939_v43 = vrot.slane %v4937_v25, 4  ;;  %v4940_v12 = vshll.u32 %v4780_v46, 16  ;;  %v17935_v45 = vshll.u32 %v15000_v13, 16  ;;  %v5039_v46 = vld [vmem:[#allocation3 + $0x6c] sm:$0xe] }
 0x1e9   : > { %v11245_v16 = vcombine.low %v4682_v37, %v4692_v52  ;;  %6737 = vmatprep.mubr.bf16.mxu1 %v11265_v36  ;;  %v17936_v57 = vshrl.u32 %v15000_v13, 16  ;;  %v4956_v41 = vshll.u32 %v4782_v58, 16  ;;  %v4694_v27 = vshrl.u32 %v15011_v42, 16  ;;  %v4785_v52 = vld [vmem:[#allocation3 + $0x74] sm:$0x1] }
 0x1ea   : > { %v4500_v30 = vsel %vm13451_vm11, %v4498_v33, %v4499_v59  ;;  %v4942_v29 = vrot.slane %v4940_v12, 5  ;;  %v4697_v8 = vshll.u32 %v15011_v42, 16  ;;  %v18101_v19 = vshrl.u32 %v14238_v2, 16  ;;  %v15033_v12 = vld [vmem:[#allocation3 + $0x70] sm:$0xf] }
 0x1eb   : > { %6624 = vmatprep.mubr.bf16.mxu0 %v11245_v16  ;;  %v11235_v60 = vcombine.low %v4497_v62, %v4500_v30  ;;  %v4948_v31 = vrot.slane %v17935_v45, 5  ;;  %v4952_v58 = vrot.slane %v17936_v57, 4  ;;  %v4958_v35 = vrot.slane %v4956_v41, 5 }
 0x1ec   : > { %v4702_v49 = vrot.slane %v18101_v19, 5  ;;  %v4943_v44 = vor.u32 %v4942_v29, %v4939_v43  ;;  %v4696_v63 = vrot.slane %v4694_v27, 5  ;;  %v4699_v25 = vrot.slane %v4697_v8, 6 }
 0x1ed   : > { %v18102_v59 = vshll.u32 %v14238_v2, 16  ;;  %6625 = vmatmul.mubr.bf16.gmra.mrb[64].mxu0 %v11235_v60  ;;  %v4953_v36 = vor.u32 %v4952_v58, %v4948_v31  ;;  %v4708_v16 = vshrl.u32 %v4529_v0, 16  ;;  %v4711_v33 = vshll.u32 %v4529_v0, 16  ;;  %v4783_v58 = vld [vmem:[#allocation3 + $0x6c] sm:$0xf] }
 0x1ee   : > { %v11186_v62 = vrot.slane %v5039_v46, 9  ;;  %v4944_v30 = vrot.slane %v4943_v44, 4  ;;  %v4700_v19 = vor.u32 %v4699_v25, %v4696_v63  ;;  %v5123_v57 = vrot.slane %v15033_v12, 5 }
 0x1ef   : > { %v4703_v37 = vrot.slane %v18102_v59, 6  ;;  %v4954_v41 = vrot.slane %v4953_v36, 4  ;;  %v4710_v43 = vrot.slane %v4708_v16, 5  ;;  %v4713_v27 = vrot.slane %v4711_v33, 6 }
 0x1f0   : > { %v5126_v29 = vrot.slane %v4785_v52, 5  ;;  %v4949_v2 = vsel %vm13470_vm12, %v4944_v30, %v4948_v31  ;;  %v4701_v8 = vrot.slane %v4700_v19, 4  ;;  %v5124_v0 = vsel %vm13451_vm11, %v11186_v62, %v5123_v57  ;;  %v12825_v31 = vld [vmem:[#allocation3 + $0x68] sm:$0x1]  ;;  %v15049_v19 = vpop.permute.xlu1 %3240 }
 0x1f1   : > { %v4704_v45 = vor.u32 %v4703_v37, %v4702_v49  ;;  %v4959_v46 = vsel %vm13470_vm12, %v4954_v41, %v4958_v35  ;;  %v4714_v44 = vor.u32 %v4713_v27, %v4710_v43  ;;  %v5125_v49 = vrot.slane %v5123_v57, 4  ;;  %v12824_v37 = vld [vmem:[#allocation3 + $0x64] sm:$0xf]  ;;  %18103 = vst [vmem:[#allocation80_spill] sm:$0xff] %v15049_v19 }
 0x1f2   : > { %v11176_v63 = vrot.slane %v15011_v42, 9  ;;  %v11255_v25 = vcombine.low %v4949_v2, %v4959_v46  ;;  %v4503_v36 = vrot.slane %v12824_v37, 5  ;;  %v4506_v16 = vrot.slane %v12825_v31, 5  ;;  %v12826_v46 = vld [vmem:[#allocation2 + $0xc] sm:$0xe] }
 0x1f3   : > { %v4706_v60 = vrot.slane %v4704_v45, 4  ;;  %v4705_v59 = vsel %vm13492_vm13, %v4701_v8, %v4704_v45  ;;  %v5127_v62 = vsel %vm13451_vm11, %v5125_v49, %v5126_v29  ;;  %v4961_v30 = vshrl.u32 %v4783_v58, 16 }
 0x1f4   : > { %v4964_v35 = vshll.u32 %v4783_v58, 16  ;;  %6738 = vmatmul.mubr.bf16.gmra.mrb[64].mxu1 %v11255_v25  ;;  %v11266_v57 = vcombine.low %v5124_v0, %v5127_v62  ;;  %v4504_v45 = vsel %vm13451_vm11, %v11176_v63, %v4503_v36  ;;  %v4505_v41 = vrot.slane %v4503_v36, 4  ;;  %v15057_v58 = vpop.permute.xlu0 %3238  ;;  %v4420_v63 = vld [vmem:[#allocation3 + $0x6c] sm:$0xe] }
 0x1f5   : > { %v4715_v33 = vsel %vm13492_vm13, %v4706_v60, %v4714_v44  ;;  %v4963_v43 = vrot.slane %v4961_v30, 4  ;;  %v17937_v2 = vshll.u32 %v15033_v12, 16  ;;  %v17938_v8 = vshrl.u32 %v15033_v12, 16  ;;  %18104 = vst [vmem:[#allocation81_spill] sm:$0xff] %v15057_v58  ;;  %v12827_v44 = vld [vmem:[#allocation2 + $0x10] sm:$0xf] }
 0x1f6   : > { %v11246_v42 = vcombine.low %v4705_v59, %v4715_v33  ;;  %v4966_v27 = vrot.slane %v4964_v35, 5  ;;  %6745 = vmatprep.mubr.bf16.mxu1 %v11266_v57  ;;  %v4507_v29 = vsel %vm13451_vm11, %v4505_v41, %v4506_v16  ;;  %v4980_v60 = vshll.u32 %v4785_v52, 16  ;;  %v12828_v33 = vld [vmem:[#allocation2 + $0x14] sm:$0x1]  ;;  %v4530_v57 = vld [vmem:[#allocation3 + $0x74] sm:$0x3] }
 0x1f7   : > { %v11049_v0 = vrot.slane %v12826_v46, 9  ;;  %v2010_v49 = vrot.slane %v12827_v44, 5  ;;  %v11236_v25 = vcombine.low %v4504_v45, %v4507_v29  ;;  %v4972_v37 = vrot.slane %v17937_v2, 5 }
 0x1f8   : > { %6632 = vmatprep.mubr.bf16.mxu0 %v11246_v42  ;;  %v4967_v59 = vor.u32 %v4966_v27, %v4963_v43  ;;  %v4976_v36 = vrot.slane %v17938_v8, 4  ;;  %v4982_v31 = vrot.slane %v4980_v60, 5  ;;  %v2013_v62 = vrot.slane %v12828_v33, 5  ;;  %v15065_v42 = vpop.permute.xlu1 %3160  ;;  %v3159_v33 = vpop.permute.xlu0 %3158 }
 0x1f9   : > { %v2011_v16 = vsel %vm13451_vm11, %v11049_v0, %v2010_v49  ;;  %v2012_v52 = vrot.slane %v2010_v49, 4  ;;  %6633 = vmatmul.mubr.bf16.gmra.mrb[68].mxu0 %v11236_v25  ;;  %18105 = vst [vmem:[#allocation82_spill] sm:$0xff] %v15065_v42  ;;  %v4717_v45 = vshrl.u32 %v4420_v63, 16  ;;  %v4720_v43 = vshll.u32 %v4420_v63, 16  ;;  %v5040_v0 = vld [vmem:[#allocation3 + $0x78] sm:$0xe] }
 0x1fa   : > { %v4968_v30 = vrot.slane %v4967_v59, 4  ;;  %v4977_v35 = vor.u32 %v4976_v36, %v4972_v37  ;;  %v18106_v27 = vshrl.u32 %v14349_v10, 16  ;;  %v18107_v60 = vshll.u32 %v14349_v10, 16  ;;  %v15075_v36 = vld [vmem:[#allocation3 + $0x7c] sm:$0xf] }
 0x1fb   : > { %v2014_v41 = vsel %vm13451_vm11, %v2012_v52, %v2013_v62  ;;  %v4719_v59 = vrot.slane %v4717_v45, 5  ;;  %v4722_v2 = vrot.slane %v4720_v43, 6  ;;  %v4731_v52 = vshrl.u32 %v4530_v57, 16 }
 0x1fc   : > { %v4725_v29 = vrot.slane %v18106_v27, 5  ;;  %v4726_v46 = vrot.slane %v18107_v60, 6  ;;  %v4973_v44 = vsel %vm13470_vm12, %v4968_v30, %v4972_v37  ;;  %v4978_v49 = vrot.slane %v4977_v35, 4 }
 0x1fd   : > { %v11109_v25 = vcombine.low %v2011_v16, %v2014_v41  ;;  %v4734_v62 = vshll.u32 %v4530_v57, 16  ;;  %v11187_v60 = vrot.slane %v5040_v0, 9  ;;  %v5130_v37 = vrot.slane %v15075_v36, 5  ;;  %v4786_v41 = vld [vmem:[#allocation3 + $0x78] sm:$0xf] }
 0x1fe   : > { %v4727_v8 = vor.u32 %v4726_v46, %v4725_v29  ;;  %v4983_v27 = vsel %vm13470_vm12, %v4978_v49, %v4982_v31  ;;  %v4723_v16 = vor.u32 %v4722_v2, %v4719_v59  ;;  %v4733_v45 = vrot.slane %v4731_v52, 5  ;;  %v15085_v46 = vpop.permute.xlu1 %3162 }
 0x1ff   : > { %v15080_v10 = vsel %vm3288_vm0, %v11109_v25, %v3159_v33  ;;  %v11256_v30 = vcombine.low %v4973_v44, %v4983_v27  ;;  %v4736_v42 = vrot.slane %v4734_v62, 6  ;;  %v5131_v43 = vsel %vm13451_vm11, %v11187_v60, %v5130_v37  ;;  %18109 = vst [vmem:[#allocation84_spill] sm:$0xff] %v15085_v46  ;;  %v12829_v25 = vld [vmem:[#allocation3 + $0x70] sm:$0xf]  ;;  %v12830_v33 = vld [vmem:[#allocation3 + $0x74] sm:$0x1] }
 0x200   : > { %18108 = vst [vmem:[#allocation83_spill] sm:$0xff] %v15080_v10  ;;  %v4729_v35 = vrot.slane %v4727_v8, 4  ;;  %v5132_v57 = vrot.slane %v5130_v37, 4  ;;  %v5133_v29 = vrot.slane %v4788_v18, 5  ;;  %v4724_v31 = vrot.slane %v4723_v16, 4 }
 0x201   : > { %6746 = vmatmul.mubr.bf16.gmra.mrb[68].mxu1 %v11256_v30  ;;  %v11177_v49 = vrot.slane %v4420_v63, 9  ;;  %v4510_v0 = vrot.slane %v12829_v25, 5  ;;  %v4513_v15 = vrot.slane %v12830_v33, 5  ;;  %v4737_v44 = vor.u32 %v4736_v42, %v4733_v45  ;;  %v15093_v30 = vld [vmem:[#allocation3 + $0x78] sm:$0xe] }
 0x202   : > { %v5134_v2 = vsel %vm13451_vm11, %v5132_v57, %v5133_v29  ;;  %v4985_v59 = vshrl.u32 %v4786_v41, 16  ;;  %v4988_v52 = vshll.u32 %v4786_v41, 16  ;;  %v4728_v62 = vsel %vm13492_vm13, %v4724_v31, %v4727_v8  ;;  %v4531_v29 = vld [vmem:[#allocation3 + $0x80] sm:$0x3]  ;;  %v1039_v33 = vld [vmem:[%s14402_s26 + $0x8] sm:$0xf] }
 0x203   : > { %v11267_v27 = vcombine.low %v5131_v43, %v5134_v2  ;;  %v4511_v60 = vsel %vm13451_vm11, %v11177_v49, %v4510_v0  ;;  %v4512_v37 = vrot.slane %v4510_v0, 4  ;;  %v4738_v63 = vsel %vm13492_vm13, %v4729_v35, %v4737_v44  ;;  %v15103_v35 = vpop.permute.xlu1 %3164  ;;  %v1040_v44 = vld [vmem:[%s14402_s26 + $0xc] sm:$0xf] }
 0x204   : > { %v4987_v42 = vrot.slane %v4985_v59, 4  ;;  %v4990_v16 = vrot.slane %v4988_v52, 5  ;;  %v17943_v45 = vshll.u32 %v15075_v36, 16  ;;  %v11247_v41 = vcombine.low %v4728_v62, %v4738_v63  ;;  %18110 = vst [vmem:[#allocation85_spill] sm:$0xff] %v15103_v35  ;;  %v15113_v62 = vpop.f32.mrb[0].mxu0 }
 0x205   : > { %6753 = vmatprep.mubr.bf16.mxu1 %v11267_v27  ;;  %v4514_v8 = vsel %vm13451_vm11, %v4512_v37, %v4513_v15  ;;  %v17944_v43 = vshrl.u32 %v15075_v36, 16  ;;  %v5004_v57 = vshll.u32 %v4788_v18, 16  ;;  %v4740_v0 = vshrl.u32 %v15093_v30, 16  ;;  %v15115_v27 = vpop.f32.mrb[0].mxu1 }
 0x206   : > { %v11237_v31 = vcombine.low %v4511_v60, %v4514_v8  ;;  %v4991_v49 = vor.u32 %v4990_v16, %v4987_v42  ;;  %v4996_v25 = vrot.slane %v17943_v45, 5  ;;  %6640 = vmatprep.mubr.bf16.mxu0 %v11247_v41  ;;  %v4743_v59 = vshll.u32 %v15093_v30, 16  ;;  %v11643_v41 = vpop.f32.mrb[1].mxu0  ;;  %v15119_v8 = vpop.f32.mrb[1].mxu1 }
 0x207   : > { %v5000_v2 = vrot.slane %v17944_v43, 4  ;;  %v5006_v15 = vrot.slane %v5004_v57, 5  ;;  %v18111_v18 = vshrl.u32 %v14467_v53, 16  ;;  %v4742_v37 = vrot.slane %v4740_v0, 5  ;;  %v15121_v46 = vpop.f32.mrb[2].mxu0 }
 0x208   : > { %6641 = vmatmul.mubr.bf16.gmra.mrb[72].mxu0 %v11237_v31  ;;  %v4992_v60 = vrot.slane %v4991_v49, 4  ;;  %v18112_v63 = vshll.u32 %v14467_v53, 16  ;;  %v4754_v16 = vshrl.u32 %v4531_v29, 16  ;;  %v4745_v45 = vrot.slane %v4743_v59, 6  ;;  %v15127_v53 = vpop.f32.mrb[3].mxu0 }
 0x209   : > { %v4748_v52 = vrot.slane %v18111_v18, 5  ;;  %v5001_v57 = vor.u32 %v5000_v2, %v4996_v25  ;;  %v4757_v43 = vshll.u32 %v4531_v29, 16  ;;  %v1050_v35 = vrot.slane %v1039_v33, 7  ;;  %v15123_v18 = vpop.f32.mrb[2].mxu1 }
 0x20a   : > { %v4749_v42 = vrot.slane %v18112_v63, 6  ;;  %18113 = vst [vmem:[#allocation86_spill] sm:$0xff] %v15123_v18  ;;  %v4997_v31 = vsel %vm13470_vm12, %v4992_v60, %v4996_v25  ;;  %v4756_v0 = vrot.slane %v4754_v16, 5  ;;  %v1052_v19 = vrot.slane %v1040_v44, 7  ;;  %v15129_v63 = vpop.f32.mrb[3].mxu1  ;;  %v15142_v16 = vpop.permute.xlu0 %3242 }
 0x20b   : > { %v5002_v10 = vrot.slane %v5001_v57, 4  ;;  %v4746_v50 = vor.u32 %v4745_v45, %v4742_v37  ;;  %v4759_v2 = vrot.slane %v4757_v43, 6  ;;  %v1051_v59 = vrot.slane %v1050_v35, 4  ;;  %1065 = vst [vmem:[#allocation3 + $0x84] sm:$0xe] %v1050_v35  ;;  %18114 = vst [vmem:[#allocation87_spill] sm:$0xff] %v15142_v16 }
 0x20c   : > { %v4750_v49 = vor.u32 %v4749_v42, %v4748_v52  ;;  %v1054_v33 = vrot.slane %v1052_v19, 4  ;;  %v11178_v58 = vrot.slane %v15093_v30, 9  ;;  %v12831_v18 = vld [vmem:[#allocation3 + $0x7c] sm:$0xf]  ;;  %v12832_v35 = vld [vmem:[#allocation3 + $0x80] sm:$0x1] }
 0x20d   : > { %v4517_v34 = vrot.slane %v12831_v18, 5  ;;  %v5007_v25 = vsel %vm13470_vm12, %v5002_v10, %v5006_v15  ;;  %v4747_v44 = vrot.slane %v4746_v50, 4  ;;  %v4760_v52 = vor.u32 %v4759_v2, %v4756_v0  ;;  %v15146_v18 = vpop.permute.xlu1 %3166 }
 0x20e   : > { %v4752_v29 = vrot.slane %v4750_v49, 4  ;;  %v1053_v60 = vsel %vm13417_vm4, %v1051_v59, %v1052_v19  ;;  %v11257_v42 = vcombine.low %v4997_v31, %v5007_v25  ;;  %1067 = vst [vmem:[#allocation3 + $0x8c] sm:$0x1] %v1054_v33  ;;  %v4520_v30 = vrot.slane %v12832_v35, 5  ;;  %18115 = vst [vmem:[#allocation88_spill] sm:$0xff] %v15146_v18 }
 0x20f   : > { %1066 = vst [vmem:[#allocation3 + $0x88] sm:$0xf] %v1053_v60  ;;  %v4518_v45 = vsel %vm13451_vm11, %v11178_v58, %v4517_v34  ;;  %v4519_v43 = vrot.slane %v4517_v34, 4  ;;  %v4751_v37 = vsel %vm13492_vm13, %v4747_v44, %v4750_v49  ;;  %v1102_v50 = vshrl.u32 %v1068_v38, 16  ;;  %v15148_v34 = vld [vmem:[#allocation2 + $0x4] sm:$0xf] }
 0x210   : > { %v4761_v10 = vsel %vm13492_vm13, %v4752_v29, %v4760_v52  ;;  %v1105_v15 = vshll.u32 %v1068_v38, 16  ;;  %6754 = vmatmul.mubr.bf16.gmra.mrb[72].mxu1 %v11257_v42  ;;  %v17951_v58 = vshll.u32 %v15148_v34, 16  ;;  %v18116_v31 = vshrl.u32 %v14096_v5, 16  ;;  %v12834_v52 = vld [vmem:[#allocation3 + $0x18] sm:$0xe] }
 0x211   : > { %v11248_v19 = vcombine.low %v4751_v37, %v4761_v10  ;;  %v4521_v57 = vsel %vm13451_vm11, %v4519_v43, %v4520_v30  ;;  %v1104_v2 = vrot.slane %v1102_v50, 4  ;;  %v18117_v38 = vshll.u32 %v14098_v40, 16 }
 0x212   : > { %v1117_v49 = vrot.slane %v18116_v31, 4  ;;  %v11238_v0 = vcombine.low %v4518_v45, %v4521_v57  ;;  %v1107_v59 = vrot.slane %v1105_v15, 5  ;;  %v15155_v33 = vld [vmem:[#allocation3 + $0x84] sm:$0xe]  ;;  %v1113_v44 = vrot.slane %v17951_v58, 5  ;;  %v15169_v57 = vpop.f32.mrb[4].mxu0 }
 0x213   : > { %v1123_v29 = vrot.slane %v18117_v38, 5  ;;  %6648 = vmatprep.mubr.bf16.mxu0 %v11248_v19  ;;  %v4789_v25 = vld [vmem:[#allocation3 + $0x84] sm:$0xf]  ;;  %v5153_v60 = vshrl.u32 %v12834_v52, 16  ;;  %v15164_v45 = vadd.f32 %v11643_v41, %v15113_v62  ;;  %v11188_v40 = vrot.slane %v15155_v33, 9  ;;  %v15171_v31 = vpop.f32.mrb[4].mxu1 }
 0x214   : > { %6649 = vmatmul.mubr.bf16.gmra.mrb[76].mxu0 %v11238_v0  ;;  %v5009_v43 = vshrl.u32 %v4789_v25, 16  ;;  %v5012_v35 = vshll.u32 %v4789_v25, 16  ;;  %v1108_v30 = vor.u32 %v1107_v59, %v1104_v2  ;;  %v1118_v37 = vor.u32 %v1117_v49, %v1113_v44  ;;  %18119 = vst [vmem:[#allocation89_spill] sm:$0xff] %v15171_v31  ;;  %v15183_v2 = vpop.permute.xlu0 %3244  ;;  %v15190_v18 = vpop.f32.mrb[5].mxu1 }
 0x215   : > { %v5155_v10 = vrot.slane %v5153_v60, 5  ;;  %v5156_v50 = vshll.u32 %v12834_v52, 16  ;;  %v18118_v15 = vshrl.u32 %v14535_v11, 16  ;;  %v4791_v62 = vld [vmem:[#allocation3 + $0x8c] sm:$0x1]  ;;  %v15177_v0 = vadd.f32 %v15119_v8, %v15115_v27  ;;  %18120 = vst [vmem:[#allocation90_spill] sm:$0xff] %v15183_v2 }
 0x216   : > { %v15173_v38 = vld [vmem:[#allocation3 + $0x88] sm:$0xf]  ;;  %v5011_v41 = vrot.slane %v5009_v43, 4  ;;  %v5014_v42 = vrot.slane %v5012_v35, 5  ;;  %v15181_v49 = vadd.f32 %v15127_v53, %v15121_v46  ;;  %v5140_v25 = vrot.slane %v4791_v62, 5  ;;  %v15188_v8 = vpop.f32.mrb[5].mxu0 }
 0x217   : > { %v5161_v19 = vrot.slane %v18118_v15, 5  ;;  %v5137_v59 = vrot.slane %v15173_v38, 5  ;;  %v17954_v52 = vshll.u32 %v15173_v38, 16  ;;  %v17955_v60 = vshrl.u32 %v15173_v38, 16  ;;  %v2999_v15 = vpop.permute.xlu1 %2998  ;;  %v5142_v43 = vld [vmem:[#allocation3 + $0x20] sm:$0x3] }
 0x218   : > { %v5015_v35 = vor.u32 %v5014_v42, %v5011_v41  ;;  %v5028_v58 = vshll.u32 %v4791_v62, 16  ;;  %v1109_v39 = vrot.slane %v1108_v30, 4  ;;  %v1119_v27 = vrot.slane %v1118_v37, 4  ;;  %18121 = vst [vmem:[#allocation91_spill] sm:$0xff] %v15188_v8  ;;  %18122 = vst [vmem:[#allocation92_spill] sm:$0xff] %v15190_v18  ;;  %v15198_v31 = vpop.f32.mrb[6].mxu0 }
 0x219   : > { %v5138_v46 = vsel %vm13451_vm11, %v11188_v40, %v5137_v59  ;;  %v5139_v53 = vrot.slane %v5137_v59, 4  ;;  %v5020_v2 = vrot.slane %v17954_v52, 5  ;;  %v5024_v16 = vrot.slane %v17955_v60, 4  ;;  %18123 = vst [vmem:[#allocation93_spill] sm:$0xff] %v15198_v31  ;;  %v15200_v42 = vpop.f32.mrb[6].mxu1  ;;  %v15206_v40 = vpop.f32.mrb[7].mxu0 }
 0x21a   : > { %18124 = vst [vmem:[#allocation94_spill] sm:$0xff] %v15200_v42  ;;  %v5016_v30 = vrot.slane %v5015_v35, 4  ;;  %v5030_v37 = vrot.slane %v5028_v58, 5  ;;  %v1114_v62 = vsel %vm13470_vm12, %v1109_v39, %v1113_v44  ;;  %v1124_v41 = vsel %vm13470_vm12, %v1119_v27, %v1123_v29  ;;  %18125 = vst [vmem:[#allocation95_spill] sm:$0xff] %v15206_v40  ;;  %v15208_v59 = vpop.f32.mrb[7].mxu1 }
 0x21b   : > { %18126 = vst [vmem:[#allocation96_spill] sm:$0xff] %v15208_v59  ;;  %v5141_v52 = vsel %vm13451_vm11, %v5139_v53, %v5140_v25  ;;  %v5025_v60 = vor.u32 %v5024_v16, %v5020_v2  ;;  %v11069_v18 = vcombine.low %v1114_v62, %v1124_v41  ;;  %v5158_v31 = vrot.slane %v5156_v50, 6  ;;  %v1454_v16 = vld [vmem:[#allocation2 + $0x8] sm:$0x3]  ;;  %v15225_v53 = vpop.permute.xlu0 %3246 }
 0x21c   : > { %v11268_v8 = vcombine.low %v5138_v46, %v5141_v52  ;;  %v5021_v58 = vsel %vm13470_vm12, %v5016_v30, %v5020_v2  ;;  %v18127_v35 = vshll.u32 %v14535_v11, 16  ;;  %v5167_v44 = vshrl.u32 %v5142_v43, 16 }
 0x21d   : > { %v5026_v42 = vrot.slane %v5025_v60, 4  ;;  %v15217_v29 = vsel %vm3288_vm0, %v11069_v18, %v2999_v15  ;;  %v5159_v27 = vor.u32 %v5158_v31, %v5155_v10  ;;  %v5170_v59 = vshll.u32 %v5142_v43, 16  ;;  %v5143_v15 = vld [vmem:[#allocation3 + $0x2c] sm:$0x3] }
 0x21e   : > { %v5162_v39 = vrot.slane %v18127_v35, 6  ;;  %6761 = vmatprep.mubr.bf16.mxu1 %v11268_v8  ;;  %v5169_v25 = vrot.slane %v5167_v44, 5  ;;  %v18128_v50 = vshrl.u32 %v14079_v26, 16  ;;  %v18129_v46 = vshll.u32 %v14079_v26, 16 }
 0x21f   : > { %v5031_v11 = vsel %vm13470_vm12, %v5026_v42, %v5030_v37  ;;  %v5160_v60 = vrot.slane %v5159_v27, 4  ;;  %v5172_v18 = vrot.slane %v5170_v59, 6  ;;  %v18130_v10 = vshrl.u32 %v14096_v5, 16 }
 0x220   : > { %v5163_v40 = vor.u32 %v5162_v39, %v5161_v19  ;;  %v1470_v52 = vrot.slane %v18128_v50, 5  ;;  %v1473_v2 = vrot.slane %v18129_v46, 6  ;;  %v11258_v19 = vcombine.low %v5021_v58, %v5031_v11 }
 0x221   : > { %v1476_v31 = vrot.slane %v18130_v10, 5  ;;  %v18131_v30 = vshll.u32 %v15148_v34, 16  ;;  %v5173_v41 = vor.u32 %v5172_v18, %v5169_v25  ;;  %v1482_v35 = vshrl.u32 %v1454_v16, 16  ;;  %v5144_v34 = vld [vmem:[#allocation3 + $0x38] sm:$0x3] }
 0x222   : > { %v5165_v43 = vrot.slane %v5163_v40, 4  ;;  %v1474_v8 = vor.u32 %v1473_v2, %v1470_v52  ;;  %v5164_v26 = vsel %vm13492_vm13, %v5160_v60, %v5163_v40  ;;  %v1485_v42 = vshll.u32 %v1454_v16, 16  ;;  %6762 = vmatmul.mubr.bf16.gmra.mrb[76].mxu1 %v11258_v19  ;;  %v3079_v16 = vpop.permute.xlu0 %3078  ;;  %v12835_v60 = vld [vmem:[#allocation3 + $0x30] sm:$0xe] }
 0x223   : > { %v1477_v62 = vrot.slane %v18131_v30, 6  ;;  %v5188_v59 = vrot.slane %v14749_v4, 4  ;;  %v5190_v5 = vshrl.u32 %v5143_v15, 16  ;;  %v1484_v44 = vrot.slane %v1482_v35, 5 }
 0x224   : > { %v1475_v37 = vrot.slane %v1474_v8, 4  ;;  %v5174_v58 = vsel %vm13492_vm13, %v5165_v43, %v5173_v41  ;;  %v1487_v27 = vrot.slane %v1485_v42, 6  ;;  %v5193_v50 = vshll.u32 %v5143_v15, 16 }
 0x225   : > { %v1478_v39 = vor.u32 %v1477_v62, %v1476_v31  ;;  %v11269_v52 = vcombine.low %v5164_v26, %v5174_v58  ;;  %v5192_v46 = vrot.slane %v5190_v5, 5  ;;  %v5199_v18 = vshrl.u32 %v12835_v60, 16  ;;  %v15238_v31 = vpop.f32.mrb[8].mxu0  ;;  %v15244_v26 = vpop.f32.mrb[8].mxu1 }
 0x226   : > { %v1488_v2 = vor.u32 %v1487_v27, %v1484_v44  ;;  %v5195_v11 = vrot.slane %v5193_v50, 6  ;;  %v5202_v10 = vshll.u32 %v12835_v60, 16  ;;  %v18132_v19 = vshrl.u32 %v14785_v3, 16  ;;  %v15246_v41 = vpop.f32.mrb[9].mxu0  ;;  %v15250_v5 = vpop.f32.mrb[9].mxu1 }
 0x227   : > { %v1479_v40 = vsel %vm13492_vm13, %v1475_v37, %v1478_v39  ;;  %v1480_v25 = vrot.slane %v1478_v39, 4  ;;  %12418 = vmatprep.mubr.bf16.mxu0 %v11269_v52  ;;  %v18133_v15 = vshll.u32 %v14785_v3, 16  ;;  %v5213_v30 = vshrl.u32 %v5144_v34, 16  ;;  %v15252_v58 = vpop.f32.mrb[10].mxu0  ;;  %v15254_v52 = vpop.f32.mrb[10].mxu1 }
 0x228   : > { %v5207_v43 = vrot.slane %v18132_v19, 5  ;;  %v5216_v62 = vshll.u32 %v5144_v34, 16  ;;  %v5196_v42 = vor.u32 %v5195_v11, %v5192_v46  ;;  %v5201_v37 = vrot.slane %v5199_v18, 5  ;;  %v15256_v34 = vpop.f32.mrb[11].mxu0  ;;  %v15267_v19 = vpop.f32.mrb[11].mxu1 }
 0x229   : > { %v5208_v8 = vrot.slane %v18133_v15, 6  ;;  %v1489_v35 = vsel %vm13492_vm13, %v1480_v25, %v1488_v2  ;;  %v5204_v39 = vrot.slane %v5202_v10, 6  ;;  %v5215_v3 = vrot.slane %v5213_v30, 5  ;;  %v12792_v25 = vld [vmem:[%s17819_s6 + $0x80] sm:$0xff]   ;;  %v1455_v2 = vld [vmem:[#allocation2 + $0x14] sm:$0x3] }
 0x22a   : > { %v11089_v44 = vcombine.low %v1479_v40, %v1489_v35  ;;  %v5218_v50 = vrot.slane %v5216_v62, 6  ;;  %v5197_v60 = vsel %vm13492_vm13, %v5188_v59, %v5196_v42  ;;  %v18134_v11 = vshrl.u32 %v14170_v51, 16 }
 0x22b   : > { %v5209_v27 = vor.u32 %v5208_v8, %v5207_v43  ;;  %v5205_v46 = vor.u32 %v5204_v39, %v5201_v37  ;;  %v18135_v40 = vshll.u32 %v14170_v51, 16  ;;  %v18136_v59 = vsel %vm13492_vm13, %v14742_v54, %v14749_v4  ;;  %v12793_v8 = vld [vmem:[%s17819_s6 + $0xc8] sm:$0xff]   ;;  %v15283_v54 = vpop.permute.xlu0 %3248 }
 0x22c   : > { %v1493_v18 = vrot.slane %v18134_v11, 5  ;;  %v3331_v43 = vsel %vm3288_vm0, %v11089_v44, %v3079_v16  ;;  %v11270_v15 = vcombine.low %v18136_v59, %v5197_v60  ;;  %v5219_v62 = vor.u32 %v5218_v50, %v5215_v3  ;;  %18139 = vst [vmem:[#allocation97_spill] sm:$0xff] %v15283_v54  ;;  %v12836_v3 = vld [vmem:[#allocation3 + $0x3c] sm:$0xe] }
 0x22d   : > { %v1496_v10 = vrot.slane %v18135_v40, 6  ;;  %v5211_v30 = vrot.slane %v5209_v27, 4  ;;  %7161 = vmatprep.mubr.bf16.mxu1 %v3331_v43  ;;  %v5206_v35 = vrot.slane %v5205_v46, 4  ;;  %v18137_v42 = vshrl.u32 %v14180_v22, 16  ;;  %v12794_v46 = vld [vmem:[%s17819_s6 + $0x88] sm:$0xff]  }
 0x22e   : > { %v18138_v16 = vshll.u32 %v14180_v22, 16  ;;  %12419 = vmatmul.mubr.bf16.vlgmr.msra.gmra.mrb[80].mxu0 %v11270_v15  ;;  %7162 = vmatmul.mubr.bf16.vlgmr.msra.gmra.mrb[80].mxu1 %v15217_v29  ;;  %v1505_v44 = vshrl.u32 %v1455_v2, 16  ;;  %v1508_v60 = vshll.u32 %v1455_v2, 16  ;;  %v5222_v50 = vshrl.u32 %v12836_v3, 16  ;;  %v5145_v29 = vld [vmem:[#allocation3 + $0x44] sm:$0x3] }
 0x22f   : > { %v1497_v51 = vor.u32 %v1496_v10, %v1493_v18  ;;  %v1499_v37 = vrot.slane %v18137_v42, 5  ;;  %v5220_v4 = vsel %vm13492_vm13, %v5211_v30, %v5219_v62  ;;  %12025 = vmatpush3.bf16.msra.mxu0 %v12792_v25  ;;  %v5210_v11 = vsel %vm13492_vm13, %v5206_v35, %v5209_v27  ;;  %v1071_v2 = vld [vmem:[#allocation2 + $0xc] sm:$0xf]  ;;  %v12795_v25 = vld [vmem:[%s17819_s6 + $0xd0] sm:$0xff]  }
 0x230   : > { %v1500_v39 = vrot.slane %v18138_v16, 6  ;;  %v5225_v10 = vshll.u32 %v12836_v3, 16  ;;  %12026 = vmatprep.subr.bf16.mxu0 %v12793_v8  ;;  %v11271_v43 = vcombine.low %v5210_v11, %v5220_v4  ;;  %v1507_v59 = vrot.slane %v1505_v44, 5 }
 0x231   : > { %v1498_v18 = vrot.slane %v1497_v51, 4  ;;  %v1510_v15 = vrot.slane %v1508_v60, 6  ;;  %v5224_v30 = vrot.slane %v5222_v50, 5  ;;  %v18140_v27 = vshrl.u32 %v14859_v1, 16 }
 0x232   : > { %v1501_v40 = vor.u32 %v1500_v39, %v1499_v37  ;;  %v5227_v16 = vrot.slane %v5225_v10, 6  ;;  %12422 = vmatprep.mubr.bf16.mxu0 %v11271_v43  ;;  %v18141_v8 = vshll.u32 %v14859_v1, 16  ;;  %v5236_v39 = vshrl.u32 %v5145_v29, 16  ;;  %v3081_v10 = vpop.permute.xlu0 %3080 }
 0x233   : > { %v5230_v35 = vrot.slane %v18140_v27, 5  ;;  %v1511_v51 = vor.u32 %v1510_v15, %v1507_v59  ;;  %v5239_v4 = vshll.u32 %v5145_v29, 16  ;;  %12027 = vmatpush3.bf16.msra.mxu0 %v12794_v46  ;;  %v1126_v60 = vshrl.u32 %v1071_v2, 16  ;;  %v12797_v59 = vld [vmem:[%s17819_s6 + $0xd8] sm:$0xff]  }
 0x234   : > { %v1502_v62 = vsel %vm13492_vm13, %v1498_v18, %v1501_v40  ;;  %v1503_v42 = vrot.slane %v1501_v40, 4  ;;  %v5231_v37 = vrot.slane %v18141_v8, 6  ;;  %v5228_v44 = vor.u32 %v5227_v16, %v5224_v30  ;;  %v12796_v18 = vld [vmem:[%s17819_s6 + $0x90] sm:$0xff]   ;;  %v15308_v40 = vpop.permute.xlu1 %3168  ;;  %12028 = vmatprep.subr.bf16.mxu0 %v12795_v25 }
 0x235   : > { %v1129_v3 = vshll.u32 %v1071_v2, 16  ;;  %v18142_v50 = vshll.u32 %v14180_v22, 16  ;;  %18143 = vst [vmem:[#allocation98_spill] sm:$0xff] %v15308_v40  ;;  %v5238_v29 = vrot.slane %v5236_v39, 5  ;;  %v5241_v46 = vrot.slane %v5239_v4, 6  ;;  %v15322_v4 = vpop.f32.mrb[12].mxu0 }
 0x236   : > { %v1512_v1 = vsel %vm13492_vm13, %v1503_v42, %v1511_v51  ;;  %v5232_v43 = vor.u32 %v5231_v37, %v5230_v35  ;;  %v5229_v30 = vrot.slane %v5228_v44, 4  ;;  %v1128_v2 = vrot.slane %v1126_v60, 4  ;;  %v5146_v37 = vld [vmem:[#allocation3 + $0x50] sm:$0x3]  ;;  %v15324_v44 = vpop.f32.mrb[12].mxu1 }
 0x237   : > { %v15303_v11 = vrot.slane %v18142_v50, 5  ;;  %v11090_v15 = vcombine.low %v1502_v62, %v1512_v1  ;;  %v1131_v16 = vrot.slane %v1129_v3, 5  ;;  %v5242_v8 = vor.u32 %v5241_v46, %v5238_v29  ;;  %12029 = vmatpush3.bf16.msra.mxu0 %v12796_v18  ;;  %v12837_v62 = vld [vmem:[#allocation3 + $0x48] sm:$0xe]  ;;  %v15336_v1 = vpop.f32.mrb[13].mxu1 }
 0x238   : > { %v5234_v27 = vrot.slane %v5232_v43, 4  ;;  %v18144_v50 = vshrl.u32 %v14180_v22, 16  ;;  %v18145_v40 = vshll.u32 %v14182_v47, 16  ;;  %v5233_v25 = vsel %vm13492_vm13, %v5229_v30, %v5232_v43  ;;  %12030 = vmatprep.subr.bf16.mxu0 %v12797_v59  ;;  %v12798_v18 = vld [vmem:[%s17819_s6 + $0x98] sm:$0xff]   ;;  %v15345_v59 = vpop.f32.mrb[14].mxu1 }
 0x239   : > { %v3335_v35 = vsel %vm3288_vm0, %v11090_v15, %v3081_v10  ;;  %v1132_v51 = vor.u32 %v1131_v16, %v1128_v2  ;;  %v5245_v39 = vshrl.u32 %v12837_v62, 16  ;;  %v5248_v60 = vshll.u32 %v12837_v62, 16  ;;  %v15334_v10 = vpop.f32.mrb[13].mxu0  ;;  %18149 = vst [vmem:[#allocation100_spill] sm:$0xff] %v15345_v59  ;;  %v3001_v16 = vpop.permute.xlu1 %3000 }
 0x23a   : > { %v1141_v54 = vrot.slane %v18144_v50, 4  ;;  %v1147_v42 = vrot.slane %v18145_v40, 5  ;;  %7169 = vmatprep.mubr.bf16.mxu1 %v3335_v35  ;;  %v5243_v22 = vsel %vm13492_vm13, %v5234_v27, %v5242_v8  ;;  %v18146_v3 = vshrl.u32 %v14916_v17, 16  ;;  %v15343_v2 = vpop.f32.mrb[14].mxu0  ;;  %v15356_v59 = vpop.f32.mrb[15].mxu1 }
 0x23b   : > { %v11272_v43 = vcombine.low %v5233_v25, %v5243_v22  ;;  %v1133_v29 = vrot.slane %v1132_v51, 4  ;;  %v5247_v46 = vrot.slane %v5245_v39, 5  ;;  %v18147_v15 = vshll.u32 %v14916_v17, 16  ;;  %18148 = vst [vmem:[#allocation99_spill] sm:$0xff] %v15343_v2  ;;  %v1456_v51 = vld [vmem:[#allocation2 + $0x20] sm:$0x3]  ;;  %12031 = vmatpush3.bf16.msra.mxu0 %v12798_v18 }
 0x23c   : > { %v1142_v47 = vor.u32 %v1141_v54, %v15303_v11  ;;  %v5253_v40 = vrot.slane %v18146_v3, 5  ;;  %v12799_v54 = vld [vmem:[%s17819_s6 + $0xe0] sm:$0xff]   ;;  %v5250_v8 = vrot.slane %v5248_v60, 6  ;;  %v5259_v50 = vshrl.u32 %v5146_v37, 16  ;;  %18153 = vst [vmem:[#allocation102_spill] sm:$0xff] %v15356_v59 }
 0x23d   : > { %v5254_v30 = vrot.slane %v18147_v15, 6  ;;  %v5262_v35 = vshll.u32 %v5146_v37, 16  ;;  %12423 = vmatmul.mubr.bf16.gmra.mrb[84].mxu0 %v11272_v43  ;;  %v1138_v25 = vsel %vm13470_vm12, %v1133_v29, %v15303_v11  ;;  %v18150_v62 = vshrl.u32 %v14284_v56, 16  ;;  %v15354_v15 = vpop.f32.mrb[15].mxu0  ;;  %v12800_v11 = vld [vmem:[%s17819_s6 + $0xa0] sm:$0xff]   ;;  %12032 = vmatprep.subr.bf16.mxu0 %v12799_v54  ;;  %v15373_v54 = vpop.permute.xlu1 %3170 }
 0x23e   : > { %v1143_v27 = vrot.slane %v1142_v47, 4  ;;  %v18151_v22 = vshll.u32 %v14284_v56, 16  ;;  %18152 = vst [vmem:[#allocation101_spill] sm:$0xff] %v15354_v15  ;;  %v5251_v47 = vor.u32 %v5250_v8, %v5247_v46  ;;  %v5261_v60 = vrot.slane %v5259_v50, 5  ;;  %18157 = vst [vmem:[#allocation104_spill] sm:$0xff] %v15373_v54 }
 0x23f   : > { %v5255_v17 = vor.u32 %v5254_v30, %v5253_v40  ;;  %v1516_v39 = vrot.slane %v18150_v62, 5  ;;  %v5264_v43 = vrot.slane %v5262_v35, 6  ;;  %v18154_v56 = vshrl.u32 %v14288_v21, 16  ;;  %v15371_v35 = vpop.permute.xlu0 %3250  ;;  %v1074_v59 = vld [vmem:[#allocation2 + $0x18] sm:$0xf]  ;;  %12033 = vmatpush3.bf16.msra.mxu0 %v12800_v11 }
 0x240   : > { %v1519_v3 = vrot.slane %v18151_v22, 6  ;;  %v1148_v37 = vsel %vm13470_vm12, %v1143_v27, %v1147_v42  ;;  %v12801_v22 = vld [vmem:[%s17819_s6 + $0xe8] sm:$0xff]   ;;  %v5252_v42 = vrot.slane %v5251_v47, 4  ;;  %v18155_v27 = vshll.u32 %v14288_v21, 16  ;;  %18156 = vst [vmem:[#allocation103_spill] sm:$0xff] %v15371_v35 }
 0x241   : > { %v11070_v40 = vcombine.low %v1138_v25, %v1148_v37  ;;  %v5257_v29 = vrot.slane %v5255_v17, 4  ;;  %v1522_v62 = vrot.slane %v18154_v56, 5  ;;  %v5265_v46 = vor.u32 %v5264_v43, %v5261_v60  ;;  %12034 = vmatprep.subr.bf16.mxu0 %v12801_v22 }
 0x242   : > { %v1520_v30 = vor.u32 %v1519_v3, %v1516_v39  ;;  %v1523_v18 = vrot.slane %v18155_v27, 6  ;;  %v1528_v8 = vshrl.u32 %v1456_v51, 16  ;;  %v1531_v39 = vshll.u32 %v1456_v51, 16  ;;  %v12838_v3 = vld [vmem:[#allocation3 + $0x54] sm:$0xe] }
 0x243   : > { %v3295_v50 = vsel %vm3288_vm0, %v11070_v40, %v3001_v16  ;;  %v5268_v37 = vshrl.u32 %v12838_v3, 16  ;;  %v5256_v56 = vsel %vm13492_vm13, %v5252_v42, %v5255_v17  ;;  %v5266_v47 = vsel %vm13492_vm13, %v5257_v29, %v5265_v46  ;;  %v5147_v27 = vld [vmem:[#allocation3 + $0x5c] sm:$0x3]  ;;  %v12803_v17 = vld [vmem:[%s17819_s6 + $0xf0] sm:$0xff]   ;;  %v15385_v42 = vpop.f32.mrb[16].mxu0  ;;  %v15387_v29 = vpop.f32.mrb[16].mxu1 }
 0x244   : > { %v1521_v25 = vrot.slane %v1520_v30, 4  ;;  %7170 = vmatmul.mubr.bf16.gmra.mrb[84].mxu1 %v3295_v50  ;;  %v1524_v60 = vor.u32 %v1523_v18, %v1522_v62  ;;  %v1530_v43 = vrot.slane %v1528_v8, 5  ;;  %v12802_v16 = vld [vmem:[%s17819_s6 + $0xa8] sm:$0xff]   ;;  %v11273_v51 = vcombine.low %v5256_v56, %v5266_v47  ;;  %18158 = vst [vmem:[#allocation105_spill] sm:$0xff] %v15385_v42  ;;  %18159 = vst [vmem:[#allocation106_spill] sm:$0xff] %v15387_v29  ;;  %v15397_v22 = vpop.f32.mrb[17].mxu1 }
 0x245   : > { %v1533_v40 = vrot.slane %v1531_v39, 6  ;;  %v5270_v30 = vrot.slane %v5268_v37, 5  ;;  %v5271_v50 = vshll.u32 %v12838_v3, 16  ;;  %v18160_v46 = vshrl.u32 %v14973_v20, 16  ;;  %v15395_v3 = vpop.f32.mrb[17].mxu0  ;;  %18163 = vst [vmem:[#allocation108_spill] sm:$0xff] %v15397_v22  ;;  %12035 = vmatpush3.bf16.msra.mxu0 %v12802_v16 }
 0x246   : > { %v1525_v11 = vsel %vm13492_vm13, %v1521_v25, %v1524_v60  ;;  %v1526_v62 = vrot.slane %v1524_v60, 4  ;;  %v18161_v8 = vshll.u32 %v14973_v20, 16  ;;  %18162 = vst [vmem:[#allocation107_spill] sm:$0xff] %v15395_v3  ;;  %12426 = vmatprep.mubr.bf16.mxu0 %v11273_v51  ;;  %v5282_v47 = vshrl.u32 %v5147_v27, 16  ;;  %v15399_v54 = vpop.f32.mrb[18].mxu0  ;;  %v15401_v29 = vpop.f32.mrb[18].mxu1  ;;  %12036 = vmatprep.subr.bf16.mxu0 %v12803_v17 }
 0x247   : > { %v5276_v18 = vrot.slane %v18160_v46, 5  ;;  %v1534_v37 = vor.u32 %v1533_v40, %v1530_v43  ;;  %v5273_v56 = vrot.slane %v5271_v50, 6  ;;  %v5285_v35 = vshll.u32 %v5147_v27, 16  ;;  %18164 = vst [vmem:[#allocation109_spill] sm:$0xff] %v15399_v54  ;;  %18165 = vst [vmem:[#allocation110_spill] sm:$0xff] %v15401_v29  ;;  %v12804_v51 = vld [vmem:[%s17819_s6 + $0xb0] sm:$0xff]   ;;  %v3083_v27 = vpop.permute.xlu0 %3082 }
 0x248   : > { %v5277_v39 = vrot.slane %v18161_v8, 6  ;;  %v1150_v60 = vshrl.u32 %v1074_v59, 16  ;;  %v1153_v42 = vshll.u32 %v1074_v59, 16  ;;  %v18166_v46 = vshll.u32 %v14288_v21, 16  ;;  %v15410_v43 = vpop.f32.mrb[19].mxu0  ;;  %v15412_v40 = vpop.f32.mrb[19].mxu1 }
 0x249   : > { %18167 = vst [vmem:[#allocation111_spill] sm:$0xff] %v15410_v43  ;;  %18168 = vst [vmem:[#allocation112_spill] sm:$0xff] %v15412_v40  ;;  %v1535_v50 = vsel %vm13492_vm13, %v1526_v62, %v1534_v37  ;;  %v5284_v8 = vrot.slane %v5282_v47, 5  ;;  %v5287_v59 = vrot.slane %v5285_v35, 6  ;;  %v12805_v16 = vld [vmem:[%s17819_s6 + $0xf8] sm:$0xff]   ;;  %v18169_v40 = vshrl.u32 %v14288_v21, 16  ;;  %12037 = vmatpush3.bf16.msra.mxu0 %v12804_v51 }
 0x24a   : > { %v5278_v25 = vor.u32 %v5277_v39, %v5276_v18  ;;  %v15405_v20 = vrot.slane %v18166_v46, 5  ;;  %v5274_v18 = vor.u32 %v5273_v56, %v5270_v30  ;;  %v11091_v39 = vcombine.low %v1525_v11, %v1535_v50  ;;  %v3003_v30 = vpop.permute.xlu1 %3002  ;;  %v5148_v37 = vld [vmem:[#allocation3 + $0x68] sm:$0x3]  ;;  %v12839_v56 = vld [vmem:[#allocation3 + $0x60] sm:$0xe]  ;;  %12038 = vmatprep.subr.bf16.mxu0 %v12805_v16 }
 0x24b   : > { %v1152_v29 = vrot.slane %v1150_v60, 4  ;;  %v1155_v54 = vrot.slane %v1153_v42, 5  ;;  %v5288_v43 = vor.u32 %v5287_v59, %v5284_v8  ;;  %v1165_v3 = vrot.slane %v18169_v40, 4  ;;  %v15436_v60 = vpop.f32.mrb[20].mxu1 }
 0x24c   : > { %v5280_v46 = vrot.slane %v5278_v25, 4  ;;  %v5275_v22 = vrot.slane %v5274_v18, 4  ;;  %v18170_v15 = vshll.u32 %v14290_v24, 16  ;;  %v3339_v35 = vsel %vm3288_vm0, %v11091_v39, %v3083_v27  ;;  %v15445_v27 = vpop.f32.mrb[21].mxu1 }
 0x24d   : > { %v1156_v17 = vor.u32 %v1155_v54, %v1152_v29  ;;  %v5291_v47 = vshrl.u32 %v12839_v56, 16  ;;  %v5294_v2 = vshll.u32 %v12839_v56, 16  ;;  %7177 = vmatprep.mubr.bf16.mxu1 %v3339_v35  ;;  %v1166_v11 = vor.u32 %v1165_v3, %v15405_v20  ;;  %v12806_v54 = vld [vmem:[%s17819_s6 + $0xb8] sm:$0xff]   ;;  %v15434_v29 = vpop.f32.mrb[20].mxu0  ;;  %v15441_v3 = vld [vmem:[%s17819_s6 + $0x100] sm:$0xff]  }
 0x24e   : > { %v1171_v62 = vrot.slane %v18170_v15, 5  ;;  %v5279_v42 = vsel %vm13492_vm13, %v5275_v22, %v5278_v25  ;;  %v5289_v21 = vsel %vm13492_vm13, %v5280_v46, %v5288_v43  ;;  %v18171_v24 = vshrl.u32 %v15000_v13, 16  ;;  %v15443_v43 = vpop.f32.mrb[21].mxu0  ;;  %v15451_v46 = vpop.f32.mrb[22].mxu1  ;;  %12039 = vmatpush3.bf16.msra.mxu0 %v12806_v54 }
 0x24f   : > { %v11274_v51 = vcombine.low %v5279_v42, %v5289_v21  ;;  %v1157_v40 = vrot.slane %v1156_v17, 4  ;;  %v5293_v22 = vrot.slane %v5291_v47, 5  ;;  %v5296_v25 = vrot.slane %v5294_v2, 6  ;;  %v15449_v39 = vpop.f32.mrb[22].mxu0  ;;  %18174 = vst [vmem:[#allocation114_spill] sm:$0xff] %v15451_v46  ;;  %12438 = vmatprep.subr.bf16.mxu0 %v15441_v3  ;;  %v15474_v54 = vpop.permute.xlu1 %3172 }
 0x250   : > { %v5299_v15 = vrot.slane %v18171_v24, 5  ;;  %v1167_v50 = vrot.slane %v1166_v11, 4  ;;  %v18172_v18 = vshll.u32 %v15000_v13, 16  ;;  %v5305_v59 = vshrl.u32 %v5148_v37, 16  ;;  %18173 = vst [vmem:[#allocation113_spill] sm:$0xff] %v15449_v39  ;;  %v15460_v21 = vpop.f32.mrb[23].mxu0 }
 0x251   : > { %v5308_v16 = vshll.u32 %v5148_v37, 16  ;;  %12427 = vmatmul.mubr.bf16.gmra.mrb[88].mxu0 %v11274_v51  ;;  %v1162_v2 = vsel %vm13470_vm12, %v1157_v40, %v15405_v20  ;;  %v5297_v35 = vor.u32 %v5296_v25, %v5293_v22  ;;  %v1457_v17 = vld [vmem:[#allocation2 + $0x2c] sm:$0x3]  ;;  %v18175_v56 = vshrl.u32 %v14406_v23, 16  ;;  %18177 = vst [vmem:[#allocation115_spill] sm:$0xff] %v15460_v21  ;;  %18182 = vst [vmem:[#allocation118_spill] sm:$0xff] %v15474_v54 }
 0x252   : > { %v5300_v8 = vrot.slane %v18172_v18, 6  ;;  %v18176_v42 = vshll.u32 %v14406_v23, 16  ;;  %v1172_v37 = vsel %vm13470_vm12, %v1167_v50, %v1171_v62  ;;  %v5307_v24 = vrot.slane %v5305_v59, 5  ;;  %v15464_v18 = vpop.f32.mrb[23].mxu1  ;;  %v15472_v50 = vpop.permute.xlu0 %3252 }
 0x253   : > { %v1539_v47 = vrot.slane %v18175_v56, 5  ;;  %v5310_v51 = vrot.slane %v5308_v16, 6  ;;  %18178 = vst [vmem:[#allocation116_spill] sm:$0xff] %v15464_v18  ;;  %v11071_v20 = vcombine.low %v1162_v2, %v1172_v37  ;;  %v5298_v40 = vrot.slane %v5297_v35, 4  ;;  %18181 = vst [vmem:[#allocation117_spill] sm:$0xff] %v15472_v50 }
 0x254   : > { %v1542_v13 = vrot.slane %v18176_v42, 6  ;;  %v5301_v11 = vor.u32 %v5300_v8, %v5299_v15  ;;  %v18179_v25 = vshrl.u32 %v14392_v9, 16  ;;  %v18180_v46 = vshll.u32 %v14392_v9, 16  ;;  %v1077_v2 = vld [vmem:[#allocation2 + $0x24] sm:$0xf] }
 0x255   : > { %v5311_v42 = vor.u32 %v5310_v51, %v5307_v24  ;;  %v1551_v62 = vshrl.u32 %v1457_v17, 16  ;;  %v3299_v15 = vsel %vm3288_vm0, %v11071_v20, %v3003_v30  ;;  %v1554_v16 = vshll.u32 %v1457_v17, 16  ;;  %v12840_v37 = vld [vmem:[#allocation3 + $0x6c] sm:$0xe]  ;;  %v15480_v30 = vpop.f32.mrb[24].mxu0  ;;  %v15482_v51 = vpop.f32.mrb[24].mxu1 }
 0x256   : > { %v1543_v22 = vor.u32 %v1542_v13, %v1539_v47  ;;  %v1545_v56 = vrot.slane %v18179_v25, 5  ;;  %v5303_v23 = vrot.slane %v5301_v11, 4  ;;  %v1546_v21 = vrot.slane %v18180_v46, 6  ;;  %7178 = vmatmul.mubr.bf16.gmra.mrb[88].mxu1 %v3299_v15  ;;  %v5149_v46 = vld [vmem:[#allocation3 + $0x74] sm:$0x3]  ;;  %18183 = vst [vmem:[#allocation119_spill] sm:$0xff] %v15480_v30 }
 0x257   : > { %v5302_v8 = vsel %vm13492_vm13, %v5298_v40, %v5301_v11  ;;  %v1553_v13 = vrot.slane %v1551_v62, 5  ;;  %v5314_v24 = vshrl.u32 %v12840_v37, 16  ;;  %18184 = vst [vmem:[#allocation120_spill] sm:$0xff] %v15482_v51  ;;  %v1556_v25 = vrot.slane %v1554_v16, 6  ;;  %v15486_v40 = vpop.f32.mrb[25].mxu0 }
 0x258   : > { %v1544_v59 = vrot.slane %v1543_v22, 4  ;;  %v5312_v35 = vsel %vm13492_vm13, %v5303_v23, %v5311_v42  ;;  %v1547_v47 = vor.u32 %v1546_v21, %v1545_v56  ;;  %v5317_v50 = vshll.u32 %v12840_v37, 16  ;;  %18186 = vst [vmem:[#allocation121_spill] sm:$0xff] %v15486_v40  ;;  %v15488_v22 = vpop.f32.mrb[25].mxu1  ;;  %v15494_v15 = vpop.f32.mrb[26].mxu0 }
 0x259   : > { %v11275_v20 = vcombine.low %v5302_v8, %v5312_v35  ;;  %v18185_v11 = vshrl.u32 %v15033_v12, 16  ;;  %18187 = vst [vmem:[#allocation122_spill] sm:$0xff] %v15488_v22  ;;  %v5316_v23 = vrot.slane %v5314_v24, 5  ;;  %v18188_v42 = vshll.u32 %v15033_v12, 16  ;;  %18189 = vst [vmem:[#allocation123_spill] sm:$0xff] %v15494_v15  ;;  %v15496_v8 = vpop.f32.mrb[26].mxu1 }
 0x25a   : > { %v1548_v21 = vsel %vm13492_vm13, %v1544_v59, %v1547_v47  ;;  %v1549_v56 = vrot.slane %v1547_v47, 4  ;;  %18190 = vst [vmem:[#allocation124_spill] sm:$0xff] %v15496_v8  ;;  %v1557_v16 = vor.u32 %v1556_v25, %v1553_v13  ;;  %v5319_v35 = vrot.slane %v5317_v50, 6  ;;  %v15498_v54 = vpop.f32.mrb[27].mxu0  ;;  %v15500_v22 = vpop.f32.mrb[27].mxu1 }
 0x25b   : > { %v5322_v17 = vrot.slane %v18185_v11, 5  ;;  %v5323_v62 = vrot.slane %v18188_v42, 6  ;;  %12430 = vmatprep.mubr.bf16.mxu0 %v11275_v20  ;;  %v5328_v37 = vshrl.u32 %v5149_v46, 16  ;;  %v5331_v11 = vshll.u32 %v5149_v46, 16  ;;  %18191 = vst [vmem:[#allocation125_spill] sm:$0xff] %v15498_v54  ;;  %18192 = vst [vmem:[#allocation126_spill] sm:$0xff] %v15500_v22  ;;  %v3085_v42 = vpop.permute.xlu0 %3084  ;;  %v3005_v54 = vpop.permute.xlu1 %3004 }
 0x25c   : > { %v1174_v59 = vshrl.u32 %v1077_v2, 16  ;;  %v1177_v47 = vshll.u32 %v1077_v2, 16  ;;  %v18193_v24 = vshll.u32 %v14392_v9, 16  ;;  %v1558_v15 = vsel %vm13492_vm13, %v1549_v56, %v1557_v16  ;;  %v5150_v56 = vld [vmem:[#allocation3 + $0x80] sm:$0x3] }
 0x25d   : > { %v5324_v51 = vor.u32 %v5323_v62, %v5322_v17  ;;  %v5320_v8 = vor.u32 %v5319_v35, %v5316_v23  ;;  %v5330_v20 = vrot.slane %v5328_v37, 5  ;;  %v5333_v13 = vrot.slane %v5331_v11, 6  ;;  %v12841_v23 = vld [vmem:[#allocation3 + $0x78] sm:$0xe] }
 0x25e   : > { %v1185_v12 = vrot.slane %v18193_v24, 5  ;;  %v11092_v50 = vcombine.low %v1548_v21, %v1558_v15  ;;  %v1176_v46 = vrot.slane %v1174_v59, 4  ;;  %v1179_v40 = vrot.slane %v1177_v47, 5  ;;  %v15511_v21 = vpop.f32.mrb[28].mxu0  ;;  %v15513_v15 = vpop.f32.mrb[28].mxu1 }
 0x25f   : > { %v5326_v25 = vrot.slane %v5324_v51, 4  ;;  %v5321_v30 = vrot.slane %v5320_v8, 4  ;;  %v5334_v22 = vor.u32 %v5333_v13, %v5330_v20  ;;  %v18194_v17 = vshrl.u32 %v14392_v9, 16  ;;  %v15523_v59 = vpop.f32.mrb[29].mxu1 }
 0x260   : > { %v18195_v62 = vshll.u32 %v14396_v6, 16  ;;  %v3343_v18 = vsel %vm3288_vm0, %v11092_v50, %v3085_v42  ;;  %v1180_v39 = vor.u32 %v1179_v40, %v1176_v46  ;;  %v5337_v16 = vshrl.u32 %v12841_v23, 16  ;;  %v15521_v40 = vpop.f32.mrb[29].mxu0 }
 0x261   : > { %v1189_v2 = vrot.slane %v18194_v17, 4  ;;  %v5340_v35 = vshll.u32 %v12841_v23, 16  ;;  %7185 = vmatprep.mubr.bf16.mxu1 %v3343_v18  ;;  %v5325_v8 = vsel %vm13492_vm13, %v5321_v30, %v5324_v51  ;;  %v5335_v9 = vsel %vm13492_vm13, %v5326_v25, %v5334_v22  ;;  %v15525_v50 = vpop.f32.mrb[30].mxu0  ;;  %v15527_v18 = vpop.f32.mrb[30].mxu1  ;;  %v1458_v23 = vld [vmem:[#allocation2 + $0x38] sm:$0x3] }
 0x262   : > { %v1195_v24 = vrot.slane %v18195_v62, 5  ;;  %v18196_v37 = vshrl.u32 %v15075_v36, 16  ;;  %v11276_v47 = vcombine.low %v5325_v8, %v5335_v9  ;;  %v1181_v42 = vrot.slane %v1180_v39, 4  ;;  %18197 = vst [vmem:[#allocation127_spill] sm:$0xff] %v15527_v18  ;;  %v15531_v17 = vpop.f32.mrb[31].mxu0 }
 0x263   : > { %v1190_v6 = vor.u32 %v1189_v2, %v1185_v12  ;;  %v5339_v20 = vrot.slane %v5337_v16, 5  ;;  %v5342_v13 = vrot.slane %v5340_v35, 6  ;;  %v18198_v51 = vshll.u32 %v15075_v36, 16  ;;  %18199 = vst [vmem:[#allocation128_spill] sm:$0xff] %v15531_v17  ;;  %v15533_v2 = vpop.f32.mrb[31].mxu1 }
 0x264   : > { %v5345_v11 = vrot.slane %v18196_v37, 5  ;;  %v5351_v25 = vshrl.u32 %v5150_v56, 16  ;;  %v5354_v46 = vshll.u32 %v5150_v56, 16  ;;  %18200 = vst [vmem:[#allocation129_spill] sm:$0xff] %v15533_v2  ;;  %12431 = vmatmul.mubr.bf16.gmra.mrb[92].mxu0 %v11276_v47  ;;  %v1186_v39 = vsel %vm13470_vm12, %v1181_v42, %v1185_v12  ;;  %v15545_v42 = vpop.permute.xlu0 %3254 }
 0x265   : > { %v1191_v30 = vrot.slane %v1190_v6, 4  ;;  %v5346_v22 = vrot.slane %v18198_v51, 6  ;;  %v5343_v62 = vor.u32 %v5342_v13, %v5339_v20  ;;  %v18201_v16 = vshrl.u32 %v14517_v55, 16  ;;  %18204 = vst [vmem:[#allocation130_spill] sm:$0xff] %v15545_v42  ;;  %v15547_v20 = vpop.permute.xlu1 %3174  ;;  %v2318_v42 = vld [vmem:[#allocation2 + $0x18] sm:$0xf] }
 0x266   : > { %v18202_v8 = vshll.u32 %v14517_v55, 16  ;;  %v5353_v6 = vrot.slane %v5351_v25, 5  ;;  %v5356_v37 = vrot.slane %v5354_v46, 6  ;;  %v18203_v18 = vshrl.u32 %v14511_v14, 16  ;;  %v1080_v25 = vld [vmem:[#allocation2 + $0x30] sm:$0xf] }
 0x267   : > { %v1562_v35 = vrot.slane %v18201_v16, 5  ;;  %v1196_v36 = vsel %vm13470_vm12, %v1191_v30, %v1195_v24  ;;  %v5347_v56 = vor.u32 %v5346_v22, %v5345_v11  ;;  %v5344_v2 = vrot.slane %v5343_v62, 4  ;;  %v15554_v46 = vpop.f32.mrb[32].mxu0 }
 0x268   : > { %v1565_v9 = vrot.slane %v18202_v8, 6  ;;  %v11072_v51 = vcombine.low %v1186_v39, %v1196_v36  ;;  %v1568_v12 = vrot.slane %v18203_v18, 5  ;;  %v5357_v16 = vor.u32 %v5356_v37, %v5353_v6  ;;  %18206 = vst [vmem:[#allocation131_spill] sm:$0xff] %v15554_v46  ;;  %v15556_v18 = vpop.f32.mrb[32].mxu1 }
 0x269   : > { %v5349_v13 = vrot.slane %v5347_v56, 4  ;;  %v18205_v55 = vshll.u32 %v14511_v14, 16  ;;  %v1574_v17 = vshrl.u32 %v1458_v23, 16  ;;  %v5348_v11 = vsel %vm13492_vm13, %v5344_v2, %v5347_v56  ;;  %18207 = vst [vmem:[#allocation132_spill] sm:$0xff] %v15556_v18  ;;  %v15563_v6 = vpop.f32.mrb[33].mxu1 }
 0x26a   : > { %v1566_v47 = vor.u32 %v1565_v9, %v1562_v35  ;;  %v3303_v24 = vsel %vm3288_vm0, %v11072_v51, %v3005_v54  ;;  %v1577_v22 = vshll.u32 %v1458_v23, 16  ;;  %v5151_v9 = vld [vmem:[#allocation3 + $0x8c] sm:$0x3]  ;;  %v5360_v36 = vshrl.u32 %v15155_v33, 16  ;;  %v15561_v54 = vpop.f32.mrb[33].mxu0  ;;  %18209 = vst [vmem:[#allocation134_spill] sm:$0xff] %v15563_v6 }
 0x26b   : > { %v1569_v8 = vrot.slane %v18205_v55, 6  ;;  %7186 = vmatmul.mubr.bf16.gmra.mrb[92].mxu1 %v3303_v24  ;;  %v5358_v39 = vsel %vm13492_vm13, %v5349_v13, %v5357_v16  ;;  %v1576_v35 = vrot.slane %v1574_v17, 5  ;;  %18208 = vst [vmem:[#allocation133_spill] sm:$0xff] %v15561_v54  ;;  %v5363_v56 = vshll.u32 %v15155_v33, 16  ;;  %v15570_v55 = vpop.f32.mrb[34].mxu1 }
 0x26c   : > { %v1567_v30 = vrot.slane %v1566_v47, 4  ;;  %v11277_v2 = vcombine.low %v5348_v11, %v5358_v39  ;;  %v1579_v23 = vrot.slane %v1577_v22, 6  ;;  %v18210_v37 = vshrl.u32 %v15173_v38, 16  ;;  %v15568_v47 = vpop.f32.mrb[34].mxu0  ;;  %18212 = vst [vmem:[#allocation136_spill] sm:$0xff] %v15570_v55  ;;  %v15578_v11 = vpop.f32.mrb[35].mxu1 }
 0x26d   : > { %v1570_v62 = vor.u32 %v1569_v8, %v1568_v12  ;;  %18211 = vst [vmem:[#allocation135_spill] sm:$0xff] %v15568_v47  ;;  %v5362_v13 = vrot.slane %v5360_v36, 5  ;;  %v18213_v16 = vshll.u32 %v15173_v38, 16  ;;  %v15576_v24 = vpop.f32.mrb[35].mxu0  ;;  %18215 = vst [vmem:[#allocation138_spill] sm:$0xff] %v15578_v11  ;;  %v5365_v22 = vrot.slane %v5363_v56, 6  ;;  %v3007_v11 = vpop.permute.xlu1 %3006 }
 0x26e   : > { %v5368_v51 = vrot.slane %v18210_v37, 5  ;;  %18214 = vst [vmem:[#allocation137_spill] sm:$0xff] %v15576_v24  ;;  %12434 = vmatprep.mubr.bf16.mxu0 %v11277_v2  ;;  %v1580_v33 = vor.u32 %v1579_v23, %v1576_v35  ;;  %v5374_v39 = vshrl.u32 %v5151_v9, 16  ;;  %v5377_v37 = vshll.u32 %v5151_v9, 16  ;;  %v15588_v46 = vpop.f32.mrb[36].mxu0 }
 0x26f   : > { %v1571_v17 = vsel %vm13492_vm13, %v1567_v30, %v1570_v62  ;;  %v1572_v12 = vrot.slane %v1570_v62, 4  ;;  %v5369_v8 = vrot.slane %v18213_v16, 6  ;;  %v1198_v6 = vshrl.u32 %v1080_v25, 16  ;;  %v3087_v62 = vpop.permute.xlu0 %3086  ;;  %18219 = vst [vmem:[#allocation139_spill] sm:$0xff] %v15588_v46 }
 0x270   : > { %v1201_v55 = vshll.u32 %v1080_v25, 16  ;;  %v18216_v18 = vshll.u32 %v14511_v14, 16  ;;  %v5366_v36 = vor.u32 %v5365_v22, %v5362_v13  ;;  %v5376_v16 = vrot.slane %v5374_v39, 5  ;;  %v15593_v39 = vpop.f32.mrb[37].mxu0 }
 0x271   : > { %v5370_v47 = vor.u32 %v5369_v8, %v5368_v51  ;;  %v1581_v38 = vsel %vm13492_vm13, %v1572_v12, %v1580_v33  ;;  %v5379_v24 = vrot.slane %v5377_v37, 6  ;;  %v1200_v23 = vrot.slane %v1198_v6, 4  ;;  %v15590_v12 = vpop.f32.mrb[36].mxu1  ;;  %18221 = vst [vmem:[#allocation141_spill] sm:$0xff] %v15593_v39  ;;  %v18254_v39 = vld [vmem:[#allocation30_spill] sm:$0xff] }
 0x272   : > { %v1209_v30 = vrot.slane %v18216_v18, 5  ;;  %v11093_v2 = vcombine.low %v1571_v17, %v1581_v38  ;;  %v1203_v56 = vrot.slane %v1201_v55, 5  ;;  %v5367_v9 = vrot.slane %v5366_v36, 4  ;;  %18220 = vst [vmem:[#allocation140_spill] sm:$0xff] %v15590_v12  ;;  %v15595_v6 = vpop.f32.mrb[37].mxu1 }
 0x273   : > { %v5372_v35 = vrot.slane %v5370_v47, 4  ;;  %v5380_v51 = vor.u32 %v5379_v24, %v5376_v16  ;;  %v18217_v25 = vshrl.u32 %v14511_v14, 16  ;;  %v18218_v18 = vshll.u32 %v14519_v48, 16  ;;  %18222 = vst [vmem:[#allocation142_spill] sm:$0xff] %v15595_v6  ;;  %v1459_v38 = vld [vmem:[#allocation2 + $0x44] sm:$0x3] }
 0x274   : > { %v3347_v13 = vsel %vm3288_vm0, %v11093_v2, %v3087_v62  ;;  %v1204_v33 = vor.u32 %v1203_v56, %v1200_v23  ;;  %v2349_v22 = vshrl.u32 %v2318_v42, 16  ;;  %v2352_v17 = vshll.u32 %v2318_v42, 16  ;;  %v15603_v62 = vpop.f32.mrb[38].mxu0  ;;  %v15605_v36 = vpop.f32.mrb[38].mxu1 }
 0x275   : > { %v1213_v8 = vrot.slane %v18217_v25, 4  ;;  %v1219_v54 = vrot.slane %v18218_v18, 5  ;;  %7193 = vmatprep.mubr.bf16.mxu1 %v3347_v13  ;;  %v5371_v14 = vsel %vm13492_vm13, %v5367_v9, %v5370_v47  ;;  %v5381_v48 = vsel %vm13492_vm13, %v5372_v35, %v5380_v51  ;;  %18224 = vst [vmem:[#allocation143_spill] sm:$0xff] %v15603_v62  ;;  %18225 = vst [vmem:[#allocation144_spill] sm:$0xff] %v15605_v36  ;;  %v15607_v56 = vpop.f32.mrb[39].mxu0  ;;  %v15609_v25 = vpop.f32.mrb[39].mxu1 }
 0x276   : > { %v18223_v24 = vshll.u32 %v13662_v28, 16  ;;  %v11278_v42 = vcombine.low %v5371_v14, %v5381_v48  ;;  %v1205_v16 = vrot.slane %v1204_v33, 4  ;;  %v2351_v2 = vrot.slane %v2349_v22, 4  ;;  %18226 = vst [vmem:[#allocation145_spill] sm:$0xff] %v15607_v56  ;;  %18227 = vst [vmem:[#allocation146_spill] sm:$0xff] %v15609_v25  ;;  %v18228_v9 = vld [vmem:[#allocation26_spill] sm:$0xff] }
 0x277   : > { %v1214_v55 = vor.u32 %v1213_v8, %v1209_v30  ;;  %v2354_v23 = vrot.slane %v2352_v17, 5  ;;  %v18229_v51 = vld [vmem:[#allocation67_spill] sm:$0xff]  ;;  %v18232_v22 = vld [vmem:[#allocation65_spill] sm:$0xff]  ;;  %v1597_v56 = vshrl.u32 %v1459_v38, 16  ;;  %v15631_v12 = vpop.f32.mrb[40].mxu0 }
 0x278   : > { %v2360_v37 = vrot.slane %v18223_v24, 5  ;;  %v18230_v8 = vshrl.u32 %v18229_v51, 16  ;;  %v18231_v18 = vshll.u32 %v18229_v51, 16  ;;  %12435 = vmatmul.mubr.bf16.gmra.mrb[96].mxu0 %v11278_v42  ;;  %v1210_v14 = vsel %vm13470_vm12, %v1205_v16, %v1209_v30  ;;  %v15626_v42 = vpop.permute.xlu1 %3176  ;;  %18236 = vst [vmem:[#allocation26_spill] sm:$0xff] %v15631_v12 }
 0x279   : > { %v1215_v47 = vrot.slane %v1214_v55, 4  ;;  %v2355_v33 = vor.u32 %v2354_v23, %v2351_v2  ;;  %v18233_v17 = vshrl.u32 %v18232_v22, 16  ;;  %v18234_v24 = vshll.u32 %v18232_v22, 16  ;;  %v1083_v55 = vld [vmem:[#allocation2 + $0x3c] sm:$0xf]  ;;  %v18235_v23 = vld [vmem:[#allocation24_spill] sm:$0xff] }
 0x27a   : > { %v2365_v35 = vor.u32 %v18228_v9, %v2360_v37  ;;  %v1585_v28 = vrot.slane %v18230_v8, 5  ;;  %v1588_v13 = vrot.slane %v18231_v18, 6  ;;  %v15624_v18 = vpop.permute.xlu0 %3256  ;;  %v1600_v2 = vshll.u32 %v1459_v38, 16  ;;  %v15638_v38 = vpop.f32.mrb[41].mxu0 }
 0x27b   : > { %v1591_v48 = vrot.slane %v18233_v17, 5  ;;  %v1592_v25 = vrot.slane %v18234_v24, 6  ;;  %v1220_v9 = vsel %vm13470_vm12, %v1215_v47, %v1219_v54  ;;  %v2356_v30 = vrot.slane %v2355_v33, 4  ;;  %v15633_v54 = vpop.f32.mrb[40].mxu1  ;;  %18238 = vst [vmem:[#allocation65_spill] sm:$0xff] %v15638_v38 }
 0x27c   : > { %v2366_v36 = vrot.slane %v2365_v35, 4  ;;  %v1589_v8 = vor.u32 %v1588_v13, %v1585_v28  ;;  %v11073_v51 = vcombine.low %v1210_v14, %v1220_v9  ;;  %v1599_v62 = vrot.slane %v1597_v56, 5  ;;  %18237 = vst [vmem:[#allocation67_spill] sm:$0xff] %v15633_v54  ;;  %v15640_v14 = vpop.f32.mrb[41].mxu1  ;;  %v15644_v9 = vpop.f32.mrb[42].mxu0 }
 0x27d   : > { %v1593_v16 = vor.u32 %v1592_v25, %v1591_v48  ;;  %v1222_v6 = vshrl.u32 %v1083_v55, 16  ;;  %v2361_v35 = vsel %vm13470_vm12, %v2356_v30, %v2360_v37  ;;  %v1602_v13 = vrot.slane %v1600_v2, 6  ;;  %v2321_v25 = vld [vmem:[#allocation2 + $0x24] sm:$0xf]  ;;  %18239 = vst [vmem:[#allocation24_spill] sm:$0xff] %v15640_v14  ;;  %18240 = vst [vmem:[#allocation147_spill] sm:$0xff] %v15644_v9  ;;  %v3009_v12 = vpop.permute.xlu1 %3008 }
 0x27e   : > { %v2371_v17 = vsel %vm13470_vm12, %v2366_v36, %v18235_v23  ;;  %v1590_v24 = vrot.slane %v1589_v8, 4  ;;  %v3307_v47 = vsel %vm3288_vm0, %v11073_v51, %v3007_v11  ;;  %v1225_v48 = vshll.u32 %v1083_v55, 16  ;;  %v15646_v11 = vpop.f32.mrb[42].mxu1  ;;  %v18244_v23 = vld [vmem:[#allocation66_spill] sm:$0xff] }
 0x27f   : > { %v1595_v28 = vrot.slane %v1593_v16, 4  ;;  %7194 = vmatmul.mubr.bf16.gmra.mrb[96].mxu1 %v3307_v47  ;;  %v11129_v36 = vcombine.low %v2361_v35, %v2371_v17  ;;  %v1224_v33 = vrot.slane %v1222_v6, 4  ;;  %18241 = vst [vmem:[#allocation148_spill] sm:$0xff] %v15646_v11  ;;  %v1603_v8 = vor.u32 %v1602_v13, %v1599_v62  ;;  %v15654_v17 = vpop.f32.mrb[43].mxu0  ;;  %v15656_v35 = vpop.f32.mrb[43].mxu1  ;;  %v18248_v6 = vld [vmem:[#allocation81_spill] sm:$0xff] }
 0x280   : > { %v1594_v56 = vsel %vm13492_vm13, %v1590_v24, %v1593_v16  ;;  %v18242_v37 = vshll.u32 %v18232_v22, 16  ;;  %v18243_v30 = vshrl.u32 %v18232_v22, 16  ;;  %v18245_v14 = vshll.u32 %v18244_v23, 16  ;;  %18246 = vst [vmem:[#allocation66_spill] sm:$0xff] %v15654_v17  ;;  %18247 = vst [vmem:[#allocation149_spill] sm:$0xff] %v15656_v35  ;;  %v12808_v62 = vld [vmem:[%s17819_s6 + $0x108] sm:$0xff]   ;;  %v3089_v22 = vpop.permute.xlu0 %3088 }
 0x281   : > { %v3411_v55 = vsel %vm3288_vm0, %v11129_v36, %v18248_v6  ;;  %v1227_v16 = vrot.slane %v1225_v48, 5  ;;  %v2373_v24 = vshrl.u32 %v2321_v25, 16  ;;  %v2376_v11 = vshll.u32 %v2321_v25, 16  ;;  %v18251_v35 = vld [vmem:[#allocation69_spill] sm:$0xff]  ;;  %v18253_v6 = vld [vmem:[#allocation83_spill] sm:$0xff] }
 0x282   : > { %v1233_v51 = vrot.slane %v18242_v37, 5  ;;  %v1237_v2 = vrot.slane %v18243_v30, 4  ;;  %v1243_v47 = vrot.slane %v18245_v14, 5  ;;  %7274 = vmatprep.mubr.bf16.mxu0 %v3411_v55  ;;  %v1604_v13 = vsel %vm13492_vm13, %v1595_v28, %v1603_v8  ;;  %v18249_v37 = vld [vmem:[#allocation28_spill] sm:$0xff]  ;;  %v1460_v38 = vld [vmem:[#allocation2 + $0x50] sm:$0x3] }
 0x283   : > { %v18250_v30 = vshll.u32 %v18249_v37, 16  ;;  %v18252_v54 = vshrl.u32 %v18251_v35, 16  ;;  %v11094_v36 = vcombine.low %v1594_v56, %v1604_v13  ;;  %v1228_v48 = vor.u32 %v1227_v16, %v1224_v33  ;;  %7275 = vmatmul.mubr.bf16.vlgmr.msra.gmra.mrb[100].mxu0 %v18253_v6  ;;  %v18256_v37 = vld [vmem:[#allocation68_spill] sm:$0xff] }
 0x284   : > { %v1238_v14 = vor.u32 %v1237_v2, %v1233_v51  ;;  %v2375_v25 = vrot.slane %v2373_v24, 4  ;;  %v2378_v9 = vrot.slane %v2376_v11, 5  ;;  %12439 = vmatpush3.bf16.msra.mxu0 %v15441_v3  ;;  %v18255_v8 = vshll.u32 %v18251_v35, 16  ;;  %v12809_v3 = vld [vmem:[%s17819_s6 + $0x110] sm:$0xff]   ;;  %v15682_v24 = vpop.f32.mrb[44].mxu0 }
 0x285   : > { %v2384_v23 = vrot.slane %v18250_v30, 5  ;;  %v1608_v17 = vrot.slane %v18252_v54, 5  ;;  %v18257_v30 = vshrl.u32 %v18256_v37, 16  ;;  %v3351_v54 = vsel %vm3288_vm0, %v11094_v36, %v3089_v22  ;;  %12440 = vmatprep.subr.bf16.mxu0 %v12808_v62  ;;  %v15688_v36 = vpop.f32.mrb[45].mxu0 }
 0x286   : > { %v1239_v55 = vrot.slane %v1238_v14, 4  ;;  %v1611_v2 = vrot.slane %v18255_v8, 6  ;;  %v1229_v56 = vrot.slane %v1228_v48, 4  ;;  %v2379_v33 = vor.u32 %v2378_v9, %v2375_v25  ;;  %7201 = vmatprep.mubr.bf16.mxu1 %v3351_v54  ;;  %v1086_v9 = vld [vmem:[#allocation2 + $0x48] sm:$0xf]  ;;  %18260 = vst [vmem:[#allocation28_spill] sm:$0xff] %v15688_v36 }
 0x287   : > { %v2389_v28 = vor.u32 %v18254_v39, %v2384_v23  ;;  %v1614_v46 = vrot.slane %v18257_v30, 5  ;;  %v18258_v16 = vshll.u32 %v18256_v37, 16  ;;  %v15684_v39 = vpop.f32.mrb[44].mxu1  ;;  %v1620_v14 = vshrl.u32 %v1460_v38, 16 }
 0x288   : > { %18259 = vst [vmem:[#allocation81_spill] sm:$0xff] %v15684_v39  ;;  %v1244_v35 = vsel %vm13470_vm12, %v1239_v55, %v1243_v47  ;;  %v1612_v22 = vor.u32 %v1611_v2, %v1608_v17  ;;  %v15690_v48 = vpop.f32.mrb[45].mxu1  ;;  %v1234_v6 = vsel %vm13470_vm12, %v1229_v56, %v1233_v51  ;;  %v2380_v25 = vrot.slane %v2379_v33, 4  ;;  %v18264_v47 = vld [vmem:[#allocation29_spill] sm:$0xff]  ;;  %12441 = vmatpush3.bf16.msra.mxu0 %v12808_v62  ;;  %v12810_v33 = vld [vmem:[%s17819_s6 + $0x118] sm:$0xff]  }
 0x289   : > { %v1615_v11 = vrot.slane %v18258_v16, 6  ;;  %v2390_v13 = vrot.slane %v2389_v28, 4  ;;  %18261 = vst [vmem:[#allocation69_spill] sm:$0xff] %v15690_v48  ;;  %v1623_v30 = vshll.u32 %v1460_v38, 16  ;;  %v15694_v16 = vpop.f32.mrb[46].mxu0  ;;  %v15696_v54 = vpop.f32.mrb[46].mxu1  ;;  %v11074_v39 = vcombine.low %v1234_v6, %v1244_v35  ;;  %12442 = vmatprep.subr.bf16.mxu0 %v12809_v3 }
 0x28a   : > { %18262 = vst [vmem:[#allocation83_spill] sm:$0xff] %v15694_v16  ;;  %18263 = vst [vmem:[#allocation30_spill] sm:$0xff] %v15696_v54  ;;  %v1613_v55 = vrot.slane %v1612_v22, 4  ;;  %v1622_v28 = vrot.slane %v1620_v14, 5  ;;  %v15701_v2 = vpop.f32.mrb[47].mxu0  ;;  %v15703_v48 = vpop.f32.mrb[47].mxu1 }
 0x28b   : > { %v1616_v8 = vor.u32 %v1615_v11, %v1614_v46  ;;  %v2395_v17 = vsel %vm13470_vm12, %v2390_v13, %v18264_v47  ;;  %18265 = vst [vmem:[#allocation68_spill] sm:$0xff] %v15701_v2  ;;  %18266 = vst [vmem:[#allocation29_spill] sm:$0xff] %v15703_v48  ;;  %v2385_v46 = vsel %vm13470_vm12, %v2380_v25, %v2384_v23  ;;  %v1625_v51 = vrot.slane %v1623_v30, 6  ;;  %v18269_v47 = vld [vmem:[#allocation80_spill] sm:$0xff]  ;;  %v18270_v2 = vld [vmem:[#allocation70_spill] sm:$0xff] }
 0x28c   : > { %v1246_v56 = vshrl.u32 %v1086_v9, 16  ;;  %v3311_v11 = vsel %vm3288_vm0, %v11074_v39, %v3009_v12  ;;  %v11130_v35 = vcombine.low %v2385_v46, %v2395_v17  ;;  %v1249_v13 = vshll.u32 %v1086_v9, 16  ;;  %v12842_v17 = vld [vmem:[#allocation2 + $0x18] sm:$0xe]  ;;  %12443 = vmatpush3.bf16.msra.mxu0 %v12809_v3  ;;  %v3091_v9 = vpop.permute.xlu0 %3090  ;;  %v18273_v3 = vld [vmem:[#allocation86_spill] sm:$0xff] }
 0x28d   : > { %v1618_v38 = vrot.slane %v1616_v8, 4  ;;  %v1617_v62 = vsel %vm13492_vm13, %v1613_v55, %v1616_v8  ;;  %7202 = vmatmul.mubr.bf16.gmra.mrb[100].mxu1 %v3311_v11  ;;  %v1626_v22 = vor.u32 %v1625_v51, %v1622_v28  ;;  %v18267_v23 = vshll.u32 %v18256_v37, 16  ;;  %v12843_v28 = vld [vmem:[#allocation2 + $0x1c] sm:$0xf]  ;;  %12444 = vmatprep.subr.bf16.mxu0 %v12810_v33  ;;  %v15723_v11 = vpop.f32.mrb[48].mxu0 }
 0x28e   : > { %v1248_v14 = vrot.slane %v1246_v56, 4  ;;  %v18268_v25 = vshrl.u32 %v18256_v37, 16  ;;  %v3415_v48 = vsel %vm3288_vm0, %v11130_v35, %v18269_v47  ;;  %v1251_v54 = vrot.slane %v1249_v13, 5  ;;  %v12844_v37 = vld [vmem:[#allocation2 + $0x20] sm:$0x1]  ;;  %18272 = vst [vmem:[#allocation80_spill] sm:$0xff] %v15723_v11 }
 0x28f   : > { %v1257_v6 = vrot.slane %v18267_v23, 5  ;;  %v18271_v12 = vshll.u32 %v18270_v2, 16  ;;  %v11050_v46 = vrot.slane %v12842_v17, 9  ;;  %7282 = vmatprep.mubr.bf16.mxu0 %v3415_v48  ;;  %v1627_v8 = vsel %vm13492_vm13, %v1618_v38, %v1626_v22  ;;  %v15731_v23 = vpop.f32.mrb[49].mxu0  ;;  %v18275_v47 = vld [vmem:[#allocation72_spill] sm:$0xff] }
 0x290   : > { %v1261_v30 = vrot.slane %v18268_v25, 4  ;;  %v2017_v51 = vrot.slane %v12843_v28, 5  ;;  %v2020_v56 = vrot.slane %v12844_v37, 5  ;;  %v11095_v35 = vcombine.low %v1617_v62, %v1627_v8  ;;  %18274 = vst [vmem:[#allocation70_spill] sm:$0xff] %v15731_v23  ;;  %v15737_v62 = vpop.f32.mrb[50].mxu0  ;;  %12445 = vmatpush3.bf16.msra.mxu0 %v12810_v33 }
 0x291   : > { %v1267_v39 = vrot.slane %v18271_v12, 5  ;;  %v1252_v13 = vor.u32 %v1251_v54, %v1248_v14  ;;  %v15727_v2 = vadd.f32 %v15177_v0, %v15164_v45  ;;  %v11723_v48 = vadd.f32 %v15129_v63, %v18273_v3  ;;  %18277 = vst [vmem:[#allocation86_spill] sm:$0xff] %v15737_v62  ;;  %v2324_v8 = vld [vmem:[#allocation2 + $0x30] sm:$0xf] }
 0x292   : > { %v1262_v55 = vor.u32 %v1261_v30, %v1257_v6  ;;  %v2018_v22 = vsel %vm13451_vm11, %v11050_v46, %v2017_v51  ;;  %v2019_v25 = vrot.slane %v2017_v51, 4  ;;  %v1461_v30 = vld [vmem:[#allocation2 + $0x5c] sm:$0x3]  ;;  %v18276_v12 = vshrl.u32 %v18275_v47, 16 }
 0x293   : > { %v3355_v54 = vsel %vm3288_vm0, %v11095_v35, %v3091_v9  ;;  %v1253_v45 = vrot.slane %v1252_v13, 4  ;;  %v15741_v0 = vadd.f32 %v11723_v48, %v15181_v49  ;;  %v18278_v63 = vshll.u32 %v18275_v47, 16  ;;  %v18280_v51 = vld [vmem:[#allocation71_spill] sm:$0xff]  ;;  %v3011_v13 = vpop.permute.xlu1 %3010 }
 0x294   : > { %v1263_v38 = vrot.slane %v1262_v55, 4  ;;  %v1631_v17 = vrot.slane %v18276_v12, 5  ;;  %v15745_v55 = vpop.f32.mrb[51].mxu0  ;;  %7209 = vmatprep.mubr.bf16.mxu1 %v3355_v54  ;;  %v2021_v28 = vsel %vm13451_vm11, %v2019_v25, %v2020_v56  ;;  %v18281_v9 = vshrl.u32 %v18280_v51, 16  ;;  %v18284_v56 = vld [vmem:[#allocation82_spill] sm:$0xff] }
 0x295   : > { %v1634_v14 = vrot.slane %v18278_v63, 6  ;;  %18279 = vst [vmem:[#allocation72_spill] sm:$0xff] %v15745_v55  ;;  %v18282_v49 = vshll.u32 %v18280_v51, 16  ;;  %v1258_v3 = vsel %vm13470_vm12, %v1253_v45, %v1257_v6  ;;  %v11110_v33 = vcombine.low %v2018_v22, %v2021_v28  ;;  %v15768_v28 = vld [vmem:[#allocation2 + $0x34] sm:$0xf] }
 0x296   : > { %v1268_v46 = vsel %vm13470_vm12, %v1263_v38, %v1267_v39  ;;  %v1637_v37 = vrot.slane %v18281_v9, 5  ;;  %v1643_v47 = vshrl.u32 %v1461_v30, 16  ;;  %v1646_v63 = vshll.u32 %v1461_v30, 16  ;;  %v15757_v38 = vpop.f32.mrb[48].mxu1 }
 0x297   : > { %v1638_v35 = vrot.slane %v18282_v49, 6  ;;  %v1635_v48 = vor.u32 %v1634_v14, %v1631_v17  ;;  %v11075_v12 = vcombine.low %v1258_v3, %v1268_v46  ;;  %v2397_v39 = vshrl.u32 %v2324_v8, 16  ;;  %18283 = vst [vmem:[#allocation71_spill] sm:$0xff] %v15757_v38  ;;  %v1089_v49 = vld [vmem:[#allocation2 + $0x54] sm:$0xf]  ;;  %v15761_v23 = vpop.f32.mrb[49].mxu1 }
 0x298   : > { %v3375_v25 = vsel %vm3288_vm0, %v11110_v33, %v18284_v56  ;;  %v1645_v55 = vrot.slane %v1643_v47, 5  ;;  %v2400_v62 = vshll.u32 %v2324_v8, 16  ;;  %18285 = vst [vmem:[#allocation82_spill] sm:$0xff] %v15761_v23  ;;  %v1648_v17 = vrot.slane %v1646_v63, 6  ;;  %v15764_v14 = vpop.f32.mrb[50].mxu1 }
 0x299   : > { %v1639_v54 = vor.u32 %v1638_v35, %v1637_v37  ;;  %v1636_v9 = vrot.slane %v1635_v48, 4  ;;  %v3315_v6 = vsel %vm3288_vm0, %v11075_v12, %v3011_v13  ;;  %7283 = vmatmul.mubr.bf16.gmra.mrb[104].mxu0 %v3375_v25  ;;  %v2399_v45 = vrot.slane %v2397_v39, 4  ;;  %18286 = vst [vmem:[#allocation150_spill] sm:$0xff] %v15764_v14  ;;  %v18287_v37 = vld [vmem:[#allocation34_spill] sm:$0xff]  ;;  %v15773_v33 = vpop.f32.mrb[51].mxu1  ;;  %v18290_v48 = vld [vmem:[#allocation33_spill] sm:$0xff]  ;;  %v3093_v14 = vpop.permute.xlu0 %3092 }
 0x29a   : > { %7210 = vmatmul.mubr.bf16.gmra.mrb[104].mxu1 %v3315_v6  ;;  %v2402_v46 = vrot.slane %v2400_v62, 5  ;;  %v17956_v8 = vshll.u32 %v15768_v28, 16  ;;  %v18288_v35 = vshrl.u32 %v18287_v37, 16  ;;  %18289 = vst [vmem:[#allocation34_spill] sm:$0xff] %v15773_v33  ;;  %v1649_v13 = vor.u32 %v1648_v17, %v1645_v55  ;;  %v12846_v38 = vld [vmem:[#allocation2 + $0x24] sm:$0xe] }
 0x29b   : > { %v1641_v22 = vrot.slane %v1639_v54, 4  ;;  %v1640_v30 = vsel %vm13492_vm13, %v1636_v9, %v1639_v54  ;;  %v18291_v47 = vshll.u32 %v18290_v48, 16  ;;  %v1270_v63 = vshrl.u32 %v1089_v49, 16  ;;  %v18294_v48 = vld [vmem:[#allocation73_spill] sm:$0xff] }
 0x29c   : > { %v2412_v3 = vrot.slane %v18288_v35, 4  ;;  %v1273_v39 = vshll.u32 %v1089_v49, 16  ;;  %v2403_v56 = vor.u32 %v2402_v46, %v2399_v45  ;;  %v2408_v54 = vrot.slane %v17956_v8, 5 }
 0x29d   : > { %v2418_v12 = vrot.slane %v18291_v47, 5  ;;  %v18292_v62 = vshll.u32 %v18280_v51, 16  ;;  %v18293_v9 = vshrl.u32 %v18280_v51, 16  ;;  %v1650_v35 = vsel %vm13492_vm13, %v1641_v22, %v1649_v13  ;;  %v12848_v51 = vld [vmem:[#allocation2 + $0x2c] sm:$0x1] }
 0x29e   : > { %v1272_v55 = vrot.slane %v1270_v63, 4  ;;  %v1275_v17 = vrot.slane %v1273_v39, 5  ;;  %v18295_v47 = vshll.u32 %v18294_v48, 16  ;;  %v11096_v49 = vcombine.low %v1640_v30, %v1650_v35 }
 0x29f   : > { %v1281_v25 = vrot.slane %v18292_v62, 5  ;;  %v1285_v6 = vrot.slane %v18293_v9, 4  ;;  %v2404_v45 = vrot.slane %v2403_v56, 4  ;;  %v2413_v46 = vor.u32 %v2412_v3, %v2408_v54  ;;  %v12847_v62 = vld [vmem:[#allocation2 + $0x28] sm:$0xf]  ;;  %v18296_v56 = vld [vmem:[#allocation91_spill] sm:$0xff] }
 0x2a0   : > { %v1291_v33 = vrot.slane %v18295_v47, 5  ;;  %v1276_v8 = vor.u32 %v1275_v17, %v1272_v55  ;;  %v11051_v11 = vrot.slane %v12846_v38, 9  ;;  %v2024_v16 = vrot.slane %v12847_v62, 5  ;;  %v18299_v55 = vld [vmem:[#allocation92_spill] sm:$0xff] }
 0x2a1   : > { %v1286_v23 = vor.u32 %v1285_v6, %v1281_v25  ;;  %v2027_v9 = vrot.slane %v12848_v51, 5  ;;  %v3359_v36 = vsel %vm3288_vm0, %v11096_v49, %v3093_v14  ;;  %v2409_v22 = vsel %vm13470_vm12, %v2404_v45, %v2408_v54  ;;  %v15794_v6 = vpop.f32.mrb[52].mxu0  ;;  %v18298_v54 = vld [vmem:[#allocation89_spill] sm:$0xff]  ;;  %v18304_v49 = vld [vmem:[#allocation96_spill] sm:$0xff] }
 0x2a2   : > { %v2414_v13 = vrot.slane %v2413_v46, 4  ;;  %7217 = vmatprep.mubr.bf16.mxu1 %v3359_v36  ;;  %v1277_v39 = vrot.slane %v1276_v8, 4  ;;  %v2025_v30 = vsel %vm13451_vm11, %v11051_v11, %v2024_v16  ;;  %v2026_v3 = vrot.slane %v2024_v16, 4  ;;  %18297 = vst [vmem:[#allocation33_spill] sm:$0xff] %v15794_v6  ;;  %v18300_v36 = vld [vmem:[#allocation93_spill] sm:$0xff]  ;;  %v18301_v8 = vld [vmem:[#allocation95_spill] sm:$0xff]  ;;  %v3013_v16 = vpop.permute.xlu1 %3012  ;;  %v3095_v6 = vpop.permute.xlu0 %3094 }
 0x2a3   : > { %v1287_v63 = vrot.slane %v1286_v23, 4  ;;  %v11650_v38 = vadd.f32 %v18296_v56, %v15169_v57  ;;  %v11726_v23 = vadd.f32 %v18299_v55, %v18298_v54  ;;  %v11653_v17 = vadd.f32 %v18301_v8, %v18300_v36  ;;  %v15804_v48 = vpop.f32.mrb[53].mxu0  ;;  %v18313_v36 = vld [vmem:[#allocation74_spill] sm:$0xff] }
 0x2a4   : > { %v2419_v35 = vsel %vm13470_vm12, %v2414_v13, %v2418_v12  ;;  %18302 = vst [vmem:[#allocation73_spill] sm:$0xff] %v15804_v48  ;;  %v1282_v57 = vsel %vm13470_vm12, %v1277_v39, %v1281_v25  ;;  %v2028_v47 = vsel %vm13451_vm11, %v2026_v3, %v2027_v9  ;;  %v18303_v12 = vld [vmem:[#allocation94_spill] sm:$0xff]  ;;  %v15812_v46 = vpop.f32.mrb[54].mxu0  ;;  %v18310_v25 = vld [vmem:[#allocation87_spill] sm:$0xff]  ;;  %v18314_v8 = vshrl.u32 %v18313_v36, 16 }
 0x2a5   : > { %v1292_v14 = vsel %vm13470_vm12, %v1287_v63, %v1291_v33  ;;  %v11131_v11 = vcombine.low %v2409_v22, %v2419_v35  ;;  %v11729_v45 = vadd.f32 %v18304_v49, %v18303_v12  ;;  %v1462_v33 = vld [vmem:[#allocation2 + $0x68] sm:$0x3]  ;;  %18305 = vst [vmem:[#allocation91_spill] sm:$0xff] %v15812_v46  ;;  %v11111_v51 = vcombine.low %v2025_v30, %v2028_v47  ;;  %v18307_v63 = vld [vmem:[#allocation75_spill] sm:$0xff]  ;;  %v15818_v35 = vpop.f32.mrb[55].mxu0 }
 0x2a6   : > { %v11076_v62 = vcombine.low %v1282_v57, %v1292_v14  ;;  %v15814_v13 = vadd.f32 %v11726_v23, %v11650_v38  ;;  %v18308_v56 = vshrl.u32 %v18307_v63, 16  ;;  %v2327_v22 = vld [vmem:[#allocation2 + $0x3c] sm:$0xf]  ;;  %18309 = vst [vmem:[#allocation92_spill] sm:$0xff] %v15818_v35  ;;  %v18312_v3 = vshll.u32 %v18307_v63, 16  ;;  %v18315_v38 = vld [vmem:[#allocation84_spill] sm:$0xff] }
 0x2a7   : > { %v3419_v39 = vsel %vm3288_vm0, %v11131_v11, %v18310_v25  ;;  %v15822_v9 = vadd.f32 %v11729_v45, %v11653_v17  ;;  %v1660_v14 = vrot.slane %v18314_v8, 5  ;;  %v3379_v23 = vsel %vm3288_vm0, %v11111_v51, %v18315_v38  ;;  %v1092_v63 = vld [vmem:[#allocation2 + $0x60] sm:$0xf] }
 0x2a8   : > { %18306 = vst [vmem:[#allocation89_spill] sm:$0xff] %v15814_v13  ;;  %v1654_v54 = vrot.slane %v18308_v56, 5  ;;  %v1657_v55 = vrot.slane %v18312_v3, 6  ;;  %7290 = vmatprep.mubr.bf16.mxu0 %v3419_v39  ;;  %v3319_v30 = vsel %vm3288_vm0, %v11076_v62, %v3013_v16  ;;  %v18316_v57 = vshll.u32 %v18313_v36, 16  ;;  %v15833_v3 = vld [vmem:[#allocation2 + $0x40] sm:$0xf] }
 0x2a9   : > { %18311 = vst [vmem:[#allocation93_spill] sm:$0xff] %v15822_v9  ;;  %v1666_v12 = vshrl.u32 %v1462_v33, 16  ;;  %7218 = vmatmul.mubr.bf16.gmra.mrb[108].mxu1 %v3319_v30  ;;  %7291 = vmatmul.mubr.bf16.gmra.mrb[108].mxu0 %v3379_v23  ;;  %v1669_v11 = vshll.u32 %v1462_v33, 16  ;;  %v2421_v49 = vshrl.u32 %v2327_v22, 16  ;;  %v2424_v45 = vshll.u32 %v2327_v22, 16  ;;  %v18317_v62 = vld [vmem:[#allocation38_spill] sm:$0xff] }
 0x2aa   : > { %v1661_v47 = vrot.slane %v18316_v57, 6  ;;  %v1658_v17 = vor.u32 %v1657_v55, %v1654_v54  ;;  %v17957_v16 = vshll.u32 %v15833_v3, 16  ;;  %v18318_v39 = vshrl.u32 %v18317_v62, 16  ;;  %v15838_v30 = vpop.f32.mrb[52].mxu1  ;;  %v18320_v22 = vld [vmem:[#allocation37_spill] sm:$0xff] }
 0x2ab   : > { %v1668_v25 = vrot.slane %v1666_v12, 5  ;;  %v1671_v38 = vrot.slane %v1669_v11, 6  ;;  %v2423_v57 = vrot.slane %v2421_v49, 4  ;;  %v2426_v35 = vrot.slane %v2424_v45, 5  ;;  %18319 = vst [vmem:[#allocation95_spill] sm:$0xff] %v15838_v30 }
 0x2ac   : > { %v1662_v56 = vor.u32 %v1661_v47, %v1660_v14  ;;  %v2436_v51 = vrot.slane %v18318_v39, 4  ;;  %v1659_v8 = vrot.slane %v1658_v17, 4  ;;  %v2432_v33 = vrot.slane %v17957_v16, 5  ;;  %v15844_v47 = vpop.f32.mrb[53].mxu1  ;;  %v12852_v9 = vld [vmem:[#allocation2 + $0x38] sm:$0x1] }
 0x2ad   : > { %v18321_v55 = vshll.u32 %v18320_v22, 16  ;;  %v1294_v23 = vshrl.u32 %v1092_v63, 16  ;;  %18322 = vst [vmem:[#allocation94_spill] sm:$0xff] %v15844_v47  ;;  %v1672_v39 = vor.u32 %v1671_v38, %v1668_v25  ;;  %v2427_v17 = vor.u32 %v2426_v35, %v2423_v57  ;;  %v15848_v49 = vpop.f32.mrb[54].mxu1  ;;  %v18327_v35 = vld [vmem:[#allocation76_spill] sm:$0xff] }
 0x2ae   : > { %v1664_v54 = vrot.slane %v1662_v56, 4  ;;  %v1663_v12 = vsel %vm13492_vm13, %v1659_v8, %v1662_v56  ;;  %v1297_v11 = vshll.u32 %v1092_v63, 16  ;;  %18323 = vst [vmem:[#allocation96_spill] sm:$0xff] %v15848_v49  ;;  %v2437_v45 = vor.u32 %v2436_v51, %v2432_v33 }
 0x2af   : > { %v2442_v14 = vrot.slane %v18321_v55, 5  ;;  %v1296_v30 = vrot.slane %v1294_v23, 4  ;;  %v18324_v46 = vshll.u32 %v18313_v36, 16  ;;  %v18325_v16 = vshrl.u32 %v18313_v36, 16  ;;  %v15854_v55 = vpop.f32.mrb[55].mxu1 }
 0x2b0   : > { %18326 = vst [vmem:[#allocation75_spill] sm:$0xff] %v15854_v55  ;;  %v1673_v47 = vsel %vm13492_vm13, %v1664_v54, %v1672_v39  ;;  %v2428_v56 = vrot.slane %v2427_v17, 4  ;;  %v1299_v25 = vrot.slane %v1297_v11, 5  ;;  %v18328_v63 = vshll.u32 %v18327_v35, 16  ;;  %v12850_v23 = vld [vmem:[#allocation2 + $0x30] sm:$0xe] }
 0x2b1   : > { %v1305_v48 = vrot.slane %v18324_v46, 5  ;;  %v1309_v22 = vrot.slane %v18325_v16, 4  ;;  %v11097_v38 = vcombine.low %v1663_v12, %v1673_v47  ;;  %v2438_v51 = vrot.slane %v2437_v45, 4  ;;  %v12851_v16 = vld [vmem:[#allocation2 + $0x34] sm:$0xf] }
 0x2b2   : > { %v1315_v8 = vrot.slane %v18328_v63, 5  ;;  %v11052_v49 = vrot.slane %v12850_v23, 9  ;;  %v2433_v46 = vsel %vm13470_vm12, %v2428_v56, %v2432_v33  ;;  %v1300_v36 = vor.u32 %v1299_v25, %v1296_v30  ;;  %v2330_v12 = vld [vmem:[#allocation2 + $0x48] sm:$0xf] }
 0x2b3   : > { %v1310_v57 = vor.u32 %v1309_v22, %v1305_v48  ;;  %v2031_v55 = vrot.slane %v12851_v16, 5  ;;  %v2034_v13 = vrot.slane %v12852_v9, 5  ;;  %v3363_v54 = vsel %vm3288_vm0, %v11097_v38, %v3095_v6  ;;  %v18329_v22 = vld [vmem:[#allocation90_spill] sm:$0xff]  ;;  %v15889_v38 = vld [vmem:[#allocation2 + $0x4c] sm:$0xf] }
 0x2b4   : > { %v2443_v39 = vsel %vm13470_vm12, %v2438_v51, %v2442_v14  ;;  %v11656_v47 = vadd.f32 %v15246_v41, %v15238_v31  ;;  %7225 = vmatprep.mubr.bf16.mxu1 %v3363_v54  ;;  %v1301_v45 = vrot.slane %v1300_v36, 4  ;;  %v11732_v6 = vadd.f32 %v15250_v5, %v15244_v26  ;;  %v3015_v41 = vpop.permute.xlu1 %3014  ;;  %v18330_v51 = vld [vmem:[#allocation42_spill] sm:$0xff]  ;;  %v18333_v36 = vld [vmem:[#allocation85_spill] sm:$0xff] }
 0x2b5   : > { %v1311_v17 = vrot.slane %v1310_v57, 4  ;;  %v11132_v11 = vcombine.low %v2433_v46, %v2443_v39  ;;  %v2032_v30 = vsel %vm13451_vm11, %v11052_v49, %v2031_v55  ;;  %v2033_v33 = vrot.slane %v2031_v55, 4  ;;  %v18334_v54 = vld [vmem:[#allocation41_spill] sm:$0xff] }
 0x2b6   : > { %v11659_v14 = vadd.f32 %v15256_v34, %v15252_v58  ;;  %v11735_v31 = vadd.f32 %v15267_v19, %v15254_v52  ;;  %v1306_v49 = vsel %vm13470_vm12, %v1301_v45, %v1305_v48  ;;  %v2445_v25 = vshrl.u32 %v2330_v12, 16  ;;  %v1463_v34 = vld [vmem:[#allocation2 + $0x74] sm:$0x3]  ;;  %v1095_v52 = vld [vmem:[#allocation2 + $0x6c] sm:$0xf]  ;;  %v15887_v19 = vpop.f32.mrb[56].mxu0 }
 0x2b7   : > { %v1316_v9 = vsel %vm13470_vm12, %v1311_v17, %v1315_v8  ;;  %v3423_v56 = vsel %vm3288_vm0, %v11132_v11, %v18329_v22  ;;  %v2035_v55 = vsel %vm13451_vm11, %v2033_v33, %v2034_v13  ;;  %v15883_v5 = vadd.f32 %v11732_v6, %v11656_v47  ;;  %v15894_v23 = vpop.f32.mrb[57].mxu0  ;;  %v18336_v47 = vld [vmem:[#allocation78_spill] sm:$0xff] }
 0x2b8   : > { %7298 = vmatprep.mubr.bf16.mxu0 %v3423_v56  ;;  %v11077_v35 = vcombine.low %v1306_v49, %v1316_v9  ;;  %v11112_v26 = vcombine.low %v2032_v30, %v2035_v55  ;;  %v15885_v58 = vadd.f32 %v11735_v31, %v11659_v14  ;;  %v2447_v63 = vrot.slane %v2445_v25, 4  ;;  %18332 = vst [vmem:[#allocation87_spill] sm:$0xff] %v15894_v23  ;;  %v15903_v45 = vpop.f32.mrb[58].mxu0  ;;  %v18340_v14 = vld [vmem:[#allocation77_spill] sm:$0xff] }
 0x2b9   : > { %v2448_v8 = vshll.u32 %v2330_v12, 16  ;;  %v17958_v48 = vshll.u32 %v15889_v38, 16  ;;  %v18331_v13 = vshrl.u32 %v18330_v51, 16  ;;  %v18335_v39 = vshll.u32 %v18334_v54, 16  ;;  %18338 = vst [vmem:[#allocation74_spill] sm:$0xff] %v15903_v45  ;;  %v15911_v22 = vpop.f32.mrb[59].mxu0 }
 0x2ba   : > { %v3323_v46 = vsel %vm3288_vm0, %v11077_v35, %v3015_v41  ;;  %v3383_v16 = vsel %vm3288_vm0, %v11112_v26, %v18333_v36  ;;  %v18337_v11 = vshrl.u32 %v18336_v47, 16  ;;  %v18339_v9 = vshll.u32 %v18336_v47, 16  ;;  %18342 = vst [vmem:[#allocation84_spill] sm:$0xff] %v15911_v22 }
 0x2bb   : > { %v2460_v57 = vrot.slane %v18331_v13, 4  ;;  %v2466_v17 = vrot.slane %v18335_v39, 5  ;;  %7226 = vmatmul.mubr.bf16.gmra.mrb[112].mxu1 %v3323_v46  ;;  %7299 = vmatmul.mubr.bf16.gmra.mrb[112].mxu0 %v3383_v16  ;;  %v2450_v30 = vrot.slane %v2448_v8, 5  ;;  %v2456_v33 = vrot.slane %v17958_v48, 5 }
 0x2bc   : > { %v1677_v12 = vrot.slane %v18337_v11, 5  ;;  %v1680_v6 = vrot.slane %v18339_v9, 6  ;;  %v18341_v31 = vshrl.u32 %v18340_v14, 16  ;;  %v18343_v56 = vshll.u32 %v18340_v14, 16 }
 0x2bd   : > { %v1689_v55 = vshrl.u32 %v1463_v34, 16  ;;  %v1692_v25 = vshll.u32 %v1463_v34, 16  ;;  %v1318_v35 = vshrl.u32 %v1095_v52, 16  ;;  %v2451_v26 = vor.u32 %v2450_v30, %v2447_v63  ;;  %v15925_v30 = vpop.f32.mrb[56].mxu1 }
 0x2be   : > { %v1683_v41 = vrot.slane %v18341_v31, 5  ;;  %v1684_v49 = vrot.slane %v18343_v56, 6  ;;  %v2461_v13 = vor.u32 %v2460_v57, %v2456_v33  ;;  %v1681_v8 = vor.u32 %v1680_v6, %v1677_v12  ;;  %v3097_v6 = vpop.permute.xlu0 %3096 }
 0x2bf   : > { %v1321_v46 = vshll.u32 %v1095_v52, 16  ;;  %v1691_v16 = vrot.slane %v1689_v55, 5  ;;  %v1694_v54 = vrot.slane %v1692_v25, 6  ;;  %v1320_v39 = vrot.slane %v1318_v35, 4  ;;  %v15931_v35 = vpop.f32.mrb[57].mxu1 }
 0x2c0   : > { %v1685_v36 = vor.u32 %v1684_v49, %v1683_v41  ;;  %v2452_v47 = vrot.slane %v2451_v26, 4  ;;  %v2462_v11 = vrot.slane %v2461_v13, 4  ;;  %v1682_v9 = vrot.slane %v1681_v8, 4  ;;  %v12855_v8 = vld [vmem:[#allocation2 + $0x40] sm:$0xf] }
 0x2c1   : > { %v1323_v31 = vrot.slane %v1321_v46, 5  ;;  %v1695_v22 = vor.u32 %v1694_v54, %v1691_v16  ;;  %v18344_v45 = vmov %v18343_v56  ;;  %v18345_v34 = vshrl.u32 %v18340_v14, 16  ;;  %v18346_v14 = vld [vmem:[#allocation79_spill] sm:$0xff] }
 0x2c2   : > { %v1687_v48 = vrot.slane %v1685_v36, 4  ;;  %v1329_v56 = vrot.slane %v18344_v45, 5  ;;  %v2457_v63 = vsel %vm13470_vm12, %v2452_v47, %v2456_v33  ;;  %v2467_v52 = vsel %vm13470_vm12, %v2462_v11, %v2466_v17  ;;  %v12854_v17 = vld [vmem:[#allocation2 + $0x3c] sm:$0xe] }
 0x2c3   : > { %v1333_v23 = vrot.slane %v18345_v34, 4  ;;  %v1686_v57 = vsel %vm13492_vm13, %v1682_v9, %v1685_v36  ;;  %v1324_v12 = vor.u32 %v1323_v31, %v1320_v39  ;;  %v11133_v41 = vcombine.low %v2457_v63, %v2467_v52  ;;  %v15933_v36 = vpop.f32.mrb[58].mxu1  ;;  %v12856_v39 = vld [vmem:[#allocation2 + $0x44] sm:$0x1]  ;;  %v18349_v52 = vld [vmem:[#allocation101_spill] sm:$0xff] }
 0x2c4   : > { %v1696_v45 = vsel %vm13492_vm13, %v1687_v48, %v1695_v22  ;;  %v18347_v55 = vshll.u32 %v18346_v14, 16  ;;  %v11053_v13 = vrot.slane %v12854_v17, 9  ;;  %v2038_v46 = vrot.slane %v12855_v8, 5  ;;  %v2333_v22 = vld [vmem:[#allocation2 + $0x54] sm:$0xf]  ;;  %v15939_v47 = vpop.f32.mrb[59].mxu1 }
 0x2c5   : > { %v1334_v49 = vor.u32 %v1333_v23, %v1329_v56  ;;  %v11098_v33 = vcombine.low %v1686_v57, %v1696_v45  ;;  %v1325_v26 = vrot.slane %v1324_v12, 4  ;;  %v3427_v16 = vsel %vm3288_vm0, %v11133_v41, %v15225_v53  ;;  %v3017_v53 = vpop.permute.xlu1 %3016  ;;  %v18350_v12 = vld [vmem:[#allocation100_spill] sm:$0xff]  ;;  %v18352_v8 = vld [vmem:[#allocation45_spill] sm:$0xff] }
 0x2c6   : > { %v1339_v25 = vrot.slane %v18347_v55, 5  ;;  %v2041_v48 = vrot.slane %v12856_v39, 5  ;;  %v11662_v23 = vadd.f32 %v15334_v10, %v15322_v4  ;;  %7306 = vmatprep.mubr.bf16.mxu0 %v3427_v16  ;;  %v2039_v31 = vsel %vm13451_vm11, %v11053_v13, %v2038_v46  ;;  %v18348_v10 = vld [vmem:[#allocation99_spill] sm:$0xff] }
 0x2c7   : > { %v1335_v54 = vrot.slane %v1334_v49, 4  ;;  %v3367_v11 = vsel %vm3288_vm0, %v11098_v33, %v3097_v6  ;;  %v1330_v9 = vsel %vm13470_vm12, %v1325_v26, %v1329_v56  ;;  %v2040_v34 = vrot.slane %v2038_v46, 4  ;;  %v18351_v6 = vld [vmem:[#allocation102_spill] sm:$0xff] }
 0x2c8   : > { %7233 = vmatprep.mubr.bf16.mxu1 %v3367_v11  ;;  %v11738_v4 = vadd.f32 %v15336_v1, %v15324_v44  ;;  %v11665_v57 = vadd.f32 %v18349_v52, %v18348_v10  ;;  %v11741_v41 = vadd.f32 %v18351_v6, %v18350_v12  ;;  %v2469_v49 = vshrl.u32 %v2333_v22, 16  ;;  %v12860_v10 = vld [vmem:[#allocation2 + $0x50] sm:$0x1]  ;;  %v18358_v12 = vld [vmem:[#allocation107_spill] sm:$0xff] }
 0x2c9   : > { %v1340_v63 = vsel %vm13470_vm12, %v1335_v54, %v1339_v25  ;;  %v2042_v56 = vsel %vm13451_vm11, %v2040_v34, %v2041_v48  ;;  %v2472_v14 = vshll.u32 %v2333_v22, 16  ;;  %v15960_v25 = vld [vmem:[#allocation2 + $0x58] sm:$0xf]  ;;  %v18353_v46 = vshrl.u32 %v18352_v8, 16  ;;  %v18354_v54 = vld [vmem:[#allocation88_spill] sm:$0xff] }
 0x2ca   : > { %v11078_v45 = vcombine.low %v1330_v9, %v1340_v63  ;;  %v11113_v55 = vcombine.low %v2039_v31, %v2042_v56  ;;  %v15956_v33 = vadd.f32 %v11738_v4, %v11662_v23  ;;  %v15958_v26 = vadd.f32 %v11741_v41, %v11665_v57  ;;  %v18355_v23 = vld [vmem:[#allocation46_spill] sm:$0xff]  ;;  %v12858_v9 = vld [vmem:[#allocation2 + $0x48] sm:$0xe]  ;;  %v2336_v34 = vld [vmem:[#allocation2 + $0x60] sm:$0xf]  ;;  %v15974_v41 = vpop.f32.mrb[60].mxu0 }
 0x2cb   : > { %v17959_v44 = vshll.u32 %v15960_v25, 16  ;;  %v2471_v17 = vrot.slane %v2469_v49, 4  ;;  %v2474_v13 = vrot.slane %v2472_v14, 5  ;;  %v2484_v16 = vrot.slane %v18353_v46, 4  ;;  %v12859_v63 = vld [vmem:[#allocation2 + $0x4c] sm:$0xf] }
 0x2cc   : > { %v3327_v1 = vsel %vm3288_vm0, %v11078_v45, %v3017_v53  ;;  %v3387_v39 = vsel %vm3288_vm0, %v11113_v55, %v18354_v54  ;;  %v18356_v22 = vshll.u32 %v18355_v23, 16  ;;  %v11054_v31 = vrot.slane %v12858_v9, 9  ;;  %v18357_v57 = vld [vmem:[#allocation105_spill] sm:$0xff]  ;;  %v18359_v56 = vld [vmem:[#allocation106_spill] sm:$0xff]  ;;  %v18360_v49 = vld [vmem:[#allocation108_spill] sm:$0xff] }
 0x2cd   : > { %7234 = vmatmul.mubr.bf16.gmra.mrb[116].mxu1 %v3327_v1  ;;  %v2480_v48 = vrot.slane %v17959_v44, 5  ;;  %7307 = vmatmul.mubr.bf16.gmra.mrb[116].mxu0 %v3387_v39  ;;  %v2475_v53 = vor.u32 %v2474_v13, %v2471_v17  ;;  %v2045_v4 = vrot.slane %v12859_v63, 5  ;;  %v2048_v52 = vrot.slane %v12860_v10, 5  ;;  %v18361_v55 = vld [vmem:[#allocation109_spill] sm:$0xff]  ;;  %v18362_v1 = vld [vmem:[#allocation111_spill] sm:$0xff]  ;;  %v18363_v54 = vld [vmem:[#allocation110_spill] sm:$0xff] }
 0x2ce   : > { %v2490_v11 = vrot.slane %v18356_v22, 5  ;;  %v11668_v6 = vadd.f32 %v18358_v12, %v18357_v57  ;;  %v11744_v14 = vadd.f32 %v18360_v49, %v18359_v56  ;;  %v11671_v46 = vadd.f32 %v18362_v1, %v18361_v55  ;;  %v18364_v23 = vld [vmem:[#allocation112_spill] sm:$0xff]  ;;  %v15982_v17 = vpop.f32.mrb[61].mxu0  ;;  %v18372_v44 = vld [vmem:[#allocation98_spill] sm:$0xff] }
 0x2cf   : > { %v2485_v45 = vor.u32 %v2484_v16, %v2480_v48  ;;  %v11747_v39 = vadd.f32 %v18364_v23, %v18363_v54  ;;  %v2476_v13 = vrot.slane %v2475_v53, 4  ;;  %v2046_v22 = vsel %vm13451_vm11, %v11054_v31, %v2045_v4  ;;  %v15986_v10 = vpop.f32.mrb[62].mxu0  ;;  %v15998_v31 = vld [vmem:[#allocation2 + $0x64] sm:$0xf] }
 0x2d0   : > { %v2047_v9 = vrot.slane %v2045_v4, 4  ;;  %v2493_v63 = vshrl.u32 %v2336_v34, 16  ;;  %18365 = vst [vmem:[#allocation38_spill] sm:$0xff] %v15986_v10  ;;  %v15988_v57 = vadd.f32 %v11744_v14, %v11668_v6  ;;  %v2496_v56 = vshll.u32 %v2336_v34, 16  ;;  %v15992_v49 = vpop.f32.mrb[63].mxu0 }
 0x2d1   : > { %v2486_v16 = vrot.slane %v2485_v45, 4  ;;  %v15990_v12 = vadd.f32 %v11747_v39, %v11671_v46  ;;  %18367 = vst [vmem:[#allocation76_spill] sm:$0xff] %v15992_v49  ;;  %v2481_v55 = vsel %vm13470_vm12, %v2476_v13, %v2480_v48  ;;  %v17960_v4 = vshll.u32 %v15998_v31, 16  ;;  %v18368_v46 = vld [vmem:[#allocation49_spill] sm:$0xff]  ;;  %v18370_v39 = vld [vmem:[#allocation50_spill] sm:$0xff] }
 0x2d2   : > { %v2049_v53 = vsel %vm13451_vm11, %v2047_v9, %v2048_v52  ;;  %v2495_v1 = vrot.slane %v2493_v63, 4  ;;  %v2498_v14 = vrot.slane %v2496_v56, 5  ;;  %v18369_v34 = vshrl.u32 %v18368_v46, 16  ;;  %v12862_v9 = vld [vmem:[#allocation2 + $0x54] sm:$0xe] }
 0x2d3   : > { %18366 = vst [vmem:[#allocation37_spill] sm:$0xff] %v15990_v12  ;;  %v2491_v6 = vsel %vm13470_vm12, %v2486_v16, %v2490_v11  ;;  %v11114_v45 = vcombine.low %v2046_v22, %v2049_v53  ;;  %v2504_v48 = vrot.slane %v17960_v4, 5  ;;  %v18371_v13 = vshll.u32 %v18370_v39, 16  ;;  %v12863_v12 = vld [vmem:[#allocation2 + $0x58] sm:$0xf]  ;;  %v18373_v53 = vld [vmem:[#allocation97_spill] sm:$0xff] }
 0x2d4   : > { %v2508_v54 = vrot.slane %v18369_v34, 4  ;;  %v11134_v23 = vcombine.low %v2481_v55, %v2491_v6  ;;  %v11055_v63 = vrot.slane %v12862_v9, 9  ;;  %v2499_v10 = vor.u32 %v2498_v14, %v2495_v1  ;;  %v12864_v22 = vld [vmem:[#allocation2 + $0x5c] sm:$0x1]  ;;  %v2339_v56 = vld [vmem:[#allocation2 + $0x6c] sm:$0xf] }
 0x2d5   : > { %v2514_v52 = vrot.slane %v18371_v13, 5  ;;  %v3391_v49 = vsel %vm3288_vm0, %v11114_v45, %v18372_v44  ;;  %v2052_v11 = vrot.slane %v12863_v12, 5  ;;  %v2055_v16 = vrot.slane %v12864_v22, 5  ;;  %v16017_v13 = vpop.f32.mrb[60].mxu1  ;;  %v18375_v45 = vld [vmem:[#allocation113_spill] sm:$0xff]  ;;  %v18376_v14 = vld [vmem:[#allocation115_spill] sm:$0xff] }
 0x2d6   : > { %v3431_v55 = vsel %vm3288_vm0, %v11134_v23, %v18373_v53  ;;  %v2509_v6 = vor.u32 %v2508_v54, %v2504_v48  ;;  %v11674_v34 = vadd.f32 %v15443_v43, %v15434_v29  ;;  %v11750_v39 = vadd.f32 %v15445_v27, %v15436_v60  ;;  %18374 = vst [vmem:[#allocation90_spill] sm:$0xff] %v16017_v13  ;;  %v16023_v22 = vpop.f32.mrb[61].mxu1  ;;  %v18379_v29 = vld [vmem:[#allocation114_spill] sm:$0xff]  ;;  %v18380_v43 = vld [vmem:[#allocation116_spill] sm:$0xff] }
 0x2d7   : > { %7314 = vmatprep.mubr.bf16.mxu0 %v3431_v55  ;;  %v2500_v44 = vrot.slane %v2499_v10, 4  ;;  %v2053_v12 = vsel %vm13451_vm11, %v11055_v63, %v2052_v11  ;;  %v2054_v1 = vrot.slane %v2052_v11, 4  ;;  %v11677_v9 = vadd.f32 %v18376_v14, %v18375_v45  ;;  %18377 = vst [vmem:[#allocation42_spill] sm:$0xff] %v16023_v22  ;;  %v16029_v53 = vpop.f32.mrb[62].mxu1  ;;  %v16035_v55 = vld [vmem:[#allocation2 + $0x70] sm:$0xf] }
 0x2d8   : > { %7315 = vmatmul.mubr.bf16.gmra.mrb[120].mxu0 %v3391_v49  ;;  %v2510_v54 = vrot.slane %v2509_v6, 4  ;;  %v16025_v23 = vadd.f32 %v11750_v39, %v11674_v34  ;;  %v11753_v60 = vadd.f32 %v18380_v43, %v18379_v29  ;;  %v2517_v27 = vshrl.u32 %v2339_v56, 16  ;;  %18381 = vst [vmem:[#allocation41_spill] sm:$0xff] %v16029_v53  ;;  %v16038_v6 = vpop.f32.mrb[63].mxu1  ;;  %v18387_v4 = vld [vmem:[#allocation104_spill] sm:$0xff]  ;;  %v18388_v53 = vld [vmem:[#allocation54_spill] sm:$0xff] }
 0x2d9   : > { %v2505_v10 = vsel %vm13470_vm12, %v2500_v44, %v2504_v48  ;;  %v2056_v63 = vsel %vm13451_vm11, %v2054_v1, %v2055_v16  ;;  %v2520_v11 = vshll.u32 %v2339_v56, 16  ;;  %v17961_v49 = vshll.u32 %v16035_v55, 16  ;;  %18382 = vst [vmem:[#allocation78_spill] sm:$0xff] %v16038_v6  ;;  %v18384_v16 = vld [vmem:[#allocation53_spill] sm:$0xff]  ;;  %v16048_v1 = vpop.f32.mrb[64].mxu0 }
 0x2da   : > { %18378 = vst [vmem:[#allocation85_spill] sm:$0xff] %v16025_v23  ;;  %v2515_v34 = vsel %vm13470_vm12, %v2510_v54, %v2514_v52  ;;  %v11115_v39 = vcombine.low %v2053_v12, %v2056_v63  ;;  %v16042_v45 = vadd.f32 %v11753_v60, %v11677_v9  ;;  %v2519_v14 = vrot.slane %v2517_v27, 4  ;;  %18386 = vst [vmem:[#allocation79_spill] sm:$0xff] %v16048_v1  ;;  %v12866_v12 = vld [vmem:[#allocation2 + $0x60] sm:$0xe]  ;;  %v16054_v27 = vpop.f32.mrb[65].mxu0 }
 0x2db   : > { %v11135_v29 = vcombine.low %v2505_v10, %v2515_v34  ;;  %v2522_v43 = vrot.slane %v2520_v11, 5  ;;  %v2528_v48 = vrot.slane %v17961_v49, 5  ;;  %v18385_v56 = vshrl.u32 %v18384_v16, 16  ;;  %v12867_v54 = vld [vmem:[#allocation2 + $0x64] sm:$0xf]  ;;  %18390 = vst [vmem:[#allocation99_spill] sm:$0xff] %v16054_v27 }
 0x2dc   : > { %18383 = vst [vmem:[#allocation77_spill] sm:$0xff] %v16042_v45  ;;  %v3395_v6 = vsel %vm3288_vm0, %v11115_v39, %v18387_v4  ;;  %v18389_v23 = vshll.u32 %v18388_v53, 16  ;;  %v11056_v9 = vrot.slane %v12866_v12, 9  ;;  %v2059_v60 = vrot.slane %v12867_v54, 5  ;;  %v18391_v10 = vld [vmem:[#allocation103_spill] sm:$0xff]  ;;  %v16058_v1 = vpop.f32.mrb[66].mxu0 }
 0x2dd   : > { %v2532_v44 = vrot.slane %v18385_v56, 4  ;;  %v3435_v63 = vsel %vm3288_vm0, %v11135_v29, %v18391_v10  ;;  %v2523_v11 = vor.u32 %v2522_v43, %v2519_v14  ;;  %v12868_v56 = vld [vmem:[#allocation2 + $0x68] sm:$0x1]  ;;  %v2342_v45 = vld [vmem:[#allocation2 + $0x78] sm:$0xf]  ;;  %18392 = vst [vmem:[#allocation101_spill] sm:$0xff] %v16058_v1 }
 0x2de   : > { %v2538_v52 = vrot.slane %v18389_v23, 5  ;;  %v2062_v49 = vrot.slane %v12868_v56, 5  ;;  %7322 = vmatprep.mubr.bf16.mxu0 %v3435_v63  ;;  %v2060_v4 = vsel %vm13451_vm11, %v11056_v9, %v2059_v60  ;;  %v2061_v23 = vrot.slane %v2059_v60, 4  ;;  %v18393_v53 = vld [vmem:[#allocation119_spill] sm:$0xff]  ;;  %v18394_v39 = vld [vmem:[#allocation121_spill] sm:$0xff]  ;;  %v18395_v54 = vld [vmem:[#allocation120_spill] sm:$0xff] }
 0x2df   : > { %v2533_v34 = vor.u32 %v2532_v44, %v2528_v48  ;;  %v11680_v12 = vadd.f32 %v18394_v39, %v18393_v53  ;;  %v18396_v27 = vld [vmem:[#allocation122_spill] sm:$0xff]  ;;  %v16066_v13 = vpop.f32.mrb[67].mxu0  ;;  %v2524_v14 = vrot.slane %v2523_v11, 4  ;;  %v18398_v43 = vld [vmem:[#allocation123_spill] sm:$0xff]  ;;  %v18399_v44 = vld [vmem:[#allocation125_spill] sm:$0xff]  ;;  %v2541_v53 = vshrl.u32 %v2342_v45, 16 }
 0x2e0   : > { %v11756_v22 = vadd.f32 %v18396_v27, %v18395_v54  ;;  %18397 = vst [vmem:[#allocation100_spill] sm:$0xff] %v16066_v13  ;;  %v11683_v10 = vadd.f32 %v18399_v44, %v18398_v43  ;;  %v18400_v56 = vld [vmem:[#allocation124_spill] sm:$0xff]  ;;  %v18401_v1 = vld [vmem:[#allocation126_spill] sm:$0xff]  ;;  %7323 = vmatmul.mubr.bf16.gmra.mrb[124].mxu0 %v3395_v6  ;;  %v2063_v9 = vsel %vm13451_vm11, %v2061_v23, %v2062_v49  ;;  %v2544_v39 = vshll.u32 %v2342_v45, 16  ;;  %v16082_v6 = vld [vmem:[#allocation2 + $0x7c] sm:$0xf] }
 0x2e1   : > { %v2534_v29 = vrot.slane %v2533_v34, 4  ;;  %v11759_v63 = vadd.f32 %v18401_v1, %v18400_v56  ;;  %v2529_v27 = vsel %vm13470_vm12, %v2524_v14, %v2528_v48  ;;  %v11116_v34 = vcombine.low %v2060_v4, %v2063_v9  ;;  %v18405_v23 = vld [vmem:[#allocation118_spill] sm:$0xff]  ;;  %v18408_v56 = vld [vmem:[#allocation57_spill] sm:$0xff] }
 0x2e2   : > { %v16074_v60 = vadd.f32 %v11756_v22, %v11680_v12  ;;  %v2543_v44 = vrot.slane %v2541_v53, 4  ;;  %v2546_v1 = vrot.slane %v2544_v39, 5  ;;  %v17962_v49 = vshll.u32 %v16082_v6, 16  ;;  %v16085_v22 = vpop.f32.mrb[64].mxu1  ;;  %v18406_v12 = vld [vmem:[#allocation58_spill] sm:$0xff]  ;;  %v18411_v9 = vld [vmem:[#allocation117_spill] sm:$0xff] }
 0x2e3   : > { %v2539_v11 = vsel %vm13470_vm12, %v2534_v29, %v2538_v52  ;;  %v16080_v54 = vadd.f32 %v11759_v63, %v11683_v10  ;;  %18404 = vst [vmem:[#allocation88_spill] sm:$0xff] %v16085_v22  ;;  %v3399_v45 = vsel %vm3288_vm0, %v11116_v34, %v18405_v23  ;;  %v18407_v48 = vshrl.u32 %v18406_v12, 16  ;;  %v12870_v29 = vld [vmem:[#allocation2 + $0x6c] sm:$0xe]  ;;  %v16093_v63 = vpop.f32.mrb[65].mxu1  ;;  %v16115_v22 = vpop.f32.mrb[68].mxu0 }
 0x2e4   : > { %18402 = vst [vmem:[#allocation102_spill] sm:$0xff] %v16074_v60  ;;  %v11136_v43 = vcombine.low %v2529_v27, %v2539_v11  ;;  %v18409_v52 = vshll.u32 %v18408_v56, 16  ;;  %v11057_v10 = vrot.slane %v12870_v29, 9  ;;  %18410 = vst [vmem:[#allocation46_spill] sm:$0xff] %v16093_v63  ;;  %v2547_v39 = vor.u32 %v2546_v1, %v2543_v44  ;;  %v12871_v11 = vld [vmem:[#allocation2 + $0x70] sm:$0xf] }
 0x2e5   : > { %18403 = vst [vmem:[#allocation45_spill] sm:$0xff] %v16080_v54  ;;  %v2556_v14 = vrot.slane %v18407_v48, 4  ;;  %v2552_v27 = vrot.slane %v17962_v49, 5  ;;  %v2066_v54 = vrot.slane %v12871_v11, 5  ;;  %v2345_v34 = vld [vmem:[#allocation2 + $0x84] sm:$0xf]  ;;  %v11762_v29 = vadd.f32 %v15523_v59, %v15513_v15 }
 0x2e6   : > { %v2562_v4 = vrot.slane %v18409_v52, 5  ;;  %v3439_v53 = vsel %vm3288_vm0, %v11136_v43, %v18411_v9  ;;  %v16099_v23 = vpop.f32.mrb[66].mxu1  ;;  %v12872_v48 = vld [vmem:[#allocation2 + $0x74] sm:$0x1]  ;;  %v11686_v52 = vadd.f32 %v15521_v40, %v15511_v21  ;;  %v18413_v43 = vld [vmem:[#allocation128_spill] sm:$0xff]  ;;  %v2548_v9 = vrot.slane %v2547_v39, 4 }
 0x2e7   : > { %18412 = vst [vmem:[#allocation105_spill] sm:$0xff] %v16099_v23  ;;  %7330 = vmatprep.mubr.bf16.mxu0 %v3439_v53  ;;  %v2069_v56 = vrot.slane %v12872_v48, 5  ;;  %v11689_v44 = vadd.f32 %v18413_v43, %v15525_v50  ;;  %v16107_v1 = vpop.f32.mrb[67].mxu1  ;;  %v2557_v49 = vor.u32 %v2556_v14, %v2552_v27  ;;  %v2067_v11 = vsel %vm13451_vm11, %v11057_v10, %v2066_v54  ;;  %v18416_v48 = vld [vmem:[#allocation127_spill] sm:$0xff]  ;;  %v18417_v60 = vld [vmem:[#allocation129_spill] sm:$0xff]  ;;  %v16124_v10 = vpop.f32.mrb[69].mxu0 }
 0x2e8   : > { %18414 = vst [vmem:[#allocation107_spill] sm:$0xff] %v16107_v1  ;;  %v2068_v23 = vrot.slane %v2066_v54, 4  ;;  %v16111_v53 = vadd.f32 %v11762_v29, %v11686_v52  ;;  %v11765_v63 = vadd.f32 %v18417_v60, %v18416_v48  ;;  %v2565_v21 = vshrl.u32 %v2345_v34, 16  ;;  %18418 = vst [vmem:[#allocation108_spill] sm:$0xff] %v16115_v22  ;;  %7331 = vmatmul.mubr.bf16.gmra.mrb[128].mxu0 %v3399_v45  ;;  %v16121_v14 = vld [vmem:[#allocation2 + $0x88] sm:$0xf] }
 0x2e9   : > { %v2568_v40 = vshll.u32 %v2345_v34, 16  ;;  %v2553_v15 = vsel %vm13470_vm12, %v2548_v9, %v2552_v27  ;;  %v2558_v59 = vrot.slane %v2557_v49, 4  ;;  %v17963_v54 = vshll.u32 %v16121_v14, 16  ;;  %18419 = vst [vmem:[#allocation109_spill] sm:$0xff] %v16124_v10  ;;  %v16128_v29 = vpop.f32.mrb[70].mxu0  ;;  %v18422_v27 = vld [vmem:[#allocation61_spill] sm:$0xff] }
 0x2ea   : > { %18415 = vst [vmem:[#allocation106_spill] sm:$0xff] %v16111_v53  ;;  %v2070_v50 = vsel %vm13451_vm11, %v2068_v23, %v2069_v56  ;;  %v16126_v60 = vadd.f32 %v11765_v63, %v11689_v44  ;;  %v2567_v34 = vrot.slane %v2565_v21, 4  ;;  %18421 = vst [vmem:[#allocation110_spill] sm:$0xff] %v16128_v29  ;;  %v18423_v23 = vshrl.u32 %v18422_v27, 16  ;;  %v18424_v43 = vld [vmem:[#allocation62_spill] sm:$0xff]  ;;  %v16138_v53 = vpop.f32.mrb[71].mxu0 }
 0x2eb   : > { %v11117_v39 = vcombine.low %v2067_v11, %v2070_v50  ;;  %v2570_v52 = vrot.slane %v2568_v40, 5  ;;  %v2563_v45 = vsel %vm13470_vm12, %v2558_v59, %v2562_v4  ;;  %v2576_v49 = vrot.slane %v17963_v54, 5  ;;  %18426 = vst [vmem:[#allocation112_spill] sm:$0xff] %v16138_v53  ;;  %v12874_v21 = vld [vmem:[#allocation2 + $0x78] sm:$0xe]  ;;  %v18428_v10 = vld [vmem:[#allocation133_spill] sm:$0xff] }
 0x2ec   : > { %18420 = vst [vmem:[#allocation111_spill] sm:$0xff] %v16126_v60  ;;  %v2580_v56 = vrot.slane %v18423_v23, 4  ;;  %v18425_v9 = vshll.u32 %v18424_v43, 16  ;;  %v11137_v63 = vcombine.low %v2553_v15, %v2563_v45  ;;  %v11058_v40 = vrot.slane %v12874_v21, 9  ;;  %v12875_v4 = vld [vmem:[#allocation2 + $0x7c] sm:$0xf] }
 0x2ed   : > { %v3403_v44 = vsel %vm3288_vm0, %v11117_v39, %v15547_v20  ;;  %v2571_v11 = vor.u32 %v2570_v52, %v2567_v34  ;;  %v2073_v59 = vrot.slane %v12875_v4, 5  ;;  %v12876_v60 = vld [vmem:[#allocation2 + $0x80] sm:$0x1]  ;;  %v18427_v29 = vld [vmem:[#allocation131_spill] sm:$0xff]  ;;  %v18429_v22 = vld [vmem:[#allocation130_spill] sm:$0xff] }
 0x2ee   : > { %v2586_v48 = vrot.slane %v18425_v9, 5  ;;  %v2581_v50 = vor.u32 %v2580_v56, %v2576_v49  ;;  %v2076_v54 = vrot.slane %v12876_v60, 5  ;;  %v11692_v23 = vadd.f32 %v18428_v10, %v18427_v29  ;;  %v18430_v53 = vld [vmem:[#allocation132_spill] sm:$0xff]  ;;  %v18431_v15 = vld [vmem:[#allocation134_spill] sm:$0xff]  ;;  %v18432_v1 = vld [vmem:[#allocation135_spill] sm:$0xff]  ;;  %v16154_v29 = vpop.f32.mrb[68].mxu1 }
 0x2ef   : > { %v3443_v43 = vsel %vm3288_vm0, %v11137_v63, %v18429_v22  ;;  %v2572_v9 = vrot.slane %v2571_v11, 4  ;;  %v11768_v45 = vadd.f32 %v18431_v15, %v18430_v53  ;;  %v18433_v20 = vld [vmem:[#allocation137_spill] sm:$0xff]  ;;  %v2698_v34 = vld [vmem:[#allocation2 + $0x20] sm:$0x3]  ;;  %v2074_v56 = vsel %vm13451_vm11, %v11058_v40, %v2073_v59  ;;  %v18435_v4 = vld [vmem:[#allocation138_spill] sm:$0xff]  ;;  %v16164_v13 = vpop.f32.mrb[69].mxu1 }
 0x2f0   : > { %v11695_v39 = vadd.f32 %v18433_v20, %v18432_v1  ;;  %7338 = vmatprep.mubr.bf16.mxu0 %v3443_v43  ;;  %v2582_v52 = vrot.slane %v2581_v50, 4  ;;  %v2075_v60 = vrot.slane %v2073_v59, 4  ;;  %v18434_v21 = vld [vmem:[#allocation136_spill] sm:$0xff]  ;;  %v18437_v53 = vld [vmem:[#allocation22_spill] sm:$0xff]  ;;  %v18438_v11 = vld [vmem:[#allocation23_spill] sm:$0xff] }
 0x2f1   : > { %v11771_v10 = vadd.f32 %v18435_v4, %v18434_v21  ;;  %v2577_v22 = vsel %vm13470_vm12, %v2572_v9, %v2576_v49  ;;  %v16158_v63 = vadd.f32 %v11768_v45, %v11692_v23  ;;  %v2715_v1 = vor.u32 %v18438_v11, %v18437_v53  ;;  %v18439_v15 = vld [vmem:[#allocation27_spill] sm:$0xff]  ;;  %v18440_v43 = vld [vmem:[#allocation25_spill] sm:$0xff]  ;;  %7339 = vmatmul.mubr.bf16.gmra.mrb[132].mxu0 %v3403_v44  ;;  %v16172_v23 = vpop.f32.mrb[70].mxu1  ;;  %v18444_v44 = vld [vmem:[#allocation32_spill] sm:$0xff] }
 0x2f2   : > { %v2719_v50 = vor.u32 %v18440_v43, %v18439_v15  ;;  %v2699_v20 = vld [vmem:[#allocation2 + $0x2c] sm:$0x3]  ;;  %v2587_v40 = vsel %vm13470_vm12, %v2582_v52, %v2586_v48  ;;  %v2077_v59 = vsel %vm13451_vm11, %v2075_v60, %v2076_v54  ;;  %v2723_v49 = vshrl.u32 %v2698_v34, 16  ;;  %18442 = vst [vmem:[#allocation98_spill] sm:$0xff] %v16172_v23  ;;  %v16174_v11 = vpop.f32.mrb[71].mxu1  ;;  %v18454_v23 = vld [vmem:[#allocation35_spill] sm:$0xff] }
 0x2f3   : > { %18436 = vst [vmem:[#allocation49_spill] sm:$0xff] %v16158_v63  ;;  %v16170_v21 = vadd.f32 %v11771_v10, %v11695_v39  ;;  %v11138_v9 = vcombine.low %v2577_v22, %v2587_v40  ;;  %v11118_v45 = vcombine.low %v2074_v56, %v2077_v59  ;;  %v2716_v4 = vrot.slane %v2715_v1, 4  ;;  %18443 = vst [vmem:[#allocation97_spill] sm:$0xff] %v16174_v11  ;;  %v18445_v63 = vld [vmem:[#allocation31_spill] sm:$0xff]  ;;  %v18447_v1 = vld [vmem:[#allocation141_spill] sm:$0xff] }
 0x2f4   : > { %v2721_v53 = vrot.slane %v2719_v50, 4  ;;  %v2725_v15 = vrot.slane %v2723_v49, 5  ;;  %v2726_v43 = vshll.u32 %v2698_v34, 16  ;;  %v2743_v48 = vsel %vm13492_vm13, %v18445_v63, %v18444_v44  ;;  %v18446_v34 = vld [vmem:[#allocation139_spill] sm:$0xff]  ;;  %v18448_v59 = vld [vmem:[#allocation140_spill] sm:$0xff]  ;;  %v18449_v49 = vld [vmem:[#allocation142_spill] sm:$0xff] }
 0x2f5   : > { %18441 = vst [vmem:[#allocation50_spill] sm:$0xff] %v16170_v21  ;;  %v2746_v52 = vshrl.u32 %v2699_v20, 16  ;;  %v3447_v54 = vsel %vm3288_vm0, %v11138_v9, %v15624_v18  ;;  %v3407_v39 = vsel %vm3288_vm0, %v11118_v45, %v15626_v42  ;;  %v2720_v56 = vsel %vm13492_vm13, %v2716_v4, %v2719_v50  ;;  %v18450_v21 = vld [vmem:[#allocation143_spill] sm:$0xff]  ;;  %v18451_v18 = vld [vmem:[#allocation145_spill] sm:$0xff]  ;;  %v18452_v11 = vld [vmem:[#allocation144_spill] sm:$0xff]  ;;  %v16196_v4 = vpop.f32.mrb[72].mxu0 }
 0x2f6   : > { %v2749_v60 = vshll.u32 %v2699_v20, 16  ;;  %7346 = vmatprep.mubr.bf16.mxu0 %v3447_v54  ;;  %v2728_v10 = vrot.slane %v2726_v43, 6  ;;  %v11698_v40 = vadd.f32 %v18447_v1, %v18446_v34  ;;  %v11774_v63 = vadd.f32 %v18449_v49, %v18448_v59  ;;  %v18453_v42 = vld [vmem:[#allocation146_spill] sm:$0xff]  ;;  %v18455_v50 = vld [vmem:[#allocation36_spill] sm:$0xff]  ;;  %v16204_v59 = vpop.f32.mrb[73].mxu0 }
 0x2f7   : > { %v2748_v22 = vrot.slane %v2746_v52, 5  ;;  %v11701_v9 = vadd.f32 %v18451_v18, %v18450_v21  ;;  %v11777_v45 = vadd.f32 %v18453_v42, %v18452_v11  ;;  %v2761_v20 = vor.u32 %v18455_v50, %v18454_v23  ;;  %v16208_v42 = vpop.f32.mrb[74].mxu0 }
 0x2f8   : > { %v2751_v7 = vrot.slane %v2749_v60, 6  ;;  %v2729_v43 = vor.u32 %v2728_v10, %v2725_v15  ;;  %v16198_v52 = vadd.f32 %v11774_v63, %v11698_v40  ;;  %v18457_v54 = vshrl.u32 %v18287_v37, 16  ;;  %v2701_v37 = vld [vmem:[#allocation2 + $0x44] sm:$0x3]  ;;  %v18460_v40 = vld [vmem:[#allocation39_spill] sm:$0xff]  ;;  %v16214_v50 = vpop.f32.mrb[75].mxu0 }
 0x2f9   : > { %v18458_v1 = vshll.u32 %v15768_v28, 16  ;;  %v16206_v49 = vadd.f32 %v11777_v45, %v11701_v9  ;;  %v2762_v11 = vrot.slane %v2761_v20, 4  ;;  %v2769_v18 = vshrl.u32 %v2700_v32, 16  ;;  %7347 = vmatmul.mubr.bf16.gmra.mrb[136].mxu0 %v3407_v39  ;;  %v18461_v63 = vld [vmem:[#allocation40_spill] sm:$0xff] }
 0x2fa   : > { %18456 = vst [vmem:[#allocation113_spill] sm:$0xff] %v16198_v52  ;;  %v2763_v34 = vrot.slane %v18457_v54, 5  ;;  %v2752_v21 = vor.u32 %v2751_v7, %v2748_v22  ;;  %v2730_v23 = vsel %vm13492_vm13, %v2721_v53, %v2729_v43  ;;  %v2772_v10 = vshll.u32 %v2700_v32, 16  ;;  %v18489_v52 = vld [vmem:[#allocation52_spill] sm:$0xff] }
 0x2fb   : > { %v2764_v60 = vrot.slane %v18458_v1, 6  ;;  %18459 = vst [vmem:[#allocation115_spill] sm:$0xff] %v16206_v49  ;;  %v2784_v28 = vor.u32 %v18461_v63, %v18460_v40  ;;  %v11149_v54 = vcombine.low %v2720_v56, %v2730_v23  ;;  %v18462_v7 = vrot.slane %v18444_v44, 4  ;;  %v18468_v63 = vld [vmem:[#allocation66_spill] sm:$0xff]  ;;  %v18472_v49 = vld [vmem:[#allocation44_spill] sm:$0xff] }
 0x2fc   : > { %v2771_v9 = vrot.slane %v2769_v18, 5  ;;  %v18463_v39 = vshrl.u32 %v18317_v62, 16  ;;  %v2774_v43 = vrot.slane %v2772_v10, 6  ;;  %v18464_v56 = vshll.u32 %v15833_v3, 16  ;;  %v18466_v18 = vld [vmem:[#allocation65_spill] sm:$0xff]  ;;  %v18467_v62 = vld [vmem:[#allocation147_spill] sm:$0xff] }
 0x2fd   : > { %v2765_v15 = vor.u32 %v2764_v60, %v2763_v34  ;;  %v2753_v22 = vsel %vm13492_vm13, %v18462_v7, %v2752_v21  ;;  %12446 = vmatprep.mubr.msk.bf16.mxu0 %vm3288_vm0, %v11149_v54  ;;  %v2785_v34 = vrot.slane %v2784_v28, 4  ;;  %v2792_v44 = vshrl.u32 %v2701_v37, 16  ;;  %v18465_v21 = vld [vmem:[#allocation26_spill] sm:$0xff]  ;;  %v18469_v7 = vld [vmem:[#allocation67_spill] sm:$0xff] }
 0x2fe   : > { %v2786_v45 = vrot.slane %v18463_v39, 5  ;;  %v11150_v20 = vcombine.low %v2743_v48, %v2753_v22  ;;  %v2787_v1 = vrot.slane %v18464_v56, 6  ;;  %v2795_v60 = vshll.u32 %v2701_v37, 16  ;;  %v18470_v22 = vld [vmem:[#allocation24_spill] sm:$0xff]  ;;  %v2702_v54 = vld [vmem:[#allocation2 + $0x50] sm:$0x3] }
 0x2ff   : > { %v2766_v32 = vsel %vm13492_vm13, %v2762_v11, %v2765_v15  ;;  %v2767_v53 = vrot.slane %v2765_v15, 4  ;;  %v2775_v23 = vor.u32 %v2774_v43, %v2771_v9  ;;  %v11796_v40 = vadd.f32 %v18466_v18, %v18465_v21  ;;  %v18471_v28 = vld [vmem:[#allocation43_spill] sm:$0xff]  ;;  %v16235_v56 = vpop.f32.mrb[72].mxu1 }
 0x300   : > { %v11799_v48 = vadd.f32 %v18468_v63, %v18467_v62  ;;  %v11872_v11 = vadd.f32 %v18470_v22, %v18469_v7  ;;  %v2788_v15 = vor.u32 %v2787_v1, %v2786_v45  ;;  %v2794_v10 = vrot.slane %v2792_v44, 5  ;;  %v16243_v62 = vpop.f32.mrb[73].mxu1  ;;  %v16256_v63 = vpop.f32.mrb[76].mxu0  ;;  %v18477_v7 = vld [vmem:[#allocation149_spill] sm:$0xff]  ;;  %v2703_v22 = vld [vmem:[#allocation2 + $0x5c] sm:$0x3] }
 0x301   : > { %v2797_v39 = vrot.slane %v2795_v60, 6  ;;  %v2807_v3 = vor.u32 %v18472_v49, %v18471_v28  ;;  %v2776_v37 = vsel %vm13492_vm13, %v2767_v53, %v2775_v23  ;;  %v6579_v9 = vadd.f32 %v11796_v40, %v15727_v2  ;;  %v16247_v60 = vpop.f32.mrb[74].mxu1  ;;  %12447 = vmatmul.mubr.msk.bf16.vlgmr.msra.gmra.mrb[80].mxu0 %vm3288_vm0, %v11150_v20 }
 0x302   : > { %v6582_v43 = vadd.f32 %v11799_v48, %v15741_v0  ;;  %v18473_v21 = vshrl.u32 %v18330_v51, 16  ;;  %v11151_v45 = vcombine.low %v2766_v32, %v2776_v37  ;;  %v2789_v1 = vsel %vm13492_vm13, %v2785_v34, %v2788_v15  ;;  %v16254_v40 = vpop.f32.mrb[75].mxu1  ;;  %v18476_v48 = vld [vmem:[#allocation148_spill] sm:$0xff] }
 0x303   : > { %v2790_v44 = vrot.slane %v2788_v15, 4  ;;  %v2798_v49 = vor.u32 %v2797_v39, %v2794_v10  ;;  %v16250_v53 = vadd.f32 %v11872_v11, %v6579_v9  ;;  %v2808_v2 = vrot.slane %v2807_v3, 4  ;;  %v18478_v11 = vld [vmem:[#allocation47_spill] sm:$0xff]  ;;  %v18479_v15 = vld [vmem:[#allocation48_spill] sm:$0xff] }
 0x304   : > { %v2809_v18 = vrot.slane %v18473_v21, 5  ;;  %v18475_v0 = vshll.u32 %v15889_v38, 16  ;;  %v2815_v51 = vshrl.u32 %v2702_v54, 16  ;;  %12450 = vmatprep.mubr.msk.bf16.mxu0 %vm3288_vm0, %v11151_v45  ;;  %v2818_v34 = vshll.u32 %v2702_v54, 16  ;;  %v16265_v38 = vpop.f32.mrb[77].mxu0 }
 0x305   : > { %18474 = vst [vmem:[#allocation114_spill] sm:$0xff] %v16250_v53  ;;  %v2799_v32 = vsel %vm13492_vm13, %v2790_v44, %v2798_v49  ;;  %v11875_v20 = vadd.f32 %v18477_v7, %v18476_v48  ;;  %v2830_v10 = vor.u32 %v18479_v15, %v18478_v11  ;;  %v18480_v37 = vshrl.u32 %v18352_v8, 16  ;;  %v16269_v21 = vpop.f32.mrb[78].mxu0  ;;  %v18488_v53 = vld [vmem:[#allocation51_spill] sm:$0xff] }
 0x306   : > { %v2810_v23 = vrot.slane %v18475_v0, 6  ;;  %v11152_v39 = vcombine.low %v2789_v1, %v2799_v32  ;;  %v2817_v3 = vrot.slane %v2815_v51, 5  ;;  %v2820_v45 = vrot.slane %v2818_v34, 6  ;;  %v16275_v48 = vpop.f32.mrb[79].mxu0  ;;  %v18483_v32 = vld [vmem:[#allocation28_spill] sm:$0xff]  ;;  %v18484_v34 = vld [vmem:[#allocation83_spill] sm:$0xff] }
 0x307   : > { %v2832_v9 = vrot.slane %v18480_v37, 5  ;;  %v16271_v44 = vadd.f32 %v11875_v20, %v6582_v43  ;;  %v2831_v54 = vrot.slane %v2830_v10, 4  ;;  %v18482_v49 = vshll.u32 %v15960_v25, 16  ;;  %v18485_v43 = vld [vmem:[#allocation68_spill] sm:$0xff]  ;;  %v18486_v25 = vld [vmem:[#allocation81_spill] sm:$0xff] }
 0x308   : > { %v2811_v28 = vor.u32 %v2810_v23, %v2809_v18  ;;  %v2838_v18 = vshrl.u32 %v2703_v22, 16  ;;  %v2841_v23 = vshll.u32 %v2703_v22, 16  ;;  %v2821_v51 = vor.u32 %v2820_v45, %v2817_v3  ;;  %v18487_v37 = vld [vmem:[#allocation69_spill] sm:$0xff] }
 0x309   : > { %18481 = vst [vmem:[#allocation116_spill] sm:$0xff] %v16271_v44  ;;  %v2833_v0 = vrot.slane %v18482_v49, 6  ;;  %v11802_v11 = vadd.f32 %v18483_v32, %v15682_v24  ;;  %v11805_v20 = vadd.f32 %v18485_v43, %v18484_v34  ;;  %v11878_v49 = vadd.f32 %v18487_v37, %v18486_v25  ;;  %v2704_v44 = vld [vmem:[#allocation2 + $0x68] sm:$0x3]  ;;  %12451 = vmatmul.mubr.msk.bf16.gmra.mrb[84].mxu0 %vm3288_vm0, %v11152_v39 }
 0x30a   : > { %v2812_v7 = vsel %vm13492_vm13, %v2808_v2, %v2811_v28  ;;  %v2813_v1 = vrot.slane %v2811_v28, 4  ;;  %v2840_v15 = vrot.slane %v2838_v18, 5  ;;  %v2843_v10 = vrot.slane %v2841_v23, 6  ;;  %v18490_v24 = vld [vmem:[#allocation89_spill] sm:$0xff] }
 0x30b   : > { %v2834_v8 = vor.u32 %v2833_v0, %v2832_v9  ;;  %v2853_v2 = vor.u32 %v18489_v52, %v18488_v53  ;;  %v6587_v9 = vadd.f32 %v11802_v11, %v18490_v24  ;;  %v18491_v18 = vld [vmem:[#allocation93_spill] sm:$0xff]  ;;  %v18492_v52 = vshrl.u32 %v18368_v46, 16 }
 0x30c   : > { %v2822_v22 = vsel %vm13492_vm13, %v2813_v1, %v2821_v51  ;;  %v2844_v0 = vor.u32 %v2843_v10, %v2840_v15  ;;  %v6590_v23 = vadd.f32 %v11805_v20, %v18491_v18  ;;  %v18493_v1 = vshll.u32 %v15998_v31, 16  ;;  %v2705_v20 = vld [vmem:[#allocation2 + $0x74] sm:$0x3]  ;;  %v18496_v15 = vld [vmem:[#allocation55_spill] sm:$0xff]  ;;  %v18497_v10 = vld [vmem:[#allocation56_spill] sm:$0xff] }
 0x30d   : > { %v2835_v28 = vsel %vm13492_vm13, %v2831_v54, %v2834_v8  ;;  %v2836_v3 = vrot.slane %v2834_v8, 4  ;;  %v11153_v45 = vcombine.low %v2812_v7, %v2822_v22  ;;  %v2854_v32 = vrot.slane %v2853_v2, 4  ;;  %v18494_v7 = vld [vmem:[#allocation30_spill] sm:$0xff]  ;;  %v18495_v8 = vld [vmem:[#allocation29_spill] sm:$0xff] }
 0x30e   : > { %v16294_v34 = vadd.f32 %v11878_v49, %v6587_v9  ;;  %v2855_v53 = vrot.slane %v18492_v52, 5  ;;  %v2856_v51 = vrot.slane %v18493_v1, 6  ;;  %v2861_v43 = vshrl.u32 %v2704_v44, 16 }
 0x30f   : > { %12454 = vmatprep.mubr.msk.bf16.mxu0 %vm3288_vm0, %v11153_v45  ;;  %v2845_v54 = vsel %vm13492_vm13, %v2836_v3, %v2844_v0  ;;  %v2864_v39 = vshll.u32 %v2704_v44, 16  ;;  %v11881_v11 = vadd.f32 %v18495_v8, %v18494_v7  ;;  %v2876_v25 = vor.u32 %v18497_v10, %v18496_v15  ;;  %v2706_v10 = vld [vmem:[#allocation2 + $0x80] sm:$0x3] }
 0x310   : > { %v11154_v37 = vcombine.low %v2835_v28, %v2845_v54  ;;  %v2857_v46 = vor.u32 %v2856_v51, %v2855_v53  ;;  %v2863_v49 = vrot.slane %v2861_v43, 5  ;;  %v18498_v31 = vshrl.u32 %v18384_v16, 16  ;;  %v18500_v53 = vld [vmem:[#allocation80_spill] sm:$0xff]  ;;  %v18501_v51 = vld [vmem:[#allocation70_spill] sm:$0xff] }
 0x311   : > { %v2866_v22 = vrot.slane %v2864_v39, 6  ;;  %v16309_v24 = vadd.f32 %v11881_v11, %v6590_v23  ;;  %v2877_v9 = vrot.slane %v2876_v25, 4  ;;  %v18499_v3 = vshll.u32 %v16035_v55, 16  ;;  %v18502_v16 = vld [vmem:[#allocation86_spill] sm:$0xff]  ;;  %v18503_v54 = vld [vmem:[#allocation72_spill] sm:$0xff]  ;;  %v16319_v23 = vpop.f32.mrb[76].mxu1 }
 0x312   : > { %v2878_v2 = vrot.slane %v18498_v31, 5  ;;  %v2858_v45 = vsel %vm13492_vm13, %v2854_v32, %v2857_v46  ;;  %v2859_v0 = vrot.slane %v2857_v46, 4  ;;  %v2884_v18 = vshrl.u32 %v2705_v20, 16  ;;  %v18504_v55 = vld [vmem:[#allocation71_spill] sm:$0xff]  ;;  %v18505_v11 = vld [vmem:[#allocation82_spill] sm:$0xff]  ;;  %v18507_v25 = vld [vmem:[#allocation60_spill] sm:$0xff]  ;;  %12455 = vmatmul.mubr.msk.bf16.gmra.mrb[88].mxu0 %vm3288_vm0, %v11154_v37 }
 0x313   : > { %v2879_v44 = vrot.slane %v18499_v3, 6  ;;  %v2887_v52 = vshll.u32 %v2705_v20, 16  ;;  %v2867_v1 = vor.u32 %v2866_v22, %v2863_v49  ;;  %v11808_v43 = vadd.f32 %v18501_v51, %v18500_v53  ;;  %v18506_v32 = vld [vmem:[#allocation59_spill] sm:$0xff]  ;;  %v16325_v20 = vpop.f32.mrb[77].mxu1 }
 0x314   : > { %v11811_v39 = vadd.f32 %v18503_v54, %v18502_v16  ;;  %v2886_v7 = vrot.slane %v2884_v18, 5  ;;  %v11884_v15 = vadd.f32 %v18505_v11, %v18504_v55  ;;  %v2899_v46 = vor.u32 %v18507_v25, %v18506_v32  ;;  %v16333_v3 = vpop.f32.mrb[78].mxu1 }
 0x315   : > { %v2880_v28 = vor.u32 %v2879_v44, %v2878_v2  ;;  %v2889_v8 = vrot.slane %v2887_v52, 6  ;;  %v2868_v49 = vsel %vm13492_vm13, %v2859_v0, %v2867_v1  ;;  %v6595_v22 = vadd.f32 %v11808_v43, %v15883_v5  ;;  %v16336_v51 = vpop.f32.mrb[79].mxu1  ;;  %v18510_v43 = vld [vmem:[#allocation150_spill] sm:$0xff] }
 0x316   : > { %v11155_v44 = vcombine.low %v2858_v45, %v2868_v49  ;;  %v6598_v52 = vadd.f32 %v11811_v39, %v15885_v58  ;;  %v2900_v53 = vrot.slane %v2899_v46, 4  ;;  %v18508_v37 = vshrl.u32 %v18406_v12, 16  ;;  %v18511_v58 = vld [vmem:[#allocation34_spill] sm:$0xff]  ;;  %v2707_v39 = vld [vmem:[#allocation2 + $0x8c] sm:$0x3] }
 0x317   : > { %v2881_v31 = vsel %vm13492_vm13, %v2877_v9, %v2880_v28  ;;  %v2882_v2 = vrot.slane %v2880_v28, 4  ;;  %v2890_v18 = vor.u32 %v2889_v8, %v2886_v7  ;;  %v16338_v16 = vadd.f32 %v11884_v15, %v6595_v22  ;;  %v18512_v7 = vld [vmem:[#allocation63_spill] sm:$0xff]  ;;  %v18513_v8 = vld [vmem:[#allocation64_spill] sm:$0xff] }
 0x318   : > { %v2901_v0 = vrot.slane %v18508_v37, 5  ;;  %v18509_v1 = vshll.u32 %v16082_v6, 16  ;;  %v2907_v28 = vshrl.u32 %v2706_v10, 16  ;;  %12458 = vmatprep.mubr.msk.bf16.mxu0 %vm3288_vm0, %v11155_v44  ;;  %v2910_v45 = vshll.u32 %v2706_v10, 16 }
 0x319   : > { %v2891_v5 = vsel %vm13492_vm13, %v2882_v2, %v2890_v18  ;;  %v11887_v54 = vadd.f32 %v18511_v58, %v18510_v43  ;;  %v2922_v55 = vor.u32 %v18513_v8, %v18512_v7  ;;  %v18514_v6 = vshrl.u32 %v18422_v27, 16  ;;  %v18518_v27 = vld [vmem:[#allocation91_spill] sm:$0xff]  ;;  %v18521_v58 = vld [vmem:[#allocation94_spill] sm:$0xff]  ;;  %v18522_v7 = vld [vmem:[#allocation96_spill] sm:$0xff] }
 0x31a   : > { %v2902_v9 = vrot.slane %v18509_v1, 6  ;;  %v11156_v11 = vcombine.low %v2881_v31, %v2891_v5  ;;  %v2909_v15 = vrot.slane %v2907_v28, 5  ;;  %v2912_v25 = vrot.slane %v2910_v45, 6  ;;  %v18519_v5 = vld [vmem:[#allocation92_spill] sm:$0xff] }
 0x31b   : > { %v2924_v32 = vrot.slane %v18514_v6, 5  ;;  %v16353_v46 = vadd.f32 %v11887_v54, %v6598_v52  ;;  %v2923_v49 = vrot.slane %v2922_v55, 4  ;;  %v18515_v2 = vshll.u32 %v16121_v14, 16  ;;  %v18520_v14 = vld [vmem:[#allocation95_spill] sm:$0xff]  ;;  %v11964_v55 = vpop.f32.mrb[80].mxu1 }
 0x31c   : > { %v2903_v12 = vor.u32 %v2902_v9, %v2901_v0  ;;  %v2930_v18 = vshrl.u32 %v2707_v39, 16  ;;  %v2933_v37 = vshll.u32 %v2707_v39, 16  ;;  %v2913_v1 = vor.u32 %v2912_v25, %v2909_v15  ;;  %v18516_v0 = vld [vmem:[#allocation33_spill] sm:$0xff]  ;;  %12459 = vmatmul.mubr.msk.bf16.gmra.mrb[92].mxu0 %vm3288_vm0, %v11156_v11 }
 0x31d   : > { %v2925_v10 = vrot.slane %v18515_v2, 6  ;;  %v18517_v9 = vld [vmem:[#allocation73_spill] sm:$0xff]  ;;  %v11817_v45 = vadd.f32 %v18519_v5, %v18518_v27  ;;  %v11890_v54 = vadd.f32 %v18521_v58, %v18520_v14  ;;  %v18526_v27 = vld [vmem:[#allocation84_spill] sm:$0xff] }
 0x31e   : > { %v2904_v22 = vsel %vm13492_vm13, %v2900_v53, %v2903_v12  ;;  %v2905_v44 = vrot.slane %v2903_v12, 4  ;;  %v11814_v28 = vadd.f32 %v18517_v9, %v18516_v0  ;;  %v2932_v52 = vrot.slane %v2930_v18, 5  ;;  %v18523_v53 = vld [vmem:[#allocation75_spill] sm:$0xff]  ;;  %v18525_v9 = vld [vmem:[#allocation74_spill] sm:$0xff]  ;;  %v18527_v5 = vld [vmem:[#allocation37_spill] sm:$0xff] }
 0x31f   : > { %v2926_v31 = vor.u32 %v2925_v10, %v2924_v32  ;;  %v2935_v43 = vrot.slane %v2933_v37, 6  ;;  %v11893_v8 = vadd.f32 %v18523_v53, %v18522_v7  ;;  %v11965_v32 = vpop.f32.mrb[81].mxu1  ;;  %v6606_v2 = vadd.f32 %v11817_v45, %v15958_v26  ;;  %v18524_v10 = vld [vmem:[#allocation87_spill] sm:$0xff]  ;;  %v18532_v58 = vld [vmem:[#allocation85_spill] sm:$0xff]  ;;  %v18534_v53 = vld [vmem:[#allocation78_spill] sm:$0xff] }
 0x320   : > { %v2914_v39 = vsel %vm13492_vm13, %v2905_v44, %v2913_v1  ;;  %v6603_v6 = vadd.f32 %v11814_v28, %v15956_v33  ;;  %v11820_v18 = vadd.f32 %v18524_v10, %v15887_v19  ;;  %v11967_v37 = vpop.f32.mrb[82].mxu1  ;;  %v11823_v44 = vadd.f32 %v18526_v27, %v18525_v9  ;;  %v18533_v7 = vld [vmem:[#allocation41_spill] sm:$0xff]  ;;  %v18541_v10 = vld [vmem:[#allocation46_spill] sm:$0xff] }
 0x321   : > { %v2927_v12 = vsel %vm13492_vm13, %v2923_v49, %v2926_v31  ;;  %v2928_v15 = vrot.slane %v2926_v31, 4  ;;  %v11157_v11 = vcombine.low %v2904_v22, %v2914_v39  ;;  %v2936_v25 = vor.u32 %v2935_v43, %v2932_v52  ;;  %v11968_v1 = vpop.f32.mrb[83].mxu1  ;;  %v18536_v39 = vld [vmem:[#allocation99_spill] sm:$0xff]  ;;  %v18542_v27 = vld [vmem:[#allocation102_spill] sm:$0xff] }
 0x322   : > { %v16376_v0 = vadd.f32 %v11890_v54, %v6603_v6  ;;  %v11896_v49 = vadd.f32 %v15931_v35, %v15925_v30  ;;  %v11899_v33 = vadd.f32 %v15939_v47, %v15933_v36  ;;  %v16387_v22 = vadd.f32 %v11893_v8, %v6606_v2  ;;  %v18528_v30 = vld [vmem:[#allocation38_spill] sm:$0xff]  ;;  %v18529_v35 = vld [vmem:[#allocation76_spill] sm:$0xff]  ;;  %v18538_v6 = vld [vmem:[#allocation101_spill] sm:$0xff] }
 0x323   : > { %12462 = vmatprep.mubr.msk.bf16.mxu0 %vm3288_vm0, %v11157_v11  ;;  %v2937_v26 = vsel %vm13492_vm13, %v2928_v15, %v2936_v25  ;;  %v6611_v19 = vadd.f32 %v11820_v18, %v15988_v57  ;;  %v11826_v31 = vadd.f32 %v15982_v17, %v15974_v41  ;;  %v6614_v45 = vadd.f32 %v11823_v44, %v18527_v5  ;;  %v18530_v36 = vld [vmem:[#allocation90_spill] sm:$0xff]  ;;  %v18535_v57 = vld [vmem:[#allocation79_spill] sm:$0xff]  ;;  %v18537_v17 = vld [vmem:[#allocation77_spill] sm:$0xff] }
 0x324   : > { %v11158_v28 = vcombine.low %v2927_v12, %v2937_v26  ;;  %v11829_v52 = vadd.f32 %v18529_v35, %v18528_v30  ;;  %v18531_v47 = vld [vmem:[#allocation42_spill] sm:$0xff]  ;;  %v11905_v8 = vadd.f32 %v18534_v53, %v18533_v7  ;;  %v11832_v15 = vadd.f32 %v18536_v39, %v18535_v57  ;;  %v18539_v11 = vld [vmem:[#allocation100_spill] sm:$0xff]  ;;  %v18544_v26 = vld [vmem:[#allocation107_spill] sm:$0xff] }
 0x325   : > { %v11902_v43 = vadd.f32 %v18531_v47, %v18530_v36  ;;  %v16397_v14 = vadd.f32 %v11896_v49, %v6611_v19  ;;  %v6619_v54 = vadd.f32 %v11826_v31, %v18532_v58  ;;  %v16404_v41 = vadd.f32 %v11899_v33, %v6614_v45  ;;  %v18540_v2 = vld [vmem:[#allocation88_spill] sm:$0xff]  ;;  %v18543_v49 = vld [vmem:[#allocation105_spill] sm:$0xff]  ;;  %v18550_v58 = vld [vmem:[#allocation106_spill] sm:$0xff] }
 0x326   : > { %v6622_v12 = vadd.f32 %v11829_v52, %v18537_v17  ;;  %v11835_v25 = vadd.f32 %v18539_v11, %v18538_v6  ;;  %v11908_v18 = vadd.f32 %v18541_v10, %v18540_v2  ;;  %12463 = vmatmul.mubr.msk.bf16.gmra.mrb[96].mxu0 %vm3288_vm0, %v11158_v28  ;;  %v6627_v44 = vadd.f32 %v11832_v15, %v18542_v27  ;;  %v18545_v31 = vld [vmem:[#allocation108_spill] sm:$0xff]  ;;  %v18546_v33 = vld [vmem:[#allocation109_spill] sm:$0xff]  ;;  %v18548_v52 = vld [vmem:[#allocation110_spill] sm:$0xff] }
 0x327   : > { %v16412_v9 = vadd.f32 %v11902_v43, %v6619_v54  ;;  %v11911_v19 = vadd.f32 %v18544_v26, %v18543_v49  ;;  %v11838_v5 = vadd.f32 %v18546_v33, %v18545_v31  ;;  %v18547_v30 = vld [vmem:[#allocation45_spill] sm:$0xff]  ;;  %v18549_v36 = vld [vmem:[#allocation112_spill] sm:$0xff]  ;;  %v11914_v28 = vadd.f32 %v16164_v13, %v16154_v29  ;;  %v18551_v7 = vld [vmem:[#allocation98_spill] sm:$0xff] }
 0x328   : > { %v16419_v45 = vadd.f32 %v11905_v8, %v6622_v12  ;;  %v6630_v35 = vadd.f32 %v11835_v25, %v18547_v30  ;;  %v11841_v47 = vadd.f32 %v18549_v36, %v18548_v52  ;;  %v16426_v43 = vadd.f32 %v11908_v18, %v6627_v44  ;;  %v18552_v53 = vld [vmem:[#allocation97_spill] sm:$0xff]  ;;  %v18553_v15 = vld [vmem:[#allocation111_spill] sm:$0xff]  ;;  %v18555_v2 = vld [vmem:[#allocation50_spill] sm:$0xff] }
 0x329   : > { %v6635_v54 = vadd.f32 %v11838_v5, %v18550_v58  ;;  %v11917_v57 = vadd.f32 %v18552_v53, %v18551_v7  ;;  %v11844_v39 = vadd.f32 %v16204_v59, %v16196_v4  ;;  %v11847_v12 = vadd.f32 %v16214_v50, %v16208_v42  ;;  %v18554_v6 = vld [vmem:[#allocation49_spill] sm:$0xff]  ;;  %v18558_v26 = vld [vmem:[#allocation114_spill] sm:$0xff] }
 0x32a   : > { %v16433_v8 = vadd.f32 %v11911_v19, %v6630_v35  ;;  %v6638_v17 = vadd.f32 %v11841_v47, %v18553_v15  ;;  %v11920_v13 = vadd.f32 %v16243_v62, %v16235_v56  ;;  %v11923_v25 = vadd.f32 %v16254_v40, %v16247_v60  ;;  %v18556_v62 = vld [vmem:[#allocation113_spill] sm:$0xff]  ;;  %v11970_v19 = vpop.f32.mrb[84].mxu1 }
 0x32b   : > { %v16440_v29 = vadd.f32 %v11914_v28, %v6635_v54  ;;  %v6643_v11 = vadd.f32 %v11844_v39, %v18554_v6  ;;  %v11850_v4 = vadd.f32 %v16265_v38, %v16256_v63  ;;  %v6646_v10 = vadd.f32 %v11847_v12, %v18555_v2  ;;  %v18557_v63 = vld [vmem:[#allocation115_spill] sm:$0xff]  ;;  %v11971_v31 = vpop.f32.mrb[85].mxu1 }
 0x32c   : > { %v16447_v59 = vadd.f32 %v11917_v57, %v6638_v17  ;;  %v11853_v42 = vadd.f32 %v16275_v48, %v16269_v21  ;;  %v11926_v50 = vadd.f32 %v16325_v20, %v16319_v23  ;;  %v11929_v60 = vadd.f32 %v16336_v51, %v16333_v3  ;;  %v18559_v23 = vld [vmem:[#allocation116_spill] sm:$0xff]  ;;  %v11973_v5 = vpop.f32.mrb[86].mxu1 }
 0x32d   : > { %v16454_v56 = vadd.f32 %v11920_v13, %v6643_v11  ;;  %v6651_v18 = vadd.f32 %v11850_v4, %v18556_v62  ;;  %v11966_v40 = vadd.f32 %v11965_v32, %v11964_v55  ;;  %v16459_v27 = vadd.f32 %v11923_v25, %v6646_v10  ;;  %v11974_v30 = vpop.f32.mrb[87].mxu1 }
 0x32e   : > { %v6654_v38 = vadd.f32 %v11853_v42, %v18557_v63  ;;  %v11969_v44 = vadd.f32 %v11968_v1, %v11967_v37  ;;  %v11972_v33 = vadd.f32 %v11971_v31, %v11970_v19  ;;  %v11975_v51 = vadd.f32 %v11974_v30, %v11973_v5  ;;  %v11976_v32 = vpop.f32.mrb[88].mxu1 }
 0x32f   : > { %v16462_v49 = vadd.f32 %v11926_v50, %v6651_v18  ;;  %v12549_v21 = vadd.f32 %v11966_v40, %v18558_v26  ;;  %v11977_v37 = vpop.f32.mrb[89].mxu1 }
 0x330   : > { %v16465_v48 = vadd.f32 %v11929_v60, %v6654_v38  ;;  %v12555_v20 = vadd.f32 %v11969_v44, %v18559_v23  ;;  %v12546_v3 = vadd.f32 %v11972_v33, %v16294_v34  ;;  %v12552_v55 = vadd.f32 %v11975_v51, %v16309_v24  ;;  %v11979_v35 = vpop.f32.mrb[90].mxu1 }
 0x331   : > { %v11978_v1 = vadd.f32 %v11977_v37, %v11976_v32  ;;  %v11980_v52 = vpop.f32.mrb[91].mxu1 }
 0x332   : > { %v11981_v47 = vadd.f32 %v11980_v52, %v11979_v35 }
 0x333   : > { %v16471_v36 = vadd.f32 %v11978_v1, %v16338_v16 }
 0x334   : > { %v16474_v28 = vadd.f32 %v11981_v47, %v16353_v46 }
 0x33e   : > { %v11982_v58 = vpop.f32.mrb[92].mxu1 }
 0x33f   : > { %v11983_v54 = vpop.f32.mrb[93].mxu1 }
 0x340   : > { %v11984_v7 = vadd.f32 %v11983_v54, %v11982_v58  ;;  %v11985_v53 = vpop.f32.mrb[94].mxu1 }
 0x341   : > { %v11986_v34 = vpop.f32.mrb[95].mxu1 }
 0x342   : > { %v16477_v57 = vadd.f32 %v11984_v7, %v16376_v0  ;;  %v11987_v24 = vadd.f32 %v11986_v34, %v11985_v53 }
 0x344   : > { %v16480_v39 = vadd.f32 %v11987_v24, %v16387_v22 }
 0x352   : > { %v11988_v15 = vpop.f32.mrb[96].mxu1 }
 0x353   : > { %v11989_v17 = vpop.f32.mrb[97].mxu1 }
 0x354   : > { %v11990_v16 = vadd.f32 %v11989_v17, %v11988_v15  ;;  %v11991_v12 = vpop.f32.mrb[98].mxu1 }
 0x355   : > { %v11992_v13 = vpop.f32.mrb[99].mxu1 }
 0x356   : > { %v16483_v46 = vadd.f32 %v11990_v16, %v16397_v14  ;;  %v11993_v6 = vadd.f32 %v11992_v13, %v11991_v12  ;;  %v12040_v11 = vpop.f32.mrb[100].mxu0 }
 0x357   : > { %v12041_v25 = vpop.f32.mrb[101].mxu0 }
 0x358   : > { %v16486_v4 = vadd.f32 %v11993_v6, %v16404_v41  ;;  %v12042_v0 = vadd.f32 %v12041_v25, %v12040_v11  ;;  %v12043_v2 = vpop.f32.mrb[102].mxu0 }
 0x359   : > { %v12044_v10 = vpop.f32.mrb[103].mxu0 }
 0x35a   : > { %v12045_v42 = vadd.f32 %v12044_v10, %v12043_v2  ;;  %v16488_v22 = vadd.f32 %v12549_v21, %v12042_v0 }
 0x35c   : > { %v16490_v50 = vadd.f32 %v12555_v20, %v12045_v42 }
 0x360   : > { %v11994_v62 = vpop.f32.mrb[100].mxu1 }
 0x361   : > { %v11995_v18 = vpop.f32.mrb[101].mxu1 }
 0x362   : > { %v11996_v60 = vadd.f32 %v11995_v18, %v11994_v62  ;;  %v11997_v40 = vpop.f32.mrb[102].mxu1 }
 0x363   : > { %v11998_v14 = vpop.f32.mrb[103].mxu1 }
 0x364   : > { %v16493_v63 = vadd.f32 %v11996_v60, %v16412_v9  ;;  %v11999_v38 = vadd.f32 %v11998_v14, %v11997_v40 }
 0x366   : > { %v16496_v41 = vadd.f32 %v11999_v38, %v16419_v45 }
 0x36c   : > { %v12046_v44 = vpop.f32.mrb[104].mxu0 }
 0x36d   : > { %v12000_v26 = vpop.f32.mrb[104].mxu1  ;;  %v12047_v23 = vpop.f32.mrb[105].mxu0 }
 0x36e   : > { %v12001_v19 = vpop.f32.mrb[105].mxu1  ;;  %v12048_v21 = vadd.f32 %v12047_v23, %v12046_v44  ;;  %v12049_v31 = vpop.f32.mrb[106].mxu0 }
 0x36f   : > { %v12002_v20 = vadd.f32 %v12001_v19, %v12000_v26  ;;  %v12003_v33 = vpop.f32.mrb[106].mxu1  ;;  %v12050_v5 = vpop.f32.mrb[107].mxu0 }
 0x370   : > { %v12004_v30 = vpop.f32.mrb[107].mxu1  ;;  %v12051_v51 = vadd.f32 %v12050_v5, %v12049_v31  ;;  %v16498_v32 = vadd.f32 %v12546_v3, %v12048_v21 }
 0x371   : > { %v16501_v9 = vadd.f32 %v12002_v20, %v16426_v43  ;;  %v12005_v37 = vadd.f32 %v12004_v30, %v12003_v33 }
 0x372   : > { %v16503_v1 = vadd.f32 %v12552_v55, %v12051_v51 }
 0x373   : > { %v16506_v45 = vadd.f32 %v12005_v37, %v16433_v8 }
 0x37c   : > { %v12006_v35 = vpop.f32.mrb[108].mxu1  ;;  %v12052_v52 = vpop.f32.mrb[108].mxu0 }
 0x37d   : > { %v12007_v47 = vpop.f32.mrb[109].mxu1  ;;  %v12053_v58 = vpop.f32.mrb[109].mxu0 }
 0x37e   : > { %v12008_v54 = vadd.f32 %v12007_v47, %v12006_v35  ;;  %v12054_v7 = vadd.f32 %v12053_v58, %v12052_v52  ;;  %v12009_v53 = vpop.f32.mrb[110].mxu1  ;;  %v12055_v34 = vpop.f32.mrb[110].mxu0 }
 0x37f   : > { %v12010_v24 = vpop.f32.mrb[111].mxu1  ;;  %v12056_v3 = vpop.f32.mrb[111].mxu0 }
 0x380   : > { %v12582_v15 = vadd.f32 %v12008_v54, %v16440_v29  ;;  %v12011_v43 = vadd.f32 %v12010_v24, %v12009_v53  ;;  %v12057_v17 = vadd.f32 %v12056_v3, %v12055_v34  ;;  %v16510_v55 = vadd.f32 %v16471_v36, %v12054_v7 }
 0x382   : > { %v12588_v8 = vadd.f32 %v12011_v43, %v16447_v59  ;;  %v16514_v16 = vadd.f32 %v16474_v28, %v12057_v17 }
 0x38e   : > { %v12012_v12 = vpop.f32.mrb[112].mxu1  ;;  %v12058_v13 = vpop.f32.mrb[112].mxu0 }
 0x38f   : > { %v12013_v6 = vpop.f32.mrb[113].mxu1  ;;  %v12059_v11 = vpop.f32.mrb[113].mxu0 }
 0x390   : > { %v12014_v25 = vadd.f32 %v12013_v6, %v12012_v12  ;;  %v12060_v0 = vadd.f32 %v12059_v11, %v12058_v13  ;;  %v12015_v2 = vpop.f32.mrb[114].mxu1  ;;  %v12061_v10 = vpop.f32.mrb[114].mxu0 }
 0x391   : > { %v12016_v42 = vpop.f32.mrb[115].mxu1  ;;  %v12062_v29 = vpop.f32.mrb[115].mxu0 }
 0x392   : > { %v12597_v62 = vadd.f32 %v12014_v25, %v16454_v56  ;;  %v12017_v18 = vadd.f32 %v12016_v42, %v12015_v2  ;;  %v12063_v36 = vadd.f32 %v12062_v29, %v12061_v10  ;;  %v16518_v60 = vadd.f32 %v16477_v57, %v12060_v0 }
 0x394   : > { %v12603_v59 = vadd.f32 %v12017_v18, %v16459_v27  ;;  %v16522_v28 = vadd.f32 %v16480_v39, %v12063_v36 }
 0x3a0   : > { %v12018_v40 = vpop.f32.mrb[116].mxu1  ;;  %v12064_v14 = vpop.f32.mrb[116].mxu0 }
 0x3a1   : > { %v12019_v38 = vpop.f32.mrb[117].mxu1  ;;  %v12065_v26 = vpop.f32.mrb[117].mxu0 }
 0x3a2   : > { %v12020_v44 = vadd.f32 %v12019_v38, %v12018_v40  ;;  %v12021_v23 = vpop.f32.mrb[118].mxu1  ;;  %v12066_v19 = vadd.f32 %v12065_v26, %v12064_v14  ;;  %v12067_v21 = vpop.f32.mrb[118].mxu0  ;;  %v16559_v26 = vld [vmem:[%s17823_s10] ss:$0 sm:$0xff] }
 0x3a3   : > { %v12022_v31 = vpop.f32.mrb[119].mxu1  ;;  %v12068_v33 = vpop.f32.mrb[119].mxu0 }
 0x3a4   : > { %v12594_v56 = vadd.f32 %v12020_v44, %v16462_v49  ;;  %v12023_v20 = vadd.f32 %v12022_v31, %v12021_v23  ;;  %v12069_v57 = vadd.f32 %v12068_v33, %v12067_v21  ;;  %v16526_v5 = vadd.f32 %v16483_v46, %v12066_v19 }
 0x3a6   : > { %v12600_v27 = vadd.f32 %v12023_v20, %v16465_v48  ;;  %v16530_v39 = vadd.f32 %v16486_v4, %v12069_v57 }
 0x3ab   : > { %v12070_v30 = vpop.f32.mrb[120].mxu0 }
 0x3ac   : > { %v12071_v51 = vpop.f32.mrb[121].mxu0 }
 0x3ad   : > { %v12072_v37 = vadd.f32 %v12071_v51, %v12070_v30  ;;  %v12073_v35 = vpop.f32.mrb[122].mxu0 }
 0x3ae   : > { %v12074_v52 = vpop.f32.mrb[123].mxu0 }
 0x3af   : > { %v12075_v47 = vadd.f32 %v12074_v52, %v12073_v35  ;;  %v16533_v58 = vadd.f32 %v16493_v63, %v12072_v37 }
 0x3b1   : > { %v16536_v49 = vadd.f32 %v16496_v41, %v12075_v47 }
 0x3b3   : > { %v12076_v54 = vpop.f32.mrb[124].mxu0 }
 0x3b4   : > { %v12077_v46 = vpop.f32.mrb[125].mxu0 }
 0x3b5   : > { %v12078_v7 = vadd.f32 %v12077_v46, %v12076_v54  ;;  %v12079_v53 = vpop.f32.mrb[126].mxu0 }
 0x3b6   : > { %v12080_v48 = vpop.f32.mrb[127].mxu0 }
 0x3b7   : > { %v12081_v34 = vadd.f32 %v12080_v48, %v12079_v53  ;;  %v16539_v4 = vadd.f32 %v16501_v9, %v12078_v7 }
 0x3b9   : > { %v16542_v24 = vadd.f32 %v16506_v45, %v12081_v34 }
 0x3bb   : > { %v12082_v3 = vpop.f32.mrb[128].mxu0 }
 0x3bc   : > { %v12083_v43 = vpop.f32.mrb[129].mxu0 }
 0x3bd   : > { %v12084_v17 = vadd.f32 %v12083_v43, %v12082_v3  ;;  %v12085_v63 = vpop.f32.mrb[130].mxu0 }
 0x3be   : > { %v12086_v12 = vpop.f32.mrb[131].mxu0 }
 0x3bf   : > { %v12087_v13 = vadd.f32 %v12086_v12, %v12085_v63  ;;  %v16544_v41 = vadd.f32 %v12582_v15, %v12084_v17 }
 0x3c1   : > { %v16546_v6 = vadd.f32 %v12588_v8, %v12087_v13 }
 0x3c4   : > { %v12088_v11 = vpop.f32.mrb[132].mxu0 }
 0x3c5   : > { %v12089_v25 = vpop.f32.mrb[133].mxu0 }
 0x3c6   : > { %v12090_v0 = vadd.f32 %v12089_v25, %v12088_v11  ;;  %v12091_v2 = vpop.f32.mrb[134].mxu0 }
 0x3c7   : > { %v12092_v10 = vpop.f32.mrb[135].mxu0 }
 0x3c8   : > { %v12093_v9 = vadd.f32 %v12092_v10, %v12091_v2  ;;  %v16548_v42 = vadd.f32 %v12597_v62, %v12090_v0 }
 0x3ca   : > { %v16550_v45 = vadd.f32 %v12603_v59, %v12093_v9 }
 0x3cc   : > { %v12094_v29 = vpop.f32.mrb[136].mxu0 }
 0x3cd   : > { %v12095_v18 = vpop.f32.mrb[137].mxu0 }
 0x3ce   : > { %v12096_v36 = vadd.f32 %v12095_v18, %v12094_v29  ;;  %v12097_v40 = vpop.f32.mrb[138].mxu0 }
 0x3cf   : > { %v12098_v14 = vpop.f32.mrb[139].mxu0 }
 0x3d0   : > { %v12099_v38 = vadd.f32 %v12098_v14, %v12097_v40  ;;  %v16552_v15 = vadd.f32 %v12594_v56, %v12096_v36 }
 0x3d2   : > { %v16554_v8 = vadd.f32 %v12600_v27, %v12099_v38 }
 0x3d4   : > { %v12448_v44 = vpop.f32.mrb[80].mxu0 }
 0x3d5   : > { %v12548_v62 = vadd.f32 %v16498_v32, %v12448_v44  ;;  %v7389_v59 = vpop.f32.mrb[81].mxu0 }
 0x3d6   : > { %v12551_v23 = vadd.f32 %v16488_v22, %v7389_v59  ;;  %v12449_v19 = vpop.f32.mrb[82].mxu0 }
 0x3d7   : > { %v16564_v21 = vadd.f32 %v12548_v62, %v16559_v26  ;;  %v12554_v31 = vadd.f32 %v16503_v1, %v12449_v19  ;;  %v7392_v56 = vpop.f32.mrb[83].mxu0 }
 0x3d8   : > { %v7475_v20 = vadd.f32 %v12551_v23, %v16559_v26  ;;  %v12557_v33 = vadd.f32 %v16490_v50, %v7392_v56 }
 0x3d9   : > { %v7497_v57 = vmax.f32 %v16564_v21, 0.0  ;;  %v16571_v27 = vadd.f32 %v12554_v31, %v16559_v26 }
 0x3da   : > { %v7495_v32 = vmax.f32 %v7475_v20, 0.0  ;;  %v7476_v30 = vadd.f32 %v12557_v33, %v16559_v26 }
 0x3db   : > { %v11607_v22 = vpack.c.bf16 %v7497_v57, %v7497_v57  ;;  %v7498_v51 = vmax.f32 %v16571_v27, 0.0 }
 0x3dc   : > { %v11605_v37 = vpack.c.bf16 %v7495_v32, %v7495_v32  ;;  %v7496_v35 = vmax.f32 %v7476_v30, 0.0  ;;  %v12452_v52 = vpop.f32.mrb[84].mxu0 }
 0x3dd   : > { %v7600_v1 = vrot.slane %v11607_v22, 7  ;;  %v11608_v47 = vpack.c.bf16 %v7498_v51, %v7498_v51  ;;  %v12560_v54 = vadd.f32 %v16518_v60, %v12452_v52  ;;  %v7405_v46 = vpop.f32.mrb[85].mxu0 }
 0x3de   : > { %v7595_v50 = vrot.slane %v11605_v37, 7  ;;  %v11606_v7 = vpack.c.bf16 %v7496_v35, %v7496_v35  ;;  %v12563_v53 = vadd.f32 %v16510_v55, %v7405_v46  ;;  %v12453_v48 = vpop.f32.mrb[86].mxu0 }
 0x3df   : > { %v7601_v34 = vrot.slane %v7600_v1, 4  ;;  %7678 = vst [vmem:[#allocation4 + $0xc] sm:$0xe] %v7600_v1  ;;  %v7602_v3 = vrot.slane %v11608_v47, 7  ;;  %v16578_v43 = vadd.f32 %v12560_v54, %v16559_v26  ;;  %v12566_v17 = vadd.f32 %v16522_v28, %v12453_v48  ;;  %v7408_v63 = vpop.f32.mrb[87].mxu0 }
 0x3e0   : > { %v7596_v12 = vrot.slane %v7595_v50, 4  ;;  %7675 = vst [vmem:[#allocation4] sm:$0xe] %v7595_v50  ;;  %v7597_v13 = vrot.slane %v11606_v7, 7  ;;  %v16582_v60 = vadd.f32 %v12563_v53, %v16559_v26  ;;  %v12569_v11 = vadd.f32 %v16514_v16, %v7408_v63 }
 0x3e1   : > { %v7603_v55 = vsel %vm13417_vm4, %v7601_v34, %v7602_v3  ;;  %v7604_v0 = vrot.slane %v7602_v3, 4  ;;  %v7501_v2 = vmax.f32 %v16578_v43, 0.0  ;;  %v16589_v10 = vadd.f32 %v12566_v17, %v16559_v26 }
 0x3e2   : > { %7679 = vst [vmem:[#allocation4 + $0x10] sm:$0xf] %v7603_v55  ;;  %v7598_v28 = vsel %vm13417_vm4, %v7596_v12, %v7597_v13  ;;  %v7599_v9 = vrot.slane %v7597_v13, 4  ;;  %v7499_v29 = vmax.f32 %v16582_v60, 0.0  ;;  %v16595_v18 = vadd.f32 %v12569_v11, %v16559_v26 }
 0x3e3   : > { %7680 = vst [vmem:[#allocation4 + $0x14] sm:$0x1] %v7604_v0  ;;  %7676 = vst [vmem:[#allocation4 + $0x4] sm:$0xf] %v7598_v28  ;;  %v11611_v16 = vpack.c.bf16 %v7501_v2, %v7501_v2  ;;  %v7502_v36 = vmax.f32 %v16589_v10, 0.0 }
 0x3e4   : > { %7677 = vst [vmem:[#allocation4 + $0x8] sm:$0x1] %v7599_v9  ;;  %v11609_v40 = vpack.c.bf16 %v7499_v29, %v7499_v29  ;;  %v7500_v14 = vmax.f32 %v16595_v18, 0.0 }
 0x3e5   : > { %v12456_v38 = vpop.f32.mrb[88].mxu0  ;;  %v7610_v44 = vrot.slane %v11611_v16, 7  ;;  %v11612_v62 = vpack.c.bf16 %v7502_v36, %v7502_v36 }
 0x3e6   : > { %v12572_v59 = vadd.f32 %v16533_v58, %v12456_v38  ;;  %v7421_v23 = vpop.f32.mrb[89].mxu0  ;;  %v7605_v19 = vrot.slane %v11609_v40, 7  ;;  %v11610_v31 = vpack.c.bf16 %v7500_v14, %v7500_v14 }
 0x3e7   : > { %v12575_v56 = vadd.f32 %v16526_v5, %v7421_v23  ;;  %v12457_v20 = vpop.f32.mrb[90].mxu0  ;;  %v7611_v33 = vrot.slane %v7610_v44, 4  ;;  %7684 = vst [vmem:[#allocation4 + $0x24] sm:$0xe] %v7610_v44  ;;  %v7612_v57 = vrot.slane %v11612_v62, 7 }
 0x3e8   : > { %v16602_v32 = vadd.f32 %v12572_v59, %v16559_v26  ;;  %v12578_v30 = vadd.f32 %v16536_v49, %v12457_v20  ;;  %v7424_v22 = vpop.f32.mrb[91].mxu0  ;;  %v7606_v51 = vrot.slane %v7605_v19, 4  ;;  %7681 = vst [vmem:[#allocation4 + $0x18] sm:$0xe] %v7605_v19  ;;  %v7607_v37 = vrot.slane %v11610_v31, 7 }
 0x3e9   : > { %v16606_v58 = vadd.f32 %v12575_v56, %v16559_v26  ;;  %v12581_v35 = vadd.f32 %v16530_v39, %v7424_v22  ;;  %v7613_v5 = vsel %vm13417_vm4, %v7611_v33, %v7612_v57  ;;  %v7614_v52 = vrot.slane %v7612_v57, 4 }
 0x3ea   : > { %v7505_v1 = vmax.f32 %v16602_v32, 0.0  ;;  %v16613_v47 = vadd.f32 %v12578_v30, %v16559_v26  ;;  %7685 = vst [vmem:[#allocation4 + $0x28] sm:$0xf] %v7613_v5  ;;  %v7608_v49 = vsel %vm13417_vm4, %v7606_v51, %v7607_v37  ;;  %v7609_v54 = vrot.slane %v7607_v37, 4 }
 0x3eb   : > { %v7503_v46 = vmax.f32 %v16606_v58, 0.0  ;;  %v16619_v50 = vadd.f32 %v12581_v35, %v16559_v26  ;;  %7686 = vst [vmem:[#allocation4 + $0x2c] sm:$0x1] %v7614_v52  ;;  %7682 = vst [vmem:[#allocation4 + $0x1c] sm:$0xf] %v7608_v49 }
 0x3ec   : > { %v11615_v39 = vpack.c.bf16 %v7505_v1, %v7505_v1  ;;  %v7506_v7 = vmax.f32 %v16613_v47, 0.0  ;;  %7683 = vst [vmem:[#allocation4 + $0x20] sm:$0x1] %v7609_v54 }
 0x3ed   : > { %v11613_v53 = vpack.c.bf16 %v7503_v46, %v7503_v46  ;;  %v7504_v48 = vmax.f32 %v16619_v50, 0.0 }
 0x3ee   : > { %v7620_v3 = vrot.slane %v11615_v39, 7  ;;  %v11616_v17 = vpack.c.bf16 %v7506_v7, %v7506_v7 }
 0x3ef   : > { %v12460_v34 = vpop.f32.mrb[92].mxu0  ;;  %v7615_v13 = vrot.slane %v11613_v53, 7  ;;  %v11614_v11 = vpack.c.bf16 %v7504_v48, %v7504_v48 }
 0x3f0   : > { %v12584_v63 = vadd.f32 %v16544_v41, %v12460_v34  ;;  %v7437_v12 = vpop.f32.mrb[93].mxu0  ;;  %v7621_v2 = vrot.slane %v7620_v3, 4  ;;  %7690 = vst [vmem:[#allocation4 + $0x3c] sm:$0xe] %v7620_v3  ;;  %v7622_v28 = vrot.slane %v11616_v17, 7 }
 0x3f1   : > { %v12587_v55 = vadd.f32 %v16539_v4, %v7437_v12  ;;  %v12461_v0 = vpop.f32.mrb[94].mxu0  ;;  %v7616_v36 = vrot.slane %v7615_v13, 4  ;;  %7687 = vst [vmem:[#allocation4 + $0x30] sm:$0xe] %v7615_v13  ;;  %v7617_v40 = vrot.slane %v11614_v11, 7 }
 0x3f2   : > { %v16626_v9 = vadd.f32 %v12584_v63, %v16559_v26  ;;  %v12590_v29 = vadd.f32 %v16546_v6, %v12461_v0  ;;  %v7440_v16 = vpop.f32.mrb[95].mxu0  ;;  %v7623_v4 = vsel %vm13417_vm4, %v7621_v2, %v7622_v28  ;;  %v7624_v38 = vrot.slane %v7622_v28, 4 }
 0x3f3   : > { %v16630_v41 = vadd.f32 %v12587_v55, %v16559_v26  ;;  %v12593_v14 = vadd.f32 %v16542_v24, %v7440_v16  ;;  %7691 = vst [vmem:[#allocation4 + $0x40] sm:$0xf] %v7623_v4  ;;  %v7618_v6 = vsel %vm13417_vm4, %v7616_v36, %v7617_v40  ;;  %v7619_v59 = vrot.slane %v7617_v40, 4 }
 0x3f4   : > { %v7509_v44 = vmax.f32 %v16626_v9, 0.0  ;;  %v16637_v62 = vadd.f32 %v12590_v29, %v16559_v26  ;;  %7692 = vst [vmem:[#allocation4 + $0x44] sm:$0x1] %v7624_v38  ;;  %7688 = vst [vmem:[#allocation4 + $0x34] sm:$0xf] %v7618_v6 }
 0x3f5   : > { %v7507_v23 = vmax.f32 %v16630_v41, 0.0  ;;  %v16643_v19 = vadd.f32 %v12593_v14, %v16559_v26  ;;  %7689 = vst [vmem:[#allocation4 + $0x38] sm:$0x1] %v7619_v59  ;;  %v13060_v59 = vmov (!%p11418_p1), 0  }
 0x3f6   : > { %v11619_v24 = vpack.c.bf16 %v7509_v44, %v7509_v44  ;;  %v7510_v31 = vmax.f32 %v16637_v62, 0.0  ;;  %7709 = vst [vmem:[#allocation4] sm:$0xf] (!%p11418_p1), %v13060_v59  ;;  %7710 = vst [vmem:[#allocation4 + $0x4] sm:$0xf] (!%p11418_p1), %v13060_v59 }
 0x3f7   : > { %v11617_v56 = vpack.c.bf16 %v7507_v23, %v7507_v23  ;;  %v7508_v20 = vmax.f32 %v16643_v19, 0.0  ;;  %7711 = vst [vmem:[#allocation4 + $0x8] sm:$0x3] (!%p11418_p1), %v13060_v59 }
 0x3f8   : > { %v7630_v57 = vrot.slane %v11619_v24, 7  ;;  %v11620_v30 = vpack.c.bf16 %v7510_v31, %v7510_v31 }
 0x3f9   : > { %v12464_v33 = vpop.f32.mrb[96].mxu0  ;;  %v7625_v37 = vrot.slane %v11617_v56, 7  ;;  %v11618_v35 = vpack.c.bf16 %v7508_v20, %v7508_v20 }
 0x3fa   : > { %v12596_v22 = vadd.f32 %v16552_v15, %v12464_v33  ;;  %v7453_v51 = vpop.f32.mrb[97].mxu0  ;;  %v7631_v1 = vrot.slane %v7630_v57, 4  ;;  %7696 = vst [vmem:[#allocation4 + $0x54] sm:$0xe] %v7630_v57  ;;  %v7632_v49 = vrot.slane %v11620_v30, 7 }
 0x3fb   : > { %v12599_v5 = vadd.f32 %v16548_v42, %v7453_v51  ;;  %v12465_v52 = vpop.f32.mrb[98].mxu0  ;;  %v7626_v7 = vrot.slane %v7625_v37, 4  ;;  %7693 = vst [vmem:[#allocation4 + $0x48] sm:$0xe] %v7625_v37  ;;  %v7627_v53 = vrot.slane %v11618_v35, 7 }
 0x3fc   : > { %v7493_v54 = vadd.f32 %v12596_v22, %v16559_v26  ;;  %v12602_v46 = vadd.f32 %v16554_v8, %v12465_v52  ;;  %v7456_v39 = vpop.f32.mrb[99].mxu0  ;;  %v7633_v42 = vsel %vm13417_vm4, %v7631_v1, %v7632_v49  ;;  %v7634_v34 = vrot.slane %v7632_v49, 4 }
 0x3fd   : > { %v16652_v48 = vadd.f32 %v12599_v5, %v16559_v26  ;;  %v12605_v15 = vadd.f32 %v16550_v45, %v7456_v39  ;;  %7697 = vst [vmem:[#allocation4 + $0x58] sm:$0xf] %v7633_v42  ;;  %v7628_v8 = vsel %vm13417_vm4, %v7626_v7, %v7627_v53  ;;  %v7629_v63 = vrot.slane %v7627_v53, 4 }
 0x3fe   : > { %v7513_v3 = vmax.f32 %v7493_v54, 0.0  ;;  %v7494_v17 = vadd.f32 %v12602_v46, %v16559_v26  ;;  %7698 = vst [vmem:[#allocation4 + $0x5c] sm:$0x1] %v7634_v34  ;;  %7694 = vst [vmem:[#allocation4 + $0x4c] sm:$0xf] %v7628_v8 }
 0x3ff   : > { %v7511_v12 = vmax.f32 %v16652_v48, 0.0  ;;  %v16662_v13 = vadd.f32 %v12605_v15, %v16559_v26  ;;  %7695 = vst [vmem:[#allocation4 + $0x50] sm:$0x1] %v7629_v63 }
 0x400   : > { %v11623_v45 = vpack.c.bf16 %v7513_v3, %v7513_v3  ;;  %v7514_v11 = vmax.f32 %v7494_v17, 0.0 }
 0x401   : > { %v11621_v55 = vpack.c.bf16 %v7511_v12, %v7511_v12  ;;  %v7512_v0 = vmax.f32 %v16662_v13, 0.0 }
 0x402   : > { %v7640_v2 = vrot.slane %v11623_v45, 7  ;;  %v11624_v28 = vpack.c.bf16 %v7514_v11, %v7514_v11 }
 0x403   : > { %v7635_v29 = vrot.slane %v11621_v55, 7  ;;  %v11622_v16 = vpack.c.bf16 %v7512_v0, %v7512_v0  ;;  %7708 = sbr.rel (%p11418_p1) target bundleno = 1034 (0x40a), region = 76 }
 0x404   : > { %v7641_v36 = vrot.slane %v7640_v2, 4  ;;  %7702 = vst [vmem:[#allocation4 + $0x6c] sm:$0xe] %v7640_v2  ;;  %v7642_v40 = vrot.slane %v11624_v28, 7 }
 0x405   : > { %v7636_v14 = vrot.slane %v7635_v29, 4  ;;  %7699 = vst [vmem:[#allocation4 + $0x60] sm:$0xe] %v7635_v29  ;;  %v7637_v26 = vrot.slane %v11622_v16, 7 }
 0x406   : > { %v7643_v4 = vsel %vm13417_vm4, %v7641_v36, %v7642_v40  ;;  %v7644_v38 = vrot.slane %v7642_v40, 4 }
 0x407   : > { %7703 = vst [vmem:[#allocation4 + $0x70] sm:$0xf] %v7643_v4  ;;  %v7638_v44 = vsel %vm13417_vm4, %v7636_v14, %v7637_v26  ;;  %v7639_v6 = vrot.slane %v7637_v26, 4 }
 0x408   : > { %7704 = vst [vmem:[#allocation4 + $0x74] sm:$0x1] %v7644_v38  ;;  %7700 = vst [vmem:[#allocation4 + $0x64] sm:$0xf] %v7638_v44 }
 0x409   : > { %7701 = vst [vmem:[#allocation4 + $0x68] sm:$0x1] %v7639_v6 }
 0x40a PF: > { %p11419_p2 = scmp.ne.s32.totalorder %s13040_s28, 1 }
 0x40b   : > { %v13061_v23 = vmov (!%p11419_p2), 0  }
 0x40c   : > { %7715 = sbr.rel (%p11419_p2) target bundleno = 1043 (0x413), region = 80  ;;  %7717 = vst [vmem:[#allocation4 + $0x6c] sm:$0xf] (!%p11419_p2), %v13061_v23  ;;  %7718 = vst [vmem:[#allocation4 + $0x70] sm:$0xf] (!%p11419_p2), %v13061_v23 }
 0x40d   : > { %7719 = vst [vmem:[#allocation4 + $0x74] sm:$0x3] (!%p11419_p2), %v13061_v23 }
 0x413 PF: > { %v12877_v25 = vld [vmem:[%s17821_s8 + $0x40] sm:$0xff]   ;;  %v12879_v31 = vld [vmem:[%s17821_s8 + $0x48] sm:$0xff]   ;;  %v12881_v20 = vld [vmem:[%s17821_s8 + $0x50] sm:$0xff]   ;;  %s11625_s20 = sshll.u32 %s13040_s28, 4  ;;  %s11601_s18 = sshll.u32 %s13044_s29, 5 }
 0x414   : > { %v12878_v24 = vld [vmem:[%s17821_s8] sm:$0xff]   ;;  %12114 = vmatprep.subr.bf16.mxu1 %v12877_v25  ;;  %v12880_v56 = vld [vmem:[%s17821_s8 + $0x8] sm:$0xff]   ;;  %v12882_v33 = vld [vmem:[%s17821_s8 + $0x10] sm:$0xff]   ;;  %s10820_s24 = sadd.s32 %s11625_s20, %s11601_s18  ;;  %s18579_s28 = sld [smem:[#allocation9_spill]] }
 0x415   : > { %12115 = vmatpush3.bf16.msra.mxu1 %v12878_v24  ;;  %v12883_v57 = vld [vmem:[%s17821_s8 + $0x58] sm:$0xff]   ;;  %v12885_v22 = vld [vmem:[%s17821_s8 + $0x60] sm:$0xff]   ;;  %v12887_v37 = vld [vmem:[%s17821_s8 + $0x68] sm:$0xff]   ;;  %s11602_s29 = sshll.u32 %s10820_s24, 7  ;;  %s10823_s13 = sshll.u32 %s16670_s14, 4  ;;  %s17754_s13 = int_to_ptr.vmem [resolvable:$true] %s10823_s13 }
 0x416   : > { %12116 = vmatprep.subr.bf16.mxu1 %v12879_v31  ;;  %v12884_v30 = vld [vmem:[%s17821_s8 + $0x18] sm:$0xff]   ;;  %v12886_v51 = vld [vmem:[%s17821_s8 + $0x20] sm:$0xff]   ;;  %v7722_v5 = vld [vmem:[#allocation4 + $0x8] sm:$0x1]  ;;  %s18581_s26 = sld [smem:[#allocation151_spill]]  ;;  %s12962_s30 = scalar_lea.vmem %s17754_s13, 2048 }
 0x417   : > { %v7721_v35 = vld [vmem:[#allocation4 + $0x4] sm:$0xf]  ;;  %v7936_v52 = vld [vmem:[#allocation4] sm:$0xe]  ;;  %v7764_v54 = vshll.u32 %v7722_v5, 16  ;;  %v7973_v53 = vrot.slane %v7722_v5, 5  ;;  %p12963_p4 = scmp.ne.s32.totalorder %s17754_s13, %s12962_s30 }
 0x418   : > { %v7754_v1 = vshll.u32 %v7721_v35, 16  ;;  %v7758_v49 = vshrl.u32 %v7721_v35, 16  ;;  %v11420_v46 = vrot.slane %v7936_v52, 9  ;;  %v7720_v39 = vld [vmem:[#allocation4] sm:$0xf]  ;;  %v7970_v7 = vrot.slane %v7721_v35, 5 }
 0x419   : > { %12117 = vmatpush3.bf16.msra.mxu1 %v12880_v56  ;;  %v8033_v15 = vshrl.u32 %v7936_v52, 16  ;;  %v8036_v42 = vshll.u32 %v7936_v52, 16  ;;  %v12888_v34 = vld [vmem:[%s17821_s8 + $0x28] sm:$0xff]   ;;  %v7745_v8 = vshrl.u32 %v7720_v39, 16  ;;  %v12889_v63 = vld [vmem:[%s17821_s8 + $0x70] sm:$0xff]   ;;  %v7748_v29 = vshll.u32 %v7720_v39, 16  ;;  %p12964_p5 = pnand %p12963_p4, %p13186_p3 }
 0x41a   : > { %12118 = vmatprep.subr.bf16.mxu1 %v12881_v20  ;;  %v8041_v3 = vrot.slane %v7758_v49, 5  ;;  %v8042_v17 = vrot.slane %v7754_v1, 6  ;;  %v7971_v45 = vsel %vm13451_vm11, %v11420_v46, %v7970_v7  ;;  %v7972_v11 = vrot.slane %v7970_v7, 4  ;;  %v16719_v4 = vld [vmem:[#allocation4 + $0x10] sm:$0xf]  ;;  %v12891_v31 = vld [vmem:[%s17821_s8 + $0x78] sm:$0xff]  }
 0x41b   : > { %v8035_v55 = vrot.slane %v8033_v15, 5  ;;  %v8038_v0 = vrot.slane %v8036_v42, 6  ;;  %v7747_v28 = vrot.slane %v7745_v8, 4  ;;  %v7756_v16 = vrot.slane %v7754_v1, 5  ;;  %v7725_v38 = vld [vmem:[#allocation4 + $0x14] sm:$0x1]  ;;  %p12965_p6 = pneg %p12964_p5 }
 0x41c   : > { %v16715_v2 = vor.u32 %v8042_v17, %v8041_v3  ;;  %v7766_v36 = vrot.slane %v7764_v54, 5  ;;  %v7974_v40 = vsel %vm13451_vm11, %v7972_v11, %v7973_v53  ;;  %v7760_v26 = vrot.slane %v7758_v49, 4  ;;  %v12890_v44 = vld [vmem:[%s17821_s8 + $0x30] sm:$0xff]   ;;  %v16725_v25 = vld [vmem:[#allocation4 + $0xc] sm:$0xe]  ;;  %v12893_v39 = vld [vmem:[%s17821_s8 + $0xc0] sm:$0xff]   ;;  %s18582_s22 = smov %s18581_s26  ;;  %s17752_s16 = scalar_lea.hbm %s18581_s26, %s11602_s29 }
 0x41d   : > { %12119 = vmatpush3.bf16.msra.mxu1 %v12882_v33  ;;  %v8039_v14 = vor.u32 %v8038_v0, %v8035_v55  ;;  %v11452_v59 = vcombine.low %v7971_v45, %v7974_v40  ;;  %v7750_v23 = vrot.slane %v7748_v29, 5  ;;  %v7977_v24 = vrot.slane %v16719_v4, 5  ;;  %v7728_v45 = vld [vmem:[#allocation4 + $0x20] sm:$0x1]  ;;  %v16761_v29 = vld [vmem:[#allocation4 + $0x18] sm:$0xe] }
 0x41e   : > { %12120 = vmatprep.subr.bf16.mxu1 %v12883_v57  ;;  %v7761_v20 = vor.u32 %v7760_v26, %v7756_v16  ;;  %v11421_v33 = vrot.slane %v16725_v25, 9  ;;  %v7980_v57 = vrot.slane %v7725_v38, 5  ;;  %v17980_v54 = vshll.u32 %v16719_v4, 16  ;;  %v12894_v55 = vld [vmem:[%s17821_s8 + $0x80] sm:$0xff]   ;;  %v7726_v40 = vld [vmem:[#allocation4 + $0x18] sm:$0xf] }
 0x41f   : > { %v16731_v56 = vrot.slane %v8039_v14, 4  ;;  %10113 = vmatprep.mubr.bf16.mxu1 %v11452_v59  ;;  %v7782_v8 = vshrl.u32 %v16719_v4, 16  ;;  %v7987_v59 = vrot.slane %v7728_v45, 5  ;;  %s18583_s17 = sand.u32 1, %s18579_s28   ;;  %s13062_s19 = smov [#allocation5]  }
 0x420   : > { %v7762_v1 = vrot.slane %v7761_v20, 4  ;;  %v7978_v49 = vsel %vm13451_vm11, %v11421_v33, %v7977_v24  ;;  %v7780_v17 = vrot.slane %v17980_v54, 5  ;;  %s17761_s27 = scalar_lea.sflag [#allocation6], %s18583_s17  ;;  %s12966_s23 = sshll.u32 %s13062_s19, 4  ;;  %s12967_s23 = int_to_ptr.vmem [resolvable:$false] %s12966_s23 }
 0x421   : > { %12121 = vmatpush3.bf16.msra.mxu1 %v12884_v30  ;;  %v7723_v30 = vld [vmem:[#allocation4 + $0xc] sm:$0xf]  ;;  %v7784_v26 = vrot.slane %v7782_v8, 4  ;;  %s12968_s20 = scalar_lea.vmem %s12967_s23, 4096  ;;  %p12969_p7 = scmp.lt.s32.totalorder %s17754_s13, %s12967_s23 }
 0x422   : > { %12122 = vmatprep.subr.bf16.mxu1 %v12885_v22  ;;  %v12892_v22 = vld [vmem:[%s17821_s8 + $0x38] sm:$0xff]   ;;  %v7769_v35 = vshrl.u32 %v7723_v30, 16  ;;  %v7772_v5 = vshll.u32 %v7723_v30, 16  ;;  %p12970_p9 = scmp.lt.s32.totalorder %s12968_s20, %s12962_s30 }
 0x423   : > { %v7785_v20 = vor.u32 %v7784_v26, %v7780_v17 }
 0x424   : > { %v7771_v53 = vrot.slane %v7769_v35, 4  ;;  %v7774_v15 = vrot.slane %v7772_v5, 5  ;;  %v16776_v5 = vld [vmem:[#allocation4 + $0x28] sm:$0xf]  ;;  %p12971_p10 = por %p12970_p9, %p12969_p7 }
 0x425   : > { %12123 = vmatpush3.bf16.msra.mxu1 %v12886_v51  ;;  %v7751_v51 = vor.u32 %v7750_v23, %v7747_v28  ;;  %v7788_v28 = vshll.u32 %v7725_v38, 16 }
 0x426   : > { %12124 = vmatprep.subr.bf16.mxu1 %v12887_v37  ;;  %v7979_v37 = vrot.slane %v7977_v24, 4  ;;  %v7775_v0 = vor.u32 %v7774_v15, %v7771_v53  ;;  %v7939_v53 = vld [vmem:[#allocation4 + $0x24] sm:$0xe]  ;;  %p12972_p11 = pnand %p12971_p10, %p12965_p6 }
 0x427   : > { %v7752_v46 = vrot.slane %v7751_v51, 4  ;;  %v7790_v24 = vrot.slane %v7788_v28, 5  ;;  %v7729_v28 = vld [vmem:[#allocation4 + $0x24] sm:$0xf] }
 0x428   : > { %v7981_v7 = vsel %vm13451_vm11, %v7979_v37, %v7980_v57  ;;  %v7776_v23 = vrot.slane %v7775_v0, 4  ;;  %v7796_v57 = vshll.u32 %v7726_v40, 16  ;;  %v7991_v0 = vrot.slane %v16776_v5, 5 }
 0x429   : > { %12125 = vmatpush3.bf16.msra.mxu1 %v12888_v34  ;;  %v7767_v34 = vsel %vm13470_vm12, %v7762_v1, %v7766_v36  ;;  %v11453_v3 = vcombine.low %v7978_v49, %v7981_v7  ;;  %v7757_v11 = vsel %vm13470_vm12, %v7752_v46, %v7756_v16  ;;  %v11422_v16 = vrot.slane %v16761_v29, 9  ;;  %v12896_v46 = vld [vmem:[%s17821_s8 + $0x88] sm:$0xff]  }
 0x42a   : > { %12126 = vmatprep.subr.bf16.mxu1 %v12889_v63  ;;  %v16754_v63 = vld [vmem:[#allocation4 + $0x1c] sm:$0xf]  ;;  %v11444_v14 = vcombine.low %v7757_v11, %v7767_v34  ;;  %v7781_v1 = vsel %vm13470_vm12, %v7776_v23, %v7780_v17  ;;  %v7786_v49 = vrot.slane %v7785_v20, 4  ;;  %v7812_v11 = vshll.u32 %v7728_v45, 16  ;;  %v12897_v17 = vld [vmem:[%s17821_s8 + $0xd0] sm:$0xff]  }
 0x42b   : > { %v7984_v36 = vrot.slane %v16754_v63, 5  ;;  %v17976_v30 = vshll.u32 %v16754_v63, 16  ;;  %v17977_v35 = vshrl.u32 %v16754_v63, 16  ;;  %v12898_v45 = vld [vmem:[%s17821_s8 + $0x90] sm:$0xff]   ;;  %v7820_v20 = vshll.u32 %v7729_v28, 16 }
 0x42d   : > { %12127 = vmatpush3.bf16.msra.mxu1 %v12890_v44  ;;  %v12895_v44 = vld [vmem:[%s17821_s8 + $0xc8] sm:$0xff]   ;;  %v7986_v38 = vrot.slane %v7984_v36, 4  ;;  %v7985_v33 = vsel %vm13451_vm11, %v11422_v16, %v7984_v36  ;;  %v16787_v7 = vrot.slane %v17976_v30, 5  ;;  %v7808_v34 = vrot.slane %v17977_v35, 4 }
 0x42e   : > { %12128 = vmatprep.subr.bf16.mxu1 %v12891_v31  ;;  %v7793_v31 = vshrl.u32 %v7726_v40, 16  ;;  %v7791_v36 = vsel %vm13470_vm12, %v7786_v49, %v7790_v24  ;;  %v7814_v16 = vrot.slane %v7812_v11, 5  ;;  %v16805_v24 = vld [vmem:[#allocation4 + $0x34] sm:$0xf]  ;;  %v7822_v49 = vrot.slane %v7820_v20, 5 }
 0x42f   : > { %v7988_v51 = vsel %vm13451_vm11, %v7986_v38, %v7987_v59  ;;  %v7809_v26 = vor.u32 %v7808_v34, %v16787_v7  ;;  %v7993_v38 = vrot.slane %v7991_v0, 4  ;;  %v7732_v34 = vld [vmem:[#allocation4 + $0x30] sm:$0xf] }
 0x430   : > { %v7795_v37 = vrot.slane %v7793_v31, 4  ;;  %v11454_v15 = vcombine.low %v7985_v33, %v7988_v51  ;;  %v17969_v51 = vshrl.u32 %v16776_v5, 16 }
 0x431   : > { %12129 = vmatpush3.bf16.msra.mxu1 %v12892_v22  ;;  %v16778_v22 = vld [vmem:[#allocation4 + $0x2c] sm:$0x1]  ;;  %v7810_v33 = vrot.slane %v7809_v26, 4 }
 0x432   : > { %12178 = vmatprep.subr.bf16.mxu1 %v12893_v39  ;;  %v7798_v39 = vrot.slane %v7796_v57, 5  ;;  %v7994_v59 = vrot.slane %v16778_v22, 5  ;;  %v17968_v57 = vshll.u32 %v16776_v5, 16 }
 0x434   : > { %10114 = vmatmul.mubr.bf16.vlgmr.msra.gmra.mrb[120].mxu1 %v11444_v14  ;;  %v7799_v40 = vor.u32 %v7798_v39, %v7795_v37  ;;  %v11423_v14 = vrot.slane %v7939_v53, 9  ;;  %v7836_v37 = vshll.u32 %v16778_v22, 16  ;;  %v16812_v39 = vld [vmem:[#allocation4 + $0x30] sm:$0xe]  ;;  %v7998_v53 = vrot.slane %v16805_v24, 5 }
 0x435   : > { %12179 = vmatpush3.bf16.msra.mxu1 %v12894_v55  ;;  %10121 = vmatprep.mubr.bf16.mxu1 %v11453_v3  ;;  %v7817_v55 = vshrl.u32 %v7729_v28, 16  ;;  %v11445_v3 = vcombine.low %v7781_v1, %v7791_v36  ;;  %v16810_v1 = vld [vmem:[#allocation4 + $0x38] sm:$0x1]  ;;  %v16822_v28 = vrot.slane %v17968_v57, 5  ;;  %v7832_v22 = vrot.slane %v17969_v51, 4 }
 0x436   : > { %12180 = vmatprep.subr.bf16.mxu1 %v12895_v44  ;;  %v7800_v23 = vrot.slane %v7799_v40, 4  ;;  %v12899_v44 = vld [vmem:[%s17821_s8 + $0xd8] sm:$0xff]   ;;  %v7992_v11 = vsel %vm13451_vm11, %v11423_v14, %v7991_v0  ;;  %v7815_v36 = vsel %vm13470_vm12, %v7810_v33, %v7814_v16  ;;  %v11424_v0 = vrot.slane %v16812_v39, 9  ;;  %v12901_v14 = vld [vmem:[%s17821_s8 + $0xe0] sm:$0xff]  }
 0x437   : > { %v7819_v31 = vrot.slane %v7817_v55, 4  ;;  %v7833_v55 = vor.u32 %v7832_v22, %v16822_v28  ;;  %v8000_v26 = vrot.slane %v7998_v53, 4  ;;  %v12903_v16 = vld [vmem:[%s17821_s8 + $0x140] sm:$0xff]   ;;  %v7844_v33 = vshll.u32 %v7732_v34, 16 }
 0x438   : > { %v17973_v39 = vshrl.u32 %v16805_v24, 16  ;;  %v12902_v22 = vld [vmem:[%s17821_s8 + $0xa0] sm:$0xff]   ;;  %12242 = vmatprep.subr.bf16.mxu0 %v12903_v16 }
 0x439   : > { %12181 = vmatpush3.bf16.msra.mxu1 %v12896_v46  ;;  %v7805_v46 = vsel %vm13470_vm12, %v7800_v23, %v16787_v7  ;;  %v7823_v40 = vor.u32 %v7822_v49, %v7819_v31  ;;  %v16831_v7 = vrot.slane %v7836_v37, 5  ;;  %v7841_v23 = vshrl.u32 %v7732_v34, 16  ;;  %v16864_v16 = vld [vmem:[#allocation4 + $0x40] sm:$0xf]  ;;  %v16866_v51 = vld [vmem:[#allocation4 + $0x44] sm:$0x1] }
 0x43a   : > { %12182 = vmatprep.subr.bf16.mxu1 %v12897_v17  ;;  %v12900_v17 = vld [vmem:[%s17821_s8 + $0x98] sm:$0xff]   ;;  %v7995_v31 = vsel %vm13451_vm11, %v7993_v38, %v7994_v59  ;;  %v7834_v37 = vrot.slane %v7833_v55, 4  ;;  %v12905_v59 = vld [vmem:[%s17821_s8 + $0x148] sm:$0xff]   ;;  %v11446_v38 = vcombine.low %v7805_v46, %v7815_v36  ;;  %v7856_v55 = vrot.slane %v17973_v39, 4 }
 0x43b   : > { %v7824_v20 = vrot.slane %v7823_v40, 4  ;;  %v7843_v49 = vrot.slane %v7841_v23, 4  ;;  %v11455_v40 = vcombine.low %v7992_v11, %v7995_v31  ;;  %v7860_v23 = vshll.u32 %v16810_v1, 16  ;;  %v7941_v46 = vld [vmem:[#allocation4 + $0x3c] sm:$0xe]  ;;  %v12906_v11 = vld [vmem:[%s17821_s8 + $0x108] sm:$0xff]  }
 0x43c   : > { %10122 = vmatmul.mubr.bf16.gmra.mrb[124].mxu1 %v11445_v3  ;;  %v8001_v3 = vrot.slane %v16810_v1, 5  ;;  %v8005_v36 = vrot.slane %v16864_v16, 5  ;;  %v8008_v1 = vrot.slane %v16866_v51, 5 }
 0x43d   : > { %10129 = vmatprep.mubr.bf16.mxu1 %v11454_v15  ;;  %12183 = vmatpush3.bf16.msra.mxu1 %v12898_v45  ;;  %v17970_v15 = vshll.u32 %v16805_v24, 16  ;;  %v12904_v45 = vld [vmem:[%s17821_s8 + $0x100] sm:$0xff]   ;;  %v16873_v31 = vrot.slane %v7860_v23, 5 }
 0x43e   : > { %12184 = vmatprep.subr.bf16.mxu1 %v12899_v44  ;;  %v7846_v44 = vrot.slane %v7844_v33, 5  ;;  %12243 = vmatpush3.bf16.msra.mxu0 %v12904_v45  ;;  %v11425_v33 = vrot.slane %v7941_v46, 9  ;;  %v7829_v45 = vsel %vm13470_vm12, %v7824_v20, %v16822_v28  ;;  %v8002_v28 = vsel %vm13451_vm11, %v8000_v26, %v8001_v3 }
 0x43f   : > { %v16859_v34 = vrot.slane %v17970_v15, 5  ;;  %12244 = vmatprep.subr.bf16.mxu0 %v12905_v59  ;;  %v8007_v59 = vrot.slane %v8005_v36, 4  ;;  %v17971_v20 = vshll.u32 %v16864_v16, 16 }
 0x440   : > { %v7847_v57 = vor.u32 %v7846_v44, %v7843_v49  ;;  %v7735_v44 = vld [vmem:[#allocation4 + $0x3c] sm:$0xf] }
 0x441   : > { %12185 = vmatpush3.bf16.msra.mxu1 %v12900_v17  ;;  %v7857_v17 = vor.u32 %v7856_v55, %v16859_v34  ;;  %v7839_v55 = vsel %vm13470_vm12, %v7834_v37, %v16831_v7  ;;  %v7865_v46 = vshrl.u32 %v7735_v44, 16  ;;  %v7868_v15 = vshll.u32 %v7735_v44, 16 }
 0x442   : > { %12186 = vmatprep.subr.bf16.mxu1 %v12901_v14  ;;  %v12907_v14 = vld [vmem:[%s17821_s8 + $0xe8] sm:$0xff]   ;;  %v7848_v49 = vrot.slane %v7847_v57, 4  ;;  %12245 = vmatpush3.bf16.msra.mxu0 %v12906_v11  ;;  %v7999_v57 = vsel %vm13451_vm11, %v11424_v0, %v7998_v53  ;;  %v17972_v7 = vshrl.u32 %v16864_v16, 16  ;;  %v16898_v11 = vrot.slane %v17971_v20, 5  ;;  %v12909_v0 = vld [vmem:[%s17821_s8 + $0x150] sm:$0xff]  }
 0x443   : > { %v7858_v23 = vrot.slane %v7857_v17, 4  ;;  %v7867_v37 = vrot.slane %v7865_v46, 4  ;;  %v7884_v53 = vshll.u32 %v16866_v51, 16  ;;  %v11456_v26 = vcombine.low %v7999_v57, %v8002_v28  ;;  %12246 = vmatprep.subr.bf16.mxu0 %v12909_v0  ;;  %v12911_v51 = vld [vmem:[%s17821_s8 + $0x158] sm:$0xff]   ;;  %v7740_v57 = vld [vmem:[#allocation4 + $0x50] sm:$0x1] }
 0x444   : > { %10130 = vmatmul.mubr.bf16.gmra.mrb[128].mxu1 %v11446_v38  ;;  %v12908_v38 = vld [vmem:[%s17821_s8 + $0xa8] sm:$0xff]   ;;  %v7880_v17 = vrot.slane %v17972_v7, 4  ;;  %v12912_v28 = vld [vmem:[%s17821_s8 + $0x118] sm:$0xff]  }
 0x445   : > { %10137 = vmatprep.mubr.bf16.mxu1 %v11455_v40  ;;  %12187 = vmatpush3.bf16.msra.mxu1 %v12902_v22  ;;  %v7870_v22 = vrot.slane %v7868_v15, 5  ;;  %v11447_v40 = vcombine.low %v7829_v45, %v7839_v55  ;;  %v12910_v15 = vld [vmem:[%s17821_s8 + $0x110] sm:$0xff]   ;;  %v16911_v44 = vrot.slane %v7884_v53, 5  ;;  %v8006_v55 = vsel %vm13451_vm11, %v11425_v33, %v8005_v36 }
 0x446   : > { %12188 = vmatprep.subr.bf16.mxu1 %v12907_v14  ;;  %v8056_v14 = vshrl.u32 %v16725_v25, 16  ;;  %v7881_v45 = vor.u32 %v7880_v17, %v16898_v11  ;;  %12247 = vmatpush3.bf16.msra.mxu0 %v12910_v15  ;;  %v8015_v53 = vrot.slane %v7740_v57, 5  ;;  %v7853_v36 = vsel %vm13470_vm12, %v7848_v49, %v16859_v34  ;;  %v12913_v34 = vld [vmem:[%s17821_s8 + $0xf0] sm:$0xff]  }
 0x447   : > { %v7871_v3 = vor.u32 %v7870_v22, %v7867_v37  ;;  %12248 = vmatprep.subr.bf16.mxu0 %v12911_v51  ;;  %v7942_v22 = vld [vmem:[#allocation4 + $0x48] sm:$0xe]  ;;  %v7863_v33 = vsel %vm13470_vm12, %v7858_v23, %v16873_v31  ;;  %v8009_v15 = vsel %vm13451_vm11, %v8007_v59, %v8008_v1 }
 0x448   : > { %v7882_v37 = vrot.slane %v7881_v45, 4  ;;  %v7738_v51 = vld [vmem:[#allocation4 + $0x48] sm:$0xf]  ;;  %v11448_v23 = vcombine.low %v7853_v36, %v7863_v33  ;;  %v11457_v1 = vcombine.low %v8006_v55, %v8009_v15  ;;  %v12916_v33 = vld [vmem:[%s17821_s8 + $0x120] sm:$0xff]   ;;  %v16957_v55 = vrot.slane %v8056_v14, 5 }
 0x449   : > { %12189 = vmatpush3.bf16.msra.mxu1 %v12908_v38  ;;  %v16918_v46 = vrot.slane %v7871_v3, 4  ;;  %v16920_v38 = vld [vmem:[#allocation4 + $0x4c] sm:$0xf]  ;;  %v11426_v3 = vrot.slane %v7942_v22, 9  ;;  %v7889_v49 = vshrl.u32 %v7738_v51, 16  ;;  %v7892_v31 = vshll.u32 %v7738_v51, 16 }
 0x44a   : > { %v8012_v17 = vrot.slane %v16920_v38, 5  ;;  %v17974_v0 = vshll.u32 %v16920_v38, 16  ;;  %12249 = vmatpush3.bf16.msra.mxu0 %v12912_v28  ;;  %12190 = vmatprep.subr.bf16.mxu1 %v12913_v34  ;;  %v12915_v28 = vld [vmem:[%s17821_s8 + $0x160] sm:$0xff]   ;;  %v16968_v34 = vld [vmem:[#allocation4 + $0x58] sm:$0xf]  ;;  %v7887_v14 = vsel %vm13470_vm12, %v7882_v37, %v16911_v44 }
 0x44b   : > { %v7891_v59 = vrot.slane %v7889_v49, 4  ;;  %v7894_v39 = vrot.slane %v7892_v31, 5  ;;  %12250 = vmatprep.subr.bf16.mxu0 %v12915_v28  ;;  %v7877_v15 = vsel %vm13470_vm12, %v16918_v46, %v16898_v11  ;;  %v7743_v49 = vld [vmem:[#allocation4 + $0x5c] sm:$0x1]  ;;  %v12918_v46 = vld [vmem:[%s17821_s8 + $0x128] sm:$0xff]   ;;  %v17978_v44 = vshll.u32 %v16968_v34, 16 }
 0x44c   : > { %10138 = vmatmul.mubr.bf16.gmra.mrb[132].mxu1 %v11447_v40  ;;  %v17975_v40 = vshrl.u32 %v16920_v38, 16  ;;  %v8014_v45 = vrot.slane %v8012_v17, 4  ;;  %v16938_v20 = vrot.slane %v17974_v0, 5  ;;  %v8022_v11 = vrot.slane %v7743_v49, 5  ;;  %v7741_v28 = vld [vmem:[#allocation4 + $0x54] sm:$0xf] }
 0x44d   : > { %10145 = vmatprep.mubr.bf16.mxu1 %v11456_v26  ;;  %v7908_v26 = vshll.u32 %v7740_v57, 16  ;;  %v12914_v57 = vld [vmem:[%s17821_s8 + $0xb0] sm:$0xff]   ;;  %v7895_v36 = vor.u32 %v7894_v39, %v7891_v59  ;;  %v12917_v39 = vld [vmem:[%s17821_s8 + $0x168] sm:$0xff]   ;;  %v8013_v59 = vsel %vm13451_vm11, %v11426_v3, %v8012_v17  ;;  %v11449_v0 = vcombine.low %v7877_v15, %v7887_v14 }
 0x44e   : > { %v7904_v22 = vrot.slane %v17975_v40, 4  ;;  %12191 = vmatpush3.bf16.msra.mxu1 %v12914_v57  ;;  %12251 = vmatpush3.bf16.msra.mxu0 %v12916_v33  ;;  %v12919_v33 = vld [vmem:[%s17821_s8 + $0xf8] sm:$0xff]   ;;  %v7913_v40 = vshrl.u32 %v7741_v28, 16  ;;  %v7916_v30 = vshll.u32 %v7741_v28, 16  ;;  %v12921_v15 = vld [vmem:[%s17821_s8 + $0x170] sm:$0xff]  }
 0x44f   : > { %v16945_v7 = vrot.slane %v7908_v26, 5  ;;  %v7896_v31 = vrot.slane %v7895_v36, 4  ;;  %12252 = vmatprep.subr.bf16.mxu0 %v12917_v39  ;;  %v7932_v36 = vshll.u32 %v7743_v49, 16  ;;  %12192 = vmatprep.subr.bf16.mxu1 %v12919_v33  ;;  %v12920_v39 = vld [vmem:[%s17821_s8 + $0xb8] sm:$0xff]  }
 0x450   : > { %v7905_v51 = vor.u32 %v7904_v22, %v16938_v20  ;;  %v8019_v22 = vrot.slane %v16968_v34, 5  ;;  %v7915_v49 = vrot.slane %v7913_v40, 4  ;;  %v12923_v28 = vld [vmem:[%s17821_s8 + $0x178] sm:$0xff]  }
 0x452   : > { %v16963_v26 = vrot.slane %v7905_v51, 4  ;;  %v8021_v37 = vrot.slane %v8019_v22, 4  ;;  %v17979_v51 = vshrl.u32 %v16968_v34, 16  ;;  %12253 = vmatpush3.bf16.msra.mxu0 %v12918_v46  ;;  %12193 = vmatpush3.bf16.msra.mxu1 %v12920_v39 }
 0x453   : > { %12254 = vmatprep.subr.bf16.mxu0 %v12921_v15 }
 0x454   : > { %10146 = vmatmul.mubr.bf16.gmra.mrb[136].mxu1 %v11448_v23  ;;  %v7943_v23 = vld [vmem:[#allocation4 + $0x54] sm:$0xe]  ;;  %v7928_v3 = vrot.slane %v17979_v51, 4  ;;  %v7911_v40 = vsel %vm13470_vm12, %v16963_v26, %v16945_v7  ;;  %v8023_v33 = vsel %vm13451_vm11, %v8021_v37, %v8022_v11 }
 0x455   : > { %10153 = vmatprep.mubr.bf16.mxu1 %v11457_v1  ;;  %v8016_v1 = vsel %vm13451_vm11, %v8014_v45, %v8015_v53  ;;  %v11427_v57 = vrot.slane %v7943_v23, 9  ;;  %v7924_v53 = vrot.slane %v17978_v44, 5  ;;  %v7934_v45 = vrot.slane %v7932_v36, 5  ;;  %v8217_v36 = vld [vmem:[#allocation4 + $0xc] sm:$0xf] }
 0x456   : > { %v11458_v17 = vcombine.low %v8013_v59, %v8016_v1  ;;  %v7918_v23 = vrot.slane %v7916_v30, 5  ;;  %v12922_v59 = vld [vmem:[%s17821_s8 + $0x130] sm:$0xff]   ;;  %v17002_v1 = vrot.slane %v7782_v8, 5  ;;  %v7901_v30 = vsel %vm13470_vm12, %v7896_v31, %v16938_v20 }
 0x457   : > { %v7929_v35 = vor.u32 %v7928_v3, %v7924_v53  ;;  %v8020_v8 = vsel %vm13451_vm11, %v11427_v57, %v8019_v22  ;;  %12255 = vmatpush3.bf16.msra.mxu0 %v12922_v59  ;;  %v17018_v20 = vld [vmem:[#allocation4 + $0x10] sm:$0xf]  ;;  %v17020_v31 = vld [vmem:[#allocation4 + $0x14] sm:$0x1]  ;;  %v8242_v7 = vshrl.u32 %v8217_v36, 16  ;;  %v8245_v26 = vshll.u32 %v8217_v36, 16 }
 0x458   : > { %v7919_v46 = vor.u32 %v7918_v23, %v7915_v49  ;;  %12256 = vmatprep.subr.bf16.mxu0 %v12923_v28  ;;  %v8251_v3 = vshll.u32 %v17018_v20, 16  ;;  %v8255_v39 = vshrl.u32 %v17018_v20, 16  ;;  %v12924_v22 = vld [vmem:[%s17821_s8 + $0x138] sm:$0xff]   ;;  %v11450_v11 = vcombine.low %v7901_v30, %v7911_v40  ;;  %v8024_v23 = vld [vmem:[#allocation4 + $0x8] sm:$0x3] }
 0x459   : > { %v8244_v37 = vrot.slane %v8242_v7, 4  ;;  %v8261_v49 = vshll.u32 %v17020_v31, 16  ;;  %v11459_v15 = vcombine.low %v8020_v8, %v8023_v33  ;;  %v8047_v36 = vshrl.u32 %v8024_v23, 16  ;;  %v8521_v7 = vld [vmem:[#allocation4 + $0x14] sm:$0x3] }
 0x45a   : > { %v8257_v59 = vrot.slane %v8255_v39, 4  ;;  %v8050_v44 = vshll.u32 %v8024_v23, 16  ;;  %v8538_v30 = vrot.slane %v8255_v39, 5  ;;  %v8539_v54 = vrot.slane %v8251_v3, 6 }
 0x45b   : > { %12257 = vmatpush3.bf16.msra.mxu0 %v12924_v22  ;;  %v8049_v8 = vrot.slane %v8047_v36, 5  ;;  %v8544_v22 = vshrl.u32 %v8521_v7, 16  ;;  %v17043_v36 = vld [vmem:[#allocation4 + $0x1c] sm:$0xf] }
 0x45c   : > { %10154 = vmatmul.mubr.bf16.gmra.mrb[140].mxu1 %v11449_v0  ;;  %v7930_v0 = vrot.slane %v7929_v35, 4  ;;  %v8052_v33 = vrot.slane %v8050_v44, 6  ;;  %v8220_v44 = vld [vmem:[#allocation4 + $0x18] sm:$0xf] }
 0x45d   : > { %10161 = vmatprep.mubr.bf16.mxu1 %v11458_v17  ;;  %v7920_v17 = vrot.slane %v7919_v46, 4  ;;  %v8253_v46 = vrot.slane %v8251_v3, 5 }
 0x45e   : > { %v7935_v35 = vsel %vm13470_vm12, %v7930_v0, %v7934_v45  ;;  %v8247_v45 = vrot.slane %v8245_v26, 5  ;;  %v12925_v0 = vld [vmem:[%s17821_s8 + $0x1c0] sm:$0xff]  }
 0x45f   : > { %v7925_v57 = vsel %vm13470_vm12, %v7920_v17, %v7924_v53  ;;  %v8258_v51 = vor.u32 %v8257_v59, %v8253_v46  ;;  %v8263_v53 = vrot.slane %v8261_v49, 5  ;;  %12306 = vmatprep.subr.bf16.mxu1 %v12925_v0  ;;  %v8433_v17 = vld [vmem:[#allocation4 + $0xc] sm:$0xe] }
 0x460   : > { %v11451_v28 = vcombine.low %v7925_v57, %v7935_v35  ;;  %v8248_v40 = vor.u32 %v8247_v45, %v8244_v37  ;;  %v8530_v26 = vshrl.u32 %v8433_v17, 16  ;;  %v8533_v14 = vshll.u32 %v8433_v17, 16 }
 0x461   : > { %v8259_v6 = vrot.slane %v8258_v51, 4  ;;  %v8540_v35 = vor.u32 %v8539_v54, %v8538_v30  ;;  %v8053_v57 = vor.u32 %v8052_v33, %v8049_v8  ;;  %v8547_v37 = vshll.u32 %v8521_v7, 16  ;;  %v17052_v7 = vld [vmem:[#allocation4 + $0x20] sm:$0x1] }
 0x462   : > { %v8249_v52 = vrot.slane %v8248_v40, 4  ;;  %v8532_v23 = vrot.slane %v8530_v26, 5  ;;  %v8535_v39 = vrot.slane %v8533_v14, 6  ;;  %v8546_v45 = vrot.slane %v8544_v22, 5 }
 0x463   : > { %v8264_v3 = vsel %vm13470_vm12, %v8259_v6, %v8263_v53  ;;  %v8549_v0 = vrot.slane %v8547_v37, 6  ;;  %v11428_v6 = vrot.slane %v8433_v17, 9  ;;  %v8470_v30 = vrot.slane %v17020_v31, 5 }
 0x464   : > { %10162 = vmatmul.mubr.bf16.gmra.mrb[144].mxu1 %v11450_v11  ;;  %v8254_v49 = vsel %vm13470_vm12, %v8249_v52, %v8253_v46  ;;  %v8542_v11 = vrot.slane %v8540_v35, 4  ;;  %v8536_v51 = vor.u32 %v8535_v39, %v8532_v23  ;;  %v18564_v52 = vsel %vm13492_vm13, %v16731_v56, %v16715_v2  ;;  %v8025_v56 = vld [vmem:[#allocation4 + $0x14] sm:$0x3] }
 0x465   : > { %10169 = vmatprep.mubr.bf16.mxu1 %v11459_v15  ;;  %v11468_v59 = vcombine.low %v8254_v49, %v8264_v3  ;;  %v18563_v15 = vrot.slane %v16715_v2, 4  ;;  %v8467_v46 = vrot.slane %v17018_v20, 5  ;;  %v8550_v53 = vor.u32 %v8549_v0, %v8546_v45  ;;  %v17064_v45 = vld [vmem:[#allocation4 + $0x18] sm:$0xe] }
 0x466   : > { %v8537_v40 = vrot.slane %v8536_v51, 4  ;;  %v8266_v8 = vshrl.u32 %v8220_v44, 16  ;;  %v8269_v33 = vshll.u32 %v8220_v44, 16  ;;  %v8279_v2 = vshrl.u32 %v17043_v36, 16 }
 0x467   : > { %v8054_v54 = vsel %vm13492_vm13, %v18563_v15, %v8053_v57  ;;  %v8468_v26 = vsel %vm13451_vm11, %v11428_v6, %v8467_v46  ;;  %v8469_v22 = vrot.slane %v8467_v46, 4  ;;  %v8275_v57 = vshll.u32 %v17043_v36, 16 }
 0x468   : > { %v11460_v14 = vcombine.low %v18564_v52, %v8054_v54  ;;  %v8541_v20 = vsel %vm13492_vm13, %v8537_v40, %v8540_v35  ;;  %v8551_v31 = vsel %vm13492_vm13, %v8542_v11, %v8550_v53  ;;  %v8268_v17 = vrot.slane %v8266_v8, 4  ;;  %v12926_v53 = vld [vmem:[%s17821_s8 + $0x180] sm:$0xff]  }
 0x469   : > { %v8271_v23 = vrot.slane %v8269_v33, 5  ;;  %v11484_v39 = vcombine.low %v8541_v20, %v8551_v31  ;;  %v8471_v37 = vsel %vm13451_vm11, %v8469_v22, %v8470_v30  ;;  %v8277_v49 = vrot.slane %v8275_v57, 5  ;;  %v8522_v20 = vld [vmem:[#allocation4 + $0x20] sm:$0x3] }
 0x46a   : > { %v8281_v3 = vrot.slane %v8279_v2, 4  ;;  %v11476_v44 = vcombine.low %v8468_v26, %v8471_v37  ;;  %v18565_v35 = vshll.u32 %v16725_v25, 16  ;;  %v18566_v51 = vshll.u32 %v16719_v4, 16  ;;  %v12935_v4 = vld [vmem:[%s17821_s8 + $0x200] sm:$0xff]  }
 0x46b   : > { %v8272_v15 = vor.u32 %v8271_v23, %v8268_v17  ;;  %10307 = vmatprep.mubr.bf16.mxu0 %v11484_v39  ;;  %v8070_v0 = vshrl.u32 %v8025_v56, 16  ;;  %v8073_v52 = vshll.u32 %v8025_v56, 16  ;;  %v8553_v40 = vshrl.u32 %v17064_v45, 16  ;;  %12466 = vmatprep.subr.bf16.mxu0 %v12935_v4 }
 0x46c   : > { %10170 = vmatmul.mubr.bf16.gmra.mrb[148].mxu1 %v11451_v28  ;;  %v8285_v28 = vshll.u32 %v17052_v7, 16  ;;  %v8061_v54 = vrot.slane %v18565_v35, 6  ;;  %v8282_v11 = vor.u32 %v8281_v3, %v8277_v49  ;;  %10308 = vmatmul.mubr.bf16.vlgmr.msra.gmra.mrb[140].mxu0 %v11476_v44  ;;  %v8556_v17 = vshll.u32 %v17064_v45, 16  ;;  %v8223_v35 = vld [vmem:[#allocation4 + $0x24] sm:$0xf] }
 0x46d   : > { %10210 = vmatprep.mubr.bf16.mxu1 %v11468_v59  ;;  %v8065_v59 = vrot.slane %v18566_v51, 6  ;;  %v8273_v6 = vrot.slane %v8272_v15, 4  ;;  %v8072_v33 = vrot.slane %v8070_v0, 5  ;;  %v8075_v26 = vrot.slane %v8073_v52, 6  ;;  %12467 = vmatpush3.bf16.msra.mxu0 %v12935_v4  ;;  %v17096_v51 = vld [vmem:[#allocation4 + $0x28] sm:$0xf] }
 0x46e   : > { %v8287_v46 = vrot.slane %v8285_v28, 5  ;;  %v8062_v30 = vor.u32 %v8061_v54, %v16957_v55  ;;  %v8283_v25 = vrot.slane %v8282_v11, 4  ;;  %v12927_v55 = vld [vmem:[%s17821_s8 + $0x1c8] sm:$0xff]   ;;  %v8555_v31 = vrot.slane %v8553_v40, 5 }
 0x46f   : > { %v8066_v8 = vor.u32 %v8065_v59, %v17002_v1  ;;  %v8278_v22 = vsel %vm13470_vm12, %v8273_v6, %v8277_v49  ;;  %v8076_v39 = vor.u32 %v8075_v26, %v8072_v33  ;;  %v8561_v37 = vrot.slane %v8279_v2, 5  ;;  %v12928_v28 = vld [vmem:[%s17821_s8 + $0x188] sm:$0xff]  }
 0x470   : > { %v8063_v56 = vrot.slane %v8062_v30, 4  ;;  %v8288_v1 = vsel %vm13470_vm12, %v8283_v25, %v8287_v46  ;;  %v8558_v44 = vrot.slane %v8556_v17, 6  ;;  %v8562_v15 = vrot.slane %v8275_v57, 6  ;;  %v12937_v57 = vld [vmem:[%s17821_s8 + $0x208] sm:$0xff]   ;;  %v12929_v30 = vld [vmem:[%s17821_s8 + $0x1d0] sm:$0xff]  }
 0x471   : > { %v8068_v23 = vrot.slane %v8066_v8, 4  ;;  %v11469_v3 = vcombine.low %v8278_v22, %v8288_v1  ;;  %v8567_v11 = vshrl.u32 %v8522_v20, 16  ;;  %v8570_v2 = vshll.u32 %v8522_v20, 16  ;;  %v17102_v46 = vld [vmem:[#allocation4 + $0x2c] sm:$0x1]  ;;  %12468 = vmatprep.subr.bf16.mxu0 %v12937_v57 }
 0x472   : > { %v8067_v49 = vsel %vm13492_vm13, %v8063_v56, %v8066_v8  ;;  %v8559_v0 = vor.u32 %v8558_v44, %v8555_v31  ;;  %v8563_v52 = vor.u32 %v8562_v15, %v8561_v37  ;;  %v8474_v6 = vrot.slane %v17043_v36, 5  ;;  %12469 = vmatpush3.bf16.msra.mxu0 %v12937_v57  ;;  %v12939_v36 = vld [vmem:[%s17821_s8 + $0x210] sm:$0xff]   ;;  %v12931_v31 = vld [vmem:[%s17821_s8 + $0x1d8] sm:$0xff]   ;;  %v8026_v15 = vld [vmem:[#allocation4 + $0x20] sm:$0x3] }
 0x473   : > { %v8077_v54 = vsel %vm13492_vm13, %v8068_v23, %v8076_v39  ;;  %v8572_v40 = vrot.slane %v8570_v2, 6  ;;  %v8290_v25 = vshrl.u32 %v8223_v35, 16  ;;  %v8299_v20 = vshll.u32 %v17096_v51, 16  ;;  %12470 = vmatprep.subr.bf16.mxu0 %v12939_v36  ;;  %v17129_v2 = vld [vmem:[#allocation4 + $0x24] sm:$0xe] }
 0x474   : > { %10211 = vmatmul.mubr.bf16.vlgmr.msra.gmra.mrb[152].mxu1 %v11460_v14  ;;  %v11429_v14 = vrot.slane %v17064_v45, 9  ;;  %v11461_v59 = vcombine.low %v8067_v49, %v8077_v54  ;;  %v8569_v45 = vrot.slane %v8567_v11, 5  ;;  %v8560_v8 = vrot.slane %v8559_v0, 4 }
 0x475   : > { %12307 = vmatpush3.bf16.msra.mxu1 %v12926_v53  ;;  %10218 = vmatprep.mubr.bf16.mxu1 %v11469_v3  ;;  %v8477_v53 = vrot.slane %v17052_v7, 5  ;;  %v8565_v33 = vrot.slane %v8563_v52, 4  ;;  %v8476_v4 = vrot.slane %v8474_v6, 4  ;;  %v8292_v56 = vrot.slane %v8290_v25, 4  ;;  %v12930_v7 = vld [vmem:[%s17821_s8 + $0x190] sm:$0xff]  }
 0x476   : > { %12308 = vmatprep.subr.bf16.mxu1 %v12927_v55  ;;  %v8475_v26 = vsel %vm13451_vm11, %v11429_v14, %v8474_v6  ;;  %v8573_v22 = vor.u32 %v8572_v40, %v8569_v45  ;;  %v8293_v55 = vshll.u32 %v8223_v35, 16  ;;  %v8564_v17 = vsel %vm13492_vm13, %v8560_v8, %v8563_v52  ;;  %12471 = vmatpush3.bf16.msra.mxu0 %v12939_v36  ;;  %v12941_v14 = vld [vmem:[%s17821_s8 + $0x218] sm:$0xff]   ;;  %v12933_v40 = vld [vmem:[%s17821_s8 + $0x1e0] sm:$0xff]  }
 0x477   : > { %v8478_v1 = vsel %vm13451_vm11, %v8476_v4, %v8477_v53  ;;  %v8303_v23 = vshrl.u32 %v17096_v51, 16  ;;  %v8309_v39 = vshll.u32 %v17102_v46, 16  ;;  %v8301_v44 = vrot.slane %v8299_v20, 5  ;;  %v12932_v45 = vld [vmem:[%s17821_s8 + $0x198] sm:$0xff]   ;;  %12472 = vmatprep.subr.bf16.mxu0 %v12941_v14 }
 0x478   : > { %v8574_v37 = vsel %vm13492_vm13, %v8565_v33, %v8573_v22  ;;  %v11477_v3 = vcombine.low %v8475_v26, %v8478_v1  ;;  %v8295_v49 = vrot.slane %v8293_v55, 5  ;;  %v8079_v11 = vshrl.u32 %v16761_v29, 16 }
 0x479   : > { %12309 = vmatpush3.bf16.msra.mxu1 %v12928_v28  ;;  %v11485_v28 = vcombine.low %v8564_v17, %v8574_v37  ;;  %v8305_v35 = vrot.slane %v8303_v23, 4  ;;  %v8311_v54 = vrot.slane %v8309_v39, 5  ;;  %v8082_v0 = vshll.u32 %v16761_v29, 16 }
 0x47a   : > { %12310 = vmatprep.subr.bf16.mxu1 %v12929_v30  ;;  %v8296_v57 = vor.u32 %v8295_v49, %v8292_v56  ;;  %v18567_v52 = vshrl.u32 %v16754_v63, 16  ;;  %v8081_v25 = vrot.slane %v8079_v11, 5  ;;  %v8093_v8 = vshrl.u32 %v8026_v15, 16  ;;  %12473 = vmatpush3.bf16.msra.mxu0 %v12941_v14  ;;  %v12936_v49 = vld [vmem:[%s17821_s8 + $0x1e8] sm:$0xff]  }
 0x47b   : > { %10315 = vmatprep.mubr.bf16.mxu0 %v11485_v28  ;;  %v8306_v53 = vor.u32 %v8305_v35, %v8301_v44  ;;  %v8096_v29 = vshll.u32 %v8026_v15, 16  ;;  %v8084_v26 = vrot.slane %v8082_v0, 6  ;;  %v8576_v36 = vshrl.u32 %v17129_v2, 16 }
 0x47c   : > { %10219 = vmatmul.mubr.bf16.gmra.mrb[156].mxu1 %v11461_v59  ;;  %v8087_v6 = vrot.slane %v18567_v52, 5  ;;  %v18568_v59 = vshll.u32 %v16754_v63, 16  ;;  %v12943_v63 = vld [vmem:[%s17821_s8 + $0x220] sm:$0xff]   ;;  %10316 = vmatmul.mubr.bf16.gmra.mrb[144].mxu0 %v11477_v3  ;;  %v8297_v33 = vrot.slane %v8296_v57, 4  ;;  %v8095_v56 = vrot.slane %v8093_v8, 5  ;;  %v12945_v52 = vld [vmem:[%s17821_s8 + $0x228] sm:$0xff]  }
 0x47d   : > { %12311 = vmatpush3.bf16.msra.mxu1 %v12930_v7  ;;  %v8307_v22 = vrot.slane %v8306_v53, 4  ;;  %v8098_v55 = vrot.slane %v8096_v29, 6  ;;  %v8523_v7 = vld [vmem:[#allocation4 + $0x2c] sm:$0x3]  ;;  %v8579_v17 = vshll.u32 %v17129_v2, 16  ;;  %v8085_v1 = vor.u32 %v8084_v26, %v8081_v25  ;;  %v12934_v3 = vld [vmem:[%s17821_s8 + $0x1a0] sm:$0xff]   ;;  %12474 = vmatprep.subr.bf16.mxu0 %v12943_v63 }
 0x47e   : > { %v8088_v30 = vrot.slane %v18568_v59, 6  ;;  %12312 = vmatprep.subr.bf16.mxu1 %v12931_v31  ;;  %v8302_v31 = vsel %vm13470_vm12, %v8297_v33, %v8301_v44  ;;  %v8578_v37 = vrot.slane %v8576_v36, 5  ;;  %v8584_v11 = vrot.slane %v8303_v23, 5  ;;  %v17166_v53 = vld [vmem:[#allocation4 + $0x34] sm:$0xf]  ;;  %12475 = vmatpush3.bf16.msra.mxu0 %v12943_v63  ;;  %v12938_v29 = vld [vmem:[%s17821_s8 + $0x1a8] sm:$0xff]  }
 0x47f   : > { %v8312_v15 = vsel %vm13470_vm12, %v8307_v22, %v8311_v54  ;;  %v8099_v28 = vor.u32 %v8098_v55, %v8095_v56  ;;  %v8581_v35 = vrot.slane %v8579_v17, 6  ;;  %v8086_v14 = vrot.slane %v8085_v1, 4  ;;  %v8226_v54 = vld [vmem:[#allocation4 + $0x30] sm:$0xf]  ;;  %v17171_v8 = vld [vmem:[#allocation4 + $0x38] sm:$0x1]  ;;  %12476 = vmatprep.subr.bf16.mxu0 %v12945_v52 }
 0x480   : > { %v8089_v4 = vor.u32 %v8088_v30, %v8087_v6  ;;  %v11470_v44 = vcombine.low %v8302_v31, %v8312_v15  ;;  %v8585_v57 = vrot.slane %v8299_v20, 6  ;;  %v8590_v0 = vshrl.u32 %v8523_v7, 16  ;;  %v12947_v55 = vld [vmem:[%s17821_s8 + $0x230] sm:$0xff]   ;;  %v8027_v1 = vld [vmem:[#allocation4 + $0x2c] sm:$0x3] }
 0x481   : > { %12313 = vmatpush3.bf16.msra.mxu1 %v12932_v45  ;;  %v8582_v59 = vor.u32 %v8581_v35, %v8578_v37  ;;  %v8593_v30 = vshll.u32 %v8523_v7, 16  ;;  %v11430_v45 = vrot.slane %v17129_v2, 9  ;;  %v8481_v25 = vrot.slane %v17096_v51, 5  ;;  %v17192_v15 = vld [vmem:[#allocation4 + $0x30] sm:$0xe] }
 0x482   : > { %v8091_v39 = vrot.slane %v8089_v4, 4  ;;  %12314 = vmatprep.subr.bf16.mxu1 %v12933_v40  ;;  %10226 = vmatprep.mubr.bf16.mxu1 %v11470_v44  ;;  %v8090_v20 = vsel %vm13492_vm13, %v8086_v14, %v8089_v4  ;;  %v8586_v23 = vor.u32 %v8585_v57, %v8584_v11  ;;  %v8592_v40 = vrot.slane %v8590_v0, 5  ;;  %v12940_v4 = vld [vmem:[%s17821_s8 + $0x1f0] sm:$0xff]   ;;  %v12944_v57 = vld [vmem:[%s17821_s8 + $0x1f8] sm:$0xff]  }
 0x483   : > { %v8583_v33 = vrot.slane %v8582_v59, 4  ;;  %v8595_v26 = vrot.slane %v8593_v30, 6  ;;  %v8484_v63 = vrot.slane %v17102_v46, 5  ;;  %v8482_v51 = vsel %vm13451_vm11, %v11430_v45, %v8481_v25  ;;  %12477 = vmatpush3.bf16.msra.mxu0 %v12945_v52  ;;  %v12957_v59 = vld [vmem:[#allocation4 + $0x24] sm:$0xe]  ;;  %v12948_v45 = vld [vmem:[%s17821_s8 + $0x238] sm:$0xff]  }
 0x484   : > { %v8100_v6 = vsel %vm13492_vm13, %v8091_v39, %v8099_v28  ;;  %v8588_v36 = vrot.slane %v8586_v23, 4  ;;  %v8483_v22 = vrot.slane %v8481_v25, 4  ;;  %v8314_v56 = vshrl.u32 %v8226_v54, 16  ;;  %v12942_v28 = vld [vmem:[%s17821_s8 + $0x1b0] sm:$0xff]   ;;  %12478 = vmatprep.subr.bf16.mxu0 %v12947_v55 }
 0x485   : > { %12315 = vmatpush3.bf16.msra.mxu1 %v12934_v3  ;;  %v11462_v2 = vcombine.low %v8090_v20, %v8100_v6  ;;  %v8587_v46 = vsel %vm13492_vm13, %v8583_v33, %v8586_v23  ;;  %v8596_v7 = vor.u32 %v8595_v26, %v8592_v40  ;;  %v8317_v17 = vshll.u32 %v8226_v54, 16 }
 0x486   : > { %12316 = vmatprep.subr.bf16.mxu1 %v12936_v49  ;;  %v8323_v31 = vshll.u32 %v17166_v53, 16  ;;  %v8485_v39 = vsel %vm13451_vm11, %v8483_v22, %v8484_v63  ;;  %v8316_v37 = vrot.slane %v8314_v56, 4  ;;  %v8327_v3 = vshrl.u32 %v17166_v53, 16 }
 0x487   : > { %10227 = vmatmul.mubr.bf16.gmra.mrb[160].mxu1 %v11462_v2  ;;  %v8333_v49 = vshll.u32 %v17171_v8, 16  ;;  %v8597_v35 = vsel %vm13492_vm13, %v8588_v36, %v8596_v7  ;;  %v11478_v11 = vcombine.low %v8482_v51, %v8485_v39  ;;  %v8319_v44 = vrot.slane %v8317_v17, 5  ;;  %12479 = vmatpush3.bf16.msra.mxu0 %v12947_v55  ;;  %v8524_v7 = vld [vmem:[#allocation4 + $0x38] sm:$0x3] }
 0x488   : > { %v8325_v14 = vrot.slane %v8323_v31, 5  ;;  %v11486_v0 = vcombine.low %v8587_v46, %v8597_v35  ;;  %v8329_v52 = vrot.slane %v8327_v3, 4  ;;  %v8102_v30 = vshrl.u32 %v12957_v59, 16  ;;  %12480 = vmatprep.subr.bf16.mxu0 %v12948_v45 }
 0x489   : > { %12317 = vmatpush3.bf16.msra.mxu1 %v12938_v29  ;;  %v8335_v6 = vrot.slane %v8333_v49, 5  ;;  %v8320_v54 = vor.u32 %v8319_v44, %v8316_v37  ;;  %v8105_v20 = vshll.u32 %v12957_v59, 16  ;;  %v18569_v23 = vshrl.u32 %v16776_v5, 16 }
 0x48a   : > { %12318 = vmatprep.subr.bf16.mxu1 %v12940_v4  ;;  %v18570_v25 = vshll.u32 %v16776_v5, 16  ;;  %10323 = vmatprep.mubr.bf16.mxu0 %v11486_v0  ;;  %v8330_v2 = vor.u32 %v8329_v52, %v8325_v14  ;;  %v8104_v33 = vrot.slane %v8102_v30, 5  ;;  %v8116_v26 = vshrl.u32 %v8027_v1, 16  ;;  %v12946_v4 = vld [vmem:[%s17821_s8 + $0x1b8] sm:$0xff]  }
 0x48b   : > { %v8110_v40 = vrot.slane %v18569_v23, 5  ;;  %v8119_v63 = vshll.u32 %v8027_v1, 16  ;;  %10324 = vmatmul.mubr.bf16.gmra.mrb[148].mxu0 %v11478_v11  ;;  %v8321_v36 = vrot.slane %v8320_v54, 4  ;;  %v8107_v51 = vrot.slane %v8105_v20, 6 }
 0x48c   : > { %v8111_v29 = vrot.slane %v18570_v25, 6  ;;  %v8599_v56 = vshrl.u32 %v17192_v15, 16  ;;  %v8331_v5 = vrot.slane %v8330_v2, 4  ;;  %v8118_v46 = vrot.slane %v8116_v26, 5  ;;  %12481 = vmatpush3.bf16.msra.mxu0 %v12948_v45  ;;  %v17221_v45 = vld [vmem:[#allocation4 + $0x40] sm:$0xf] }
 0x48d   : > { %12319 = vmatpush3.bf16.msra.mxu1 %v12942_v28  ;;  %v8121_v55 = vrot.slane %v8119_v63, 6  ;;  %v8602_v17 = vshll.u32 %v17192_v15, 16  ;;  %v8326_v1 = vsel %vm13470_vm12, %v8321_v36, %v8325_v14  ;;  %v8108_v39 = vor.u32 %v8107_v51, %v8104_v33 }
 0x48e   : > { %v8112_v22 = vor.u32 %v8111_v29, %v8110_v40  ;;  %12320 = vmatprep.subr.bf16.mxu1 %v12944_v57  ;;  %v8601_v49 = vrot.slane %v8599_v56, 5  ;;  %v8336_v28 = vsel %vm13470_vm12, %v8331_v5, %v8335_v6  ;;  %v8607_v44 = vrot.slane %v8327_v3, 5  ;;  %v8229_v57 = vld [vmem:[#allocation4 + $0x3c] sm:$0xf]  ;;  %v17226_v29 = vld [vmem:[#allocation4 + $0x44] sm:$0x1] }
 0x48f   : > { %v8122_v35 = vor.u32 %v8121_v55, %v8118_v46  ;;  %v8604_v11 = vrot.slane %v8602_v17, 6  ;;  %v11471_v0 = vcombine.low %v8326_v1, %v8336_v28  ;;  %v8109_v52 = vrot.slane %v8108_v39, 4 }
 0x490   : > { %v8114_v37 = vrot.slane %v8112_v22, 4  ;;  %v8608_v59 = vrot.slane %v8323_v31, 6  ;;  %v8613_v30 = vshrl.u32 %v8524_v7, 16  ;;  %v8616_v20 = vshll.u32 %v8524_v7, 16 }
 0x491   : > { %12321 = vmatpush3.bf16.msra.mxu1 %v12946_v4  ;;  %v8605_v14 = vor.u32 %v8604_v11, %v8601_v49  ;;  %v11431_v23 = vrot.slane %v17192_v15, 9  ;;  %10234 = vmatprep.mubr.bf16.mxu1 %v11471_v0  ;;  %v8113_v6 = vsel %vm13492_vm13, %v8109_v52, %v8112_v22  ;;  %v8488_v25 = vrot.slane %v17166_v53, 5  ;;  %v8437_v49 = vld [vmem:[#allocation4 + $0x3c] sm:$0xe] }
 0x492   : > { %v8123_v54 = vsel %vm13492_vm13, %v8114_v37, %v8122_v35  ;;  %v8609_v3 = vor.u32 %v8608_v59, %v8607_v44  ;;  %v8615_v40 = vrot.slane %v8613_v30, 5  ;;  %v8618_v33 = vrot.slane %v8616_v20, 6  ;;  %v8028_v37 = vld [vmem:[#allocation4 + $0x38] sm:$0x3]  ;;  %v12958_v44 = vld [vmem:[#allocation4 + $0x30] sm:$0xe] }
 0x493   : > { %v11463_v31 = vcombine.low %v8113_v6, %v8123_v54  ;;  %v8606_v2 = vrot.slane %v8605_v14, 4  ;;  %v8491_v26 = vrot.slane %v17171_v8, 5  ;;  %v8489_v15 = vsel %vm13451_vm11, %v11431_v23, %v8488_v25 }
 0x494   : > { %v8611_v63 = vrot.slane %v8609_v3, 4  ;;  %v8490_v4 = vrot.slane %v8488_v25, 4  ;;  %v8338_v36 = vshrl.u32 %v8229_v57, 16  ;;  %v8619_v22 = vor.u32 %v8618_v33, %v8615_v40 }
 0x495   : > { %10235 = vmatmul.mubr.bf16.gmra.mrb[164].mxu1 %v11463_v31  ;;  %v8610_v51 = vsel %vm13492_vm13, %v8606_v2, %v8609_v3  ;;  %v8341_v56 = vshll.u32 %v8229_v57, 16  ;;  %v8347_v53 = vshll.u32 %v17221_v45, 16  ;;  %v8351_v8 = vshrl.u32 %v17221_v45, 16 }
 0x496   : > { %v8492_v5 = vsel %vm13451_vm11, %v8490_v4, %v8491_v26  ;;  %v8340_v46 = vrot.slane %v8338_v36, 4  ;;  %v8357_v55 = vshll.u32 %v17226_v29, 16  ;;  %v8620_v7 = vsel %vm13492_vm13, %v8611_v63, %v8619_v22 }
 0x497   : > { %v11479_v17 = vcombine.low %v8489_v15, %v8492_v5  ;;  %v8343_v1 = vrot.slane %v8341_v56, 5  ;;  %v8349_v39 = vrot.slane %v8347_v53, 5  ;;  %v11487_v28 = vcombine.low %v8610_v51, %v8620_v7  ;;  %v8525_v15 = vld [vmem:[#allocation4 + $0x44] sm:$0x3] }
 0x498   : > { %v8353_v35 = vrot.slane %v8351_v8, 4  ;;  %v8359_v11 = vrot.slane %v8357_v55, 5  ;;  %v8125_v57 = vshrl.u32 %v12958_v44, 16  ;;  %v8128_v52 = vshll.u32 %v12958_v44, 16 }
 0x499   : > { %v8344_v0 = vor.u32 %v8343_v1, %v8340_v46  ;;  %v18571_v59 = vshrl.u32 %v16805_v24, 16  ;;  %v18572_v54 = vshll.u32 %v16805_v24, 16  ;;  %10331 = vmatprep.mubr.bf16.mxu0 %v11487_v28  ;;  %v8139_v6 = vshrl.u32 %v8028_v37, 16 }
 0x49a   : > { %v8354_v20 = vor.u32 %v8353_v35, %v8349_v39  ;;  %v8127_v23 = vrot.slane %v8125_v57, 5  ;;  %v8142_v3 = vshll.u32 %v8028_v37, 16  ;;  %10332 = vmatmul.mubr.bf16.gmra.mrb[152].mxu0 %v11479_v17  ;;  %v8130_v25 = vrot.slane %v8128_v52, 6 }
 0x49b   : > { %v8133_v30 = vrot.slane %v18571_v59, 5  ;;  %v8134_v14 = vrot.slane %v18572_v54, 6  ;;  %v8345_v40 = vrot.slane %v8344_v0, 4  ;;  %v8622_v2 = vshrl.u32 %v8437_v49, 16 }
 0x49c   : > { %v8355_v33 = vrot.slane %v8354_v20, 4  ;;  %v8141_v26 = vrot.slane %v8139_v6, 5  ;;  %v8144_v63 = vrot.slane %v8142_v3, 6  ;;  %v8625_v4 = vshll.u32 %v8437_v49, 16 }
 0x49d   : > { %v8135_v31 = vor.u32 %v8134_v14, %v8133_v30  ;;  %v8350_v36 = vsel %vm13470_vm12, %v8345_v40, %v8349_v39  ;;  %v8131_v24 = vor.u32 %v8130_v25, %v8127_v23  ;;  %v8624_v22 = vrot.slane %v8622_v2, 5  ;;  %v8232_v39 = vld [vmem:[#allocation4 + $0x48] sm:$0xf]  ;;  %v17255_v30 = vld [vmem:[#allocation4 + $0x50] sm:$0x1] }
 0x49e   : > { %v8360_v56 = vsel %vm13470_vm12, %v8355_v33, %v8359_v11  ;;  %v8145_v5 = vor.u32 %v8144_v63, %v8141_v26  ;;  %v8627_v46 = vrot.slane %v8625_v4, 6  ;;  %v8630_v55 = vrot.slane %v8351_v8, 5  ;;  %v17253_v8 = vld [vmem:[#allocation4 + $0x4c] sm:$0xf] }
 0x49f   : > { %v8137_v51 = vrot.slane %v8135_v31, 4  ;;  %v11472_v7 = vcombine.low %v8350_v36, %v8360_v56  ;;  %v8132_v17 = vrot.slane %v8131_v24, 4  ;;  %v8631_v1 = vrot.slane %v8347_v53, 6  ;;  %v8029_v24 = vld [vmem:[#allocation4 + $0x44] sm:$0x3] }
 0x4a0   : > { %v8636_v37 = vshrl.u32 %v8525_v15, 16  ;;  %v8628_v35 = vor.u32 %v8627_v46, %v8624_v22  ;;  %v8639_v44 = vshll.u32 %v8525_v15, 16  ;;  %v11432_v57 = vrot.slane %v8437_v49, 9 }
 0x4a1   : > { %v8146_v28 = vsel %vm13492_vm13, %v8137_v51, %v8145_v5  ;;  %10242 = vmatprep.mubr.bf16.mxu1 %v11472_v7  ;;  %v8136_v0 = vsel %vm13492_vm13, %v8132_v17, %v8135_v31  ;;  %v8632_v52 = vor.u32 %v8631_v1, %v8630_v55  ;;  %v8495_v59 = vrot.slane %v17221_v45, 5  ;;  %v12959_v5 = vld [vmem:[#allocation4 + $0x3c] sm:$0xe]  ;;  %v8438_v55 = vld [vmem:[#allocation4 + $0x48] sm:$0xe] }
 0x4a2   : > { %v8638_v11 = vrot.slane %v8636_v37, 5  ;;  %v11464_v53 = vcombine.low %v8136_v0, %v8146_v28  ;;  %v8629_v54 = vrot.slane %v8628_v35, 4  ;;  %v8641_v14 = vrot.slane %v8639_v44, 6 }
 0x4a3   : > { %v8498_v20 = vrot.slane %v17226_v29, 5  ;;  %v8634_v23 = vrot.slane %v8632_v52, 4  ;;  %v8496_v49 = vsel %vm13451_vm11, %v11432_v57, %v8495_v59  ;;  %v8497_v6 = vrot.slane %v8495_v59, 4 }
 0x4a4   : > { %v8362_v3 = vshrl.u32 %v8232_v39, 16  ;;  %10243 = vmatmul.mubr.bf16.gmra.mrb[168].mxu1 %v11464_v53  ;;  %v8633_v40 = vsel %vm13492_vm13, %v8629_v54, %v8632_v52  ;;  %v8642_v45 = vor.u32 %v8641_v14, %v8638_v11  ;;  %v8365_v25 = vshll.u32 %v8232_v39, 16 }
 0x4a5   : > { %v8371_v31 = vshll.u32 %v17253_v8, 16  ;;  %v8499_v2 = vsel %vm13451_vm11, %v8497_v6, %v8498_v20  ;;  %v8375_v29 = vshrl.u32 %v17253_v8, 16  ;;  %v8381_v26 = vshll.u32 %v17255_v30, 16 }
 0x4a6   : > { %v8364_v33 = vrot.slane %v8362_v3, 4  ;;  %v8643_v63 = vsel %vm13492_vm13, %v8634_v23, %v8642_v45  ;;  %v11480_v15 = vcombine.low %v8496_v49, %v8499_v2  ;;  %v8367_v4 = vrot.slane %v8365_v25, 5  ;;  %v8526_v23 = vld [vmem:[#allocation4 + $0x50] sm:$0x3] }
 0x4a7   : > { %v8373_v36 = vrot.slane %v8371_v31, 5  ;;  %v11488_v51 = vcombine.low %v8633_v40, %v8643_v63  ;;  %v8377_v22 = vrot.slane %v8375_v29, 4  ;;  %v8383_v56 = vrot.slane %v8381_v26, 5 }
 0x4a8   : > { %v8148_v46 = vshrl.u32 %v12959_v5, 16  ;;  %v8368_v7 = vor.u32 %v8367_v4, %v8364_v33  ;;  %v8151_v17 = vshll.u32 %v12959_v5, 16  ;;  %v18573_v1 = vshrl.u32 %v16864_v16, 16 }
 0x4a9   : > { %v18574_v28 = vshll.u32 %v16864_v16, 16  ;;  %10339 = vmatprep.mubr.bf16.mxu0 %v11488_v51  ;;  %v8378_v44 = vor.u32 %v8377_v22, %v8373_v36  ;;  %v8162_v39 = vshrl.u32 %v8029_v24, 16  ;;  %v8165_v0 = vshll.u32 %v8029_v24, 16 }
 0x4aa   : > { %v8156_v37 = vrot.slane %v18573_v1, 5  ;;  %v8150_v57 = vrot.slane %v8148_v46, 5  ;;  %10340 = vmatmul.mubr.bf16.gmra.mrb[156].mxu0 %v11480_v15  ;;  %v8369_v52 = vrot.slane %v8368_v7, 4  ;;  %v8153_v11 = vrot.slane %v8151_v17, 6 }
 0x4ab   : > { %v8157_v35 = vrot.slane %v18574_v28, 6  ;;  %v8645_v53 = vshrl.u32 %v8438_v55, 16  ;;  %v8379_v54 = vrot.slane %v8378_v44, 4  ;;  %v8164_v14 = vrot.slane %v8162_v39, 5 }
 0x4ac   : > { %v8167_v20 = vrot.slane %v8165_v0, 6  ;;  %v8648_v49 = vshll.u32 %v8438_v55, 16  ;;  %v8374_v6 = vsel %vm13470_vm12, %v8369_v52, %v8373_v36  ;;  %v8154_v16 = vor.u32 %v8153_v11, %v8150_v57  ;;  %v8235_v36 = vld [vmem:[#allocation4 + $0x54] sm:$0xf] }
 0x4ad   : > { %v8158_v59 = vor.u32 %v8157_v35, %v8156_v37  ;;  %v8647_v40 = vrot.slane %v8645_v53, 5  ;;  %v8384_v45 = vsel %vm13470_vm12, %v8379_v54, %v8383_v56  ;;  %v8653_v33 = vrot.slane %v8375_v29, 5  ;;  %v17282_v29 = vld [vmem:[#allocation4 + $0x58] sm:$0xf]  ;;  %v17285_v35 = vld [vmem:[#allocation4 + $0x5c] sm:$0x1] }
 0x4ae   : > { %v8168_v25 = vor.u32 %v8167_v20, %v8164_v14  ;;  %v8650_v2 = vrot.slane %v8648_v49, 6  ;;  %v11473_v26 = vcombine.low %v8374_v6, %v8384_v45  ;;  %v8155_v63 = vrot.slane %v8154_v16, 4  ;;  %v8030_v6 = vld [vmem:[#allocation4 + $0x50] sm:$0x3]  ;;  %v12960_v45 = vld [vmem:[#allocation4 + $0x48] sm:$0xe] }
 0x4af   : > { %v8160_v3 = vrot.slane %v8158_v59, 4  ;;  %v8654_v15 = vrot.slane %v8371_v31, 6  ;;  %v8659_v4 = vshrl.u32 %v8526_v23, 16  ;;  %v8662_v22 = vshll.u32 %v8526_v23, 16 }
 0x4b0   : > { %v8651_v51 = vor.u32 %v8650_v2, %v8647_v40  ;;  %v11433_v5 = vrot.slane %v8438_v55, 9  ;;  %10250 = vmatprep.mubr.bf16.mxu1 %v11473_v26  ;;  %v8159_v46 = vsel %vm13492_vm13, %v8155_v63, %v8158_v59  ;;  %v8502_v17 = vrot.slane %v17253_v8, 5  ;;  %v8439_v2 = vld [vmem:[#allocation4 + $0x54] sm:$0xe] }
 0x4b1   : > { %v8169_v24 = vsel %vm13492_vm13, %v8160_v3, %v8168_v25  ;;  %v8655_v7 = vor.u32 %v8654_v15, %v8653_v33  ;;  %v8661_v56 = vrot.slane %v8659_v4, 5  ;;  %v8664_v37 = vrot.slane %v8662_v22, 6 }
 0x4b2   : > { %v11465_v1 = vcombine.low %v8159_v46, %v8169_v24  ;;  %v8652_v31 = vrot.slane %v8651_v51, 4  ;;  %v8505_v28 = vrot.slane %v17255_v30, 5  ;;  %v8503_v55 = vsel %vm13451_vm11, %v11433_v5, %v8502_v17 }
 0x4b3   : > { %v8657_v44 = vrot.slane %v8655_v7, 4  ;;  %v8504_v57 = vrot.slane %v8502_v17, 4  ;;  %v8386_v39 = vshrl.u32 %v8235_v36, 16  ;;  %v8665_v8 = vor.u32 %v8664_v37, %v8661_v56 }
 0x4b4   : > { %10251 = vmatmul.mubr.bf16.gmra.mrb[172].mxu1 %v11465_v1  ;;  %v8656_v0 = vsel %vm13492_vm13, %v8652_v31, %v8655_v7  ;;  %v8389_v52 = vshll.u32 %v8235_v36, 16  ;;  %v8395_v11 = vshll.u32 %v17282_v29, 16  ;;  %v8399_v53 = vshrl.u32 %v17282_v29, 16 }
 0x4b5   : > { %v8506_v59 = vsel %vm13451_vm11, %v8504_v57, %v8505_v28  ;;  %v8388_v30 = vrot.slane %v8386_v39, 4  ;;  %v8405_v54 = vshll.u32 %v17285_v35, 16  ;;  %v8666_v14 = vsel %vm13492_vm13, %v8657_v44, %v8665_v8  ;;  %v8527_v28 = vld [vmem:[#allocation4 + $0x5c] sm:$0x3] }
 0x4b6   : > { %v11481_v20 = vcombine.low %v8503_v55, %v8506_v59  ;;  %v8391_v23 = vrot.slane %v8389_v52, 5  ;;  %v8397_v49 = vrot.slane %v8395_v11, 5  ;;  %v11489_v16 = vcombine.low %v8656_v0, %v8666_v14 }
 0x4b7   : > { %v8401_v3 = vrot.slane %v8399_v53, 4  ;;  %v8407_v40 = vrot.slane %v8405_v54, 5  ;;  %v8171_v25 = vshrl.u32 %v12960_v45, 16  ;;  %v8174_v26 = vshll.u32 %v12960_v45, 16 }
 0x4b8   : > { %v8392_v33 = vor.u32 %v8391_v23, %v8388_v30  ;;  %v18575_v63 = vshrl.u32 %v16920_v38, 16  ;;  %v18576_v4 = vshll.u32 %v16920_v38, 16  ;;  %10347 = vmatprep.mubr.bf16.mxu0 %v11489_v16  ;;  %v8185_v5 = vshrl.u32 %v8030_v6, 16  ;;  %v8238_v30 = vld [vmem:[#allocation4 + $0x60] sm:$0xf] }
 0x4b9   : > { %v8402_v51 = vor.u32 %v8401_v3, %v8397_v49  ;;  %v8173_v22 = vrot.slane %v8171_v25, 5  ;;  %v8188_v36 = vshll.u32 %v8030_v6, 16  ;;  %10348 = vmatmul.mubr.bf16.gmra.mrb[160].mxu0 %v11481_v20  ;;  %v8176_v7 = vrot.slane %v8174_v26, 6  ;;  %v17306_v6 = vld [vmem:[#allocation4 + $0x64] sm:$0xf] }
 0x4ba   : > { %v8179_v15 = vrot.slane %v18575_v63, 5  ;;  %v8180_v24 = vrot.slane %v18576_v4, 6  ;;  %v8393_v46 = vrot.slane %v8392_v33, 4  ;;  %v8668_v17 = vshrl.u32 %v8439_v2, 16  ;;  %v17310_v25 = vld [vmem:[#allocation4 + $0x68] sm:$0x1] }
 0x4bb   : > { %v8403_v1 = vrot.slane %v8402_v51, 4  ;;  %v8187_v31 = vrot.slane %v8185_v5, 5  ;;  %v8190_v37 = vrot.slane %v8188_v36, 6  ;;  %v8671_v44 = vshll.u32 %v8439_v2, 16 }
 0x4bc   : > { %v8181_v56 = vor.u32 %v8180_v24, %v8179_v15  ;;  %v8398_v55 = vsel %vm13470_vm12, %v8393_v46, %v8397_v49  ;;  %v8177_v38 = vor.u32 %v8176_v7, %v8173_v22  ;;  %v8670_v39 = vrot.slane %v8668_v17, 5 }
 0x4bd   : > { %v8408_v0 = vsel %vm13470_vm12, %v8403_v1, %v8407_v40  ;;  %v8191_v8 = vor.u32 %v8190_v37, %v8187_v31  ;;  %v8673_v52 = vrot.slane %v8671_v44, 6  ;;  %v8676_v59 = vrot.slane %v8399_v53, 5  ;;  %v8440_v31 = vld [vmem:[#allocation4 + $0x60] sm:$0xe] }
 0x4be   : > { %v8183_v57 = vrot.slane %v8181_v56, 4  ;;  %v11474_v54 = vcombine.low %v8398_v55, %v8408_v0  ;;  %v8178_v14 = vrot.slane %v8177_v38, 4  ;;  %v8677_v20 = vrot.slane %v8395_v11, 6  ;;  %v12961_v0 = vld [vmem:[#allocation4 + $0x54] sm:$0xe] }
 0x4bf   : > { %v8682_v23 = vshrl.u32 %v8527_v28, 16  ;;  %v8674_v49 = vor.u32 %v8673_v52, %v8670_v39  ;;  %v8685_v3 = vshll.u32 %v8527_v28, 16  ;;  %v11434_v45 = vrot.slane %v8439_v2, 9 }
 0x4c0   : > { %v8192_v16 = vsel %vm13492_vm13, %v8183_v57, %v8191_v8  ;;  %10258 = vmatprep.mubr.bf16.mxu1 %v11474_v54  ;;  %v8182_v40 = vsel %vm13492_vm13, %v8178_v14, %v8181_v56  ;;  %v8678_v53 = vor.u32 %v8677_v20, %v8676_v59  ;;  %v8509_v26 = vrot.slane %v17282_v29, 5  ;;  %v8031_v29 = vld [vmem:[#allocation4 + $0x5c] sm:$0x3] }
 0x4c1   : > { %v8684_v33 = vrot.slane %v8682_v23, 5  ;;  %v11466_v11 = vcombine.low %v8182_v40, %v8192_v16  ;;  %v8675_v63 = vrot.slane %v8674_v49, 4  ;;  %v8687_v15 = vrot.slane %v8685_v3, 6 }
 0x4c2   : > { %v8512_v4 = vrot.slane %v17285_v35, 5  ;;  %v8680_v24 = vrot.slane %v8678_v53, 4  ;;  %v8510_v51 = vsel %vm13451_vm11, %v11434_v45, %v8509_v26  ;;  %v8511_v2 = vrot.slane %v8509_v26, 4  ;;  %v8528_v45 = vld [vmem:[#allocation4 + $0x68] sm:$0x3] }
 0x4c3   : > { %v8410_v22 = vshrl.u32 %v8238_v30, 16  ;;  %10259 = vmatmul.mubr.bf16.gmra.mrb[176].mxu1 %v11466_v11  ;;  %v8679_v5 = vsel %vm13492_vm13, %v8675_v63, %v8678_v53  ;;  %v8688_v36 = vor.u32 %v8687_v15, %v8684_v33  ;;  %v8413_v46 = vshll.u32 %v8238_v30, 16 }
 0x4c4   : > { %v8419_v7 = vshll.u32 %v17306_v6, 16  ;;  %v8513_v56 = vsel %vm13451_vm11, %v8511_v2, %v8512_v4  ;;  %v8423_v35 = vshrl.u32 %v17306_v6, 16  ;;  %v8429_v1 = vshll.u32 %v17310_v25, 16 }
 0x4c5   : > { %v8412_v17 = vrot.slane %v8410_v22, 4  ;;  %v8689_v37 = vsel %vm13492_vm13, %v8680_v24, %v8688_v36  ;;  %v11482_v28 = vcombine.low %v8510_v51, %v8513_v56  ;;  %v8415_v44 = vrot.slane %v8413_v46, 5 }
 0x4c6   : > { %v8421_v55 = vrot.slane %v8419_v7, 5  ;;  %v11490_v38 = vcombine.low %v8679_v5, %v8689_v37  ;;  %v8425_v57 = vrot.slane %v8423_v35, 4  ;;  %v8431_v39 = vrot.slane %v8429_v1, 5 }
 0x4c7   : > { %v8194_v8 = vshrl.u32 %v12961_v0, 16  ;;  %v8416_v52 = vor.u32 %v8415_v44, %v8412_v17  ;;  %v8197_v59 = vshll.u32 %v12961_v0, 16  ;;  %v18577_v30 = vshrl.u32 %v16968_v34, 16 }
 0x4c8   : > { %v18578_v14 = vshll.u32 %v16968_v34, 16  ;;  %10355 = vmatprep.mubr.bf16.mxu0 %v11490_v38  ;;  %v8426_v23 = vor.u32 %v8425_v57, %v8421_v55  ;;  %v8208_v49 = vshrl.u32 %v8031_v29, 16  ;;  %v8211_v3 = vshll.u32 %v8031_v29, 16 }
 0x4c9   : > { %v8202_v54 = vrot.slane %v18577_v30, 5  ;;  %v8196_v16 = vrot.slane %v8194_v8, 5  ;;  %10356 = vmatmul.mubr.bf16.gmra.mrb[164].mxu0 %v11482_v28  ;;  %v8417_v40 = vrot.slane %v8416_v52, 4  ;;  %v8199_v53 = vrot.slane %v8197_v59, 6 }
 0x4ca   : > { %v8203_v20 = vrot.slane %v18578_v14, 6  ;;  %v8691_v26 = vshrl.u32 %v8440_v31, 16  ;;  %v8427_v11 = vrot.slane %v8426_v23, 4  ;;  %v8210_v63 = vrot.slane %v8208_v49, 5 }
 0x4cb   : > { %v8213_v15 = vrot.slane %v8211_v3, 6  ;;  %v8694_v4 = vshll.u32 %v8440_v31, 16  ;;  %v8422_v24 = vsel %vm13470_vm12, %v8417_v40, %v8421_v55  ;;  %v8200_v34 = vor.u32 %v8199_v53, %v8196_v16  ;;  %v8715_v55 = vld [vmem:[#allocation4 + $0x1c] sm:$0xf] }
 0x4cc   : > { %v8204_v33 = vor.u32 %v8203_v20, %v8202_v54  ;;  %v8693_v2 = vrot.slane %v8691_v26, 5  ;;  %v8432_v22 = vsel %vm13470_vm12, %v8427_v11, %v8431_v39  ;;  %v8699_v46 = vrot.slane %v8423_v35, 5  ;;  %v8716_v35 = vld [vmem:[#allocation4 + $0x20] sm:$0x1] }
 0x4cd   : > { %v8214_v5 = vor.u32 %v8213_v15, %v8210_v63  ;;  %v8696_v36 = vrot.slane %v8694_v4, 6  ;;  %v11475_v29 = vcombine.low %v8422_v24, %v8432_v22  ;;  %v8201_v56 = vrot.slane %v8200_v34, 4 }
 0x4ce   : > { %v8206_v51 = vrot.slane %v8204_v33, 4  ;;  %v8700_v17 = vrot.slane %v8419_v7, 6  ;;  %v8705_v1 = vshrl.u32 %v8528_v45, 16  ;;  %v8708_v44 = vshll.u32 %v8528_v45, 16 }
 0x4cf   : > { %v8697_v28 = vor.u32 %v8696_v36, %v8693_v2  ;;  %v11435_v38 = vrot.slane %v8440_v31, 9  ;;  %10266 = vmatprep.mubr.bf16.mxu1 %v11475_v29  ;;  %v8205_v57 = vsel %vm13492_vm13, %v8201_v56, %v8204_v33  ;;  %v8516_v8 = vrot.slane %v17306_v6, 5  ;;  %v8930_v6 = vld [vmem:[#allocation4 + $0x18] sm:$0xe]  ;;  %v9018_v36 = vld [vmem:[#allocation4 + $0x20] sm:$0x3] }
 0x4d0   : > { %v8215_v37 = vsel %vm13492_vm13, %v8206_v51, %v8214_v5  ;;  %v8701_v0 = vor.u32 %v8700_v17, %v8699_v46  ;;  %v8707_v39 = vrot.slane %v8705_v1, 5  ;;  %v8710_v7 = vrot.slane %v8708_v44, 6  ;;  %v8714_v33 = vld [vmem:[#allocation4 + $0x18] sm:$0xf] }
 0x4d1   : > { %v11467_v52 = vcombine.low %v8205_v57, %v8215_v37  ;;  %v8698_v59 = vrot.slane %v8697_v28, 4  ;;  %v8519_v30 = vrot.slane %v17310_v25, 5  ;;  %v8517_v14 = vsel %vm13451_vm11, %v11435_v38, %v8516_v8  ;;  %v8718_v37 = vld [vmem:[#allocation4 + $0x28] sm:$0xf] }
 0x4d2   : > { %v8703_v54 = vrot.slane %v8701_v0, 4  ;;  %v8518_v31 = vrot.slane %v8516_v8, 4  ;;  %v8748_v20 = vshll.u32 %v8715_v55, 16  ;;  %v8711_v16 = vor.u32 %v8710_v7, %v8707_v39 }
 0x4d3   : > { %10267 = vmatmul.mubr.bf16.gmra.mrb[180].mxu1 %v11467_v52  ;;  %v8702_v23 = vsel %vm13492_vm13, %v8698_v59, %v8701_v0  ;;  %v8752_v49 = vshrl.u32 %v8715_v55, 16  ;;  %v8758_v3 = vshll.u32 %v8716_v35, 16  ;;  %v11436_v53 = vrot.slane %v8930_v6, 9 }
 0x4d4   : > { %v8520_v45 = vsel %vm13451_vm11, %v8518_v31, %v8519_v30  ;;  %v8750_v40 = vrot.slane %v8748_v20, 5  ;;  %v8964_v25 = vrot.slane %v8715_v55, 5  ;;  %v8712_v26 = vsel %vm13492_vm13, %v8703_v54, %v8711_v16  ;;  %v9019_v54 = vld [vmem:[#allocation4 + $0x2c] sm:$0x3] }
 0x4d5   : > { %v11483_v11 = vcombine.low %v8517_v14, %v8520_v45  ;;  %v8754_v63 = vrot.slane %v8752_v49, 4  ;;  %v8760_v15 = vrot.slane %v8758_v3, 5  ;;  %v11491_v4 = vcombine.low %v8702_v23, %v8712_v26 }
 0x4d6   : > { %v8965_v24 = vsel %vm13451_vm11, %v11436_v53, %v8964_v25  ;;  %v8966_v34 = vrot.slane %v8964_v25, 4  ;;  %v8967_v51 = vrot.slane %v8716_v35, 5  ;;  %v8739_v22 = vshrl.u32 %v8714_v33, 16  ;;  %v8931_v35 = vld [vmem:[#allocation4 + $0x24] sm:$0xe] }
 0x4d7   : > { %v8755_v2 = vor.u32 %v8754_v63, %v8750_v40  ;;  %v8742_v5 = vshll.u32 %v8714_v33, 16  ;;  %v9027_v46 = vshrl.u32 %v8930_v6, 16  ;;  %10363 = vmatprep.mubr.bf16.mxu0 %v11491_v4  ;;  %v9030_v56 = vshll.u32 %v8930_v6, 16  ;;  %v8719_v4 = vld [vmem:[#allocation4 + $0x2c] sm:$0x1] }
 0x4d8   : > { %v8968_v29 = vsel %vm13451_vm11, %v8966_v34, %v8967_v51  ;;  %v9035_v17 = vrot.slane %v8752_v49, 5  ;;  %v9036_v1 = vrot.slane %v8748_v20, 6  ;;  %10364 = vmatmul.mubr.bf16.gmra.mrb[168].mxu0 %v11483_v11  ;;  %v8741_v38 = vrot.slane %v8739_v22, 4  ;;  %v8717_v22 = vld [vmem:[#allocation4 + $0x24] sm:$0xf] }
 0x4d9   : > { %v8756_v28 = vrot.slane %v8755_v2, 4  ;;  %v11500_v44 = vcombine.low %v8965_v24, %v8968_v29  ;;  %v8744_v55 = vrot.slane %v8742_v5, 5  ;;  %v9029_v57 = vrot.slane %v9027_v46, 5 }
 0x4da   : > { %v9032_v0 = vrot.slane %v9030_v56, 6  ;;  %v9037_v39 = vor.u32 %v9036_v1, %v9035_v17  ;;  %v9041_v8 = vshrl.u32 %v9018_v36, 16  ;;  %v9044_v7 = vshll.u32 %v9018_v36, 16 }
 0x4db   : > { %v8761_v52 = vsel %vm13470_vm12, %v8756_v28, %v8760_v15  ;;  %10404 = vmatprep.mubr.bf16.mxu1 %v11500_v44  ;;  %v8745_v59 = vor.u32 %v8744_v55, %v8741_v38  ;;  %v8772_v30 = vshll.u32 %v8718_v37, 16  ;;  %v8776_v23 = vshrl.u32 %v8718_v37, 16 }
 0x4dc   : > { %v9033_v14 = vor.u32 %v9032_v0, %v9029_v57  ;;  %v9039_v31 = vrot.slane %v9037_v39, 4  ;;  %v9043_v20 = vrot.slane %v9041_v8, 5  ;;  %v9046_v49 = vrot.slane %v9044_v7, 6 }
 0x4dd   : > { %v8746_v16 = vrot.slane %v8745_v59, 4  ;;  %v9050_v3 = vshrl.u32 %v8931_v35, 16  ;;  %v9053_v6 = vshll.u32 %v8931_v35, 16  ;;  %v9058_v53 = vrot.slane %v8776_v23, 5 }
 0x4de   : > { %v9034_v45 = vrot.slane %v9033_v14, 4  ;;  %v9059_v25 = vrot.slane %v8772_v30, 6  ;;  %v9064_v33 = vshrl.u32 %v9019_v54, 16  ;;  %v9047_v11 = vor.u32 %v9046_v49, %v9043_v20 }
 0x4df   : > { %v8751_v26 = vsel %vm13470_vm12, %v8746_v16, %v8750_v40  ;;  %v9052_v63 = vrot.slane %v9050_v3, 5  ;;  %v9055_v15 = vrot.slane %v9053_v6, 6  ;;  %v9067_v46 = vshll.u32 %v9019_v54, 16  ;;  %v8722_v54 = vld [vmem:[#allocation4 + $0x38] sm:$0x1] }
 0x4e0   : > { %v11492_v24 = vcombine.low %v8751_v26, %v8761_v52  ;;  %v9038_v34 = vsel %vm13492_vm13, %v9034_v45, %v9037_v39  ;;  %v9060_v51 = vor.u32 %v9059_v25, %v9058_v53  ;;  %v9066_v2 = vrot.slane %v9064_v33, 5  ;;  %v8721_v16 = vld [vmem:[#allocation4 + $0x34] sm:$0xf]  ;;  %v8720_v3 = vld [vmem:[#allocation4 + $0x30] sm:$0xf] }
 0x4e1   : > { %v9048_v5 = vsel %vm13492_vm13, %v9039_v31, %v9047_v11  ;;  %v9056_v36 = vor.u32 %v9055_v15, %v9052_v63  ;;  %v11437_v29 = vrot.slane %v8931_v35, 9  ;;  %v8971_v17 = vrot.slane %v8718_v37, 5  ;;  %v8932_v37 = vld [vmem:[#allocation4 + $0x30] sm:$0xe] }
 0x4e2   : > { %10405 = vmatmul.mubr.bf16.vlgmr.msra.gmra.mrb[184].mxu1 %v11492_v24  ;;  %v11508_v56 = vcombine.low %v9038_v34, %v9048_v5  ;;  %v9062_v40 = vrot.slane %v9060_v51, 4  ;;  %v8974_v1 = vrot.slane %v8719_v4, 5  ;;  %v9069_v44 = vrot.slane %v9067_v46, 6 }
 0x4e3   : > { %v9057_v28 = vrot.slane %v9056_v36, 4  ;;  %v8763_v38 = vshrl.u32 %v8717_v22, 16  ;;  %v8766_v55 = vshll.u32 %v8717_v22, 16  ;;  %v8972_v57 = vsel %vm13451_vm11, %v11437_v29, %v8971_v17  ;;  %v9020_v29 = vld [vmem:[#allocation4 + $0x38] sm:$0x3] }
 0x4e4   : > { %12482 = vmatprep.mubr.bf16.mxu0 %v11508_v56  ;;  %v8973_v0 = vrot.slane %v8971_v17, 4  ;;  %v8774_v39 = vrot.slane %v8772_v30, 5  ;;  %v8778_v8 = vrot.slane %v8776_v23, 4  ;;  %v9070_v35 = vor.u32 %v9069_v44, %v9066_v2 }
 0x4e5   : > { %v9061_v52 = vsel %vm13492_vm13, %v9057_v28, %v9060_v51  ;;  %v8765_v59 = vrot.slane %v8763_v38, 4  ;;  %v8768_v7 = vrot.slane %v8766_v55, 5  ;;  %v8782_v20 = vshll.u32 %v8719_v4, 16 }
 0x4e6   : > { %v8975_v14 = vsel %vm13451_vm11, %v8973_v0, %v8974_v1  ;;  %v8779_v31 = vor.u32 %v8778_v8, %v8774_v39  ;;  %v11438_v49 = vrot.slane %v8932_v37, 9  ;;  %v9071_v30 = vsel %vm13492_vm13, %v9062_v40, %v9070_v35 }
 0x4e7   : > { %v11501_v23 = vcombine.low %v8972_v57, %v8975_v14  ;;  %v8769_v6 = vor.u32 %v8768_v7, %v8765_v59  ;;  %v8978_v45 = vrot.slane %v8721_v16, 5  ;;  %v11509_v53 = vcombine.low %v9061_v52, %v9071_v30  ;;  %v8724_v57 = vld [vmem:[#allocation4 + $0x40] sm:$0xf]  ;;  %v8933_v14 = vld [vmem:[#allocation4 + $0x3c] sm:$0xe] }
 0x4e8   : > { %v8780_v25 = vrot.slane %v8779_v31, 4  ;;  %v8784_v33 = vrot.slane %v8782_v20, 5  ;;  %v8981_v26 = vrot.slane %v8722_v54, 5  ;;  %v8787_v4 = vshrl.u32 %v8720_v3, 16 }
 0x4e9   : > { %10412 = vmatprep.mubr.bf16.mxu1 %v11501_v23  ;;  %v8770_v11 = vrot.slane %v8769_v6, 4  ;;  %v8979_v63 = vsel %vm13451_vm11, %v11438_v49, %v8978_v45  ;;  %v8980_v15 = vrot.slane %v8978_v45, 4  ;;  %12483 = vmatmul.mubr.bf16.vlgmr.msra.gmra.mrb[172].mxu0 %v11509_v53  ;;  %v8790_v34 = vshll.u32 %v8720_v3, 16  ;;  %v9021_v53 = vld [vmem:[#allocation4 + $0x44] sm:$0x3] }
 0x4ea   : > { %v8785_v24 = vsel %vm13470_vm12, %v8780_v25, %v8784_v33  ;;  %v8796_v51 = vshll.u32 %v8721_v16, 16  ;;  %v8800_v2 = vshrl.u32 %v8721_v16, 16  ;;  %v8789_v36 = vrot.slane %v8787_v4, 4 }
 0x4eb   : > { %v8775_v22 = vsel %vm13470_vm12, %v8770_v11, %v8774_v39  ;;  %v8982_v5 = vsel %vm13451_vm11, %v8980_v15, %v8981_v26  ;;  %v8806_v46 = vshll.u32 %v8722_v54, 16  ;;  %v8792_v17 = vrot.slane %v8790_v34, 5 }
 0x4ec   : > { %v11493_v56 = vcombine.low %v8775_v22, %v8785_v24  ;;  %v11502_v40 = vcombine.low %v8979_v63, %v8982_v5  ;;  %v8798_v1 = vrot.slane %v8796_v51, 5  ;;  %v8802_v28 = vrot.slane %v8800_v2, 4 }
 0x4ed   : > { %v8808_v44 = vrot.slane %v8806_v46, 5  ;;  %v9073_v38 = vshrl.u32 %v8932_v37, 16  ;;  %v9076_v55 = vshll.u32 %v8932_v37, 16  ;;  %v8793_v0 = vor.u32 %v8792_v17, %v8789_v36 }
 0x4ee   : > { %10413 = vmatmul.mubr.bf16.gmra.mrb[188].mxu1 %v11493_v56  ;;  %v9081_v8 = vrot.slane %v8800_v2, 5  ;;  %v9082_v52 = vrot.slane %v8796_v51, 6  ;;  %v9087_v39 = vshrl.u32 %v9020_v29, 16  ;;  %v8803_v35 = vor.u32 %v8802_v28, %v8798_v1  ;;  %v8725_v2 = vld [vmem:[#allocation4 + $0x44] sm:$0x1] }
 0x4ef   : > { %10420 = vmatprep.mubr.bf16.mxu1 %v11502_v40  ;;  %v9075_v59 = vrot.slane %v9073_v38, 5  ;;  %v9078_v7 = vrot.slane %v9076_v55, 6  ;;  %v9090_v54 = vshll.u32 %v9020_v29, 16  ;;  %v8794_v31 = vrot.slane %v8793_v0, 4  ;;  %v8723_v29 = vld [vmem:[#allocation4 + $0x3c] sm:$0xf] }
 0x4f0   : > { %v9083_v20 = vor.u32 %v9082_v52, %v9081_v8  ;;  %v9089_v16 = vrot.slane %v9087_v39, 5  ;;  %v8820_v49 = vshll.u32 %v8724_v57, 16  ;;  %v8804_v3 = vrot.slane %v8803_v35, 4 }
 0x4f1   : > { %v9079_v30 = vor.u32 %v9078_v7, %v9075_v59  ;;  %v9092_v23 = vrot.slane %v9090_v54, 6  ;;  %v8824_v37 = vshrl.u32 %v8724_v57, 16  ;;  %v8799_v6 = vsel %vm13470_vm12, %v8794_v31, %v8798_v1  ;;  %v8728_v31 = vld [vmem:[#allocation4 + $0x50] sm:$0x1] }
 0x4f2   : > { %v9085_v45 = vrot.slane %v9083_v20, 4  ;;  %v9096_v25 = vshrl.u32 %v8933_v14, 16  ;;  %v9099_v33 = vshll.u32 %v8933_v14, 16  ;;  %v8809_v26 = vsel %vm13470_vm12, %v8804_v3, %v8808_v44 }
 0x4f3   : > { %v9080_v11 = vrot.slane %v9079_v30, 4  ;;  %v9093_v63 = vor.u32 %v9092_v23, %v9089_v16  ;;  %v9104_v15 = vrot.slane %v8824_v37, 5  ;;  %v11494_v4 = vcombine.low %v8799_v6, %v8809_v26  ;;  %v8726_v30 = vld [vmem:[#allocation4 + $0x48] sm:$0xf] }
 0x4f4   : > { %v9098_v24 = vrot.slane %v9096_v25, 5  ;;  %v9101_v34 = vrot.slane %v9099_v33, 6  ;;  %v9105_v51 = vrot.slane %v8820_v49, 6  ;;  %v9110_v36 = vshrl.u32 %v9021_v53, 16 }
 0x4f5   : > { %v9084_v22 = vsel %vm13492_vm13, %v9080_v11, %v9083_v20  ;;  %v9094_v5 = vsel %vm13492_vm13, %v9085_v45, %v9093_v63  ;;  %v9113_v46 = vshll.u32 %v9021_v53, 16  ;;  %v11439_v1 = vrot.slane %v8933_v14, 9  ;;  %v8934_v20 = vld [vmem:[#allocation4 + $0x48] sm:$0xe]  ;;  %v8727_v53 = vld [vmem:[#allocation4 + $0x4c] sm:$0xf] }
 0x4f6   : > { %10421 = vmatmul.mubr.bf16.gmra.mrb[192].mxu1 %v11494_v4  ;;  %v11510_v56 = vcombine.low %v9084_v22, %v9094_v5  ;;  %v9102_v40 = vor.u32 %v9101_v34, %v9098_v24  ;;  %v9106_v17 = vor.u32 %v9105_v51, %v9104_v15  ;;  %v9112_v28 = vrot.slane %v9110_v36, 5 }
 0x4f7   : > { %v9115_v44 = vrot.slane %v9113_v46, 6  ;;  %v8985_v38 = vrot.slane %v8724_v57, 5  ;;  %v8988_v55 = vrot.slane %v8725_v2, 5  ;;  %v8811_v52 = vshrl.u32 %v8723_v29, 16 }
 0x4f8   : > { %12486 = vmatprep.mubr.bf16.mxu0 %v11510_v56  ;;  %v9103_v0 = vrot.slane %v9102_v40, 4  ;;  %v9108_v8 = vrot.slane %v9106_v17, 4  ;;  %v8814_v39 = vshll.u32 %v8723_v29, 16  ;;  %v8822_v54 = vrot.slane %v8820_v49, 5 }
 0x4f9   : > { %v9116_v35 = vor.u32 %v9115_v44, %v9112_v28  ;;  %v8986_v59 = vsel %vm13451_vm11, %v11439_v1, %v8985_v38  ;;  %v8987_v7 = vrot.slane %v8985_v38, 4  ;;  %v8813_v16 = vrot.slane %v8811_v52, 4 }
 0x4fa   : > { %v9107_v14 = vsel %vm13492_vm13, %v9103_v0, %v9106_v17  ;;  %v8816_v3 = vrot.slane %v8814_v39, 5  ;;  %v8826_v57 = vrot.slane %v8824_v37, 4  ;;  %v8830_v45 = vshll.u32 %v8725_v2, 16 }
 0x4fb   : > { %v9117_v23 = vsel %vm13492_vm13, %v9108_v8, %v9116_v35  ;;  %v8989_v6 = vsel %vm13451_vm11, %v8987_v7, %v8988_v55  ;;  %v11440_v25 = vrot.slane %v8934_v20, 9  ;;  %v8992_v15 = vrot.slane %v8727_v53, 5  ;;  %v9022_v55 = vld [vmem:[#allocation4 + $0x50] sm:$0x3]  ;;  %v17401_v35 = vld [vmem:[#allocation4 + $0x58] sm:$0xf] }
 0x4fc   : > { %v11511_v33 = vcombine.low %v9107_v14, %v9117_v23  ;;  %v11503_v49 = vcombine.low %v8986_v59, %v8989_v6  ;;  %v8817_v26 = vor.u32 %v8816_v3, %v8813_v16  ;;  %v8827_v11 = vor.u32 %v8826_v57, %v8822_v54  ;;  %v8935_v23 = vld [vmem:[#allocation4 + $0x54] sm:$0xe] }
 0x4fd   : > { %v8832_v63 = vrot.slane %v8830_v45, 5  ;;  %v8995_v4 = vrot.slane %v8728_v31, 5  ;;  %v8835_v24 = vshrl.u32 %v8726_v30, 16  ;;  %v8838_v51 = vshll.u32 %v8726_v30, 16 }
 0x4fe   : > { %12487 = vmatmul.mubr.bf16.gmra.mrb[176].mxu0 %v11511_v33  ;;  %10428 = vmatprep.mubr.bf16.mxu1 %v11503_v49  ;;  %v8818_v37 = vrot.slane %v8817_v26, 4  ;;  %v8828_v34 = vrot.slane %v8827_v11, 4  ;;  %v8844_v22 = vshll.u32 %v8727_v53, 16  ;;  %v8993_v5 = vsel %vm13451_vm11, %v11440_v25, %v8992_v15  ;;  %v9023_v26 = vld [vmem:[#allocation4 + $0x5c] sm:$0x3] }
 0x4ff   : > { %v8994_v2 = vrot.slane %v8992_v15, 4  ;;  %v8837_v36 = vrot.slane %v8835_v24, 4  ;;  %v8848_v46 = vshrl.u32 %v8727_v53, 16  ;;  %v8840_v40 = vrot.slane %v8838_v51, 5 }
 0x500   : > { %v8823_v29 = vsel %vm13470_vm12, %v8818_v37, %v8822_v54  ;;  %v8833_v56 = vsel %vm13470_vm12, %v8828_v34, %v8832_v63  ;;  %v8846_v17 = vrot.slane %v8844_v22, 5  ;;  %v8854_v38 = vshll.u32 %v8728_v31, 16 }
 0x501   : > { %v11495_v1 = vcombine.low %v8823_v29, %v8833_v56  ;;  %v8996_v28 = vsel %vm13451_vm11, %v8994_v2, %v8995_v4  ;;  %v8850_v44 = vrot.slane %v8848_v46, 4  ;;  %v8841_v8 = vor.u32 %v8840_v40, %v8837_v36  ;;  %v8731_v56 = vld [vmem:[#allocation4 + $0x5c] sm:$0x1] }
 0x502   : > { %v11504_v0 = vcombine.low %v8993_v5, %v8996_v28  ;;  %v9119_v52 = vshrl.u32 %v8934_v20, 16  ;;  %v9122_v39 = vshll.u32 %v8934_v20, 16  ;;  %v8856_v7 = vrot.slane %v8854_v38, 5  ;;  %v8729_v38 = vld [vmem:[#allocation4 + $0x54] sm:$0xf] }
 0x503   : > { %10429 = vmatmul.mubr.bf16.gmra.mrb[196].mxu1 %v11495_v1  ;;  %v8851_v59 = vor.u32 %v8850_v44, %v8846_v17  ;;  %v9127_v54 = vrot.slane %v8848_v46, 5  ;;  %v9128_v14 = vrot.slane %v8844_v22, 6  ;;  %v8842_v16 = vrot.slane %v8841_v8, 4 }
 0x504   : > { %10436 = vmatprep.mubr.bf16.mxu1 %v11504_v0  ;;  %v9121_v3 = vrot.slane %v9119_v52, 5  ;;  %v9124_v57 = vrot.slane %v9122_v39, 6  ;;  %v9133_v30 = vshrl.u32 %v9022_v55, 16  ;;  %v9136_v45 = vshll.u32 %v9022_v55, 16 }
 0x505   : > { %v8852_v6 = vrot.slane %v8851_v59, 4  ;;  %v9129_v31 = vor.u32 %v9128_v14, %v9127_v54  ;;  %v8868_v53 = vshll.u32 %v17401_v35, 16  ;;  %v8847_v20 = vsel %vm13470_vm12, %v8842_v16, %v8846_v17 }
 0x506   : > { %v9125_v25 = vor.u32 %v9124_v57, %v9121_v3  ;;  %v9135_v33 = vrot.slane %v9133_v30, 5  ;;  %v8872_v49 = vshrl.u32 %v17401_v35, 16  ;;  %v9138_v15 = vrot.slane %v9136_v45, 6 }
 0x507   : > { %v8857_v11 = vsel %vm13470_vm12, %v8852_v6, %v8856_v7  ;;  %v9131_v63 = vrot.slane %v9129_v31, 4  ;;  %v9142_v4 = vshrl.u32 %v8935_v23, 16  ;;  %v17409_v24 = vpop.f32.mrb[120].mxu1  ;;  %v9145_v51 = vshll.u32 %v8935_v23, 16 }
 0x508   : > { %v11496_v37 = vcombine.low %v8847_v20, %v8857_v11  ;;  %v9126_v34 = vrot.slane %v9125_v25, 4  ;;  %v9150_v22 = vrot.slane %v8872_v49, 5  ;;  %v17411_v5 = vpop.f32.mrb[121].mxu1  ;;  %v9139_v2 = vor.u32 %v9138_v15, %v9135_v33  ;;  %v8734_v20 = vld [vmem:[#allocation4 + $0x68] sm:$0x1] }
 0x509   : > { %v9144_v36 = vrot.slane %v9142_v4, 5  ;;  %v9151_v46 = vrot.slane %v8868_v53, 6  ;;  %v9156_v29 = vshrl.u32 %v9023_v26, 16  ;;  %v17413_v40 = vpop.f32.mrb[122].mxu1  ;;  %v9147_v1 = vrot.slane %v9145_v51, 6 }
 0x50a   : > { %v9130_v17 = vsel %vm13492_vm13, %v9126_v34, %v9129_v31  ;;  %v9159_v28 = vshll.u32 %v9023_v26, 16  ;;  %v11441_v44 = vrot.slane %v8935_v23, 9  ;;  %v17417_v55 = vpop.f32.mrb[123].mxu1  ;;  %v9140_v0 = vsel %vm13492_vm13, %v9131_v63, %v9139_v2  ;;  %v8732_v11 = vld [vmem:[#allocation4 + $0x60] sm:$0xf] }
 0x50b   : > { %10437 = vmatmul.mubr.bf16.gmra.mrb[200].mxu1 %v11496_v37  ;;  %v9152_v8 = vor.u32 %v9151_v46, %v9150_v22  ;;  %v9158_v52 = vrot.slane %v9156_v29, 5  ;;  %v8999_v39 = vrot.slane %v17401_v35, 5  ;;  %v11512_v59 = vcombine.low %v9130_v17, %v9140_v0  ;;  %v8733_v51 = vld [vmem:[#allocation4 + $0x64] sm:$0xf] }
 0x50c   : > { %v9148_v7 = vor.u32 %v9147_v1, %v9144_v36  ;;  %v9161_v54 = vrot.slane %v9159_v28, 6  ;;  %v9002_v14 = vrot.slane %v8731_v56, 5  ;;  %v8859_v30 = vshrl.u32 %v8729_v38, 16 }
 0x50d   : > { %v9154_v16 = vrot.slane %v9152_v8, 4  ;;  %v9000_v3 = vsel %vm13451_vm11, %v11441_v44, %v8999_v39  ;;  %v9001_v57 = vrot.slane %v8999_v39, 4  ;;  %12490 = vmatprep.mubr.bf16.mxu0 %v11512_v59  ;;  %v8862_v31 = vshll.u32 %v8729_v38, 16 }
 0x50e   : > { %v9149_v23 = vrot.slane %v9148_v7, 4  ;;  %v9162_v6 = vor.u32 %v9161_v54, %v9158_v52  ;;  %v8870_v45 = vrot.slane %v8868_v53, 5  ;;  %v8861_v35 = vrot.slane %v8859_v30, 4  ;;  %v8936_v53 = vld [vmem:[#allocation4 + $0x60] sm:$0xe] }
 0x50f   : > { %v9003_v25 = vsel %vm13451_vm11, %v9001_v57, %v9002_v14  ;;  %v8874_v33 = vrot.slane %v8872_v49, 4  ;;  %v8878_v26 = vshll.u32 %v8731_v56, 16  ;;  %v17426_v63 = vpop.f32.mrb[124].mxu1  ;;  %v8864_v34 = vrot.slane %v8862_v31, 5  ;;  %v9024_v31 = vld [vmem:[#allocation4 + $0x68] sm:$0x3] }
 0x510   : > { %v9153_v15 = vsel %vm13492_vm13, %v9149_v23, %v9152_v8  ;;  %v9163_v4 = vsel %vm13492_vm13, %v9154_v16, %v9162_v6  ;;  %v11505_v37 = vcombine.low %v9000_v3, %v9003_v25  ;;  %v17432_v22 = vpop.f32.mrb[125].mxu1  ;;  %v11442_v49 = vrot.slane %v8936_v53, 9 }
 0x511   : > { %v11513_v2 = vcombine.low %v9153_v15, %v9163_v4  ;;  %v8875_v36 = vor.u32 %v8874_v33, %v8870_v45  ;;  %v8880_v46 = vrot.slane %v8878_v26, 5  ;;  %v17434_v29 = vpop.f32.mrb[126].mxu1  ;;  %v8865_v56 = vor.u32 %v8864_v34, %v8861_v35  ;;  %v17446_v15 = vld [vmem:[#allocation4 + $0x70] sm:$0xf]  ;;  %v8937_v4 = vld [vmem:[#allocation4 + $0x6c] sm:$0xe] }
 0x512   : > { %10444 = vmatprep.mubr.bf16.mxu1 %v11505_v37  ;;  %v9006_v17 = vrot.slane %v8733_v51, 5  ;;  %v9009_v1 = vrot.slane %v8734_v20, 5  ;;  %v8883_v28 = vshrl.u32 %v8732_v11, 16  ;;  %v17436_v44 = vpop.f32.mrb[127].mxu1  ;;  %v8886_v0 = vshll.u32 %v8732_v11, 16 }
 0x513   : > { %12491 = vmatmul.mubr.bf16.gmra.mrb[180].mxu0 %v11513_v2  ;;  %v8876_v38 = vrot.slane %v8875_v36, 4  ;;  %v8892_v8 = vshll.u32 %v8733_v51, 16  ;;  %v8896_v52 = vshrl.u32 %v8733_v51, 16  ;;  %v8866_v39 = vrot.slane %v8865_v56, 4 }
 0x514   : > { %v9007_v59 = vsel %vm13451_vm11, %v11442_v49, %v9006_v17  ;;  %v9008_v7 = vrot.slane %v9006_v17, 4  ;;  %v8885_v54 = vrot.slane %v8883_v28, 4  ;;  %v8888_v16 = vrot.slane %v8886_v0, 5 }
 0x515   : > { %v8881_v14 = vsel %vm13470_vm12, %v8876_v38, %v8880_v46  ;;  %v8894_v3 = vrot.slane %v8892_v8, 5  ;;  %v8898_v57 = vrot.slane %v8896_v52, 4  ;;  %v8871_v30 = vsel %vm13470_vm12, %v8866_v39, %v8870_v45 }
 0x516   : > { %v9010_v23 = vsel %vm13451_vm11, %v9008_v7, %v9009_v1  ;;  %v8902_v6 = vshll.u32 %v8734_v20, 16  ;;  %v9165_v25 = vshrl.u32 %v8936_v53, 16  ;;  %v11497_v35 = vcombine.low %v8871_v30, %v8881_v14  ;;  %v9025_v7 = vld [vmem:[#allocation4 + $0x74] sm:$0x3] }
 0x517   : > { %v11506_v33 = vcombine.low %v9007_v59, %v9010_v23  ;;  %v8889_v26 = vor.u32 %v8888_v16, %v8885_v54  ;;  %v8899_v11 = vor.u32 %v8898_v57, %v8894_v3  ;;  %v17448_v37 = vpop.f32.mrb[128].mxu1  ;;  %v9168_v2 = vshll.u32 %v8936_v53, 16 }
 0x518   : > { %v8904_v34 = vrot.slane %v8902_v6, 5  ;;  %v9167_v51 = vrot.slane %v9165_v25, 5  ;;  %v9173_v36 = vrot.slane %v8896_v52, 5  ;;  %v17450_v45 = vpop.f32.mrb[129].mxu1  ;;  %10445 = vmatmul.mubr.bf16.gmra.mrb[204].mxu1 %v11497_v35  ;;  %v9174_v49 = vrot.slane %v8892_v8, 6 }
 0x519   : > { %v8890_v46 = vrot.slane %v8889_v26, 4  ;;  %v8900_v20 = vrot.slane %v8899_v11, 4  ;;  %v9179_v56 = vshrl.u32 %v9024_v31, 16  ;;  %v17452_v17 = vpop.f32.mrb[130].mxu1  ;;  %10452 = vmatprep.mubr.bf16.mxu1 %v11506_v33  ;;  %v9170_v1 = vrot.slane %v9168_v2, 6 }
 0x51a   : > { %v9182_v28 = vshll.u32 %v9024_v31, 16  ;;  %v8916_v38 = vshll.u32 %v17446_v15, 16  ;;  %v8920_v0 = vshrl.u32 %v17446_v15, 16  ;;  %v17456_v39 = vpop.f32.mrb[131].mxu1  ;;  %v9175_v59 = vor.u32 %v9174_v49, %v9173_v36  ;;  %v8737_v11 = vld [vmem:[#allocation4 + $0x74] sm:$0x1] }
 0x51b   : > { %v8895_v53 = vsel %vm13470_vm12, %v8890_v46, %v8894_v3  ;;  %v8905_v52 = vsel %vm13470_vm12, %v8900_v20, %v8904_v34  ;;  %v9181_v8 = vrot.slane %v9179_v56, 5  ;;  %v9171_v14 = vor.u32 %v9170_v1, %v9167_v51  ;;  %v8735_v36 = vld [vmem:[#allocation4 + $0x6c] sm:$0xf] }
 0x51c   : > { %v11498_v54 = vcombine.low %v8895_v53, %v8905_v52  ;;  %v9184_v16 = vrot.slane %v9182_v28, 6  ;;  %v9188_v57 = vshrl.u32 %v8937_v4, 16  ;;  %v9177_v30 = vrot.slane %v9175_v59, 4 }
 0x51d   : > { %v9191_v23 = vshll.u32 %v8937_v4, 16  ;;  %v9196_v6 = vrot.slane %v8920_v0, 5  ;;  %v9197_v31 = vrot.slane %v8916_v38, 6  ;;  %v9172_v25 = vrot.slane %v9171_v14, 4 }
 0x51e   : > { %v9185_v35 = vor.u32 %v9184_v16, %v9181_v8  ;;  %v9190_v33 = vrot.slane %v9188_v57, 5  ;;  %v9202_v26 = vshrl.u32 %v9025_v7, 16  ;;  %v9205_v46 = vshll.u32 %v9025_v7, 16 }
 0x51f   : > { %v9193_v3 = vrot.slane %v9191_v23, 6  ;;  %v9198_v2 = vor.u32 %v9197_v31, %v9196_v6  ;;  %v11443_v34 = vrot.slane %v8937_v4, 9  ;;  %v12148_v20 = vpop.f32.mrb[132].mxu1  ;;  %v9176_v51 = vsel %vm13492_vm13, %v9172_v25, %v9175_v59  ;;  %v12949_v4 = vld [vmem:[%s17822_s9] sm:$0xff]  }
 0x520   : > { %v9186_v49 = vsel %vm13492_vm13, %v9177_v30, %v9185_v35  ;;  %v9204_v56 = vrot.slane %v9202_v26, 5  ;;  %v9013_v1 = vrot.slane %v17446_v15, 5  ;;  %v12149_v28 = vpop.f32.mrb[133].mxu1  ;;  %10453 = vmatmul.mubr.bf16.gmra.mrb[208].mxu1 %v11498_v54  ;;  %v9207_v14 = vrot.slane %v9205_v46, 6  ;;  %12498 = vmatprep.subr.bf16.mxu0 %v12949_v4 }
 0x521   : > { %v11514_v53 = vcombine.low %v9176_v51, %v9186_v49  ;;  %v9194_v52 = vor.u32 %v9193_v3, %v9190_v33  ;;  %v9200_v8 = vrot.slane %v9198_v2, 4  ;;  %v12151_v16 = vpop.f32.mrb[134].mxu1  ;;  %v9016_v57 = vrot.slane %v8737_v11, 5  ;;  %12499 = vmatpush3.bf16.msra.mxu0 %v12949_v4  ;;  %12530 = vmatprep.subr.bf16.mxu1 %v12949_v4 }
 0x522   : > { %v9014_v59 = vsel %vm13451_vm11, %v11443_v34, %v9013_v1  ;;  %v9015_v7 = vrot.slane %v9013_v1, 4  ;;  %v8907_v30 = vshrl.u32 %v8735_v36, 16  ;;  %v12152_v23 = vpop.f32.mrb[135].mxu1  ;;  %v9208_v6 = vor.u32 %v9207_v14, %v9204_v56  ;;  %12538 = vmatpush3.bf16.msra.mxu1 %v12949_v4 }
 0x523   : > { %12494 = vmatprep.mubr.bf16.mxu0 %v11514_v53  ;;  %v9195_v15 = vrot.slane %v9194_v52, 4  ;;  %v8910_v54 = vshll.u32 %v8735_v36, 16  ;;  %v8918_v31 = vrot.slane %v8916_v38, 5  ;;  %v8922_v33 = vrot.slane %v8920_v0, 4  ;;  %v12950_v0 = vld [vmem:[%s17822_s9 + $0x8] sm:$0xff]  }
 0x524   : > { %v9017_v25 = vsel %vm13451_vm11, %v9015_v7, %v9016_v57  ;;  %v8909_v35 = vrot.slane %v8907_v30, 4  ;;  %v8926_v26 = vshll.u32 %v8737_v11, 16  ;;  %v9209_v46 = vsel %vm13492_vm13, %v9200_v8, %v9208_v6  ;;  %12500 = vmatprep.subr.bf16.mxu0 %v12950_v0  ;;  %12531 = vmatprep.subr.bf16.mxu1 %v12950_v0 }
 0x525   : > { %v9199_v3 = vsel %vm13492_vm13, %v9195_v15, %v9198_v2  ;;  %v11507_v34 = vcombine.low %v9014_v59, %v9017_v25  ;;  %v8912_v51 = vrot.slane %v8910_v54, 5  ;;  %v8923_v38 = vor.u32 %v8922_v33, %v8918_v31  ;;  %12501 = vmatpush3.bf16.msra.mxu0 %v12950_v0  ;;  %v12953_v54 = vld [vmem:[%s17822_s9 + $0x20] sm:$0xff]  }
 0x526   : > { %v11515_v36 = vcombine.low %v9199_v3, %v9209_v46  ;;  %v8928_v49 = vrot.slane %v8926_v26, 5  ;;  %v17480_v12 = vadd.f32 %v17411_v5, %v17409_v24  ;;  %v17487_v61 = vadd.f32 %v17417_v55, %v17413_v40  ;;  %12539 = vmatpush3.bf16.msra.mxu1 %v12950_v0  ;;  %v17537_v26 = vld [vmem:[%s17824_s11] ss:$0 sm:$0xff] }
 0x527   : > { %10460 = vmatprep.mubr.bf16.mxu1 %v11507_v34  ;;  %v8913_v11 = vor.u32 %v8912_v51, %v8909_v35  ;;  %v17491_v2 = vadd.f32 %v17432_v22, %v17426_v63  ;;  %v17495_v56 = vadd.f32 %v17436_v44, %v17434_v29  ;;  %v12154_v24 = vpop.f32.mrb[136].mxu1  ;;  %v8924_v5 = vrot.slane %v8923_v38, 4 }
 0x528   : > { %12495 = vmatmul.mubr.bf16.gmra.mrb[184].mxu0 %v11515_v36  ;;  %v17499_v1 = vadd.f32 %v17450_v45, %v17448_v37  ;;  %v17503_v53 = vadd.f32 %v17456_v39, %v17452_v17  ;;  %v12155_v40 = vpop.f32.mrb[137].mxu1  ;;  %v17507_v29 = vadd.f32 %v12149_v28, %v12148_v20  ;;  %v17511_v45 = vadd.f32 %v12152_v23, %v12151_v16  ;;  %v12951_v20 = vld [vmem:[%s17822_s9 + $0x10] sm:$0xff]   ;;  %v12952_v16 = vld [vmem:[%s17822_s9 + $0x18] sm:$0xff]   ;;  %v12954_v36 = vld [vmem:[%s17822_s9 + $0x28] sm:$0xff]  }
 0x529   : > { %v8914_v55 = vrot.slane %v8913_v11, 4  ;;  %v12157_v63 = vpop.f32.mrb[138].mxu1  ;;  %v8929_v22 = vsel %vm13470_vm12, %v8924_v5, %v8928_v49  ;;  %v17513_v17 = vadd.f32 %v12155_v40, %v12154_v24  ;;  %12502 = vmatprep.subr.bf16.mxu0 %v12951_v20  ;;  %12532 = vmatprep.subr.bf16.mxu1 %v12951_v20 }
 0x52a   : > { %v12158_v44 = vpop.f32.mrb[139].mxu1  ;;  %12503 = vmatpush3.bf16.msra.mxu0 %v12951_v20  ;;  %12540 = vmatpush3.bf16.msra.mxu1 %v12951_v20  ;;  %v12955_v20 = vld [vmem:[%s17822_s9 + $0x30] sm:$0xff]  }
 0x52b   : > { %v8919_v37 = vsel %vm13470_vm12, %v8914_v55, %v8918_v31  ;;  %v17515_v39 = vadd.f32 %v12158_v44, %v12157_v63  ;;  %12504 = vmatprep.subr.bf16.mxu0 %v12952_v16  ;;  %12533 = vmatprep.subr.bf16.mxu1 %v12952_v16  ;;  %v10116_v63 = vadd.f32 %v17480_v12, %v17537_v26 }
 0x52c   : > { %v11499_v52 = vcombine.low %v8919_v37, %v8929_v22 }
 0x52e   : > { %10461 = vmatmul.mubr.bf16.gmra.mrb[212].mxu1 %v11499_v52  ;;  %12505 = vmatpush3.bf16.msra.mxu0 %v12952_v16  ;;  %v10119_v52 = vadd.f32 %v17487_v61, %v17537_v26 }
 0x52f   : > { %v12160_v8 = vpop.f32.mrb[140].mxu1  ;;  %12541 = vmatpush3.bf16.msra.mxu1 %v12952_v16  ;;  %12506 = vmatprep.subr.bf16.mxu0 %v12953_v54 }
 0x530   : > { %v12161_v14 = vpop.f32.mrb[141].mxu1  ;;  %12534 = vmatprep.subr.bf16.mxu1 %v12953_v54 }
 0x531   : > { %v17520_v28 = vadd.f32 %v12161_v14, %v12160_v8  ;;  %v12163_v4 = vpop.f32.mrb[142].mxu1 }
 0x532   : > { %v12164_v59 = vpop.f32.mrb[143].mxu1  ;;  %12507 = vmatpush3.bf16.msra.mxu0 %v12953_v54 }
 0x533   : > { %v17522_v42 = vadd.f32 %v12164_v59, %v12163_v4  ;;  %12542 = vmatpush3.bf16.msra.mxu1 %v12953_v54  ;;  %12508 = vmatprep.subr.bf16.mxu0 %v12954_v36  ;;  %v12956_v4 = vld [vmem:[%s17822_s9 + $0x38] sm:$0xff]  }
 0x534   : > { %12535 = vmatprep.subr.bf16.mxu1 %v12954_v36 }
 0x536   : > { %12509 = vmatpush3.bf16.msra.mxu0 %v12954_v36 }
 0x537   : > { %v12166_v7 = vpop.f32.mrb[144].mxu1  ;;  %12543 = vmatpush3.bf16.msra.mxu1 %v12954_v36  ;;  %12510 = vmatprep.subr.bf16.mxu0 %v12955_v20 }
 0x538   : > { %v12167_v57 = vpop.f32.mrb[145].mxu1  ;;  %12536 = vmatprep.subr.bf16.mxu1 %v12955_v20 }
 0x539   : > { %v17527_v30 = vadd.f32 %v12167_v57, %v12166_v7  ;;  %v12169_v23 = vpop.f32.mrb[146].mxu1  ;;  %v10124_v57 = vadd.f32 %v17491_v2, %v17537_v26 }
 0x53a   : > { %v12170_v15 = vpop.f32.mrb[147].mxu1  ;;  %12511 = vmatpush3.bf16.msra.mxu0 %v12955_v20 }
 0x53b   : > { %v17529_v6 = vadd.f32 %v12170_v15, %v12169_v23  ;;  %12544 = vmatpush3.bf16.msra.mxu1 %v12955_v20  ;;  %12512 = vmatprep.subr.bf16.mxu0 %v12956_v4 }
 0x53c   : > { %12537 = vmatprep.subr.bf16.mxu1 %v12956_v4 }
 0x53e   : > { %12513 = vmatpush3.bf16.msra.mxu0 %v12956_v4 }
 0x53f   : > { %v12172_v31 = vpop.f32.mrb[148].mxu1  ;;  %v12258_v51 = vpop.f32.mrb[140].mxu0  ;;  %12545 = vmatpush3.bf16.msra.mxu1 %v12956_v4 }
 0x540   : > { %v12173_v25 = vpop.f32.mrb[149].mxu1  ;;  %v12259_v38 = vpop.f32.mrb[141].mxu0 }
 0x541   : > { %v12174_v35 = vadd.f32 %v12173_v25, %v12172_v31  ;;  %v12175_v33 = vpop.f32.mrb[150].mxu1  ;;  %v12260_v0 = vadd.f32 %v12259_v38, %v12258_v51  ;;  %v12261_v11 = vpop.f32.mrb[142].mxu0  ;;  %v10127_v25 = vadd.f32 %v17495_v56, %v17537_v26 }
 0x542   : > { %v12176_v3 = vpop.f32.mrb[151].mxu1  ;;  %v12262_v24 = vpop.f32.mrb[143].mxu0 }
 0x543   : > { %v17540_v46 = vadd.f32 %v12174_v35, %v17537_v26  ;;  %v12177_v34 = vadd.f32 %v12176_v3, %v12175_v33  ;;  %v12263_v40 = vadd.f32 %v12262_v24, %v12261_v11 }
 0x545   : > { %v17546_v49 = vadd.f32 %v12177_v34, %v17537_v26 }
 0x547   : > { %v12194_v5 = vpop.f32.mrb[152].mxu1 }
 0x548   : > { %v12195_v55 = vpop.f32.mrb[153].mxu1 }
 0x549   : > { %v12196_v22 = vadd.f32 %v12195_v55, %v12194_v5  ;;  %v12197_v44 = vpop.f32.mrb[154].mxu1 }
 0x54a   : > { %v12198_v37 = vpop.f32.mrb[155].mxu1 }
 0x54b   : > { %v10213_v8 = vadd.f32 %v12196_v22, %v10116_v63  ;;  %v12199_v14 = vadd.f32 %v12198_v37, %v12197_v44  ;;  %v10135_v22 = vadd.f32 %v17503_v53, %v17537_v26 }
 0x54d   : > { %v10216_v59 = vadd.f32 %v12199_v14, %v10119_v52  ;;  %v17558_v16 = vadd.f32 %v12260_v0, %v10213_v8 }
 0x54f   : > { %v17560_v12 = vadd.f32 %v12263_v40, %v10216_v59  ;;  %v12200_v61 = vpop.f32.mrb[156].mxu1  ;;  %v12264_v54 = vpop.f32.mrb[144].mxu0  ;;  %v10132_v40 = vadd.f32 %v17499_v1, %v17537_v26 }
 0x550   : > { %v12201_v7 = vpop.f32.mrb[157].mxu1  ;;  %v12265_v3 = vpop.f32.mrb[145].mxu0 }
 0x551   : > { %v12202_v23 = vadd.f32 %v12201_v7, %v12200_v61  ;;  %v12203_v15 = vpop.f32.mrb[158].mxu1  ;;  %v12266_v34 = vadd.f32 %v12265_v3, %v12264_v54  ;;  %v12267_v51 = vpop.f32.mrb[146].mxu0 }
 0x552   : > { %v12204_v31 = vpop.f32.mrb[159].mxu1  ;;  %v12268_v38 = vpop.f32.mrb[147].mxu0 }
 0x553   : > { %v10221_v35 = vadd.f32 %v12202_v23, %v10124_v57  ;;  %v12205_v33 = vadd.f32 %v12204_v31, %v12203_v15  ;;  %v12269_v11 = vadd.f32 %v12268_v38, %v12267_v51  ;;  %v10140_v15 = vadd.f32 %v17507_v29, %v17537_v26 }
 0x555   : > { %v10224_v36 = vadd.f32 %v12205_v33, %v10127_v25  ;;  %v17566_v0 = vadd.f32 %v12266_v34, %v10221_v35  ;;  %v10143_v25 = vadd.f32 %v17511_v45, %v17537_v26 }
 0x557   : > { %v17568_v2 = vadd.f32 %v12269_v11, %v10224_v36 }
 0x55a   : > { %v12206_v24 = vpop.f32.mrb[160].mxu1 }
 0x55b   : > { %v12207_v5 = vpop.f32.mrb[161].mxu1 }
 0x55c   : > { %v12208_v55 = vadd.f32 %v12207_v5, %v12206_v24  ;;  %v12209_v63 = vpop.f32.mrb[162].mxu1 }
 0x55d   : > { %v12210_v56 = vpop.f32.mrb[163].mxu1 }
 0x55e   : > { %v10229_v44 = vadd.f32 %v12208_v55, %v10132_v40  ;;  %v12211_v37 = vadd.f32 %v12210_v56, %v12209_v63  ;;  %v12270_v52 = vpop.f32.mrb[148].mxu0  ;;  %v10148_v63 = vadd.f32 %v17513_v17, %v17537_v26 }
 0x55f   : > { %v12271_v14 = vpop.f32.mrb[149].mxu0 }
 0x560   : > { %v10232_v8 = vadd.f32 %v12211_v37, %v10135_v22  ;;  %v12272_v20 = vadd.f32 %v12271_v14, %v12270_v52  ;;  %v12273_v4 = vpop.f32.mrb[150].mxu0 }
 0x561   : > { %v12274_v59 = vpop.f32.mrb[151].mxu0 }
 0x562   : > { %v17574_v61 = vadd.f32 %v12272_v20, %v10229_v44  ;;  %v12275_v7 = vadd.f32 %v12274_v59, %v12273_v4  ;;  %v10151_v44 = vadd.f32 %v17515_v39, %v17537_v26 }
 0x564   : > { %v17576_v57 = vadd.f32 %v12275_v7, %v10232_v8 }
 0x568   : > { %v12212_v1 = vpop.f32.mrb[164].mxu1 }
 0x569   : > { %v12213_v23 = vpop.f32.mrb[165].mxu1 }
 0x56a   : > { %v12214_v54 = vadd.f32 %v12213_v23, %v12212_v1  ;;  %v12215_v53 = vpop.f32.mrb[166].mxu1 }
 0x56b   : > { %v12216_v31 = vpop.f32.mrb[167].mxu1 }
 0x56c   : > { %v10237_v35 = vadd.f32 %v12214_v54, %v10140_v15  ;;  %v12217_v33 = vadd.f32 %v12216_v31, %v12215_v53  ;;  %v10156_v53 = vadd.f32 %v17520_v28, %v17537_v26 }
 0x56d   : > { %v12276_v3 = vpop.f32.mrb[152].mxu0 }
 0x56e   : > { %v10240_v34 = vadd.f32 %v12217_v33, %v10143_v25  ;;  %v12277_v51 = vpop.f32.mrb[153].mxu0 }
 0x56f   : > { %v12278_v36 = vadd.f32 %v12277_v51, %v12276_v3  ;;  %v12279_v38 = vpop.f32.mrb[154].mxu0 }
 0x570   : > { %v12280_v11 = vpop.f32.mrb[155].mxu0 }
 0x571   : > { %v17582_v24 = vadd.f32 %v12278_v36, %v10237_v35  ;;  %v12281_v5 = vadd.f32 %v12280_v11, %v12279_v38  ;;  %v10159_v35 = vadd.f32 %v17522_v42, %v17537_v26 }
 0x573   : > { %v17584_v40 = vadd.f32 %v12281_v5, %v10240_v34 }
 0x577   : > { %v12218_v29 = vpop.f32.mrb[168].mxu1 }
 0x578   : > { %v12219_v55 = vpop.f32.mrb[169].mxu1 }
 0x579   : > { %v12220_v56 = vadd.f32 %v12219_v55, %v12218_v29  ;;  %v12221_v45 = vpop.f32.mrb[170].mxu1 }
 0x57a   : > { %v12222_v22 = vpop.f32.mrb[171].mxu1 }
 0x57b   : > { %v10245_v37 = vadd.f32 %v12220_v56, %v10148_v63  ;;  %v12223_v52 = vadd.f32 %v12222_v22, %v12221_v45  ;;  %v10164_v45 = vadd.f32 %v17527_v30, %v17537_v26 }
 0x57d   : > { %v12282_v8 = vpop.f32.mrb[156].mxu0  ;;  %v10248_v14 = vadd.f32 %v12223_v52, %v10151_v44 }
 0x57e   : > { %v12283_v20 = vpop.f32.mrb[157].mxu0 }
 0x57f   : > { %v12284_v4 = vadd.f32 %v12283_v20, %v12282_v8  ;;  %v12285_v59 = vpop.f32.mrb[158].mxu0 }
 0x580   : > { %v12286_v7 = vpop.f32.mrb[159].mxu0 }
 0x581   : > { %v17590_v1 = vadd.f32 %v12284_v4, %v10245_v37  ;;  %v12287_v23 = vadd.f32 %v12286_v7, %v12285_v59  ;;  %v10167_v37 = vadd.f32 %v17529_v6, %v17537_v26 }
 0x583   : > { %v17592_v15 = vadd.f32 %v12287_v23, %v10248_v14 }
 0x587   : > { %v12224_v17 = vpop.f32.mrb[172].mxu1 }
 0x588   : > { %v12225_v54 = vpop.f32.mrb[173].mxu1 }
 0x589   : > { %v12226_v31 = vadd.f32 %v12225_v54, %v12224_v17  ;;  %v12227_v39 = vpop.f32.mrb[174].mxu1 }
 0x58a   : > { %v12228_v25 = vpop.f32.mrb[175].mxu1 }
 0x58b   : > { %v10253_v33 = vadd.f32 %v12226_v31, %v10156_v53  ;;  %v12229_v3 = vadd.f32 %v12228_v25, %v12227_v39 }
 0x58c   : > { %v12288_v34 = vpop.f32.mrb[160].mxu0 }
 0x58d   : > { %v10256_v51 = vadd.f32 %v12229_v3, %v10159_v35  ;;  %v12289_v36 = vpop.f32.mrb[161].mxu0 }
 0x58e   : > { %v12290_v38 = vadd.f32 %v12289_v36, %v12288_v34  ;;  %v12291_v11 = vpop.f32.mrb[162].mxu0 }
 0x58f   : > { %v12292_v5 = vpop.f32.mrb[163].mxu0 }
 0x590   : > { %v17598_v29 = vadd.f32 %v12290_v38, %v10253_v33  ;;  %v12293_v55 = vadd.f32 %v12292_v5, %v12291_v11 }
 0x592   : > { %v17600_v63 = vadd.f32 %v12293_v55, %v10256_v51 }
 0x596   : > { %v12230_v28 = vpop.f32.mrb[176].mxu1 }
 0x597   : > { %v12231_v56 = vpop.f32.mrb[177].mxu1 }
 0x598   : > { %v12232_v22 = vadd.f32 %v12231_v56, %v12230_v28  ;;  %v12233_v42 = vpop.f32.mrb[178].mxu1 }
 0x599   : > { %v12234_v44 = vpop.f32.mrb[179].mxu1 }
 0x59a   : > { %v10261_v52 = vadd.f32 %v12232_v22, %v10164_v45  ;;  %v12235_v8 = vadd.f32 %v12234_v44, %v12233_v42 }
 0x59c   : > { %v12294_v14 = vpop.f32.mrb[164].mxu0  ;;  %v10264_v20 = vadd.f32 %v12235_v8, %v10167_v37 }
 0x59d   : > { %v12295_v4 = vpop.f32.mrb[165].mxu0 }
 0x59e   : > { %v12296_v59 = vadd.f32 %v12295_v4, %v12294_v14  ;;  %v12297_v7 = vpop.f32.mrb[166].mxu0 }
 0x59f   : > { %v12298_v23 = vpop.f32.mrb[167].mxu0 }
 0x5a0   : > { %v17606_v17 = vadd.f32 %v12296_v59, %v10261_v52  ;;  %v12299_v54 = vadd.f32 %v12298_v23, %v12297_v7 }
 0x5a2   : > { %v17608_v53 = vadd.f32 %v12299_v54, %v10264_v20 }
 0x5a6   : > { %v12236_v30 = vpop.f32.mrb[180].mxu1 }
 0x5a7   : > { %v12237_v31 = vpop.f32.mrb[181].mxu1 }
 0x5a8   : > { %v12238_v39 = vadd.f32 %v12237_v31, %v12236_v30  ;;  %v12239_v25 = vpop.f32.mrb[182].mxu1 }
 0x5a9   : > { %v12240_v35 = vpop.f32.mrb[183].mxu1 }
 0x5aa   : > { %v10269_v6 = vadd.f32 %v12238_v39, %v17540_v46  ;;  %v12241_v26 = vadd.f32 %v12240_v35, %v12239_v25 }
 0x5ab   : > { %v12300_v33 = vpop.f32.mrb[168].mxu0 }
 0x5ac   : > { %v10272_v3 = vadd.f32 %v12241_v26, %v17546_v49  ;;  %v12301_v34 = vpop.f32.mrb[169].mxu0 }
 0x5ad   : > { %v12302_v51 = vadd.f32 %v12301_v34, %v12300_v33  ;;  %v12303_v36 = vpop.f32.mrb[170].mxu0 }
 0x5ae   : > { %v12304_v38 = vpop.f32.mrb[171].mxu0 }
 0x5af   : > { %v17612_v11 = vadd.f32 %v12302_v51, %v10269_v6  ;;  %v12305_v5 = vadd.f32 %v12304_v38, %v12303_v36 }
 0x5b1   : > { %v17614_v55 = vadd.f32 %v12305_v5, %v10272_v3 }
 0x5b5   : > { %v12322_v28 = vpop.f32.mrb[184].mxu1 }
 0x5b6   : > { %v12323_v56 = vpop.f32.mrb[185].mxu1 }
 0x5b7   : > { %v12324_v45 = vadd.f32 %v12323_v56, %v12322_v28  ;;  %v12325_v22 = vpop.f32.mrb[186].mxu1 }
 0x5b8   : > { %v12326_v42 = vpop.f32.mrb[187].mxu1 }
 0x5b9   : > { %v12327_v44 = vadd.f32 %v12326_v42, %v12325_v22  ;;  %v10407_v46 = vadd.f32 %v12324_v45, %v17558_v16 }
 0x5bb   : > { %v10410_v37 = vadd.f32 %v12327_v44, %v17560_v12 }
 0x5bc   : > { %v12484_v49 = vpop.f32.mrb[172].mxu0 }
 0x5bd   : > { %v10503_v52 = vpop.f32.mrb[173].mxu0 }
 0x5be   : > { %v17618_v8 = vadd.f32 %v10503_v52, %v10407_v46  ;;  %v12485_v14 = vpop.f32.mrb[174].mxu0 }
 0x5bf   : > { %v10506_v20 = vpop.f32.mrb[175].mxu0 }
 0x5c0   : > { %v17620_v4 = vadd.f32 %v10506_v20, %v10410_v37 }
 0x5c1   : > { %v12328_v59 = vpop.f32.mrb[188].mxu1 }
 0x5c2   : > { %v12329_v7 = vpop.f32.mrb[189].mxu1  ;;  %v10566_v23 = vpack.c.bf16 %v17620_v4, %v17618_v8 }
 0x5c3   : > { %v12330_v54 = vadd.f32 %v12329_v7, %v12328_v59  ;;  %v12331_v30 = vpop.f32.mrb[190].mxu1 }
 0x5c4   : > { %v12332_v31 = vpop.f32.mrb[191].mxu1  ;;  %12514 = vmatprep.mubr.bf16.mxu0 %v10566_v23 }
 0x5c5   : > { %v10415_v16 = vadd.f32 %v12330_v54, %v17566_v0  ;;  %v12333_v39 = vadd.f32 %v12332_v31, %v12331_v30 }
 0x5c7   : > { %v17625_v12 = vadd.f32 %v12484_v49, %v10415_v16  ;;  %v10418_v25 = vadd.f32 %v12333_v39, %v17568_v2 }
 0x5c9   : > { %v17628_v35 = vadd.f32 %v12485_v14, %v10418_v25  ;;  %v12334_v6 = vpop.f32.mrb[192].mxu1 }
 0x5ca   : > { %v12335_v26 = vpop.f32.mrb[193].mxu1 }
 0x5cb   : > { %v10567_v33 = vpack.c.bf16 %v17628_v35, %v17625_v12  ;;  %v12336_v3 = vadd.f32 %v12335_v26, %v12334_v6  ;;  %v12337_v34 = vpop.f32.mrb[194].mxu1 }
 0x5cc   : > { %v12338_v51 = vpop.f32.mrb[195].mxu1 }
 0x5cd   : > { %v12339_v36 = vadd.f32 %v12338_v51, %v12337_v34  ;;  %12515 = vmatmul.mubr.bf16.vlgmr.msra.gmra.mrb[188].mxu0 %v10567_v33  ;;  %v10423_v0 = vadd.f32 %v12336_v3, %v17574_v61 }
 0x5cf   : > { %v10426_v38 = vadd.f32 %v12339_v36, %v17576_v57 }
 0x5d1   : > { %v12488_v5 = vpop.f32.mrb[176].mxu0 }
 0x5d2   : > { %v10519_v28 = vpop.f32.mrb[177].mxu0 }
 0x5d3   : > { %v17634_v56 = vadd.f32 %v10519_v28, %v10423_v0  ;;  %v12489_v2 = vpop.f32.mrb[178].mxu0 }
 0x5d4   : > { %v10522_v45 = vpop.f32.mrb[179].mxu0 }
 0x5d5   : > { %v17636_v22 = vadd.f32 %v10522_v45, %v10426_v38 }
 0x5d6   : > { %v12340_v42 = vpop.f32.mrb[196].mxu1 }
 0x5d7   : > { %v10568_v44 = vpack.c.bf16 %v17636_v22, %v17634_v56  ;;  %v12341_v46 = vpop.f32.mrb[197].mxu1 }
 0x5d8   : > { %v12342_v37 = vadd.f32 %v12341_v46, %v12340_v42  ;;  %v12343_v49 = vpop.f32.mrb[198].mxu1 }
 0x5d9   : > { %v12344_v52 = vpop.f32.mrb[199].mxu1  ;;  %12518 = vmatprep.mubr.bf16.mxu0 %v10568_v44 }
 0x5da   : > { %v10431_v61 = vadd.f32 %v12342_v37, %v17582_v24  ;;  %v12345_v57 = vadd.f32 %v12344_v52, %v12343_v49 }
 0x5dc   : > { %v17641_v14 = vadd.f32 %v12488_v5, %v10431_v61  ;;  %v10434_v20 = vadd.f32 %v12345_v57, %v17584_v40 }
 0x5de   : > { %v17644_v59 = vadd.f32 %v12489_v2, %v10434_v20  ;;  %v12346_v7 = vpop.f32.mrb[200].mxu1 }
 0x5df   : > { %v12347_v23 = vpop.f32.mrb[201].mxu1 }
 0x5e0   : > { %v12348_v54 = vadd.f32 %v12347_v23, %v12346_v7  ;;  %v12349_v30 = vpop.f32.mrb[202].mxu1  ;;  %v10569_v31 = vpack.c.bf16 %v17644_v59, %v17641_v14 }
 0x5e1   : > { %v12350_v16 = vpop.f32.mrb[203].mxu1 }
 0x5e2   : > { %v12351_v39 = vadd.f32 %v12350_v16, %v12349_v30  ;;  %12519 = vmatmul.mubr.bf16.gmra.mrb[192].mxu0 %v10569_v31  ;;  %v10439_v25 = vadd.f32 %v12348_v54, %v17590_v1 }
 0x5e4   : > { %v10442_v24 = vadd.f32 %v12351_v39, %v17592_v15 }
 0x5e6   : > { %v12492_v6 = vpop.f32.mrb[180].mxu0 }
 0x5e7   : > { %v10535_v26 = vpop.f32.mrb[181].mxu0 }
 0x5e8   : > { %v17650_v33 = vadd.f32 %v10535_v26, %v10439_v25  ;;  %v12493_v40 = vpop.f32.mrb[182].mxu0 }
 0x5e9   : > { %v10538_v3 = vpop.f32.mrb[183].mxu0 }
 0x5ea   : > { %v17652_v34 = vadd.f32 %v10538_v3, %v10442_v24 }
 0x5eb   : > { %v12352_v36 = vpop.f32.mrb[204].mxu1 }
 0x5ec   : > { %v10570_v51 = vpack.c.bf16 %v17652_v34, %v17650_v33  ;;  %v12353_v0 = vpop.f32.mrb[205].mxu1 }
 0x5ed   : > { %v12354_v38 = vadd.f32 %v12353_v0, %v12352_v36  ;;  %v12355_v5 = vpop.f32.mrb[206].mxu1  ;;  %v17683_v0 = vld [vmem:[%s17825_s12] ss:$0 sm:$0xff] }
 0x5ee   : > { %12522 = vmatprep.mubr.bf16.mxu0 %v10570_v51  ;;  %v12356_v28 = vpop.f32.mrb[207].mxu1 }
 0x5ef   : > { %v10447_v1 = vadd.f32 %v12354_v38, %v17598_v29  ;;  %v12357_v15 = vadd.f32 %v12356_v28, %v12355_v5 }
 0x5f1   : > { %v17657_v2 = vadd.f32 %v12492_v6, %v10447_v1  ;;  %v10450_v45 = vadd.f32 %v12357_v15, %v17600_v63 }
 0x5f3   : > { %v17660_v42 = vadd.f32 %v12493_v40, %v10450_v45  ;;  %v12358_v44 = vpop.f32.mrb[208].mxu1 }
 0x5f4   : > { %v12359_v46 = vpop.f32.mrb[209].mxu1 }
 0x5f5   : > { %v12360_v37 = vadd.f32 %v12359_v46, %v12358_v44  ;;  %v12361_v49 = vpop.f32.mrb[210].mxu1  ;;  %v10571_v52 = vpack.c.bf16 %v17660_v42, %v17657_v2 }
 0x5f6   : > { %v12362_v61 = vpop.f32.mrb[211].mxu1 }
 0x5f7   : > { %v12363_v57 = vadd.f32 %v12362_v61, %v12361_v49  ;;  %12523 = vmatmul.mubr.bf16.gmra.mrb[196].mxu0 %v10571_v52  ;;  %v10455_v20 = vadd.f32 %v12360_v37, %v17606_v17 }
 0x5f9   : > { %v10458_v29 = vadd.f32 %v12363_v57, %v17608_v53 }
 0x5fb   : > { %v12496_v7 = vpop.f32.mrb[184].mxu0 }
 0x5fc   : > { %v10551_v23 = vpop.f32.mrb[185].mxu0 }
 0x5fd   : > { %v17666_v54 = vadd.f32 %v10551_v23, %v10455_v20  ;;  %v12497_v63 = vpop.f32.mrb[186].mxu0 }
 0x5fe   : > { %v10554_v30 = vpop.f32.mrb[187].mxu0 }
 0x5ff   : > { %v17668_v31 = vadd.f32 %v10554_v30, %v10458_v29 }
 0x601   : > { %v10572_v16 = vpack.c.bf16 %v17668_v31, %v17666_v54  ;;  %v12364_v39 = vpop.f32.mrb[212].mxu1 }
 0x602   : > { %v12365_v25 = vpop.f32.mrb[213].mxu1 }
 0x603   : > { %v12366_v24 = vadd.f32 %v12365_v25, %v12364_v39  ;;  %v12367_v6 = vpop.f32.mrb[214].mxu1  ;;  %12526 = vmatprep.mubr.bf16.mxu1 %v10572_v16 }
 0x604   : > { %v12368_v26 = vpop.f32.mrb[215].mxu1 }
 0x605   : > { %v10463_v17 = vadd.f32 %v12366_v24, %v17612_v11  ;;  %v12369_v53 = vadd.f32 %v12368_v26, %v12367_v6 }
 0x607   : > { %v17673_v40 = vadd.f32 %v12496_v7, %v10463_v17  ;;  %v10466_v3 = vadd.f32 %v12369_v53, %v17614_v55 }
 0x609   : > { %v17676_v51 = vadd.f32 %v12497_v63, %v10466_v3 }
 0x60b   : > { %v10573_v36 = vpack.c.bf16 %v17676_v51, %v17673_v40 }
 0x60d   : > { %12527 = vmatmul.mubr.bf16.vlgmr.msra.gmra.mrb[216].mxu1 %v10573_v36 }
 0x6a0   : > { %v12516_v38 = vpop.f32.mrb[188].mxu0 }
 0x6a1   : > { %v10688_v5 = vadd.f32 %v12516_v38, %v17683_v0  ;;  %v10679_v11 = vpop.f32.mrb[189].mxu0 }
 0x6a2   : > { %v10680_v28 = vadd.f32 %v17683_v0, %v10679_v11  ;;  %v12517_v1 = vpop.f32.mrb[190].mxu0 }
 0x6a3   : > { %v10744_v55 = vadd.f32 %v10688_v5, %v16582_v60  ;;  %v10691_v15 = vadd.f32 %v12517_v1, %v17683_v0  ;;  %v10682_v45 = vpop.f32.mrb[191].mxu0 }
 0x6a4   : > { %v10742_v44 = vadd.f32 %v10680_v28, %v16564_v21  ;;  %v10683_v46 = vadd.f32 %v17683_v0, %v10682_v45 }
 0x6a5   : > { %v10760_v37 = vadd.f32 %v10744_v55, %v17625_v12  ;;  %v10745_v49 = vadd.f32 %v10691_v15, %v16595_v18 }
 0x6a6   : > { %v10758_v52 = vadd.f32 %v10742_v44, %v17618_v8  ;;  %v10743_v61 = vadd.f32 %v10683_v46, %v16571_v27 }
 0x6a7   : > { %v10776_v57 = vmax.f32 %v10760_v37, 0.0  ;;  %v10761_v60 = vadd.f32 %v10745_v49, %v17628_v35 }
 0x6a8   : > { %v10774_v20 = vmax.f32 %v10758_v52, 0.0  ;;  %v10759_v29 = vadd.f32 %v10743_v61, %v17620_v4 }
 0x6a9   : > { %10792 = vst [vmem:[%s16670_s14 + $0x10] sm:$0xff] %v10776_v57  ;;  %v10777_v7 = vmax.f32 %v10761_v60, 0.0 }
 0x6aa   : > { %10790 = vst [vmem:[%s16670_s14] sm:$0xff] %v10774_v20  ;;  %v10775_v21 = vmax.f32 %v10759_v29, 0.0 }
 0x6ab   : > { %10793 = vst [vmem:[%s16670_s14 + $0x18] sm:$0xff] %v10777_v7 }
 0x6ac   : > { %10791 = vst [vmem:[%s16670_s14 + $0x8] sm:$0xff] %v10775_v21 }
 0x6b5   : > { %v12520_v23 = vpop.f32.mrb[192].mxu0 }
 0x6b6   : > { %v10704_v12 = vadd.f32 %v12520_v23, %v17683_v0  ;;  %v10695_v18 = vpop.f32.mrb[193].mxu0 }
 0x6b7   : > { %v10696_v8 = vadd.f32 %v17683_v0, %v10695_v18  ;;  %v12521_v27 = vpop.f32.mrb[194].mxu0 }
 0x6b8   : > { %v10748_v35 = vadd.f32 %v10704_v12, %v16606_v58  ;;  %v10707_v63 = vadd.f32 %v12521_v27, %v17683_v0  ;;  %v10698_v4 = vpop.f32.mrb[195].mxu0 }
 0x6b9   : > { %v10746_v30 = vadd.f32 %v10696_v8, %v16578_v43  ;;  %v10699_v16 = vadd.f32 %v17683_v0, %v10698_v4 }
 0x6ba   : > { %v10764_v39 = vadd.f32 %v10748_v35, %v17641_v14  ;;  %v10749_v25 = vadd.f32 %v10707_v63, %v16619_v50 }
 0x6bb   : > { %v10762_v24 = vadd.f32 %v10746_v30, %v17634_v56  ;;  %v10747_v6 = vadd.f32 %v10699_v16, %v16589_v10 }
 0x6bc   : > { %v10780_v26 = vmax.f32 %v10764_v39, 0.0  ;;  %v10765_v58 = vadd.f32 %v10749_v25, %v17644_v59 }
 0x6bd   : > { %v10778_v17 = vmax.f32 %v10762_v24, 0.0  ;;  %v10763_v53 = vadd.f32 %v10747_v6, %v17636_v22 }
 0x6be   : > { %10796 = vst [vmem:[%s16670_s14 + $0x30] sm:$0xff] %v10780_v26  ;;  %v10781_v3 = vmax.f32 %v10765_v58, 0.0 }
 0x6bf   : > { %10794 = vst [vmem:[%s16670_s14 + $0x20] sm:$0xff] %v10778_v17  ;;  %v10779_v43 = vmax.f32 %v10763_v53, 0.0 }
 0x6c0   : > { %10797 = vst [vmem:[%s16670_s14 + $0x38] sm:$0xff] %v10781_v3 }
 0x6c1   : > { %10795 = vst [vmem:[%s16670_s14 + $0x28] sm:$0xff] %v10779_v43 }
 0x6ca   : > { %v12524_v36 = vpop.f32.mrb[196].mxu0 }
 0x6cb   : > { %v10720_v14 = vadd.f32 %v12524_v36, %v17683_v0  ;;  %v10711_v50 = vpop.f32.mrb[197].mxu0 }
 0x6cc   : > { %v10712_v56 = vadd.f32 %v17683_v0, %v10711_v50  ;;  %v12525_v10 = vpop.f32.mrb[198].mxu0 }
 0x6cd   : > { %v10752_v59 = vadd.f32 %v10720_v14, %v16630_v41  ;;  %v10723_v38 = vadd.f32 %v12525_v10, %v17683_v0  ;;  %v10714_v22 = vpop.f32.mrb[199].mxu0 }
 0x6ce   : > { %v10750_v5 = vadd.f32 %v10712_v56, %v16602_v32  ;;  %v10715_v11 = vadd.f32 %v17683_v0, %v10714_v22 }
 0x6cf   : > { %v10768_v28 = vadd.f32 %v10752_v59, %v17657_v2  ;;  %v10753_v1 = vadd.f32 %v10723_v38, %v16643_v19 }
 0x6d0   : > { %v10766_v55 = vadd.f32 %v10750_v5, %v17650_v33  ;;  %v10751_v15 = vadd.f32 %v10715_v11, %v16613_v47 }
 0x6d1   : > { %v10784_v41 = vmax.f32 %v10768_v28, 0.0  ;;  %v10769_v45 = vadd.f32 %v10753_v1, %v17660_v42 }
 0x6d2   : > { %v10782_v44 = vmax.f32 %v10766_v55, 0.0  ;;  %v10767_v46 = vadd.f32 %v10751_v15, %v17652_v34 }
 0x6d3   : > { %10800 = vst [vmem:[%s16670_s14 + $0x50] sm:$0xff] %v10784_v41  ;;  %v10785_v32 = vmax.f32 %v10769_v45, 0.0 }
 0x6d4   : > { %10798 = vst [vmem:[%s16670_s14 + $0x40] sm:$0xff] %v10782_v44  ;;  %v10783_v37 = vmax.f32 %v10767_v46, 0.0 }
 0x6d5   : > { %10801 = vst [vmem:[%s16670_s14 + $0x58] sm:$0xff] %v10785_v32 }
 0x6d6   : > { %10799 = vst [vmem:[%s16670_s14 + $0x48] sm:$0xff] %v10783_v37 }
 0x6e0   : > { %v12528_v2 = vpop.f32.mrb[216].mxu1 }
 0x6e1   : > { %v10736_v19 = vadd.f32 %v12528_v2, %v17683_v0  ;;  %v10727_v33 = vpop.f32.mrb[217].mxu1 }
 0x6e2   : > { %v10728_v47 = vadd.f32 %v17683_v0, %v10727_v33  ;;  %v12529_v49 = vpop.f32.mrb[218].mxu1 }
 0x6e3   : > { %v10756_v42 = vadd.f32 %v10736_v19, %v16652_v48  ;;  %v10739_v34 = vadd.f32 %v12529_v49, %v17683_v0  ;;  %v10730_v52 = vpop.f32.mrb[219].mxu1 }
 0x6e4   : > { %v10754_v61 = vadd.f32 %v10728_v47, %v16626_v9  ;;  %v10731_v57 = vadd.f32 %v17683_v0, %v10730_v52 }
 0x6e5   : > { %v10772_v60 = vadd.f32 %v10756_v42, %v17673_v40  ;;  %v10757_v20 = vadd.f32 %v10739_v34, %v16662_v13 }
 0x6e6   : > { %v10770_v29 = vadd.f32 %v10754_v61, %v17666_v54  ;;  %v10755_v48 = vadd.f32 %v10731_v57, %v16637_v62 }
 0x6e7   : > { %v10788_v7 = vmax.f32 %v10772_v60, 0.0  ;;  %v10773_v9 = vadd.f32 %v10757_v20, %v17676_v51 }
 0x6e8   : > { %v10786_v21 = vmax.f32 %v10770_v29, 0.0  ;;  %v10771_v0 = vadd.f32 %v10755_v48, %v17668_v31 }
 0x6e9   : > { %10804 = vst [vmem:[%s16670_s14 + $0x70] sm:$0xff] %v10788_v7  ;;  %v10789_v40 = vmax.f32 %v10773_v9, 0.0 }
 0x6ea   : > { %10802 = vst [vmem:[%s16670_s14 + $0x60] sm:$0xff] %v10786_v21  ;;  %v10787_v62 = vmax.f32 %v10771_v0, 0.0 }
 0x6eb   : > { %10805 = vst [vmem:[%s16670_s14 + $0x78] sm:$0xff] %v10789_v40 }
 0x6ec   : > { %10803 = vst [vmem:[%s16670_s14 + $0x68] sm:$0xff] %v10787_v62 }
 0x6ed   : > { %12975 = shalt.err (!%p12972_p11)
}
 0x6ee   : > { %s12976_s14 = scalar_lea.hbm %s17752_s16, 2048  ;;  %s12980_s28 = scalar_lea.hbm %s18582_s22, 8192 }
 0x6ef   : > { %p12977_p12 = scmp.ne.s32.totalorder %s17752_s16, %s12976_s14  ;;  %p12981_p1 = scmp.lt.u32.totalorder %s17752_s16, %s18582_s22 }
 0x6f0   : > { %p12982_p2 = scmp.lt.u32.totalorder %s12980_s28, %s12976_s14  ;;  %p12984_p5 = scmp.lt.u32.totalorder %s12976_s14, %s17752_s16 }
 0x6f1   : > { %p12978_p13 = pnand %p12977_p12, %p13186_p3 }
 0x6f2   : > { %p12983_p4 = por %p12982_p2, %p12981_p1 }
 0x6f3   : > { %p12979_p0 = pneg %p12978_p13 }
 0x6f4   : > { %p12985_p6 = por %p12984_p5, %p12983_p4 }
 0x6f6   : > { %p12986_p7 = pnand %p12985_p6, %p12979_p0 }
 0x6f8   : > { %12989 = shalt.err (!%p12986_p7)
}
 0x6f9   : > { %s13063_s15 = smov 128   ;;  %s13064_s26 = smov 8  }
 0x6fa   : > { %12626 = dma.vmem_to_hbm [thread:$0]  (%p13186_p3), %s17754_s13, 2048, %s17752_s16, %s17761_s27, %s13063_s15, %s13063_s15, %s13064_s26  }
 0x6fb PF: > { %s18584_s17 = sld [smem:[#allocation13_spill]]  ;;  %s18585_s30 = sld [smem:[#allocation8_spill]] }
 0x701   : > { %p12632_p9 = scmp.ge.s32.totalorder %s18584_s17, 2  ;;  %s10838_s23 = sand.u32 1, %s18585_s30  }
 0x702   : > { %s10839_s20 = scalar_lea.sflag [#allocation6], %s10838_s23 }
 0x703   : > { %p12629_p10 = pnand %p12632_p9, %p13195_p8 }
 0x705   : > { %13023 = dma.done.wait (!%p12629_p10), %s10839_s20, 2048  }
 0x706   : > { %13025 = vsyncadd (!%p12629_p10), %s10839_s20, 4294965248  ;;  %s26_s15 = sadd.s32 1, %s18584_s17   ;;  %s18587_s25 = sld [smem:[#allocation9_spill]] }
 0x707   : > { %p23_p11 = scmp.ge.s32.totalorder %s26_s15, 6   ;;  %s18588_s26 = sld [smem:[#allocation10_spill]] }
 0x708   : > { %s18589_s27 = sld [smem:[#allocation18_spill]]  ;;  %s18590_s28 = sld [smem:[#allocation11_spill]] }
 0x709   : > { %s18591_s29 = sld [smem:[#allocation12_spill]]  ;;  %s18592_s30 = sld [smem:[#allocation14_spill]] }
 0x70a   : > { %s18593_s14 = sld [smem:[#allocation16_spill]]  ;;  %25 = sbr.rel (!%p23_p11) target bundleno = 7 (0x7), region = 139 }
 0x711   :  { %10844 = vsyncpa [#allocation6], 1 }
 0x712   :  { %10846 = vsyncpa [#allocation6 + $0x1], 1 }

</bundles_post_ra>
